<compile_context>
chip_gen: v7x
topology: tpu7x:2x2x1
jax: 0.10.0
libtpu: 0.0.40
codegen_flags: <defaults>
</compile_context>

<pallas_src>
import jax
import jax.numpy as jnp
from jax.experimental import pallas as pl
from jax.experimental.pallas import tpu as pltpu

N = 100              # forward hard-codes x.view(100, -1)
D_IN = 10            # input feature dim used in the demo
NP = 128             # padded point count (sublane/lane aligned)
HIDDEN = 512
N_COMPONENTS = 10
KP = 128             # padded fc input width
OP = 128             # padded fc output width
TI = 16              # i-rows per grid step in the geometry kernel
TM = 32              # rows per grid step in the MLP kernel
RADIUS = 1.2
REG = 1e-3           # megaman barycenter_graph default regularization

_NT = (((1,), (1,)), ((), ()))   # contract dim 1 of both operands  (A @ B^T, no relayout)
_TN = (((0,), (0,)), ((), ()))   # contract dim 0 of both operands  (A^T @ B, no relayout)
_NN = (((1,), (0,)), ((), ()))   # plain matmul


# ---- kernel 1: fused pairwise distances + radius mask + barycenter systems ----
def geom_kernel(xf_ref, xb_ref, csys_ref, mask_ref):
    i0 = pl.program_id(0) * TI
    xf = xf_ref[...]                                           # (NP, DP)  all points
    xb = xb_ref[...]                                           # (TI, DP)  this block's rows

    # Gram matrices straight on the MXU (NT contraction, no transposes).
    G = jax.lax.dot_general(xf, xf, _NT, preferred_element_type=jnp.float32)   # (NP, NP)
    Gi = jax.lax.dot_general(xb, xf, _NT, preferred_element_type=jnp.float32)  # (TI, NP)

    jj = jax.lax.broadcasted_iota(jnp.int32, (NP, NP), 0)
    kk = jax.lax.broadcasted_iota(jnp.int32, (NP, NP), 1)
    eye = (jj == kk).astype(jnp.float32)                       # (NP, NP)

    xsq_row = jnp.sum(G * eye, axis=0, keepdims=True)          # (1, NP)  diag(G) = ||x_j||^2
    xsq_blk = jnp.sum(xb * xb, axis=1, keepdims=True)          # (TI, 1)  ||x_i||^2 for block rows

    # squared distances for block rows (no sqrt; compare against radius^2 directly)
    d2 = xsq_blk + xsq_row - 2.0 * Gi                          # (TI, NP)

    rows = i0 + jax.lax.broadcasted_iota(jnp.int32, (TI, NP), 0)
    cols = jax.lax.broadcasted_iota(jnp.int32, (TI, NP), 1)
    valid = (rows < N) & (cols < N) & (rows != cols)           # exclude padding + self
    m = (valid & (d2 <= RADIUS * RADIUS)).astype(jnp.float32)  # (TI, NP) neighbor mask

    # trace(C_i) = sum_j ||x_j - x_i||^2 * m[i,j]
    trace = jnp.sum(d2 * m, axis=1, keepdims=True)             # (TI, 1)
    R = jnp.where(trace > 0.0, REG * trace, REG)               # (TI, 1)
    diag_add = (1.0 - m) + R                                   # (TI, NP)

    # C[i,j,k] = (G[j,k] - G[i,j] - G[i,k] + G[i,i]) * m[i,j] * m[i,k]
    C = ((G[None, :, :] - Gi[:, :, None] - Gi[:, None, :] + xsq_blk[:, :, None])
         * m[:, :, None] * m[:, None, :])                      # (TI, NP, NP)
    csys_ref[...] = C + diag_add[:, :, None] * eye[None, :, :]
    mask_ref[...] = m


def geometry_csys(x):
    """x: (N, D) float32 -> (Csys (N,N,N), mask (N,N))."""
    n, d = x.shape
    assert n == N
    dp = ((d + 127) // 128) * 128                              # lane-pad the feature dim
    x_pad = jnp.zeros((NP, dp), jnp.float32).at[:n, :d].set(x)

    csys, mask = pl.pallas_call(
        geom_kernel,
        out_shape=(jax.ShapeDtypeStruct((NP, NP, NP), jnp.float32),
                   jax.ShapeDtypeStruct((NP, NP), jnp.float32)),
        grid=(NP // TI,),
        in_specs=[pl.BlockSpec((NP, dp), lambda i: (0, 0)),    # all points, resident
                  pl.BlockSpec((TI, dp), lambda i: (i, 0))],   # this block's rows
        out_specs=(pl.BlockSpec((TI, NP, NP), lambda i: (i, 0, 0)),
                   pl.BlockSpec((TI, NP), lambda i: (i, 0))),
        compiler_params=pltpu.CompilerParams(dimension_semantics=("parallel",)),
    )(x_pad, x_pad)
    # slice the padded slabs back before the plain-JAX solve
    return csys[:n, :n, :n], mask[:n, :n]


# ---------------- kernel 2: M = (I - W)^T (I - W) ----------------
def gram_kernel(a_ref, o_ref):
    a = a_ref[...]
    o_ref[...] = jax.lax.dot_general(a, a, _TN, preferred_element_type=jnp.float32)


def gram(a):
    npad = a.shape[0]
    return pl.pallas_call(
        gram_kernel,
        out_shape=jax.ShapeDtypeStruct((npad, npad), jnp.float32),
        grid=(1,),
        in_specs=[pl.BlockSpec((npad, npad), lambda i: (0, 0))],
        out_specs=pl.BlockSpec((npad, npad), lambda i: (0, 0)),
    )(a)


# ---------------- kernel 3: fused MLP (row-tiled, bf16 MXU operands) ----------------
def mlp_kernel(x_ref, w1_ref, b1_ref, w2_ref, b2_ref, o_ref):
    x = x_ref[...].astype(jnp.bfloat16)                        # downcast at the MXU boundary
    h = jax.lax.dot_general(x, w1_ref[...], _NN, preferred_element_type=jnp.float32)
    h = jnp.maximum(h + b1_ref[...], 0.0)                      # f32 bias-add + ReLU (v5e-safe)
    # Dropout(0.2): identity at inference time (eval semantics).
    o = jax.lax.dot_general(h.astype(jnp.bfloat16), w2_ref[...], _NN,
                            preferred_element_type=jnp.float32)
    o_ref[...] = o + b2_ref[...]


def mlp(embed, w1, b1, w2, b2):
    n, k = embed.shape
    hdim = w1.shape[1]
    o = w2.shape[1]
    x_pad = jnp.zeros((NP, KP), jnp.float32).at[:n, :k].set(embed)
    w1_pad = jnp.zeros((KP, hdim), jnp.float32).at[:k, :].set(w1).astype(jnp.bfloat16)
    w2_pad = jnp.zeros((hdim, OP), jnp.float32).at[:, :o].set(w2).astype(jnp.bfloat16)
    b2_pad = jnp.zeros((1, OP), jnp.float32).at[:, :o].set(b2)

    out = pl.pallas_call(
        mlp_kernel,
        out_shape=jax.ShapeDtypeStruct((NP, OP), jnp.float32),
        grid=(NP // TM,),
        in_specs=[pl.BlockSpec((TM, KP), lambda m_: (m_, 0)),
                  pl.BlockSpec((KP, hdim), lambda m_: (0, 0)),
                  pl.BlockSpec((1, hdim), lambda m_: (0, 0)),
                  pl.BlockSpec((hdim, OP), lambda m_: (0, 0)),
                  pl.BlockSpec((1, OP), lambda m_: (0, 0))],
        out_specs=pl.BlockSpec((TM, OP), lambda m_: (m_, 0)),
        compiler_params=pltpu.CompilerParams(dimension_semantics=("parallel",)),
    )(x_pad, w1_pad, b1, w2_pad, b2_pad)
    return out[:n, :o]


# ---------------- full forward ----------------
def mega_lle_forward(x, params):
    x = x.reshape(N, -1).astype(jnp.float32)                   # x.view(100, -1)

    # --- Geometry + barycenter systems (fused Pallas kernel) ---
    csys, mask = geometry_csys(x)                              # (N,N,N), (N,N)

    # --- barycenter weights: solve (Z Z^T + reg*tr*I) w = 1 per point ---
    # TODO(synk): batched dense linear solve has no Pallas primitive; plain JAX.
    # TODO(synk): a neighbor-restricted (k-NN) solve would cut the dominant O(N^4) cost;
    #             kept dense to preserve the module's dense-LLE semantics.
    w = jnp.linalg.solve(csys, mask[..., None])[..., 0]        # (N, N)
    w = w * mask
    s = jnp.sum(w, axis=1, keepdims=True)
    w = w / jnp.where(s == 0.0, 1.0, s)

    # --- null space of M = (I - W)^T (I - W), skip the trivial constant vector ---
    A = jnp.eye(N, dtype=jnp.float32) - w
    A_pad = jnp.zeros((NP, NP), jnp.float32).at[:N, :N].set(A)  # zero padded rows -> exact M
    M = gram(A_pad)[:N, :N]
    # TODO(synk): dense symmetric eigendecomposition has no Pallas equivalent; plain JAX.
    _, vecs = jnp.linalg.eigh(M)
    embed = vecs[:, 1:N_COMPONENTS + 1].astype(jnp.float32)    # (100, 10)

    # --- fc head (fused, row-tiled Pallas MLP) ---
    w1, b1, w2, b2 = params
    return mlp(embed, w1, b1, w2, b2)                          # (100, 10)


if __name__ == "__main__":
    key = jax.random.PRNGKey(0)
    kx, k1, k2, k3, k4 = jax.random.split(key, 5)

    # input: 100 points in 10-D, scaled so radius-1.2 neighborhoods are non-empty
    x = jax.random.normal(kx, (N, D_IN), jnp.float32) * 0.25

    # deterministic fc parameters (shapes from nn.Linear(10,512) / nn.Linear(512,10))
    w1 = jax.random.normal(k1, (N_COMPONENTS, HIDDEN), jnp.float32) * (1.0 / jnp.sqrt(N_COMPONENTS))
    b1 = jax.random.normal(k2, (1, HIDDEN), jnp.float32) * 0.01
    w2 = jax.random.normal(k3, (HIDDEN, N_COMPONENTS), jnp.float32) * (1.0 / jnp.sqrt(HIDDEN))
    b2 = jax.random.normal(k4, (1, N_COMPONENTS), jnp.float32) * 0.01
    params = (w1, b1, w2, b2)

    out = mega_lle_forward(x, params)
    out = jax.block_until_ready(out)
    assert out.shape == (N, N_COMPONENTS) and out.dtype == jnp.float32
    assert bool(jnp.all(jnp.isfinite(out)))
    print("KERNEL_OK")
</pallas_src>

<mosaic_0001>
module attributes {stable_mosaic.version = 11 : i64} {
  func.func @geom_kernel(%arg0: i32, %arg1: memref<128x128xf32, #tpu.memory_space<vmem>>, %arg2: memref<16x128xf32, #tpu.memory_space<vmem>>, %arg3: memref<16x128x128xf32, #tpu.memory_space<vmem>>, %arg4: memref<16x128xf32, #tpu.memory_space<vmem>>) attributes {dimension_semantics = [#tpu.dimension_semantics<parallel>], iteration_bounds = array<i64: 8>, scalar_prefetch = 0 : i64, scratch_operands = 0 : i64, tpu.core_type = #tpu.core_type<tc>, window_params = [{pipeline_mode = #tpu.pipeline_mode<synchronous>, transform_indices = @transform_0, window_bounds = array<i64: 128, 128>}, {transform_indices = @transform_1, window_bounds = array<i64: 16, 128>}, {transform_indices = @transform_2, window_bounds = array<i64: 16, 128, 128>}, {transform_indices = @transform_3, window_bounds = array<i64: 16, 128>}]} {
    %c16_i32 = arith.constant 16 : i32
    %0 = arith.muli %arg0, %c16_i32 : i32
    %c0 = arith.constant 0 : index
    %c0_0 = arith.constant 0 : index
    %1 = vector.load %arg1[%c0, %c0_0] : memref<128x128xf32, #tpu.memory_space<vmem>>, vector<128x128xf32>
    %c0_1 = arith.constant 0 : index
    %c0_2 = arith.constant 0 : index
    %2 = vector.load %arg2[%c0_1, %c0_2] : memref<16x128xf32, #tpu.memory_space<vmem>>, vector<16x128xf32>
    %cst = arith.constant dense<0.000000e+00> : vector<128x128xf32>
    %3 = tpu.matmul %1, %1, %cst {dimension_numbers = #tpu.dot_dimension_numbers<[1], [1], [0], [0], [0, 0, 1, 0], [], []>} : vector<128x128xf32>, vector<128x128xf32>, vector<128x128xf32> -> vector<128x128xf32>
    %cst_3 = arith.constant dense<0.000000e+00> : vector<16x128xf32>
    %4 = tpu.matmul %2, %1, %cst_3 {dimension_numbers = #tpu.dot_dimension_numbers<[1], [1], [0], [0], [0, 0, 1, 0], [], []>} : vector<16x128xf32>, vector<128x128xf32>, vector<16x128xf32> -> vector<16x128xf32>
    %5 = tpu.iota {dimensions = array<i32: 0>} : vector<128x128xi32>
    %6 = tpu.iota {dimensions = array<i32: 1>} : vector<128x128xi32>
    %7 = arith.cmpi eq, %5, %6 : vector<128x128xi32>
    %8 = arith.extui %7 : vector<128x128xi1> to vector<128x128xi32>
    %9 = arith.sitofp %8 : vector<128x128xi32> to vector<128x128xf32>
    %10 = arith.mulf %3, %9 : vector<128x128xf32>
    %cst_4 = arith.constant dense<0.000000e+00> : vector<128xf32>
    %11 = vector.multi_reduction <add>, %10, %cst_4 [0] : vector<128x128xf32> to vector<128xf32>
    %12 = vector.shape_cast %11 : vector<128xf32> to vector<1x128xf32>
    %13 = arith.mulf %2, %2 : vector<16x128xf32>
    %cst_5 = arith.constant dense<0.000000e+00> : vector<16xf32>
    %14 = vector.multi_reduction <add>, %13, %cst_5 [1] : vector<16x128xf32> to vector<16xf32>
    %15 = vector.shape_cast %14 : vector<16xf32> to vector<16x1xf32>
    %16 = vector.broadcast %15 : vector<16x1xf32> to vector<16x128xf32>
    %17 = vector.broadcast %12 : vector<1x128xf32> to vector<16x128xf32>
    %18 = arith.addf %16, %17 : vector<16x128xf32>
    %cst_6 = arith.constant 2.000000e+00 : f32
    %19 = vector.broadcast %cst_6 : f32 to vector<16x128xf32>
    %20 = arith.mulf %19, %4 : vector<16x128xf32>
    %21 = arith.subf %18, %20 : vector<16x128xf32>
    %22 = tpu.iota {dimensions = array<i32: 0>} : vector<16x128xi32>
    %23 = vector.broadcast %0 : i32 to vector<16x128xi32>
    %24 = arith.addi %23, %22 : vector<16x128xi32>
    %25 = tpu.iota {dimensions = array<i32: 1>} : vector<16x128xi32>
    %c100_i32 = arith.constant 100 : i32
    %26 = vector.broadcast %c100_i32 : i32 to vector<16x128xi32>
    %27 = arith.cmpi slt, %24, %26 : vector<16x128xi32>
    %c100_i32_7 = arith.constant 100 : i32
    %28 = vector.broadcast %c100_i32_7 : i32 to vector<16x128xi32>
    %29 = arith.cmpi slt, %25, %28 : vector<16x128xi32>
    %30 = arith.andi %27, %29 : vector<16x128xi1>
    %31 = arith.cmpi ne, %24, %25 : vector<16x128xi32>
    %32 = arith.andi %30, %31 : vector<16x128xi1>
    %cst_8 = arith.constant 1.440000e+00 : f32
    %33 = vector.broadcast %cst_8 : f32 to vector<16x128xf32>
    %34 = arith.cmpf ole, %21, %33 : vector<16x128xf32>
    %35 = arith.andi %32, %34 : vector<16x128xi1>
    %36 = arith.extui %35 : vector<16x128xi1> to vector<16x128xi32>
    %37 = arith.sitofp %36 : vector<16x128xi32> to vector<16x128xf32>
    %38 = arith.mulf %21, %37 : vector<16x128xf32>
    %cst_9 = arith.constant dense<0.000000e+00> : vector<16xf32>
    %39 = vector.multi_reduction <add>, %38, %cst_9 [1] : vector<16x128xf32> to vector<16xf32>
    %40 = vector.shape_cast %39 : vector<16xf32> to vector<16x1xf32>
    %cst_10 = arith.constant 0.000000e+00 : f32
    %41 = vector.broadcast %cst_10 : f32 to vector<16x1xf32>
    %42 = arith.cmpf ogt, %40, %41 : vector<16x1xf32>
    %cst_11 = arith.constant 1.000000e-03 : f32
    %43 = vector.broadcast %cst_11 : f32 to vector<16x1xf32>
    %44 = arith.mulf %43, %40 : vector<16x1xf32>
    %cst_12 = arith.constant 1.000000e-03 : f32
    %45 = vector.broadcast %cst_12 : f32 to vector<16x1xf32>
    %46 = arith.select %42, %44, %45 : vector<16x1xi1>, vector<16x1xf32>
    %cst_13 = arith.constant 1.000000e+00 : f32
    %47 = vector.broadcast %cst_13 : f32 to vector<16x128xf32>
    %48 = arith.subf %47, %37 : vector<16x128xf32>
    %49 = vector.broadcast %46 : vector<16x1xf32> to vector<16x128xf32>
    %50 = arith.addf %48, %49 : vector<16x128xf32>
    %51 = vector.shape_cast %3 : vector<128x128xf32> to vector<1x128x128xf32>
    %52 = vector.shape_cast %4 : vector<16x128xf32> to vector<16x128x1xf32>
    %53 = vector.broadcast %51 : vector<1x128x128xf32> to vector<16x128x128xf32>
    %54 = vector.broadcast %52 : vector<16x128x1xf32> to vector<16x128x128xf32>
    %55 = arith.subf %53, %54 : vector<16x128x128xf32>
    %56 = vector.shape_cast %4 : vector<16x128xf32> to vector<16x1x128xf32>
    %57 = vector.broadcast %56 : vector<16x1x128xf32> to vector<16x128x128xf32>
    %58 = arith.subf %55, %57 : vector<16x128x128xf32>
    %59 = vector.shape_cast %15 : vector<16x1xf32> to vector<16x1x1xf32>
    %60 = vector.broadcast %59 : vector<16x1x1xf32> to vector<16x128x128xf32>
    %61 = arith.addf %58, %60 : vector<16x128x128xf32>
    %62 = vector.shape_cast %37 : vector<16x128xf32> to vector<16x128x1xf32>
    %63 = vector.broadcast %62 : vector<16x128x1xf32> to vector<16x128x128xf32>
    %64 = arith.mulf %61, %63 : vector<16x128x128xf32>
    %65 = vector.shape_cast %37 : vector<16x128xf32> to vector<16x1x128xf32>
    %66 = vector.broadcast %65 : vector<16x1x128xf32> to vector<16x128x128xf32>
    %67 = arith.mulf %64, %66 : vector<16x128x128xf32>
    %68 = vector.shape_cast %50 : vector<16x128xf32> to vector<16x128x1xf32>
    %69 = vector.shape_cast %9 : vector<128x128xf32> to vector<1x128x128xf32>
    %70 = vector.broadcast %68 : vector<16x128x1xf32> to vector<16x128x128xf32>
    %71 = vector.broadcast %69 : vector<1x128x128xf32> to vector<16x128x128xf32>
    %72 = arith.mulf %70, %71 : vector<16x128x128xf32>
    %73 = arith.addf %67, %72 : vector<16x128x128xf32>
    %c0_14 = arith.constant 0 : index
    %c0_15 = arith.constant 0 : index
    %c0_16 = arith.constant 0 : index
    %74 = vector.load %arg3[%c0_14, %c0_15, %c0_16] : memref<16x128x128xf32, #tpu.memory_space<vmem>>, vector<16x128x128xf32>
    tpu.vector_store %arg3[%c0_14, %c0_15, %c0_16], %73 {strides = array<i32>} : memref<16x128x128xf32, #tpu.memory_space<vmem>>, vector<16x128x128xf32>,
    %c0_17 = arith.constant 0 : index
    %c0_18 = arith.constant 0 : index
    %75 = vector.load %arg4[%c0_17, %c0_18] : memref<16x128xf32, #tpu.memory_space<vmem>>, vector<16x128xf32>
    tpu.vector_store %arg4[%c0_17, %c0_18], %37 {strides = array<i32>} : memref<16x128xf32, #tpu.memory_space<vmem>>, vector<16x128xf32>,
    return
  }
  func.func @transform_0(%arg0: i32) -> (i32, i32) {
    %c0_i32 = arith.constant 0 : i32
    %c0_i32_0 = arith.constant 0 : i32
    %c0_i32_1 = arith.constant 0 : i32
    return %c0_i32, %c0_i32_0 : i32, i32
  }
  func.func @transform_1(%arg0: i32) -> (i32, i32) {
    %c0_i32 = arith.constant 0 : i32
    %c0_i32_0 = arith.constant 0 : i32
    return %arg0, %c0_i32 : i32, i32
  }
  func.func @transform_2(%arg0: i32) -> (i32, i32, i32) {
    %c0_i32 = arith.constant 0 : i32
    %c0_i32_0 = arith.constant 0 : i32
    %c0_i32_1 = arith.constant 0 : i32
    return %arg0, %c0_i32, %c0_i32_0 : i32, i32, i32
  }
  func.func @transform_3(%arg0: i32) -> (i32, i32) {
    %c0_i32 = arith.constant 0 : i32
    %c0_i32_0 = arith.constant 0 : i32
    return %arg0, %c0_i32 : i32, i32
  }
}

</mosaic_0001>

<bundles_post_ra>
// kernel: tpu_custom_call.1
= control target key start
LH: loop header
LB: loop body
LE: loop exit
PB: predicated region body
PF: predicated region fallthrough
CT: control target
= control target key end

     0   :  { %9 = vsyncpa [#allocation3], 0  ;;  %s11762_s0 = inlined_call_operand.hbm [shape: f32[128,128], index: 0, kind: input, shape index: {}]   ;;  %s11763_s1 = inlined_call_operand.hbm [shape: f32[128,128], index: 1, kind: input, shape index: {}]   ;;  %s11764_s2 = inlined_call_operand.hbm [shape: f32[128,128,128], index: 2, kind: output, shape index: {0}]   ;;  %s11765_s3 = inlined_call_operand.hbm [shape: f32[128,128], index: 3, kind: output, shape index: {1}]  }
   0x1   :  { %10 = vsyncpa [#allocation6], 0 }
   0x2   :  { %12 = vsyncpa [#allocation6 + $0x1], 0 }
   0x3   :  { %13 = vsyncpa [#allocation4], 0 }
   0x4   :  { %15 = vsyncpa [#allocation4 + $0x1], 0 }
   0x5   :  { %16 = vsyncpa [#allocation9], 0 }
   0x6   :  { %18 = vsyncpa [#allocation9 + $0x1], 0  ;;  %s6984_s12 = smov 0   ;;  %s6986_s13 = smov 0  }
   0x7   :  { %s6988_s14 = smov 0   ;;  %s6990_s15 = smov 0  }
   0x8 LB: > { %s7005_s16 = sadd.s32 4294967295, %s6952_s15   ;;  %s6470_s17 = sadd.s32 4294967294, %s6952_s15   ;;  %s6952_s15 = sphi %s6990_s15, %s12995_s15   ;;  %s6948_s14 = sphi %s6988_s14, %s12994_s14   ;;  %s6944_s13 = sphi %s6986_s13, %s12993_s13   ;;  %s6940_s12 = sphi %s6984_s12, %s12992_s12  }
   0x9   : > { %p65_p0 = scmp.ne.s32.totalorder %s6944_s13, %s6940_s12  ;;  %p11766_p1 = scmp.eq.s32.totalorder %s7005_s16, 0 }
   0xa   : > { %p95_p3 = scmp.eq.s32.totalorder %s6470_s17, 7  ;;  %p6471_p5 = scmp.ge.s32.totalorder %s6952_s15, 1 }
   0xb   : > { %p7014_p4 = por %p11766_p1, %p65_p0  ;;  %p128_p7 = scmp.lt.s32.totalorder %s6952_s15, 9 }
   0xc   : > { %p7019_p6 = por %p95_p3, %p65_p0  ;;  %s6954_s21 = smov [#allocation2]  }
   0xd   : > { %s11886_s18 = scalar_select %p7014_p4, 1, 0 }
   0xe   : > { %s11887_s19 = scalar_select %p7019_p6, 1, 0 }
   0xf   : > { %p7024_p8 = pnand %p6471_p5, %p128_p7  ;;  %s140_s22 = sshll.u32 %s6954_s21, 4  ;;  %s141_s22 = int_to_ptr.vmem [resolvable:$true] %s140_s22 }
  0x10   : > { %s7037_s24 = sadd.s32 1, %s6952_s15   ;;  %s52_s25 = sadd.s32 1, %s6948_s14 }
  0x11   : > { %s11888_s20 = scalar_select %p7024_p8, 1, 0 }
  0x12   : > { %p6729_p9 = pneg %p7024_p8  ;;  %s49_s26 = ssub.s32 %s6952_s15, %s7037_s24 }
  0x13   : > { %s6792_s29 = scalar_lea.hbm %s11762_s0, 2048 }
  0x14   : > { %p7032_p10 = pnand %p6729_p9, %p11766_p1  ;;  %p6793_p11 = scmp.ne.s32.totalorder %s11762_s0, %s6792_s29 }
  0x15   : > { %p6799_p3 = scmp.lt.u32.totalorder %s6792_s29, %s11762_s0 }
  0x16   : > { %p6794_p12 = pneg %p7032_p10 }
  0x18   : > { %p6795_p13 = pnand %p6794_p12, %p6793_p11 }
  0x1a   : > { %p6796_p0 = pneg %p6795_p13 }
  0x1c   : > { %p6801_p5 = pnand %p6799_p3, %p6796_p0 }
  0x1e   : > { %6804 = shalt.err (!%p6801_p5)
}
  0x1f   : > { %s6805_s7 = scalar_lea.vmem %s141_s22, 2048  ;;  %p6813_p2 = scmp.lt.s32.totalorder %s141_s22, %s141_s22 }
  0x20   : > { %p6806_p7 = scmp.ne.s32.totalorder %s141_s22, %s6805_s7  ;;  %p6814_p6 = scmp.lt.s32.totalorder %s6805_s7, %s6805_s7 }
  0x22   : > { %p6808_p9 = pnand %p6806_p7, %p6794_p12  ;;  %p6815_p4 = por %p6814_p6, %p6813_p2 }
  0x24   : > { %p6809_p1 = pneg %p6808_p9 }
  0x26   : > { %p6816_p8 = pnand %p6815_p4, %p6809_p1 }
  0x28   : > { %6819 = shalt.err (!%p6816_p8)
}
  0x29   : > { %s6955_s8 = smov 128   ;;  %s6956_s9 = smov 8  }
  0x2a   : > { %6732 = dma.hbm_to_vmem [thread:$0]  (!%p7032_p10), %s11762_s0, 2048, %s141_s22, [#allocation3], %s6955_s8, %s6955_s8, %s6956_s9  }
  0x2b   : > { %p50_p1 = scmp.eq.s32.totalorder %s49_s26, 0  ;;  %p59_p2 = scmp.ne.s32.totalorder %s6948_s14, %s6944_s13 }
  0x2c   : > { %p60_p4 = scmp.eq.s32.totalorder %s6952_s15, 0  ;;  %p6745_p6 = scmp.lt.s32.totalorder %s6952_s15, 8 }
  0x2d   : > { %s7066_s17 = scalar_select %p50_p1, %s6948_s14, %s52_s25  }
  0x2e   : > { %p61_p8 = por %p60_p4, %p59_p2  ;;  %p11890_p11 = scmp.eq.s32.totalorder %s7005_s16, 7 }
  0x2f   : > { %s154_s23 = sand.u32 1, %s6948_s14   ;;  %s6510_s27 = sshll.u32 %s6952_s15, 8 }
  0x30   : > { %p7070_p12 = por %p11890_p11, %p59_p2  ;;  %s6474_s28 = sshll.u32 %s154_s23, 4 }
  0x31   : > { %s7079_s4 = scalar_lea.hbm %s11763_s1, %s6510_s27  ;;  %s158_s22 = scalar_lea.vmem [#allocation5], %s6474_s28 }
  0x32   : > { %s165_s25 = sshll.u32 %s158_s22, 4  ;;  %p7081_p10 = pnand %p6745_p6, %p61_p8  ;;  %s7085_s25 = int_to_ptr.vmem [resolvable:$true] %s165_s25 }
  0x33   : > { %s7087_s5 = scalar_lea.sflag [#allocation6], %s154_s23  ;;  %s6820_s6 = scalar_lea.hbm %s7079_s4, 256 }
  0x34   : > { %p6821_p13 = scmp.ne.s32.totalorder %s7079_s4, %s6820_s6  ;;  %p6822_p0 = pneg %p7081_p10 }
  0x35   : > { %s6825_s11 = scalar_lea.hbm %s11763_s1, 2048  ;;  %p6826_p7 = scmp.lt.u32.totalorder %s7079_s4, %s11763_s1 }
  0x36   : > { %p6823_p3 = pnand %p6822_p0, %p6821_p13  ;;  %p6827_p9 = scmp.lt.u32.totalorder %s6825_s11, %s6820_s6 }
  0x37   : > { %p6829_p2 = scmp.lt.u32.totalorder %s6820_s6, %s7079_s4 }
  0x38   : > { %p6824_p5 = pneg %p6823_p3  ;;  %p6828_p1 = por %p6827_p9, %p6826_p7 }
  0x3a   : > { %p6830_p4 = por %p6829_p2, %p6828_p1 }
  0x3c   : > { %p6831_p6 = pnand %p6830_p4, %p6824_p5 }
  0x3e   : > { %6834 = shalt.err (!%p6831_p6)
}
  0x3f   : > { %s6835_s23 = scalar_lea.vmem %s7085_s25, 256  ;;  %s6957_s29 = smov [#allocation5]  }
  0x40   : > { %p6836_p8 = scmp.ne.s32.totalorder %s7085_s25, %s6835_s23  ;;  %s6840_s30 = sshll.u32 %s6957_s29, 4  ;;  %s6841_s30 = int_to_ptr.vmem [resolvable:$false] %s6840_s30 }
  0x41   : > { %s6842_s22 = scalar_lea.vmem %s6841_s30, 512  ;;  %p6843_p3 = scmp.lt.s32.totalorder %s7085_s25, %s6841_s30 }
  0x42   : > { %p6838_p11 = pnand %p6836_p8, %p6822_p0  ;;  %p6844_p7 = scmp.lt.s32.totalorder %s6842_s22, %s6835_s23 }
  0x44   : > { %p6839_p13 = pneg %p6838_p11  ;;  %p6845_p9 = por %p6844_p7, %p6843_p3 }
  0x46   : > { %p6846_p1 = pnand %p6845_p9, %p6839_p13 }
  0x48   : > { %6849 = shalt.err (!%p6846_p1)
}
  0x49   : > { %6736 = dma.hbm_to_vmem [thread:$0]  (!%p7081_p10), %s7079_s4, 256, %s7085_s25, %s7087_s5, %s6955_s8, %s6955_s8, %s6956_s9  }
  0x4a   : > { %p11893_p0 = scmp.ne.s32.totalorder %s11888_s20, 0 }
  0x4c   : > { %177 = sbr.rel (%p11893_p0) target bundleno = 2119 (0x847), region = 28 }
  0x53   : > { %p11894_p5 = scmp.eq.s32.totalorder %s7005_s16, 0 }
  0x55   : > { %6923 = dma.done.wait (%p11894_p5), [#allocation3], 2048   ;;  %p11895_p2 = pmov %p11894_p5 }
  0x56   : > { %s7125_s6 = sand.u32 1, %s6944_s13   ;;  %p11896_p10 = scmp.ne.s32.totalorder %s11886_s18, 0 }
  0x57   : > { %6925 = vsyncadd (%p11895_p2), [#allocation3], 4294965248  ;;  %s6479_s26 = sshll.u32 %s7125_s6, 4  ;;  %s184_s7 = scalar_lea.sflag [#allocation6], %s7125_s6 }
  0x58   : > { %s187_s8 = scalar_lea.vmem [#allocation5], %s6479_s26 }
  0x59   : > { %6927 = dma.done.wait (%p11896_p10), %s184_s7, 256  }
  0x5a   : > { %6929 = vsyncadd (%p11896_p10), %s184_s7, 4294967040  ;;  %v219_v0 = vld [vmem:[#allocation2] sm:$0xff]  ;;  %v220_v1 = vld [vmem:[#allocation2 + $0x8] sm:$0xff]  ;;  %v457_v28 = vlaneseq  ;;  %v6958_v45 = vmov 0.0   ;;  %s6482_s18 = sshll.u32 %s7005_s16, 4  ;;  %s7349_s20 = scalar_lea.vmem [#allocation8], %s6479_s26 }
  0x5b   : > { %v7135_v2 = vld [vmem:[#allocation2 + $0x10] sm:$0xff]  ;;  %v6655_v3 = vpack.c.bf16 %v220_v1, %v219_v0  ;;  %v222_v4 = vld [vmem:[#allocation2 + $0x18] sm:$0xff]  ;;  %6596 = vmatprep.mubr.f32.mxu0 %v219_v0  ;;  %v223_v7 = vld [vmem:[#allocation2 + $0x20] sm:$0xff]  ;;  %s6480_s9 = sshll.u32 %s7125_s6, 11  ;;  %s6513_s25 = sshll.u32 %s7005_s16, 8 }
  0x5c   : > { %v6659_v5 = vpack.c.bf16 %v222_v4, %v7135_v2  ;;  %v235_v6 = vld [vmem:[%s187_s8] sm:$0xff]  ;;  %v224_v8 = vld [vmem:[#allocation2 + $0x28] sm:$0xff]  ;;  %v226_v14 = vld [vmem:[#allocation2 + $0x38] sm:$0xff]  ;;  %v7139_v29 = vshrl.u32 %v457_v28, 7  ;;  %v7160_v37 = vand.u32 127, %v457_v28  ;;  %s9501_s4 = scalar_lea.vmem [#allocation7], %s6480_s9  ;;  %s11356_s27 = scalar_lea.hbm %s11765_s3, %s6513_s25 }
  0x5d   : > { %6656 = vmatprep.subr.bf16.mxu0 %v6655_v3  ;;  %6688 = vmatprep.subr.bf16.mxu1 %v6655_v3  ;;  %v561_v9 = vmul.f32 %v235_v6, %v235_v6  ;;  %v6663_v10 = vpack.c.bf16 %v224_v8, %v223_v7  ;;  %v236_v11 = vld [vmem:[%s187_s8 + $0x8] sm:$0xff]  ;;  %v225_v13 = vld [vmem:[#allocation2 + $0x30] sm:$0xff]  ;;  %v227_v16 = vld [vmem:[#allocation2 + $0x40] sm:$0xff]  ;;  %s6353_s5 = sshll.u32 %s7349_s20, 4  ;;  %s6323_s28 = scalar_lea.sflag [#allocation9], %s7125_s6  ;;  %s11358_s5 = int_to_ptr.vmem [resolvable:$true] %s6353_s5 }
  0x5e   : > { %6658 = vmatpush3.bf16.xpose.msra.mxu0 %v6655_v3  ;;  %6690 = vmatpush3.bf16.xpose.msra.mxu1 %v6655_v3  ;;  %v562_v12 = vmul.f32 %v236_v11, %v236_v11  ;;  %v6667_v15 = vpack.c.bf16 %v226_v14, %v225_v13  ;;  %v228_v17 = vld [vmem:[#allocation2 + $0x48] sm:$0xff]  ;;  %v229_v19 = vld [vmem:[#allocation2 + $0x50] sm:$0xff]  ;;  %v230_v20 = vld [vmem:[#allocation2 + $0x58] sm:$0xff]  ;;  %v7142_v30 = vsub.s32 0, %v7139_v29  ;;  %v7158_v36 = vadd.s32 8, %v7139_v29  ;;  %s6850_s23 = scalar_lea.vmem %s11358_s5, 256 }
  0x5f   : > { %6660 = vmatprep.subr.bf16.mxu0 %v6659_v5  ;;  %6692 = vmatprep.subr.bf16.mxu1 %v6659_v5  ;;  %v6671_v18 = vpack.c.bf16 %v228_v17, %v227_v16  ;;  %v6675_v21 = vpack.c.bf16 %v230_v20, %v229_v19  ;;  %v231_v22 = vld [vmem:[#allocation2 + $0x60] sm:$0xff]  ;;  %v232_v23 = vld [vmem:[#allocation2 + $0x68] sm:$0xff]  ;;  %v233_v25 = vld [vmem:[#allocation2 + $0x70] sm:$0xff]  ;;  %v460_v40 = vadd.s32 16, %v7139_v29  ;;  %v461_v41 = vadd.s32 24, %v7139_v29  ;;  %p6851_p4 = scmp.ne.s32.totalorder %s11358_s5, %s6850_s23  ;;  %s6960_s29 = smov [#allocation8]  }
  0x60   : > { %6652 = vmatprep.mubr.f32.mxu1 %v235_v6  ;;  %563 = vadd.xlane.f32.xlu0 %v561_v9  ;;  %v6679_v24 = vpack.c.bf16 %v232_v23, %v231_v22  ;;  %v234_v26 = vld [vmem:[#allocation2 + $0x78] sm:$0xff]  ;;  %vm476_vm0 = vcmp.eq.s32.totalorder %v7139_v29, %v7160_v37  ;;  %vm477_vm1 = vcmp.eq.s32.totalorder %v7158_v36, %v7160_v37  ;;  %v462_v43 = vadd.s32 32, %v7139_v29  ;;  %s6854_s30 = sshll.u32 %s6960_s29, 4  ;;  %s6855_s30 = int_to_ptr.vmem [resolvable:$false] %s6854_s30 }
  0x61   : > { %v6683_v27 = vpack.c.bf16 %v234_v26, %v233_v25  ;;  %vm478_vm2 = vcmp.eq.s32.totalorder %v460_v40, %v7160_v37  ;;  %v7182_v46 = vsel %vm476_vm0, 1.0, %v6958_v45  ;;  %v7185_v47 = vsel %vm477_vm1, 1.0, %v6958_v45  ;;  %p6852_p6 = pnand %p6851_p4, %p7070_p12  ;;  %s6856_s22 = scalar_lea.vmem %s6855_s30, 512 }
  0x62   : > { %11904 = vst [vmem:[#allocation21_spill] sm:$0xff] %v7185_v47  ;;  %v463_v48 = vadd.s32 40, %v7139_v29  ;;  %vm479_vm3 = vcmp.eq.s32.totalorder %v461_v41, %v7160_v37  ;;  %vm480_vm4 = vcmp.eq.s32.totalorder %v462_v43, %v7160_v37  ;;  %v7195_v50 = vsel %vm478_vm2, 1.0, %v6958_v45  ;;  %p6857_p11 = scmp.lt.s32.totalorder %s11358_s5, %s6855_s30  ;;  %p6858_p13 = scmp.lt.s32.totalorder %s6856_s22, %s6850_s23 }
  0x63   : > { %v464_v53 = vadd.s32 48, %v7139_v29  ;;  %v7209_v56 = vsel %vm479_vm3, 1.0, %v6958_v45  ;;  %v465_v57 = vadd.s32 56, %v7139_v29  ;;  %v7220_v60 = vsel %vm480_vm4, 1.0, %v6958_v45  ;;  %p6853_p8 = pneg %p6852_p6 }
  0x64   : > { %565 = vadd.xlane.f32.xlu0 %v562_v12  ;;  %11907 = vst [vmem:[#allocation24_spill] sm:$0xff] %v7209_v56  ;;  %vm481_vm5 = vcmp.eq.s32.totalorder %v463_v48, %v7160_v37  ;;  %v466_v62 = vadd.s32 64, %v7139_v29  ;;  %v469_v12 = vadd.s32 88, %v7139_v29  ;;  %v472_v28 = vadd.s32 112, %v7139_v29  ;;  %p6859_p3 = por %p6858_p13, %p6857_p11 }
  0x65   : > { %vm482_vm6 = vcmp.eq.s32.totalorder %v464_v53, %v7160_v37  ;;  %vm483_vm7 = vcmp.eq.s32.totalorder %v465_v57, %v7160_v37  ;;  %v473_v48 = vadd.s32 120, %v7139_v29  ;;  %vm578_vm1 = vcmp.lt.s32.totalorder %v7160_v37, 100 }
  0x66   : > { %6662 = vmatpush3.bf16.xpose.msra.mxu0 %v6659_v5  ;;  %6694 = vmatpush3.bf16.xpose.msra.mxu1 %v6659_v5  ;;  %v7240_v6 = vsel %vm482_vm6, 1.0, %v6958_v45  ;;  %vm484_vm8 = vcmp.eq.s32.totalorder %v466_v62, %v7160_v37  ;;  %vm487_vm11 = vcmp.eq.s32.totalorder %v469_v12, %v7160_v37  ;;  %vm490_vm14 = vcmp.eq.s32.totalorder %v472_v28, %v7160_v37  ;;  %p6860_p7 = pnand %p6859_p3, %p6853_p8 }
  0x67   : > { %6664 = vmatprep.subr.bf16.mxu0 %v6663_v10  ;;  %6696 = vmatprep.subr.bf16.mxu1 %v6663_v10  ;;  %v7289_v43 = vsel %vm487_vm11, 1.0, %v6958_v45  ;;  %vm491_vm15 = vcmp.eq.s32.totalorder %v473_v48, %v7160_v37 }
  0x68   : > { %11919 = vst [vmem:[#allocation36_spill] sm:$0xff] %v7289_v43 }
  0x6e   : > { %6666 = vmatpush3.bf16.xpose.msra.mxu0 %v6663_v10  ;;  %6698 = vmatpush3.bf16.xpose.msra.mxu1 %v6663_v10 }
  0x6f   : > { %6668 = vmatprep.subr.bf16.mxu0 %v6667_v15  ;;  %6700 = vmatprep.subr.bf16.mxu1 %v6667_v15 }
  0x76   : > { %6670 = vmatpush3.bf16.xpose.msra.mxu0 %v6667_v15  ;;  %6702 = vmatpush3.bf16.xpose.msra.mxu1 %v6667_v15 }
  0x77   : > { %6672 = vmatprep.subr.bf16.mxu0 %v6671_v18  ;;  %6704 = vmatprep.subr.bf16.mxu1 %v6671_v18 }
  0x7e   : > { %6674 = vmatpush3.bf16.xpose.msra.mxu0 %v6671_v18  ;;  %6706 = vmatpush3.bf16.xpose.msra.mxu1 %v6671_v18  ;;  %v470_v18 = vadd.s32 96, %v7139_v29 }
  0x7f   : > { %6676 = vmatprep.subr.bf16.mxu0 %v6675_v21  ;;  %6708 = vmatprep.subr.bf16.mxu1 %v6675_v21 }
  0x80   : > { %vm488_vm12 = vcmp.eq.s32.totalorder %v470_v18, %v7160_v37 }
  0x86   : > { %6678 = vmatpush3.bf16.xpose.msra.mxu0 %v6675_v21  ;;  %6710 = vmatpush3.bf16.xpose.msra.mxu1 %v6675_v21 }
  0x87   : > { %6680 = vmatprep.subr.bf16.mxu0 %v6679_v24  ;;  %6712 = vmatprep.subr.bf16.mxu1 %v6679_v24 }
  0x8e   : > { %6682 = vmatpush3.bf16.xpose.msra.mxu0 %v6679_v24  ;;  %6714 = vmatpush3.bf16.xpose.msra.mxu1 %v6679_v24 }
  0x8f   : > { %6684 = vmatprep.subr.bf16.mxu0 %v6683_v27  ;;  %6716 = vmatprep.subr.bf16.mxu1 %v6683_v27 }
  0x96   : > { %6686 = vmatpush3.bf16.xpose.msra.mxu0 %v6683_v27  ;;  %6718 = vmatpush3.bf16.xpose.msra.mxu1 %v6683_v27 }
  0x9d   : > { %6597 = vmatmul.mubr.f32.vlgmr.msra.gmra.mrb[0].mxu0 %v220_v1  ;;  %6653 = vmatmul.mubr.f32.vlgmr.msra.gmra.mrb[0].mxu1 %v236_v11  ;;  %v7229_v1 = vsel %vm481_vm5, 1.0, %v6958_v45  ;;  %v7249_v11 = vsel %vm483_vm7, 1.0, %v6958_v45 }
  0x9e   : > { %6599 = vmatprep.mubr.f32.mxu0 %v7135_v2  ;;  %11910 = vst [vmem:[#allocation27_spill] sm:$0xff] %v7229_v1  ;;  %v467_v2 = vadd.s32 72, %v7139_v29  ;;  %11913 = vst [vmem:[#allocation30_spill] sm:$0xff] %v7249_v11 }
  0xa0   : > { %vm485_vm9 = vcmp.eq.s32.totalorder %v467_v2, %v7160_v37  ;;  %v7312_v2 = vsel %vm490_vm14, 1.0, %v6958_v45 }
  0xa1   : > { %6600 = vmatmul.mubr.f32.gmra.mrb[2].mxu0 %v222_v4  ;;  %v7269_v21 = vsel %vm485_vm9, 1.0, %v6958_v45  ;;  %11922 = vst [vmem:[#allocation39_spill] sm:$0xff] %v7312_v2 }
  0xa2   : > { %6602 = vmatprep.mubr.f32.mxu0 %v223_v7  ;;  %11916 = vst [vmem:[#allocation33_spill] sm:$0xff] %v7269_v21 }
  0xa5   : > { %6603 = vmatmul.mubr.f32.gmra.mrb[4].mxu0 %v224_v8  ;;  %v468_v8 = vadd.s32 80, %v7139_v29 }
  0xa6   : > { %6605 = vmatprep.mubr.f32.mxu0 %v225_v13 }
  0xa7   : > { %vm486_vm10 = vcmp.eq.s32.totalorder %v468_v8, %v7160_v37  ;;  %v7317_v8 = vsub.s32 1, %v7139_v29 }
  0xa9   : > { %6606 = vmatmul.mubr.f32.gmra.mrb[6].mxu0 %v226_v14  ;;  %11923 = vst [vmem:[#allocation40_spill] sm:$0xff] %v7317_v8 }
  0xaa   : > { %6608 = vmatprep.mubr.f32.mxu0 %v227_v16  ;;  %v7260_v16 = vsel %vm484_vm8, 1.0, %v6958_v45 }
  0xad   : > { %6609 = vmatmul.mubr.f32.gmra.mrb[8].mxu0 %v228_v17 }
  0xae   : > { %6611 = vmatprep.mubr.f32.mxu0 %v229_v19 }
  0xb1   : > { %6612 = vmatmul.mubr.f32.gmra.mrb[10].mxu0 %v230_v20 }
  0xb2   : > { %6614 = vmatprep.mubr.f32.mxu0 %v231_v22  ;;  %v471_v22 = vadd.s32 104, %v7139_v29 }
  0xb4   : > { %vm489_vm13 = vcmp.eq.s32.totalorder %v471_v22, %v7160_v37 }
  0xb5   : > { %6615 = vmatmul.mubr.f32.gmra.mrb[12].mxu0 %v232_v23  ;;  %v7304_v62 = vsel %vm489_vm13, 1.0, %v6958_v45 }
  0xb6   : > { %6617 = vmatprep.mubr.f32.mxu0 %v233_v25  ;;  %11921 = vst [vmem:[#allocation38_spill] sm:$0xff] %v7304_v62 }
  0xb9   : > { %6618 = vmatmul.mubr.f32.gmra.mrb[14].mxu0 %v234_v26  ;;  %v7280_v26 = vsel %vm486_vm10, 1.0, %v6958_v45 }
  0xed   : > { %v7333_v28 = vpop.xlane.xlu0 %563 }
 0x170   : > { %v7144_v31 = vpop.f32.mrb[0].mxu1  ;;  %v7146_v32 = vpop.f32.mrb[0].mxu0 }
 0x171   : > { %11897 = vst [vmem:[#allocation14_spill] sm:$0xff] %v7144_v31  ;;  %11898 = vst [vmem:[#allocation15_spill] sm:$0xff] %v7146_v32  ;;  %v7150_v33 = vrot.slane %v7144_v31, %v7142_v30  ;;  %v7152_v34 = vpop.f32.mrb[1].mxu1  ;;  %v7154_v35 = vpop.f32.mrb[1].mxu0  ;;  %v525_v55 = vmul.f32 %v7146_v32, %v7185_v47 }
 0x172   : > { %11899 = vst [vmem:[#allocation16_spill] sm:$0xff] %v7154_v35  ;;  %v7199_v51 = vrot.slane %v7152_v34, %v7142_v30  ;;  %v524_v54 = vmul.f32 %v7182_v46, %v7154_v35  ;;  %v679_v18 = vrot.slane %v7152_v34, %v7317_v8 }
 0x173   : > { %1154 = vbcast.lane.b32.xlu1 %v7150_v33, 264  ;;  %1150 = vbcast.lane.b32.xlu0 %v7150_v33, 256 }
 0x174   : > { %v7163_v38 = vpop.f32.mrb[2].mxu0  ;;  %v540_v0 = vadd.f32 %v525_v55, %v524_v54  ;;  %v7298_v55 = vsel %vm488_vm12, 1.0, %v6958_v45 }
 0x175   : > { %11900 = vst [vmem:[#allocation17_spill] sm:$0xff] %v7163_v38  ;;  %v7165_v39 = vpop.f32.mrb[3].mxu0  ;;  %v527_v63 = vmul.f32 %v7163_v38, %v7209_v56  ;;  %11920 = vst [vmem:[#allocation37_spill] sm:$0xff] %v7298_v55 }
 0x176   : > { %11901 = vst [vmem:[#allocation18_spill] sm:$0xff] %v7165_v39  ;;  %v526_v58 = vmul.f32 %v7195_v50, %v7165_v39 }
 0x177   : > { %1162 = vbcast.lane.b32.xlu1 %v7150_v33, 280  ;;  %1158 = vbcast.lane.b32.xlu0 %v7150_v33, 272 }
 0x178   : > { %v7175_v42 = vpop.f32.mrb[4].mxu0  ;;  %v541_v4 = vadd.f32 %v540_v0, %v526_v58 }
 0x179   : > { %11902 = vst [vmem:[#allocation19_spill] sm:$0xff] %v7175_v42  ;;  %v7178_v44 = vpop.f32.mrb[5].mxu0  ;;  %v529_v9 = vmul.f32 %v7175_v42, %v7229_v1 }
 0x17a   : > { %11903 = vst [vmem:[#allocation20_spill] sm:$0xff] %v7178_v44  ;;  %v528_v3 = vmul.f32 %v7220_v60, %v7178_v44  ;;  %v542_v10 = vadd.f32 %v541_v4, %v527_v63 }
 0x17b   : > { %1170 = vbcast.lane.b32.xlu1 %v7150_v33, 296  ;;  %1166 = vbcast.lane.b32.xlu0 %v7150_v33, 288 }
 0x17c   : > { %v7191_v49 = vpop.f32.mrb[6].mxu0  ;;  %v543_v14 = vadd.f32 %v542_v10, %v528_v3 }
 0x17d   : > { %11905 = vst [vmem:[#allocation22_spill] sm:$0xff] %v7191_v49  ;;  %v7201_v52 = vpop.f32.mrb[7].mxu0  ;;  %v531_v19 = vmul.f32 %v7191_v49, %v7249_v11 }
 0x17e   : > { %11906 = vst [vmem:[#allocation23_spill] sm:$0xff] %v7201_v52  ;;  %v530_v13 = vmul.f32 %v7240_v6, %v7201_v52  ;;  %v544_v20 = vadd.f32 %v543_v14, %v529_v9  ;;  %v7320_v9 = vsel %vm491_vm15, 1.0, %v6958_v45 }
 0x17f   : > { %618 = vbcast.lane.b32.xlu1 %v7199_v51, 264  ;;  %614 = vbcast.lane.b32.xlu0 %v7199_v51, 256  ;;  %11924 = vst [vmem:[#allocation41_spill] sm:$0xff] %v7320_v9 }
 0x180   : > { %v7217_v59 = vpop.f32.mrb[8].mxu0  ;;  %v545_v24 = vadd.f32 %v544_v20, %v530_v13 }
 0x181   : > { %11908 = vst [vmem:[#allocation25_spill] sm:$0xff] %v7217_v59  ;;  %v7222_v61 = vpop.f32.mrb[9].mxu0  ;;  %v533_v40 = vmul.f32 %v7217_v59, %v7269_v21 }
 0x182   : > { %11909 = vst [vmem:[#allocation26_spill] sm:$0xff] %v7222_v61  ;;  %v532_v23 = vmul.f32 %v7260_v16, %v7222_v61  ;;  %v546_v41 = vadd.f32 %v545_v24, %v531_v19 }
 0x183   : > { %622 = vbcast.lane.b32.xlu1 %v7199_v51, 272  ;;  %630 = vbcast.lane.b32.xlu0 %v7199_v51, 288 }
 0x184   : > { %v7237_v5 = vpop.f32.mrb[10].mxu0  ;;  %v547_v54 = vadd.f32 %v546_v41, %v532_v23  ;;  %v573_v23 = vstv %s6482_s18 }
 0x185   : > { %11911 = vst [vmem:[#allocation28_spill] sm:$0xff] %v7237_v5  ;;  %v7242_v7 = vpop.f32.mrb[11].mxu0  ;;  %v535_v57 = vmul.f32 %v7237_v5, %v7289_v43  ;;  %v575_v48 = vadd.s32 %v573_v23, %v7158_v36  ;;  %v569_v36 = vmul.f32 2.0, %v7152_v34 }
 0x186   : > { %11912 = vst [vmem:[#allocation29_spill] sm:$0xff] %v7242_v7  ;;  %v534_v53 = vmul.f32 %v7280_v26, %v7242_v7  ;;  %v548_v58 = vadd.f32 %v547_v54, %v533_v40  ;;  %v574_v40 = vadd.s32 %v573_v23, %v7139_v29 }
 0x187   : > { %626 = vbcast.lane.b32.xlu1 %v7199_v51, 280  ;;  %638 = vbcast.lane.b32.xlu0 %v7199_v51, 304  ;;  %vm577_vm2 = vcmp.lt.s32.totalorder %v575_v48, 100  ;;  %vm582_vm5 = vcmp.ne.s32.totalorder %v575_v48, %v7160_v37 }
 0x188   : > { %v7257_v15 = vpop.f32.mrb[12].mxu0  ;;  %v549_v0 = vadd.f32 %v548_v58, %v534_v53  ;;  %vm576_vm0 = vcmp.lt.s32.totalorder %v574_v40, 100  ;;  %vm581_vm4 = vcmp.ne.s32.totalorder %v574_v40, %v7160_v37  ;;  %vm580_vm6 = vmand %vm577_vm2, %vm578_vm1 }
 0x189   : > { %11914 = vst [vmem:[#allocation31_spill] sm:$0xff] %v7257_v15  ;;  %v7262_v17 = vpop.f32.mrb[13].mxu0  ;;  %v537_v3 = vmul.f32 %v7257_v15, %v7304_v62  ;;  %vm579_vm3 = vmand %vm576_vm0, %vm578_vm1 }
 0x18a   : > { %11915 = vst [vmem:[#allocation32_spill] sm:$0xff] %v7262_v17  ;;  %v536_v63 = vmul.f32 %v7298_v55, %v7262_v17  ;;  %v550_v4 = vadd.f32 %v549_v0, %v535_v57  ;;  %v570_v0 = vmul.f32 2.0, %v7144_v31  ;;  %vm583_vm7 = vmand %vm579_vm3, %vm581_vm4 }
 0x18b   : > { %634 = vbcast.lane.b32.xlu1 %v7199_v51, 296  ;;  %646 = vbcast.lane.b32.xlu0 %v7199_v51, 320  ;;  %vm584_vm8 = vmand %vm580_vm6, %vm582_vm5 }
 0x18c   : > { %v7277_v25 = vpop.f32.mrb[14].mxu0  ;;  %v551_v12 = vadd.f32 %v550_v4, %v536_v63 }
 0x18d   : > { %11917 = vst [vmem:[#allocation34_spill] sm:$0xff] %v7277_v25  ;;  %v7282_v27 = vpop.f32.mrb[15].mxu0  ;;  %v539_v13 = vmul.f32 %v7277_v25, %v7320_v9 }
 0x18e   : > { %11918 = vst [vmem:[#allocation35_spill] sm:$0xff] %v7282_v27  ;;  %v538_v10 = vmul.f32 %v7312_v2, %v7282_v27  ;;  %v552_v14 = vadd.f32 %v551_v12, %v537_v3 }
 0x18f   : > { %642 = vbcast.lane.b32.xlu1 %v7199_v51, 312  ;;  %654 = vbcast.lane.b32.xlu0 %v7199_v51, 336 }
 0x190   : > { %v553_v19 = vadd.f32 %v552_v14, %v538_v10 }
 0x192   : > { %v554_v20 = vadd.f32 %v553_v19, %v539_v13  ;;  %v7357_v13 = vsub.s32 2, %v7139_v29 }
 0x193   : > { %650 = vbcast.lane.b32.xlu1 %v7199_v51, 328  ;;  %662 = vbcast.lane.b32.xlu0 %v7199_v51, 352 }
 0x194   : > { %v555_v22 = vrot.slane %v554_v20, 4  ;;  %11926 = vst [vmem:[#allocation43_spill] sm:$0xff] %v7357_v13  ;;  %v746_v19 = vrot.slane %v7152_v34, %v7357_v13 }
 0x196   : > { %v556_v24 = vadd.f32 %v555_v22, %v554_v20 }
 0x197   : > { %658 = vbcast.lane.b32.xlu1 %v7199_v51, 344  ;;  %670 = vbcast.lane.b32.xlu0 %v7199_v51, 368 }
 0x198   : > { %v557_v41 = vrot.slane %v556_v24, 2 }
 0x19a   : > { %v558_v53 = vadd.f32 %v557_v41, %v556_v24 }
 0x19b   : > { %666 = vbcast.lane.b32.xlu1 %v7199_v51, 360  ;;  %681 = vbcast.lane.b32.xlu0 %v679_v18, 256 }
 0x19c   : > { %v559_v54 = vrot.slane %v558_v53, 1 }
 0x19e   : > { %v560_v57 = vadd.f32 %v559_v54, %v558_v53 }
 0x19f   : > { %674 = vbcast.lane.b32.xlu1 %v7199_v51, 376  ;;  %689 = vbcast.lane.b32.xlu0 %v679_v18, 272  ;;  %v7338_v51 = vpop.xlane.xlu0 %565 }
 0x1a0   : > { %11925 = vst [vmem:[#allocation42_spill] sm:$0xff] %v7338_v51  ;;  %v567_v58 = vadd.f32 %v7333_v28, %v560_v57  ;;  %v568_v63 = vadd.f32 %v7338_v51, %v560_v57 }
 0x1a2   : > { %v571_v3 = vsub.f32 %v567_v58, %v569_v36  ;;  %v572_v4 = vsub.f32 %v568_v63, %v570_v0 }
 0x1a3   : > { %685 = vbcast.lane.b32.xlu1 %v679_v18, 264  ;;  %697 = vbcast.lane.b32.xlu0 %v679_v18, 288 }
 0x1a4   : > { %vm585_vm9 = vcmp.le.f32.partialorder %v571_v3, 1.44  ;;  %vm586_vm10 = vcmp.le.f32.partialorder %v572_v4, 1.44 }
 0x1a5   : > { %vm587_vm11 = vmand %vm583_vm7, %vm585_vm9 }
 0x1a6   : > { %v6499_v37 = vsel %vm587_vm11, 1.0, %v6958_v45  ;;  %vm588_vm12 = vmand %vm584_vm8, %vm586_vm10 }
 0x1a7   : > { %693 = vbcast.lane.b32.xlu1 %v679_v18, 280  ;;  %705 = vbcast.lane.b32.xlu0 %v679_v18, 304  ;;  %6315 = vst [vmem:[%s7349_s20] sm:$0xff] %v6499_v37  ;;  %v6500_v10 = vsel %vm588_vm12, 1.0, %v6958_v45  ;;  %v7353_v12 = vmul.f32 %v6499_v37, %v571_v3  ;;  %v7364_v45 = vsub.s32 3, %v7139_v29  ;;  %v7397_v3 = vrot.slane %v7333_v28, %v7142_v30 }
 0x1a8   : > { %6316 = vst [vmem:[%s7349_s20 + $0x8] sm:$0xff] %v6500_v10  ;;  %v7359_v14 = vmul.f32 %v6500_v10, %v572_v4 }
 0x1a9   : > { %11927 = vst [vmem:[#allocation44_spill] sm:$0xff] %v7364_v45  ;;  %v813_v20 = vrot.slane %v7152_v34, %v7364_v45 }
 0x1ab   : > { %701 = vbcast.lane.b32.xlu1 %v679_v18, 296  ;;  %713 = vbcast.lane.b32.xlu0 %v679_v18, 320 }
 0x1af   : > { %709 = vbcast.lane.b32.xlu1 %v679_v18, 312  ;;  %721 = vbcast.lane.b32.xlu0 %v679_v18, 336 }
 0x1b3   : > { %717 = vbcast.lane.b32.xlu1 %v679_v18, 328  ;;  %729 = vbcast.lane.b32.xlu0 %v679_v18, 352 }
 0x1b7   : > { %725 = vbcast.lane.b32.xlu1 %v679_v18, 344  ;;  %737 = vbcast.lane.b32.xlu0 %v679_v18, 368 }
 0x1bb   : > { %733 = vbcast.lane.b32.xlu1 %v679_v18, 360  ;;  %748 = vbcast.lane.b32.xlu0 %v746_v19, 256 }
 0x1bf   : > { %741 = vbcast.lane.b32.xlu1 %v679_v18, 376  ;;  %756 = vbcast.lane.b32.xlu0 %v746_v19, 272  ;;  %v6959_v18 = vmov 1966171168  }
 0x1c0   : > { %v1941_v22 = vunpack.c.l.s4 %v6959_v18 }
 0x1c2   : > { %v1942_v23 = vunpack.c.0.s8 %v1941_v22 }
 0x1c3   : > { %752 = vbcast.lane.b32.xlu1 %v746_v19, 264  ;;  %764 = vbcast.lane.b32.xlu0 %v746_v19, 288 }
 0x1c4   : > { %v7371_v40 = vsub.s32 %v1942_v23, %v7139_v29  ;;  %v7406_v23 = vsub.s32 4, %v7139_v29 }
 0x1c6   : > { %11929 = vst [vmem:[#allocation46_spill] sm:$0xff] %v7371_v40  ;;  %v7379_v53 = vrot.slane %v7152_v34, %v7371_v40  ;;  %11935 = vst [vmem:[#allocation52_spill] sm:$0xff] %v7406_v23 }
 0x1c7   : > { %760 = vbcast.lane.b32.xlu1 %v746_v19, 280  ;;  %772 = vbcast.lane.b32.xlu0 %v746_v19, 304 }
 0x1c8   : > { %v7387_v58 = vrot.slane %v7379_v53, %v7371_v40 }
 0x1ca   : > { %v7393_v0 = vrot.slane %v7387_v58, %v7142_v30 }
 0x1cb   : > { %768 = vbcast.lane.b32.xlu1 %v746_v19, 296  ;;  %780 = vbcast.lane.b32.xlu0 %v746_v19, 320 }
 0x1cf   : > { %776 = vbcast.lane.b32.xlu1 %v746_v19, 312  ;;  %788 = vbcast.lane.b32.xlu0 %v746_v19, 336 }
 0x1d3   : > { %784 = vbcast.lane.b32.xlu1 %v746_v19, 328  ;;  %796 = vbcast.lane.b32.xlu0 %v746_v19, 352 }
 0x1d7   : > { %792 = vbcast.lane.b32.xlu1 %v746_v19, 344  ;;  %804 = vbcast.lane.b32.xlu0 %v746_v19, 368 }
 0x1db   : > { %800 = vbcast.lane.b32.xlu1 %v746_v19, 360  ;;  %815 = vbcast.lane.b32.xlu0 %v813_v20, 256 }
 0x1df   : > { %808 = vbcast.lane.b32.xlu1 %v746_v19, 376  ;;  %823 = vbcast.lane.b32.xlu0 %v813_v20, 272 }
 0x1e3   : > { %819 = vbcast.lane.b32.xlu1 %v813_v20, 264  ;;  %831 = vbcast.lane.b32.xlu0 %v813_v20, 288 }
 0x1e5   : > { %v7368_v24 = vpop.permute.xlu1 %1154  ;;  %v7373_v41 = vpop.permute.xlu0 %1150 }
 0x1e6   : > { %11928 = vst [vmem:[#allocation45_spill] sm:$0xff] %v7368_v24  ;;  %11930 = vst [vmem:[#allocation47_spill] sm:$0xff] %v7373_v41 }
 0x1e7   : > { %827 = vbcast.lane.b32.xlu1 %v813_v20, 280  ;;  %839 = vbcast.lane.b32.xlu0 %v813_v20, 304 }
 0x1e9   : > { %v7375_v48 = vpop.permute.xlu1 %1162  ;;  %v7381_v54 = vpop.permute.xlu0 %1158 }
 0x1ea   : > { %11931 = vst [vmem:[#allocation48_spill] sm:$0xff] %v7375_v48  ;;  %11932 = vst [vmem:[#allocation49_spill] sm:$0xff] %v7381_v54 }
 0x1eb   : > { %835 = vbcast.lane.b32.xlu1 %v813_v20, 296  ;;  %847 = vbcast.lane.b32.xlu0 %v813_v20, 320 }
 0x1ed   : > { %v7383_v57 = vpop.permute.xlu1 %1170  ;;  %v7389_v36 = vpop.permute.xlu0 %1166 }
 0x1ee   : > { %11933 = vst [vmem:[#allocation50_spill] sm:$0xff] %v7383_v57  ;;  %11934 = vst [vmem:[#allocation51_spill] sm:$0xff] %v7389_v36  ;;  %v7421_v36 = vrot.slane %v7152_v34, %v7406_v23 }
 0x1ef   : > { %843 = vbcast.lane.b32.xlu1 %v813_v20, 312  ;;  %855 = vbcast.lane.b32.xlu0 %v813_v20, 336 }
 0x1f1   : > { %v619_v63 = vpop.permute.xlu1 %618  ;;  %v615_v37 = vpop.permute.xlu0 %614 }
 0x1f2   : > { %v1682_v4 = vsub.f32 %v7146_v32, %v619_v63  ;;  %v1681_v10 = vsub.f32 %v7154_v35, %v615_v37 }
 0x1f3   : > { %851 = vbcast.lane.b32.xlu1 %v813_v20, 328  ;;  %863 = vbcast.lane.b32.xlu0 %v813_v20, 352 }
 0x1f4   : > { %v2118_v19 = vsub.f32 %v1682_v4, %v7393_v0  ;;  %v7403_v18 = vsub.f32 %v1681_v10, %v7393_v0 }
 0x1f5   : > { %v623_v22 = vpop.permute.xlu1 %622  ;;  %v631_v48 = vpop.permute.xlu0 %630 }
 0x1f6   : > { %v1683_v57 = vsub.f32 %v7165_v39, %v623_v22  ;;  %v7410_v24 = vadd.f32 %v7397_v3, %v2118_v19  ;;  %v1685_v63 = vsub.f32 %v7178_v44, %v631_v48 }
 0x1f7   : > { %859 = vbcast.lane.b32.xlu1 %v813_v20, 344  ;;  %871 = vbcast.lane.b32.xlu0 %v813_v20, 368 }
 0x1f8   : > { %11936 = vst [vmem:[#allocation53_spill] sm:$0xff] %v7410_v24  ;;  %v7414_v37 = vsub.f32 %v1683_v57, %v7393_v0  ;;  %v7417_v4 = vsub.f32 %v1685_v63, %v7393_v0 }
 0x1f9   : > { %v627_v10 = vpop.permute.xlu1 %626  ;;  %v639_v54 = vpop.permute.xlu0 %638 }
 0x1fa   : > { %v1684_v22 = vsub.f32 %v7163_v38, %v627_v10  ;;  %v1687_v19 = vsub.f32 %v7201_v52, %v639_v54 }
 0x1fb   : > { %867 = vbcast.lane.b32.xlu1 %v813_v20, 360  ;;  %882 = vbcast.lane.b32.xlu0 %v7421_v36, 256 }
 0x1fc   : > { %v2120_v48 = vsub.f32 %v1684_v22, %v7393_v0  ;;  %v7428_v57 = vsub.f32 %v1687_v19, %v7393_v0 }
 0x1fd   : > { %v635_v63 = vpop.permute.xlu1 %634  ;;  %v647_v9 = vpop.permute.xlu0 %646 }
 0x1fe   : > { %v1686_v41 = vsub.f32 %v7175_v42, %v635_v63  ;;  %v7432_v62 = vadd.f32 %v7397_v3, %v2120_v48  ;;  %v1689_v10 = vsub.f32 %v7222_v61, %v647_v9 }
 0x1ff   : > { %875 = vbcast.lane.b32.xlu1 %v813_v20, 376  ;;  %890 = vbcast.lane.b32.xlu0 %v7421_v36, 272 }
 0x200   : > { %11937 = vst [vmem:[#allocation54_spill] sm:$0xff] %v7432_v62  ;;  %v2122_v54 = vsub.f32 %v1686_v41, %v7393_v0  ;;  %v7438_v22 = vsub.f32 %v1689_v10, %v7393_v0  ;;  %v7505_v62 = vsub.s32 5, %v7139_v29 }
 0x201   : > { %v643_v43 = vpop.permute.xlu1 %642  ;;  %v655_v21 = vpop.permute.xlu0 %654 }
 0x202   : > { %v1688_v19 = vsub.f32 %v7191_v49, %v643_v43  ;;  %v7442_v63 = vadd.f32 %v7397_v3, %v2122_v54  ;;  %v1691_v48 = vsub.f32 %v7242_v7, %v655_v21  ;;  %v1954_v54 = vcombine.high %v7379_v53, %v7379_v53  ;;  %11945 = vst [vmem:[#allocation62_spill] sm:$0xff] %v7505_v62 }
 0x203   : > { %886 = vbcast.lane.b32.xlu1 %v7421_v36, 264  ;;  %898 = vbcast.lane.b32.xlu0 %v7421_v36, 288 }
 0x204   : > { %11938 = vst [vmem:[#allocation55_spill] sm:$0xff] %v7442_v63  ;;  %v2124_v9 = vsub.f32 %v1688_v19, %v7393_v0  ;;  %v7449_v20 = vsub.f32 %v1691_v48, %v7393_v0  ;;  %v7469_v53 = vrot.slane %v1954_v54, %v7371_v40 }
 0x205   : > { %v651_v41 = vpop.permute.xlu1 %650  ;;  %v663_v11 = vpop.permute.xlu0 %662 }
 0x206   : > { %v1690_v10 = vsub.f32 %v7217_v59, %v651_v41  ;;  %v7453_v43 = vadd.f32 %v7397_v3, %v2124_v9  ;;  %v1693_v21 = vsub.f32 %v7262_v17, %v663_v11  ;;  %v7484_v54 = vrot.slane %v7469_v53, %v7142_v30 }
 0x207   : > { %894 = vbcast.lane.b32.xlu1 %v7421_v36, 280  ;;  %906 = vbcast.lane.b32.xlu0 %v7421_v36, 304 }
 0x208   : > { %11939 = vst [vmem:[#allocation56_spill] sm:$0xff] %v7453_v43  ;;  %v2126_v19 = vsub.f32 %v1690_v10, %v7393_v0  ;;  %v7462_v48 = vsub.f32 %v1693_v21, %v7393_v0 }
 0x209   : > { %v659_v1 = vpop.permute.xlu1 %658  ;;  %v671_v56 = vpop.permute.xlu0 %670 }
 0x20a   : > { %v1692_v41 = vsub.f32 %v7237_v5, %v659_v1  ;;  %v7466_v9 = vadd.f32 %v7397_v3, %v2126_v19  ;;  %v1695_v11 = vsub.f32 %v7282_v27, %v671_v56 }
 0x20b   : > { %902 = vbcast.lane.b32.xlu1 %v7421_v36, 296  ;;  %914 = vbcast.lane.b32.xlu0 %v7421_v36, 320 }
 0x20c   : > { %11940 = vst [vmem:[#allocation57_spill] sm:$0xff] %v7466_v9  ;;  %v2128_v10 = vsub.f32 %v1692_v41, %v7393_v0  ;;  %v7476_v21 = vsub.f32 %v1695_v11, %v7393_v0 }
 0x20d   : > { %v667_v43 = vpop.permute.xlu1 %666  ;;  %v682_v63 = vpop.permute.xlu0 %681 }
 0x20e   : > { %v1694_v1 = vsub.f32 %v7257_v15, %v667_v43  ;;  %v7480_v19 = vadd.f32 %v7397_v3, %v2128_v10  ;;  %v1697_v56 = vsub.f32 %v7154_v35, %v682_v63 }
 0x20f   : > { %910 = vbcast.lane.b32.xlu1 %v7421_v36, 312  ;;  %922 = vbcast.lane.b32.xlu0 %v7421_v36, 336 }
 0x210   : > { %11941 = vst [vmem:[#allocation58_spill] sm:$0xff] %v7480_v19  ;;  %v2130_v41 = vsub.f32 %v1694_v1, %v7393_v0  ;;  %v7491_v11 = vsub.f32 %v1697_v56, %v7484_v54 }
 0x211   : > { %v675_v43 = vpop.permute.xlu1 %674  ;;  %v690_v10 = vpop.permute.xlu0 %689 }
 0x212   : > { %11942 = vst [vmem:[#allocation59_spill] sm:$0xff] %v7491_v11  ;;  %v1696_v9 = vsub.f32 %v7277_v25, %v675_v43  ;;  %v7495_v19 = vadd.f32 %v7397_v3, %v2130_v41  ;;  %v1699_v47 = vsub.f32 %v7165_v39, %v690_v10 }
 0x213   : > { %918 = vbcast.lane.b32.xlu1 %v7421_v36, 328  ;;  %930 = vbcast.lane.b32.xlu0 %v7421_v36, 352 }
 0x214   : > { %11943 = vst [vmem:[#allocation60_spill] sm:$0xff] %v7495_v19  ;;  %v2132_v63 = vsub.f32 %v1696_v9, %v7393_v0  ;;  %v7502_v1 = vsub.f32 %v1699_v47, %v7484_v54  ;;  %v7515_v0 = vrot.slane %v7333_v28, %v7317_v8 }
 0x215   : > { %v686_v56 = vpop.permute.xlu1 %685  ;;  %v698_v24 = vpop.permute.xlu0 %697 }
 0x216   : > { %11944 = vst [vmem:[#allocation61_spill] sm:$0xff] %v7502_v1  ;;  %v1698_v43 = vsub.f32 %v7146_v32, %v686_v56  ;;  %v7509_v41 = vadd.f32 %v7397_v3, %v2132_v63  ;;  %v1701_v10 = vsub.f32 %v7178_v44, %v698_v24  ;;  %11947 = vst [vmem:[#allocation64_spill] sm:$0xff] %v7515_v0 }
 0x217   : > { %926 = vbcast.lane.b32.xlu1 %v7421_v36, 344  ;;  %938 = vbcast.lane.b32.xlu0 %v7421_v36, 368  ;;  %v7524_v63 = vrot.slane %v7152_v34, %v7505_v62 }
 0x218   : > { %11946 = vst [vmem:[#allocation63_spill] sm:$0xff] %v7509_v41  ;;  %v2134_v47 = vsub.f32 %v1698_v43, %v7484_v54  ;;  %v7520_v9 = vsub.f32 %v1701_v10, %v7484_v54 }
 0x219   : > { %v694_v56 = vpop.permute.xlu1 %693  ;;  %v706_v41 = vpop.permute.xlu0 %705 }
 0x21a   : > { %11948 = vst [vmem:[#allocation65_spill] sm:$0xff] %v7520_v9  ;;  %v1700_v24 = vsub.f32 %v7163_v38, %v694_v56  ;;  %v7528_v19 = vadd.f32 %v7515_v0, %v2134_v47  ;;  %v1703_v1 = vsub.f32 %v7201_v52, %v706_v41 }
 0x21b   : > { %934 = vbcast.lane.b32.xlu1 %v7421_v36, 360  ;;  %949 = vbcast.lane.b32.xlu0 %v7524_v63, 256 }
 0x21c   : > { %11949 = vst [vmem:[#allocation66_spill] sm:$0xff] %v7528_v19  ;;  %v2136_v43 = vsub.f32 %v1700_v24, %v7484_v54  ;;  %v7535_v10 = vsub.f32 %v1703_v1, %v7484_v54 }
 0x21d   : > { %v702_v9 = vpop.permute.xlu1 %701  ;;  %v714_v11 = vpop.permute.xlu0 %713 }
 0x21e   : > { %11950 = vst [vmem:[#allocation67_spill] sm:$0xff] %v7535_v10  ;;  %v1702_v2 = vsub.f32 %v7175_v42, %v702_v9  ;;  %v7539_v56 = vadd.f32 %v7515_v0, %v2136_v43  ;;  %v1705_v47 = vsub.f32 %v7222_v61, %v714_v11 }
 0x21f   : > { %942 = vbcast.lane.b32.xlu1 %v7421_v36, 376  ;;  %957 = vbcast.lane.b32.xlu0 %v7524_v63, 272 }
 0x220   : > { %11951 = vst [vmem:[#allocation68_spill] sm:$0xff] %v7539_v56  ;;  %v2138_v41 = vsub.f32 %v1702_v2, %v7484_v54  ;;  %v7546_v24 = vsub.f32 %v1705_v47, %v7484_v54 }
 0x221   : > { %v710_v1 = vpop.permute.xlu1 %709  ;;  %v722_v10 = vpop.permute.xlu0 %721 }
 0x222   : > { %11952 = vst [vmem:[#allocation69_spill] sm:$0xff] %v7546_v24  ;;  %v1704_v19 = vsub.f32 %v7191_v49, %v710_v1  ;;  %v7550_v9 = vadd.f32 %v7515_v0, %v2138_v41  ;;  %v1707_v43 = vsub.f32 %v7242_v7, %v722_v10 }
 0x223   : > { %953 = vbcast.lane.b32.xlu1 %v7524_v63, 264  ;;  %965 = vbcast.lane.b32.xlu0 %v7524_v63, 288 }
 0x224   : > { %11953 = vst [vmem:[#allocation70_spill] sm:$0xff] %v7550_v9  ;;  %v2140_v36 = vsub.f32 %v1704_v19, %v7484_v54  ;;  %v7557_v2 = vsub.f32 %v1707_v43, %v7484_v54 }
 0x225   : > { %v718_v11 = vpop.permute.xlu1 %717  ;;  %v730_v56 = vpop.permute.xlu0 %729 }
 0x226   : > { %11954 = vst [vmem:[#allocation71_spill] sm:$0xff] %v7557_v2  ;;  %v1706_v47 = vsub.f32 %v7217_v59, %v718_v11  ;;  %v7561_v1 = vadd.f32 %v7515_v0, %v2140_v36  ;;  %v1709_v41 = vsub.f32 %v7262_v17, %v730_v56  ;;  %v1984_v36 = vcombine.high %v7387_v58, %v7387_v58 }
 0x227   : > { %961 = vbcast.lane.b32.xlu1 %v7524_v63, 280  ;;  %973 = vbcast.lane.b32.xlu0 %v7524_v63, 304 }
 0x228   : > { %11955 = vst [vmem:[#allocation72_spill] sm:$0xff] %v7561_v1  ;;  %v2142_v10 = vsub.f32 %v1706_v47, %v7484_v54  ;;  %v7568_v19 = vsub.f32 %v1709_v41, %v7484_v54  ;;  %v7588_v58 = vrot.slane %v1984_v36, %v7142_v30 }
 0x229   : > { %v726_v43 = vpop.permute.xlu1 %725  ;;  %v738_v2 = vpop.permute.xlu0 %737 }
 0x22a   : > { %11956 = vst [vmem:[#allocation73_spill] sm:$0xff] %v7568_v19  ;;  %v1708_v9 = vsub.f32 %v7237_v5, %v726_v43  ;;  %v7572_v11 = vadd.f32 %v7515_v0, %v2142_v10  ;;  %v1711_v56 = vsub.f32 %v7282_v27, %v738_v2 }
 0x22b   : > { %969 = vbcast.lane.b32.xlu1 %v7524_v63, 296  ;;  %981 = vbcast.lane.b32.xlu0 %v7524_v63, 320 }
 0x22c   : > { %11957 = vst [vmem:[#allocation74_spill] sm:$0xff] %v7572_v11  ;;  %v2144_v47 = vsub.f32 %v1708_v9, %v7484_v54  ;;  %v7581_v41 = vsub.f32 %v1711_v56, %v7484_v54 }
 0x22d   : > { %v734_v1 = vpop.permute.xlu1 %733  ;;  %v749_v19 = vpop.permute.xlu0 %748 }
 0x22e   : > { %11958 = vst [vmem:[#allocation75_spill] sm:$0xff] %v7581_v41  ;;  %v1710_v43 = vsub.f32 %v7257_v15, %v734_v1  ;;  %v7585_v10 = vadd.f32 %v7515_v0, %v2144_v47  ;;  %v1713_v2 = vsub.f32 %v7154_v35, %v749_v19 }
 0x22f   : > { %977 = vbcast.lane.b32.xlu1 %v7524_v63, 312  ;;  %989 = vbcast.lane.b32.xlu0 %v7524_v63, 336 }
 0x230   : > { %11959 = vst [vmem:[#allocation76_spill] sm:$0xff] %v7585_v10  ;;  %v2146_v9 = vsub.f32 %v1710_v43, %v7484_v54  ;;  %v7595_v56 = vsub.f32 %v1713_v2, %v7588_v58  ;;  %v7609_v10 = vsub.s32 6, %v7139_v29 }
 0x231   : > { %v742_v11 = vpop.permute.xlu1 %741  ;;  %v757_v41 = vpop.permute.xlu0 %756 }
 0x232   : > { %11960 = vst [vmem:[#allocation77_spill] sm:$0xff] %v7595_v56  ;;  %v1712_v1 = vsub.f32 %v7277_v25, %v742_v11  ;;  %v7599_v47 = vadd.f32 %v7515_v0, %v2146_v9  ;;  %v1715_v36 = vsub.f32 %v7165_v39, %v757_v41  ;;  %11963 = vst [vmem:[#allocation80_spill] sm:$0xff] %v7609_v10 }
 0x233   : > { %985 = vbcast.lane.b32.xlu1 %v7524_v63, 328  ;;  %997 = vbcast.lane.b32.xlu0 %v7524_v63, 352 }
 0x234   : > { %11961 = vst [vmem:[#allocation78_spill] sm:$0xff] %v7599_v47  ;;  %v2148_v19 = vsub.f32 %v1712_v1, %v7484_v54  ;;  %v7606_v43 = vsub.f32 %v1715_v36, %v7588_v58  ;;  %v7619_v54 = vrot.slane %v7333_v28, %v7357_v13 }
 0x235   : > { %v753_v2 = vpop.permute.xlu1 %752  ;;  %v765_v56 = vpop.permute.xlu0 %764 }
 0x236   : > { %11962 = vst [vmem:[#allocation79_spill] sm:$0xff] %v7606_v43  ;;  %v1714_v11 = vsub.f32 %v7146_v32, %v753_v2  ;;  %v7613_v9 = vadd.f32 %v7515_v0, %v2148_v19  ;;  %v1717_v41 = vsub.f32 %v7178_v44, %v765_v56  ;;  %11965 = vst [vmem:[#allocation82_spill] sm:$0xff] %v7619_v54 }
 0x237   : > { %993 = vbcast.lane.b32.xlu1 %v7524_v63, 344  ;;  %1005 = vbcast.lane.b32.xlu0 %v7524_v63, 368  ;;  %v7628_v19 = vrot.slane %v7152_v34, %v7609_v10 }
 0x238   : > { %11964 = vst [vmem:[#allocation81_spill] sm:$0xff] %v7613_v9  ;;  %v2150_v1 = vsub.f32 %v1714_v11, %v7588_v58  ;;  %v7624_v36 = vsub.f32 %v1717_v41, %v7588_v58 }
 0x239   : > { %v761_v2 = vpop.permute.xlu1 %760  ;;  %v773_v9 = vpop.permute.xlu0 %772 }
 0x23a   : > { %11966 = vst [vmem:[#allocation83_spill] sm:$0xff] %v7624_v36  ;;  %v1716_v56 = vsub.f32 %v7163_v38, %v761_v2  ;;  %v7632_v47 = vadd.f32 %v7619_v54, %v2150_v1  ;;  %v1719_v43 = vsub.f32 %v7201_v52, %v773_v9 }
 0x23b   : > { %1001 = vbcast.lane.b32.xlu1 %v7524_v63, 360  ;;  %1016 = vbcast.lane.b32.xlu0 %v7628_v19, 256 }
 0x23c   : > { %11967 = vst [vmem:[#allocation84_spill] sm:$0xff] %v7632_v47  ;;  %v2152_v11 = vsub.f32 %v1716_v56, %v7588_v58  ;;  %v7639_v41 = vsub.f32 %v1719_v43, %v7588_v58 }
 0x23d   : > { %v769_v36 = vpop.permute.xlu1 %768  ;;  %v781_v0 = vpop.permute.xlu0 %780 }
 0x23e   : > { %11968 = vst [vmem:[#allocation85_spill] sm:$0xff] %v7639_v41  ;;  %v1718_v24 = vsub.f32 %v7175_v42, %v769_v36  ;;  %v7643_v2 = vadd.f32 %v7619_v54, %v2152_v11  ;;  %v1721_v1 = vsub.f32 %v7222_v61, %v781_v0 }
 0x23f   : > { %1009 = vbcast.lane.b32.xlu1 %v7524_v63, 376  ;;  %1024 = vbcast.lane.b32.xlu0 %v7628_v19, 272 }
 0x240   : > { %11969 = vst [vmem:[#allocation86_spill] sm:$0xff] %v7643_v2  ;;  %v2154_v9 = vsub.f32 %v1718_v24, %v7588_v58  ;;  %v7650_v56 = vsub.f32 %v1721_v1, %v7588_v58 }
 0x241   : > { %v777_v43 = vpop.permute.xlu1 %776  ;;  %v789_v41 = vpop.permute.xlu0 %788 }
 0x242   : > { %11970 = vst [vmem:[#allocation87_spill] sm:$0xff] %v7650_v56  ;;  %v1720_v47 = vsub.f32 %v7191_v49, %v777_v43  ;;  %v7654_v36 = vadd.f32 %v7619_v54, %v2154_v9  ;;  %v1723_v11 = vsub.f32 %v7242_v7, %v789_v41 }
 0x243   : > { %1020 = vbcast.lane.b32.xlu1 %v7628_v19, 264  ;;  %1032 = vbcast.lane.b32.xlu0 %v7628_v19, 288 }
 0x244   : > { %11971 = vst [vmem:[#allocation88_spill] sm:$0xff] %v7654_v36  ;;  %v2156_v0 = vsub.f32 %v1720_v47, %v7588_v58  ;;  %v7661_v63 = vsub.f32 %v1723_v11, %v7588_v58 }
 0x245   : > { %v785_v24 = vpop.permute.xlu1 %784  ;;  %v797_v2 = vpop.permute.xlu0 %796 }
 0x246   : > { %11972 = vst [vmem:[#allocation89_spill] sm:$0xff] %v7661_v63  ;;  %v1722_v1 = vsub.f32 %v7217_v59, %v785_v24  ;;  %v7665_v43 = vadd.f32 %v7619_v54, %v2156_v0  ;;  %v1725_v9 = vsub.f32 %v7262_v17, %v797_v2  ;;  %v1986_v0 = vcombine.high %v7469_v53, %v7469_v53 }
 0x247   : > { %1028 = vbcast.lane.b32.xlu1 %v7628_v19, 280  ;;  %1040 = vbcast.lane.b32.xlu0 %v7628_v19, 304 }
 0x248   : > { %11973 = vst [vmem:[#allocation90_spill] sm:$0xff] %v7665_v43  ;;  %v2158_v41 = vsub.f32 %v1722_v1, %v7588_v58  ;;  %v7672_v47 = vsub.f32 %v1725_v9, %v7588_v58  ;;  %v7692_v53 = vrot.slane %v1986_v0, %v7142_v30 }
 0x249   : > { %v793_v11 = vpop.permute.xlu1 %792  ;;  %v805_v63 = vpop.permute.xlu0 %804 }
 0x24a   : > { %11974 = vst [vmem:[#allocation91_spill] sm:$0xff] %v7672_v47  ;;  %v1724_v36 = vsub.f32 %v7237_v5, %v793_v11  ;;  %v7676_v24 = vadd.f32 %v7619_v54, %v2158_v41  ;;  %v1727_v2 = vsub.f32 %v7282_v27, %v805_v63 }
 0x24b   : > { %1036 = vbcast.lane.b32.xlu1 %v7628_v19, 296  ;;  %1048 = vbcast.lane.b32.xlu0 %v7628_v19, 320 }
 0x24c   : > { %11975 = vst [vmem:[#allocation92_spill] sm:$0xff] %v7676_v24  ;;  %v2160_v1 = vsub.f32 %v1724_v36, %v7588_v58  ;;  %v7685_v9 = vsub.f32 %v1727_v2, %v7588_v58 }
 0x24d   : > { %v801_v43 = vpop.permute.xlu1 %800  ;;  %v816_v47 = vpop.permute.xlu0 %815 }
 0x24e   : > { %11976 = vst [vmem:[#allocation93_spill] sm:$0xff] %v7685_v9  ;;  %v1726_v11 = vsub.f32 %v7257_v15, %v801_v43  ;;  %v7689_v41 = vadd.f32 %v7619_v54, %v2160_v1  ;;  %v1729_v63 = vsub.f32 %v7154_v35, %v816_v47 }
 0x24f   : > { %1044 = vbcast.lane.b32.xlu1 %v7628_v19, 312  ;;  %1056 = vbcast.lane.b32.xlu0 %v7628_v19, 336 }
 0x250   : > { %11977 = vst [vmem:[#allocation94_spill] sm:$0xff] %v7689_v41  ;;  %v2162_v36 = vsub.f32 %v1726_v11, %v7588_v58  ;;  %v7699_v2 = vsub.f32 %v1729_v63, %v7692_v53  ;;  %v7713_v41 = vsub.s32 7, %v7139_v29 }
 0x251   : > { %v809_v24 = vpop.permute.xlu1 %808  ;;  %v824_v9 = vpop.permute.xlu0 %823 }
 0x252   : > { %11978 = vst [vmem:[#allocation95_spill] sm:$0xff] %v7699_v2  ;;  %v1728_v43 = vsub.f32 %v7277_v25, %v809_v24  ;;  %v7703_v1 = vadd.f32 %v7619_v54, %v2162_v36  ;;  %v1731_v0 = vsub.f32 %v7165_v39, %v824_v9  ;;  %11981 = vst [vmem:[#allocation98_spill] sm:$0xff] %v7713_v41 }
 0x253   : > { %1052 = vbcast.lane.b32.xlu1 %v7628_v19, 328  ;;  %1064 = vbcast.lane.b32.xlu0 %v7628_v19, 352 }
 0x254   : > { %11979 = vst [vmem:[#allocation96_spill] sm:$0xff] %v7703_v1  ;;  %v2164_v47 = vsub.f32 %v1728_v43, %v7588_v58  ;;  %v7710_v11 = vsub.f32 %v1731_v0, %v7692_v53  ;;  %v7723_v58 = vrot.slane %v7333_v28, %v7364_v45 }
 0x255   : > { %v820_v63 = vpop.permute.xlu1 %819  ;;  %v832_v2 = vpop.permute.xlu0 %831 }
 0x256   : > { %11980 = vst [vmem:[#allocation97_spill] sm:$0xff] %v7710_v11  ;;  %v1730_v24 = vsub.f32 %v7146_v32, %v820_v63  ;;  %v7717_v36 = vadd.f32 %v7619_v54, %v2164_v47  ;;  %v1733_v9 = vsub.f32 %v7178_v44, %v832_v2  ;;  %11983 = vst [vmem:[#allocation100_spill] sm:$0xff] %v7723_v58 }
 0x257   : > { %1060 = vbcast.lane.b32.xlu1 %v7628_v19, 344  ;;  %1072 = vbcast.lane.b32.xlu0 %v7628_v19, 368  ;;  %v7732_v47 = vrot.slane %v7152_v34, %v7713_v41 }
 0x258   : > { %11982 = vst [vmem:[#allocation99_spill] sm:$0xff] %v7717_v36  ;;  %v2166_v43 = vsub.f32 %v1730_v24, %v7692_v53  ;;  %v7728_v29 = vsub.f32 %v1733_v9, %v7692_v53 }
 0x259   : > { %v828_v0 = vpop.permute.xlu1 %827  ;;  %v840_v63 = vpop.permute.xlu0 %839 }
 0x25a   : > { %11984 = vst [vmem:[#allocation101_spill] sm:$0xff] %v7728_v29  ;;  %v1732_v2 = vsub.f32 %v7163_v38, %v828_v0  ;;  %v7736_v36 = vadd.f32 %v7723_v58, %v2166_v43  ;;  %v1735_v1 = vsub.f32 %v7201_v52, %v840_v63 }
 0x25b   : > { %1068 = vbcast.lane.b32.xlu1 %v7628_v19, 360  ;;  %1083 = vbcast.lane.b32.xlu0 %v7732_v47, 256 }
 0x25c   : > { %11985 = vst [vmem:[#allocation102_spill] sm:$0xff] %v7736_v36  ;;  %v2168_v24 = vsub.f32 %v1732_v2, %v7692_v53  ;;  %v7743_v9 = vsub.f32 %v1735_v1, %v7692_v53 }
 0x25d   : > { %v836_v29 = vpop.permute.xlu1 %835  ;;  %v848_v56 = vpop.permute.xlu0 %847 }
 0x25e   : > { %11986 = vst [vmem:[#allocation103_spill] sm:$0xff] %v7743_v9  ;;  %v1734_v11 = vsub.f32 %v7175_v42, %v836_v29  ;;  %v7747_v0 = vadd.f32 %v7723_v58, %v2168_v24  ;;  %v1737_v43 = vsub.f32 %v7222_v61, %v848_v56  ;;  %v1939_v24 = vcombine.high %v7152_v34, %v7152_v34 }
 0x25f   : > { %1076 = vbcast.lane.b32.xlu1 %v7628_v19, 376  ;;  %1091 = vbcast.lane.b32.xlu0 %v7732_v47, 272 }
 0x260   : > { %11987 = vst [vmem:[#allocation104_spill] sm:$0xff] %v7747_v0  ;;  %v2170_v63 = vsub.f32 %v1734_v11, %v7692_v53  ;;  %v7754_v2 = vsub.f32 %v1737_v43, %v7692_v53  ;;  %v7774_v34 = vrot.slane %v1939_v24, %v7371_v40 }
 0x261   : > { %v844_v1 = vpop.permute.xlu1 %843  ;;  %v856_v9 = vpop.permute.xlu0 %855 }
 0x262   : > { %11988 = vst [vmem:[#allocation105_spill] sm:$0xff] %v7754_v2  ;;  %v1736_v36 = vsub.f32 %v7191_v49, %v844_v1  ;;  %v7758_v29 = vadd.f32 %v7723_v58, %v2170_v63  ;;  %v1739_v56 = vsub.f32 %v7242_v7, %v856_v9  ;;  %v7789_v24 = vrot.slane %v7774_v34, %v7371_v40 }
 0x263   : > { %1087 = vbcast.lane.b32.xlu1 %v7732_v47, 264  ;;  %1099 = vbcast.lane.b32.xlu0 %v7732_v47, 288 }
 0x264   : > { %11989 = vst [vmem:[#allocation106_spill] sm:$0xff] %v7758_v29  ;;  %v2172_v19 = vsub.f32 %v1736_v36, %v7692_v53  ;;  %v7767_v11 = vsub.f32 %v1739_v56, %v7692_v53 }
 0x265   : > { %v852_v43 = vpop.permute.xlu1 %851  ;;  %v864_v0 = vpop.permute.xlu0 %863 }
 0x266   : > { %11990 = vst [vmem:[#allocation107_spill] sm:$0xff] %v7767_v11  ;;  %v1738_v1 = vsub.f32 %v7217_v59, %v852_v43  ;;  %v7771_v63 = vadd.f32 %v7723_v58, %v2172_v19  ;;  %v1741_v9 = vsub.f32 %v7262_v17, %v864_v0 }
 0x267   : > { %1095 = vbcast.lane.b32.xlu1 %v7732_v47, 280  ;;  %1107 = vbcast.lane.b32.xlu0 %v7732_v47, 304 }
 0x268   : > { %11991 = vst [vmem:[#allocation108_spill] sm:$0xff] %v7771_v63  ;;  %v2174_v36 = vsub.f32 %v1738_v1, %v7692_v53  ;;  %v7781_v56 = vsub.f32 %v1741_v9, %v7692_v53 }
 0x269   : > { %v860_v29 = vpop.permute.xlu1 %859  ;;  %v872_v11 = vpop.permute.xlu0 %871 }
 0x26a   : > { %11992 = vst [vmem:[#allocation109_spill] sm:$0xff] %v7781_v56  ;;  %v1740_v43 = vsub.f32 %v7237_v5, %v860_v29  ;;  %v7785_v19 = vadd.f32 %v7723_v58, %v2174_v36  ;;  %v1743_v0 = vsub.f32 %v7282_v27, %v872_v11  ;;  %v7804_v56 = vrot.slane %v7789_v24, %v7142_v30 }
 0x26b   : > { %1103 = vbcast.lane.b32.xlu1 %v7732_v47, 296  ;;  %1115 = vbcast.lane.b32.xlu0 %v7732_v47, 320 }
 0x26c   : > { %11993 = vst [vmem:[#allocation110_spill] sm:$0xff] %v7785_v19  ;;  %v2176_v1 = vsub.f32 %v1740_v43, %v7692_v53  ;;  %v7796_v9 = vsub.f32 %v1743_v0, %v7692_v53 }
 0x26d   : > { %v868_v29 = vpop.permute.xlu1 %867  ;;  %v883_v36 = vpop.permute.xlu0 %882 }
 0x26e   : > { %11994 = vst [vmem:[#allocation111_spill] sm:$0xff] %v7796_v9  ;;  %v1742_v63 = vsub.f32 %v7257_v15, %v868_v29  ;;  %v7800_v19 = vadd.f32 %v7723_v58, %v2176_v1  ;;  %v1745_v11 = vsub.f32 %v7154_v35, %v883_v36 }
 0x26f   : > { %1111 = vbcast.lane.b32.xlu1 %v7732_v47, 312  ;;  %1123 = vbcast.lane.b32.xlu0 %v7732_v47, 336 }
 0x270   : > { %11995 = vst [vmem:[#allocation112_spill] sm:$0xff] %v7800_v19  ;;  %v2178_v43 = vsub.f32 %v1742_v63, %v7692_v53  ;;  %v7811_v0 = vsub.f32 %v1745_v11, %v7804_v56 }
 0x271   : > { %v876_v29 = vpop.permute.xlu1 %875  ;;  %v891_v1 = vpop.permute.xlu0 %890 }
 0x272   : > { %11996 = vst [vmem:[#allocation113_spill] sm:$0xff] %v7811_v0  ;;  %v1744_v9 = vsub.f32 %v7277_v25, %v876_v29  ;;  %v7815_v19 = vadd.f32 %v7723_v58, %v2178_v43  ;;  %v1747_v2 = vsub.f32 %v7165_v39, %v891_v1  ;;  %v7832_v1 = vrot.slane %v7333_v28, %v7406_v23 }
 0x273   : > { %1119 = vbcast.lane.b32.xlu1 %v7732_v47, 328  ;;  %1131 = vbcast.lane.b32.xlu0 %v7732_v47, 352 }
 0x274   : > { %11997 = vst [vmem:[#allocation114_spill] sm:$0xff] %v7815_v19  ;;  %v2180_v36 = vsub.f32 %v1744_v9, %v7692_v53  ;;  %v7822_v63 = vsub.f32 %v1747_v2, %v7804_v56  ;;  %12000 = vst [vmem:[#allocation117_spill] sm:$0xff] %v7832_v1 }
 0x275   : > { %v887_v11 = vpop.permute.xlu1 %886  ;;  %v899_v54 = vpop.permute.xlu0 %898 }
 0x276   : > { %11998 = vst [vmem:[#allocation115_spill] sm:$0xff] %v7822_v63  ;;  %v1746_v0 = vsub.f32 %v7146_v32, %v887_v11  ;;  %v7826_v29 = vadd.f32 %v7723_v58, %v2180_v36  ;;  %v1749_v43 = vsub.f32 %v7178_v44, %v899_v54 }
 0x277   : > { %1127 = vbcast.lane.b32.xlu1 %v7732_v47, 344  ;;  %1139 = vbcast.lane.b32.xlu0 %v7732_v47, 368 }
 0x278   : > { %11999 = vst [vmem:[#allocation116_spill] sm:$0xff] %v7826_v29  ;;  %v2182_v53 = vsub.f32 %v1746_v0, %v7804_v56  ;;  %v7837_v2 = vsub.f32 %v1749_v43, %v7804_v56 }
 0x279   : > { %v895_v9 = vpop.permute.xlu1 %894  ;;  %v907_v36 = vpop.permute.xlu0 %906 }
 0x27a   : > { %12001 = vst [vmem:[#allocation118_spill] sm:$0xff] %v7837_v2  ;;  %v1748_v11 = vsub.f32 %v7163_v38, %v895_v9  ;;  %v7841_v29 = vadd.f32 %v7832_v1, %v2182_v53  ;;  %v1751_v54 = vsub.f32 %v7201_v52, %v907_v36 }
 0x27b   : > { %1135 = vbcast.lane.b32.xlu1 %v7732_v47, 360  ;;  %1174 = vbcast.lane.b32.xlu0 %v7150_v33, 304 }
 0x27c   : > { %12002 = vst [vmem:[#allocation119_spill] sm:$0xff] %v7841_v29  ;;  %v2184_v19 = vsub.f32 %v1748_v11, %v7804_v56  ;;  %v7848_v0 = vsub.f32 %v1751_v54, %v7804_v56 }
 0x27d   : > { %v903_v43 = vpop.permute.xlu1 %902  ;;  %v915_v63 = vpop.permute.xlu0 %914 }
 0x27e   : > { %12003 = vst [vmem:[#allocation120_spill] sm:$0xff] %v7848_v0  ;;  %v1750_v2 = vsub.f32 %v7175_v42, %v903_v43  ;;  %v7852_v9 = vadd.f32 %v7832_v1, %v2184_v19  ;;  %v1753_v53 = vsub.f32 %v7222_v61, %v915_v63 }
 0x27f   : > { %1178 = vbcast.lane.b32.xlu1 %v7150_v33, 312  ;;  %1182 = vbcast.lane.b32.xlu0 %v7150_v33, 320 }
 0x280   : > { %12004 = vst [vmem:[#allocation121_spill] sm:$0xff] %v7852_v9  ;;  %v2186_v36 = vsub.f32 %v1750_v2, %v7804_v56  ;;  %v7859_v11 = vsub.f32 %v1753_v53, %v7804_v56 }
 0x281   : > { %v911_v54 = vpop.permute.xlu1 %910  ;;  %v923_v0 = vpop.permute.xlu0 %922 }
 0x282   : > { %12005 = vst [vmem:[#allocation122_spill] sm:$0xff] %v7859_v11  ;;  %v1752_v29 = vsub.f32 %v7191_v49, %v911_v54  ;;  %v7863_v43 = vadd.f32 %v7832_v1, %v2186_v36  ;;  %v1755_v19 = vsub.f32 %v7242_v7, %v923_v0  ;;  %v1955_v36 = vcombine.high %v7774_v34, %v7774_v34 }
 0x283   : > { %1143 = vbcast.lane.b32.xlu1 %v7732_v47, 376  ;;  %1190 = vbcast.lane.b32.xlu0 %v7150_v33, 336 }
 0x284   : > { %12006 = vst [vmem:[#allocation123_spill] sm:$0xff] %v7863_v43  ;;  %v2188_v63 = vsub.f32 %v1752_v29, %v7804_v56  ;;  %v7870_v2 = vsub.f32 %v1755_v19, %v7804_v56  ;;  %v7890_v34 = vrot.slane %v1955_v36, %v7371_v40 }
 0x285   : > { %v919_v53 = vpop.permute.xlu1 %918  ;;  %v931_v11 = vpop.permute.xlu0 %930 }
 0x286   : > { %12007 = vst [vmem:[#allocation124_spill] sm:$0xff] %v7870_v2  ;;  %v1754_v9 = vsub.f32 %v7217_v59, %v919_v53  ;;  %v7874_v54 = vadd.f32 %v7832_v1, %v2188_v63  ;;  %v1757_v0 = vsub.f32 %v7262_v17, %v931_v11 }
 0x287   : > { %1186 = vbcast.lane.b32.xlu1 %v7150_v33, 328  ;;  %1198 = vbcast.lane.b32.xlu0 %v7150_v33, 352 }
 0x288   : > { %12008 = vst [vmem:[#allocation125_spill] sm:$0xff] %v7874_v54  ;;  %v2190_v47 = vsub.f32 %v1754_v9, %v7804_v56  ;;  %v7883_v29 = vsub.f32 %v1757_v0, %v7804_v56 }
 0x289   : > { %v927_v19 = vpop.permute.xlu1 %926  ;;  %v939_v43 = vpop.permute.xlu0 %938 }
 0x28a   : > { %12009 = vst [vmem:[#allocation126_spill] sm:$0xff] %v7883_v29  ;;  %v1756_v53 = vsub.f32 %v7237_v5, %v927_v19  ;;  %v7887_v63 = vadd.f32 %v7832_v1, %v2190_v47  ;;  %v1759_v11 = vsub.f32 %v7282_v27, %v939_v43  ;;  %v7901_v19 = vrot.slane %v7144_v31, %v7317_v8 }
 0x28b   : > { %1194 = vbcast.lane.b32.xlu1 %v7150_v33, 344  ;;  %1206 = vbcast.lane.b32.xlu0 %v7150_v33, 368  ;;  %v7909_v43 = vrot.slane %v7890_v34, %v7142_v30 }
 0x28c   : > { %12010 = vst [vmem:[#allocation127_spill] sm:$0xff] %v7887_v63  ;;  %v2192_v9 = vsub.f32 %v1756_v53, %v7804_v56  ;;  %v7897_v0 = vsub.f32 %v1759_v11, %v7804_v56 }
 0x28d   : > { %v935_v54 = vpop.permute.xlu1 %934  ;;  %v950_v36 = vpop.permute.xlu0 %949 }
 0x28e   : > { %12011 = vst [vmem:[#allocation128_spill] sm:$0xff] %v7897_v0  ;;  %v1758_v47 = vsub.f32 %v7257_v15, %v935_v54  ;;  %v7905_v63 = vadd.f32 %v7832_v1, %v2192_v9  ;;  %v1761_v53 = vsub.f32 %v7154_v35, %v950_v36 }
 0x28f   : > { %1202 = vbcast.lane.b32.xlu1 %v7150_v33, 360  ;;  %1217 = vbcast.lane.b32.xlu0 %v7901_v19, 256 }
 0x290   : > { %12012 = vst [vmem:[#allocation129_spill] sm:$0xff] %v7905_v63  ;;  %v2194_v11 = vsub.f32 %v1758_v47, %v7804_v56  ;;  %v7916_v0 = vsub.f32 %v1761_v53, %v7909_v43 }
 0x291   : > { %v943_v54 = vpop.permute.xlu1 %942  ;;  %v958_v9 = vpop.permute.xlu0 %957 }
 0x292   : > { %12013 = vst [vmem:[#allocation130_spill] sm:$0xff] %v7916_v0  ;;  %v1760_v29 = vsub.f32 %v7277_v25, %v943_v54  ;;  %v7920_v63 = vadd.f32 %v7832_v1, %v2194_v11  ;;  %v1763_v2 = vsub.f32 %v7165_v39, %v958_v9 }
 0x293   : > { %1210 = vbcast.lane.b32.xlu1 %v7150_v33, 376  ;;  %1225 = vbcast.lane.b32.xlu0 %v7901_v19, 272  ;;  %v7937_v33 = vrot.slane %v7333_v28, %v7505_v62 }
 0x294   : > { %12014 = vst [vmem:[#allocation131_spill] sm:$0xff] %v7920_v63  ;;  %v2196_v36 = vsub.f32 %v1760_v29, %v7804_v56  ;;  %v7927_v47 = vsub.f32 %v1763_v2, %v7909_v43 }
 0x295   : > { %v954_v53 = vpop.permute.xlu1 %953  ;;  %v966_v58 = vpop.permute.xlu0 %965  ;;  %12017 = vst [vmem:[#allocation134_spill] sm:$0xff] %v7937_v33 }
 0x296   : > { %12015 = vst [vmem:[#allocation132_spill] sm:$0xff] %v7927_v47  ;;  %v1762_v0 = vsub.f32 %v7146_v32, %v954_v53  ;;  %v7931_v54 = vadd.f32 %v7832_v1, %v2196_v36  ;;  %v1765_v11 = vsub.f32 %v7178_v44, %v966_v58 }
 0x297   : > { %1221 = vbcast.lane.b32.xlu1 %v7901_v19, 264  ;;  %1233 = vbcast.lane.b32.xlu0 %v7901_v19, 288 }
 0x298   : > { %12016 = vst [vmem:[#allocation133_spill] sm:$0xff] %v7931_v54  ;;  %v2198_v56 = vsub.f32 %v1762_v0, %v7909_v43  ;;  %v7942_v2 = vsub.f32 %v1765_v11, %v7909_v43 }
 0x299   : > { %v962_v29 = vpop.permute.xlu1 %961  ;;  %v974_v36 = vpop.permute.xlu0 %973 }
 0x29a   : > { %12018 = vst [vmem:[#allocation135_spill] sm:$0xff] %v7942_v2  ;;  %v1764_v9 = vsub.f32 %v7163_v38, %v962_v29  ;;  %v7946_v53 = vadd.f32 %v7937_v33, %v2198_v56  ;;  %v1767_v58 = vsub.f32 %v7201_v52, %v974_v36 }
 0x29b   : > { %1229 = vbcast.lane.b32.xlu1 %v7901_v19, 280  ;;  %1241 = vbcast.lane.b32.xlu0 %v7901_v19, 304 }
 0x29c   : > { %12019 = vst [vmem:[#allocation136_spill] sm:$0xff] %v7946_v53  ;;  %v2200_v54 = vsub.f32 %v1764_v9, %v7909_v43  ;;  %v7953_v0 = vsub.f32 %v1767_v58, %v7909_v43 }
 0x29d   : > { %v970_v11 = vpop.permute.xlu1 %969  ;;  %v982_v2 = vpop.permute.xlu0 %981 }
 0x29e   : > { %12020 = vst [vmem:[#allocation137_spill] sm:$0xff] %v7953_v0  ;;  %v1766_v63 = vsub.f32 %v7175_v42, %v970_v11  ;;  %v7957_v29 = vadd.f32 %v7937_v33, %v2200_v54  ;;  %v1769_v56 = vsub.f32 %v7222_v61, %v982_v2 }
 0x29f   : > { %1237 = vbcast.lane.b32.xlu1 %v7901_v19, 296  ;;  %1249 = vbcast.lane.b32.xlu0 %v7901_v19, 320 }
 0x2a0   : > { %12021 = vst [vmem:[#allocation138_spill] sm:$0xff] %v7957_v29  ;;  %v2202_v36 = vsub.f32 %v1766_v63, %v7909_v43  ;;  %v7964_v9 = vsub.f32 %v1769_v56, %v7909_v43 }
 0x2a1   : > { %v978_v58 = vpop.permute.xlu1 %977  ;;  %v990_v0 = vpop.permute.xlu0 %989 }
 0x2a2   : > { %12022 = vst [vmem:[#allocation139_spill] sm:$0xff] %v7964_v9  ;;  %v1768_v53 = vsub.f32 %v7191_v49, %v978_v58  ;;  %v7968_v11 = vadd.f32 %v7937_v33, %v2202_v36  ;;  %v1771_v54 = vsub.f32 %v7242_v7, %v990_v0 }
 0x2a3   : > { %1245 = vbcast.lane.b32.xlu1 %v7901_v19, 312  ;;  %1257 = vbcast.lane.b32.xlu0 %v7901_v19, 336 }
 0x2a4   : > { %12023 = vst [vmem:[#allocation140_spill] sm:$0xff] %v7968_v11  ;;  %v2204_v2 = vsub.f32 %v1768_v53, %v7909_v43  ;;  %v7975_v63 = vsub.f32 %v1771_v54, %v7909_v43 }
 0x2a5   : > { %v986_v56 = vpop.permute.xlu1 %985  ;;  %v998_v9 = vpop.permute.xlu0 %997 }
 0x2a6   : > { %12024 = vst [vmem:[#allocation141_spill] sm:$0xff] %v7975_v63  ;;  %v1770_v29 = vsub.f32 %v7217_v59, %v986_v56  ;;  %v7979_v58 = vadd.f32 %v7937_v33, %v2204_v2  ;;  %v1773_v36 = vsub.f32 %v7262_v17, %v998_v9  ;;  %v1985_v2 = vcombine.high %v7789_v24, %v7789_v24 }
 0x2a7   : > { %1253 = vbcast.lane.b32.xlu1 %v7901_v19, 328  ;;  %1265 = vbcast.lane.b32.xlu0 %v7901_v19, 352 }
 0x2a8   : > { %12025 = vst [vmem:[#allocation142_spill] sm:$0xff] %v7979_v58  ;;  %v2206_v0 = vsub.f32 %v1770_v29, %v7909_v43  ;;  %v7986_v53 = vsub.f32 %v1773_v36, %v7909_v43 }
 0x2a9   : > { %v994_v54 = vpop.permute.xlu1 %993  ;;  %v1006_v63 = vpop.permute.xlu0 %1005 }
 0x2aa   : > { %12026 = vst [vmem:[#allocation143_spill] sm:$0xff] %v7986_v53  ;;  %v1772_v11 = vsub.f32 %v7237_v5, %v994_v54  ;;  %v7990_v56 = vadd.f32 %v7937_v33, %v2206_v0  ;;  %v1775_v9 = vsub.f32 %v7282_v27, %v1006_v63  ;;  %v8003_v54 = vrot.slane %v7144_v31, %v7357_v13 }
 0x2ab   : > { %1261 = vbcast.lane.b32.xlu1 %v7901_v19, 344  ;;  %1273 = vbcast.lane.b32.xlu0 %v7901_v19, 368  ;;  %v8010_v63 = vrot.slane %v1985_v2, %v7142_v30 }
 0x2ac   : > { %12027 = vst [vmem:[#allocation144_spill] sm:$0xff] %v7990_v56  ;;  %v2208_v29 = vsub.f32 %v1772_v11, %v7909_v43  ;;  %v7999_v36 = vsub.f32 %v1775_v9, %v7909_v43 }
 0x2ad   : > { %v1002_v58 = vpop.permute.xlu1 %1001  ;;  %v1017_v56 = vpop.permute.xlu0 %1016 }
 0x2ae   : > { %12028 = vst [vmem:[#allocation145_spill] sm:$0xff] %v7999_v36  ;;  %v1774_v0 = vsub.f32 %v7257_v15, %v1002_v58  ;;  %v8007_v24 = vadd.f32 %v7937_v33, %v2208_v29  ;;  %v1777_v11 = vsub.f32 %v7154_v35, %v1017_v56 }
 0x2af   : > { %1269 = vbcast.lane.b32.xlu1 %v7901_v19, 360  ;;  %1284 = vbcast.lane.b32.xlu0 %v8003_v54, 256 }
 0x2b0   : > { %12029 = vst [vmem:[#allocation146_spill] sm:$0xff] %v8007_v24  ;;  %v2210_v9 = vsub.f32 %v1774_v0, %v7909_v43  ;;  %v8017_v36 = vsub.f32 %v1777_v11, %v8010_v63 }
 0x2b1   : > { %v1010_v53 = vpop.permute.xlu1 %1009  ;;  %v1025_v47 = vpop.permute.xlu0 %1024 }
 0x2b2   : > { %12030 = vst [vmem:[#allocation147_spill] sm:$0xff] %v8017_v36  ;;  %v1776_v58 = vsub.f32 %v7277_v25, %v1010_v53  ;;  %v8021_v29 = vadd.f32 %v7937_v33, %v2210_v9  ;;  %v1779_v2 = vsub.f32 %v7165_v39, %v1025_v47  ;;  %v8037_v47 = vrot.slane %v7333_v28, %v7609_v10 }
 0x2b3   : > { %1277 = vbcast.lane.b32.xlu1 %v7901_v19, 376  ;;  %1292 = vbcast.lane.b32.xlu0 %v8003_v54, 272 }
 0x2b4   : > { %12031 = vst [vmem:[#allocation148_spill] sm:$0xff] %v8021_v29  ;;  %v2212_v56 = vsub.f32 %v1776_v58, %v7909_v43  ;;  %v8028_v0 = vsub.f32 %v1779_v2, %v8010_v63  ;;  %12034 = vst [vmem:[#allocation151_spill] sm:$0xff] %v8037_v47 }
 0x2b5   : > { %v1021_v11 = vpop.permute.xlu1 %1020  ;;  %v1033_v36 = vpop.permute.xlu0 %1032 }
 0x2b6   : > { %12032 = vst [vmem:[#allocation149_spill] sm:$0xff] %v8028_v0  ;;  %v1778_v24 = vsub.f32 %v7146_v32, %v1021_v11  ;;  %v8032_v53 = vadd.f32 %v7937_v33, %v2212_v56  ;;  %v1781_v9 = vsub.f32 %v7178_v44, %v1033_v36 }
 0x2b7   : > { %1300 = vbcast.lane.b32.xlu0 %v8003_v54, 288 }
 0x2b8   : > { %12033 = vst [vmem:[#allocation150_spill] sm:$0xff] %v8032_v53  ;;  %v2214_v19 = vsub.f32 %v1778_v24, %v8010_v63  ;;  %v8042_v43 = vsub.f32 %v1781_v9, %v8010_v63 }
 0x2b9   : > { %v1029_v58 = vpop.permute.xlu1 %1028  ;;  %v1041_v11 = vpop.permute.xlu0 %1040 }
 0x2ba   : > { %12035 = vst [vmem:[#allocation152_spill] sm:$0xff] %v8042_v43  ;;  %v1780_v2 = vsub.f32 %v7163_v38, %v1029_v58  ;;  %v8046_v56 = vadd.f32 %v8037_v47, %v2214_v19  ;;  %v1783_v36 = vsub.f32 %v7201_v52, %v1041_v11 }
 0x2bb   : > { %1308 = vbcast.lane.b32.xlu0 %v8003_v54, 304 }
 0x2bc   : > { %12036 = vst [vmem:[#allocation153_spill] sm:$0xff] %v8046_v56  ;;  %v2216_v53 = vsub.f32 %v1780_v2, %v8010_v63  ;;  %v8052_v24 = vsub.f32 %v1783_v36, %v8010_v63 }
 0x2bd   : > { %v1037_v29 = vpop.permute.xlu1 %1036  ;;  %v1049_v43 = vpop.permute.xlu0 %1048 }
 0x2be   : > { %12037 = vst [vmem:[#allocation154_spill] sm:$0xff] %v8052_v24  ;;  %v1782_v9 = vsub.f32 %v7175_v42, %v1037_v29  ;;  %v8056_v0 = vadd.f32 %v8037_v47, %v2216_v53  ;;  %v1785_v58 = vsub.f32 %v7222_v61, %v1049_v43 }
 0x2bf   : > { %1316 = vbcast.lane.b32.xlu0 %v8003_v54, 320 }
 0x2c0   : > { %12038 = vst [vmem:[#allocation155_spill] sm:$0xff] %v8056_v0  ;;  %v2218_v19 = vsub.f32 %v1782_v9, %v8010_v63  ;;  %v8062_v2 = vsub.f32 %v1785_v58, %v8010_v63 }
 0x2c1   : > { %v1045_v11 = vpop.permute.xlu1 %1044  ;;  %v1057_v56 = vpop.permute.xlu0 %1056 }
 0x2c2   : > { %12039 = vst [vmem:[#allocation156_spill] sm:$0xff] %v8062_v2  ;;  %v1784_v36 = vsub.f32 %v7191_v49, %v1045_v11  ;;  %v8066_v24 = vadd.f32 %v8037_v47, %v2218_v19  ;;  %v1787_v29 = vsub.f32 %v7242_v7, %v1057_v56 }
 0x2c3   : > { %1324 = vbcast.lane.b32.xlu0 %v8003_v54, 336 }
 0x2c4   : > { %12040 = vst [vmem:[#allocation157_spill] sm:$0xff] %v8066_v24  ;;  %v2220_v53 = vsub.f32 %v1784_v36, %v8010_v63  ;;  %v8072_v43 = vsub.f32 %v1787_v29, %v8010_v63 }
 0x2c5   : > { %v1053_v9 = vpop.permute.xlu1 %1052  ;;  %v1065_v0 = vpop.permute.xlu0 %1064 }
 0x2c6   : > { %12041 = vst [vmem:[#allocation158_spill] sm:$0xff] %v8072_v43  ;;  %v1786_v58 = vsub.f32 %v7217_v59, %v1053_v9  ;;  %v8076_v2 = vadd.f32 %v8037_v47, %v2220_v53  ;;  %v1789_v11 = vsub.f32 %v7262_v17, %v1065_v0  ;;  %v1987_v53 = vcombine.high %v7890_v34, %v7890_v34 }
 0x2c7   : > { %1332 = vbcast.lane.b32.xlu0 %v8003_v54, 352 }
 0x2c8   : > { %12042 = vst [vmem:[#allocation159_spill] sm:$0xff] %v8076_v2  ;;  %v2222_v19 = vsub.f32 %v1786_v58, %v8010_v63  ;;  %v8082_v56 = vsub.f32 %v1789_v11, %v8010_v63  ;;  %v8105_v34 = vrot.slane %v1987_v53, %v7142_v30 }
 0x2c9   : > { %v1061_v36 = vpop.permute.xlu1 %1060  ;;  %v1073_v24 = vpop.permute.xlu0 %1072 }
 0x2ca   : > { %12043 = vst [vmem:[#allocation160_spill] sm:$0xff] %v8082_v56  ;;  %v1788_v29 = vsub.f32 %v7237_v5, %v1061_v36  ;;  %v8086_v43 = vadd.f32 %v8037_v47, %v2222_v19  ;;  %v1791_v9 = vsub.f32 %v7282_v27, %v1073_v24  ;;  %v8098_v36 = vrot.slane %v7144_v31, %v7364_v45 }
 0x2cb   : > { %1340 = vbcast.lane.b32.xlu0 %v8003_v54, 368 }
 0x2cc   : > { %12044 = vst [vmem:[#allocation161_spill] sm:$0xff] %v8086_v43  ;;  %v2224_v0 = vsub.f32 %v1788_v29, %v8010_v63  ;;  %v8094_v58 = vsub.f32 %v1791_v9, %v8010_v63 }
 0x2cd   : > { %v1069_v11 = vpop.permute.xlu1 %1068  ;;  %v1084_v43 = vpop.permute.xlu0 %1083 }
 0x2ce   : > { %12045 = vst [vmem:[#allocation162_spill] sm:$0xff] %v8094_v58  ;;  %v1790_v19 = vsub.f32 %v7257_v15, %v1069_v11  ;;  %v8102_v2 = vadd.f32 %v8037_v47, %v2224_v0  ;;  %v1793_v24 = vsub.f32 %v7154_v35, %v1084_v43 }
 0x2cf   : > { %1351 = vbcast.lane.b32.xlu0 %v8098_v36, 256 }
 0x2d0   : > { %12046 = vst [vmem:[#allocation163_spill] sm:$0xff] %v8102_v2  ;;  %v2226_v29 = vsub.f32 %v1790_v19, %v8010_v63  ;;  %v8111_v9 = vsub.f32 %v1793_v24, %v8105_v34 }
 0x2d1   : > { %v1077_v58 = vpop.permute.xlu1 %1076  ;;  %v1092_v11 = vpop.permute.xlu0 %1091 }
 0x2d2   : > { %12047 = vst [vmem:[#allocation164_spill] sm:$0xff] %v8111_v9  ;;  %v1792_v56 = vsub.f32 %v7277_v25, %v1077_v58  ;;  %v8115_v33 = vadd.f32 %v8037_v47, %v2226_v29  ;;  %v1795_v0 = vsub.f32 %v7165_v39, %v1092_v11  ;;  %v8131_v29 = vrot.slane %v7333_v28, %v7713_v41 }
 0x2d3   : > { %1359 = vbcast.lane.b32.xlu0 %v8098_v36, 272 }
 0x2d4   : > { %12048 = vst [vmem:[#allocation165_spill] sm:$0xff] %v8115_v33  ;;  %v2228_v53 = vsub.f32 %v1792_v56, %v8010_v63  ;;  %v8121_v43 = vsub.f32 %v1795_v0, %v8105_v34  ;;  %12051 = vst [vmem:[#allocation168_spill] sm:$0xff] %v8131_v29 }
 0x2d5   : > { %v1088_v19 = vpop.permute.xlu1 %1087  ;;  %v1100_v2 = vpop.permute.xlu0 %1099 }
 0x2d6   : > { %12049 = vst [vmem:[#allocation166_spill] sm:$0xff] %v8121_v43  ;;  %v1794_v24 = vsub.f32 %v7146_v32, %v1088_v19  ;;  %v8125_v9 = vadd.f32 %v8037_v47, %v2228_v53  ;;  %v1797_v58 = vsub.f32 %v7178_v44, %v1100_v2 }
 0x2d7   : > { %595 = vadd.xlane.f32.xlu1 %v7353_v12  ;;  %1367 = vbcast.lane.b32.xlu0 %v8098_v36, 288 }
 0x2d8   : > { %12050 = vst [vmem:[#allocation167_spill] sm:$0xff] %v8125_v9  ;;  %v2230_v63 = vsub.f32 %v1794_v24, %v8105_v34  ;;  %v8136_v56 = vsub.f32 %v1797_v58, %v8105_v34 }
 0x2d9   : > { %v1096_v11 = vpop.permute.xlu1 %1095  ;;  %v1108_v53 = vpop.permute.xlu0 %1107 }
 0x2da   : > { %12052 = vst [vmem:[#allocation169_spill] sm:$0xff] %v8136_v56  ;;  %v1796_v0 = vsub.f32 %v7163_v38, %v1096_v11  ;;  %v8140_v19 = vadd.f32 %v8131_v29, %v2230_v63  ;;  %v1799_v12 = vsub.f32 %v7201_v52, %v1108_v53 }
 0x2db   : > { %597 = vadd.xlane.f32.xlu1 %v7359_v14  ;;  %1375 = vbcast.lane.b32.xlu0 %v8098_v36, 304 }
 0x2dc   : > { %12053 = vst [vmem:[#allocation170_spill] sm:$0xff] %v8140_v19  ;;  %v2232_v28 = vsub.f32 %v1796_v0, %v8105_v34  ;;  %v8147_v2 = vsub.f32 %v1799_v12, %v8105_v34 }
 0x2dd   : > { %v1104_v24 = vpop.permute.xlu1 %1103  ;;  %v1116_v9 = vpop.permute.xlu0 %1115 }
 0x2de   : > { %12054 = vst [vmem:[#allocation171_spill] sm:$0xff] %v8147_v2  ;;  %v1798_v58 = vsub.f32 %v7175_v42, %v1104_v24  ;;  %v8151_v11 = vadd.f32 %v8131_v29, %v2232_v28  ;;  %v1801_v63 = vsub.f32 %v7222_v61, %v1116_v9 }
 0x2df   : > { %1383 = vbcast.lane.b32.xlu0 %v8098_v36, 320 }
 0x2e0   : > { %12055 = vst [vmem:[#allocation172_spill] sm:$0xff] %v8151_v11  ;;  %v2234_v53 = vsub.f32 %v1798_v58, %v8105_v34  ;;  %v8157_v14 = vsub.f32 %v1801_v63, %v8105_v34 }
 0x2e1   : > { %v1112_v0 = vpop.permute.xlu1 %1111  ;;  %v1124_v19 = vpop.permute.xlu0 %1123 }
 0x2e2   : > { %12056 = vst [vmem:[#allocation173_spill] sm:$0xff] %v8157_v14  ;;  %v1800_v12 = vsub.f32 %v7191_v49, %v1112_v0  ;;  %v8161_v33 = vadd.f32 %v8131_v29, %v2234_v53  ;;  %v1803_v24 = vsub.f32 %v7242_v7, %v1124_v19 }
 0x2e3   : > { %1391 = vbcast.lane.b32.xlu0 %v8098_v36, 336 }
 0x2e4   : > { %12057 = vst [vmem:[#allocation174_spill] sm:$0xff] %v8161_v33  ;;  %v2236_v28 = vsub.f32 %v1800_v12, %v8105_v34  ;;  %v8167_v9 = vsub.f32 %v1803_v24, %v8105_v34 }
 0x2e5   : > { %v1120_v58 = vpop.permute.xlu1 %1119  ;;  %v1132_v11 = vpop.permute.xlu0 %1131 }
 0x2e6   : > { %12058 = vst [vmem:[#allocation175_spill] sm:$0xff] %v8167_v9  ;;  %v1802_v63 = vsub.f32 %v7217_v59, %v1120_v58  ;;  %v8171_v14 = vadd.f32 %v8131_v29, %v2236_v28  ;;  %v1805_v0 = vsub.f32 %v7262_v17, %v1132_v11 }
 0x2e7   : > { %1399 = vbcast.lane.b32.xlu0 %v8098_v36, 352 }
 0x2e8   : > { %12059 = vst [vmem:[#allocation176_spill] sm:$0xff] %v8171_v14  ;;  %v2238_v53 = vsub.f32 %v1802_v63, %v8105_v34  ;;  %v8177_v19 = vsub.f32 %v1805_v0, %v8105_v34  ;;  %v8192_v0 = vrot.slane %v7144_v31, %v7406_v23 }
 0x2e9   : > { %v1128_v12 = vpop.permute.xlu1 %1127  ;;  %v1140_v33 = vpop.permute.xlu0 %1139 }
 0x2ea   : > { %12060 = vst [vmem:[#allocation177_spill] sm:$0xff] %v8177_v19  ;;  %v1804_v24 = vsub.f32 %v7237_v5, %v1128_v12  ;;  %v8181_v9 = vadd.f32 %v8131_v29, %v2238_v53  ;;  %v1807_v58 = vsub.f32 %v7282_v27, %v1140_v33 }
 0x2eb   : > { %1407 = vbcast.lane.b32.xlu0 %v8098_v36, 368 }
 0x2ec   : > { %12061 = vst [vmem:[#allocation178_spill] sm:$0xff] %v8181_v9  ;;  %v2240_v28 = vsub.f32 %v1804_v24, %v8105_v34  ;;  %1288 = vbcast.lane.b32.xlu1 %v8003_v54, 264  ;;  %v8188_v11 = vsub.f32 %v1807_v58, %v8105_v34 }
 0x2ed   : > { %v1136_v63 = vpop.permute.xlu1 %1135  ;;  %v8195_v53 = vpop.permute.xlu0 %1174 }
 0x2ee   : > { %12062 = vst [vmem:[#allocation179_spill] sm:$0xff] %v8188_v11  ;;  %v1806_v12 = vsub.f32 %v7257_v15, %v1136_v63  ;;  %12063 = vst [vmem:[#allocation180_spill] sm:$0xff] %v8195_v53  ;;  %v8198_v33 = vadd.f32 %v8131_v29, %v2240_v28 }
 0x2ef   : > { %1418 = vbcast.lane.b32.xlu0 %v8192_v0, 256 }
 0x2f0   : > { %12064 = vst [vmem:[#allocation181_spill] sm:$0xff] %v8198_v33  ;;  %v2242_v24 = vsub.f32 %v1806_v12, %v8105_v34  ;;  %1296 = vbcast.lane.b32.xlu1 %v8003_v54, 280  ;;  %v8217_v12 = vrot.slane %v7144_v31, %v7371_v40 }
 0x2f1   : > { %v8203_v58 = vpop.permute.xlu1 %1178  ;;  %v8205_v9 = vpop.permute.xlu0 %1182 }
 0x2f2   : > { %12065 = vst [vmem:[#allocation182_spill] sm:$0xff] %v8203_v58  ;;  %12066 = vst [vmem:[#allocation183_spill] sm:$0xff] %v8205_v9  ;;  %v8208_v14 = vadd.f32 %v8131_v29, %v2242_v24 }
 0x2f3   : > { %1426 = vbcast.lane.b32.xlu0 %v8192_v0, 272  ;;  %12069 = vst [vmem:[#allocation186_spill] sm:$0xff] %v8217_v12 }
 0x2f4   : > { %12067 = vst [vmem:[#allocation184_spill] sm:$0xff] %v8208_v14  ;;  %1304 = vbcast.lane.b32.xlu1 %v8003_v54, 296 }
 0x2f5   : > { %v1144_v63 = vpop.permute.xlu1 %1143  ;;  %v8213_v33 = vpop.permute.xlu0 %1190 }
 0x2f6   : > { %v1808_v28 = vsub.f32 %v7277_v25, %v1144_v63  ;;  %12068 = vst [vmem:[#allocation185_spill] sm:$0xff] %v8213_v33  ;;  %v2003_v63 = vcombine.high %v8217_v12, %v8217_v12 }
 0x2f7   : > { %1434 = vbcast.lane.b32.xlu0 %v8192_v0, 288 }
 0x2f8   : > { %v2244_v58 = vsub.f32 %v1808_v28, %v8105_v34  ;;  %1312 = vbcast.lane.b32.xlu1 %v8003_v54, 312  ;;  %v8238_v28 = vrot.slane %v2003_v63, %v7371_v40 }
 0x2f9   : > { %v8222_v24 = vpop.permute.xlu1 %1186  ;;  %v8224_v14 = vpop.permute.xlu0 %1198 }
 0x2fa   : > { %12070 = vst [vmem:[#allocation187_spill] sm:$0xff] %v8222_v24  ;;  %12071 = vst [vmem:[#allocation188_spill] sm:$0xff] %v8224_v14  ;;  %v8227_v9 = vadd.f32 %v8131_v29, %v2244_v58 }
 0x2fb   : > { %1442 = vbcast.lane.b32.xlu0 %v8192_v0, 304  ;;  %12075 = vst [vmem:[#allocation192_spill] sm:$0xff] %v8238_v28 }
 0x2fc   : > { %12072 = vst [vmem:[#allocation189_spill] sm:$0xff] %v8227_v9  ;;  %1320 = vbcast.lane.b32.xlu1 %v8003_v54, 328  ;;  %v8246_v9 = vrot.slane %v8238_v28, %v7142_v30 }
 0x2fd   : > { %v8233_v33 = vpop.permute.xlu1 %1194  ;;  %v8235_v34 = vpop.permute.xlu0 %1206 }
 0x2fe   : > { %12073 = vst [vmem:[#allocation190_spill] sm:$0xff] %v8233_v33  ;;  %12074 = vst [vmem:[#allocation191_spill] sm:$0xff] %v8235_v34 }
 0x2ff   : > { %1450 = vbcast.lane.b32.xlu0 %v8192_v0, 320 }
 0x300   : > { %1328 = vbcast.lane.b32.xlu1 %v8003_v54, 344 }
 0x301   : > { %v8242_v58 = vpop.permute.xlu1 %1202  ;;  %v1218_v24 = vpop.permute.xlu0 %1217 }
 0x302   : > { %12076 = vst [vmem:[#allocation193_spill] sm:$0xff] %v8242_v58  ;;  %v1825_v14 = vsub.f32 %v7154_v35, %v1218_v24 }
 0x303   : > { %1458 = vbcast.lane.b32.xlu0 %v8192_v0, 336 }
 0x304   : > { %1336 = vbcast.lane.b32.xlu1 %v8003_v54, 360  ;;  %v8252_v63 = vsub.f32 %v1825_v14, %v8246_v9  ;;  %v8266_v14 = vrot.slane %v7338_v51, %v7317_v8 }
 0x305   : > { %v8254_v33 = vpop.permute.xlu1 %1210  ;;  %v1226_v34 = vpop.permute.xlu0 %1225 }
 0x306   : > { %12077 = vst [vmem:[#allocation194_spill] sm:$0xff] %v8252_v63  ;;  %12078 = vst [vmem:[#allocation195_spill] sm:$0xff] %v8254_v33  ;;  %v1827_v53 = vsub.f32 %v7165_v39, %v1226_v34  ;;  %v8276_v34 = vrot.slane %v7144_v31, %v7505_v62 }
 0x307   : > { %1466 = vbcast.lane.b32.xlu0 %v8192_v0, 352  ;;  %12080 = vst [vmem:[#allocation197_spill] sm:$0xff] %v8266_v14 }
 0x308   : > { %1344 = vbcast.lane.b32.xlu1 %v8003_v54, 376  ;;  %v8260_v58 = vsub.f32 %v1827_v53, %v8246_v9 }
 0x309   : > { %v1222_v24 = vpop.permute.xlu1 %1221  ;;  %v1234_v11 = vpop.permute.xlu0 %1233 }
 0x30a   : > { %12079 = vst [vmem:[#allocation196_spill] sm:$0xff] %v8260_v58  ;;  %v1826_v28 = vsub.f32 %v7146_v32, %v1222_v24  ;;  %v1829_v19 = vsub.f32 %v7178_v44, %v1234_v11 }
 0x30b   : > { %1474 = vbcast.lane.b32.xlu0 %v8192_v0, 368 }
 0x30c   : > { %v2262_v33 = vsub.f32 %v1826_v28, %v8246_v9  ;;  %1355 = vbcast.lane.b32.xlu1 %v8098_v36, 264  ;;  %v8272_v54 = vsub.f32 %v1829_v19, %v8246_v9 }
 0x30d   : > { %v1230_v53 = vpop.permute.xlu1 %1229  ;;  %v1242_v24 = vpop.permute.xlu0 %1241 }
 0x30e   : > { %12081 = vst [vmem:[#allocation198_spill] sm:$0xff] %v8272_v54  ;;  %v1828_v11 = vsub.f32 %v7163_v38, %v1230_v53  ;;  %v8280_v32 = vadd.f32 %v8266_v14, %v2262_v33  ;;  %v1831_v28 = vsub.f32 %v7201_v52, %v1242_v24 }
 0x30f   : > { %1485 = vbcast.lane.b32.xlu0 %v8276_v34, 256 }
 0x310   : > { %12082 = vst [vmem:[#allocation199_spill] sm:$0xff] %v8280_v32  ;;  %v2264_v58 = vsub.f32 %v1828_v11, %v8246_v9  ;;  %1363 = vbcast.lane.b32.xlu1 %v8098_v36, 280  ;;  %v8287_v19 = vsub.f32 %v1831_v28, %v8246_v9 }
 0x311   : > { %v1238_v54 = vpop.permute.xlu1 %1237  ;;  %v1250_v44 = vpop.permute.xlu0 %1249 }
 0x312   : > { %12083 = vst [vmem:[#allocation200_spill] sm:$0xff] %v8287_v19  ;;  %v1830_v63 = vsub.f32 %v7175_v42, %v1238_v54  ;;  %v8291_v53 = vadd.f32 %v8266_v14, %v2264_v58  ;;  %v1833_v33 = vsub.f32 %v7222_v61, %v1250_v44 }
 0x313   : > { %1493 = vbcast.lane.b32.xlu0 %v8276_v34, 272 }
 0x314   : > { %12084 = vst [vmem:[#allocation201_spill] sm:$0xff] %v8291_v53  ;;  %v2266_v24 = vsub.f32 %v1830_v63, %v8246_v9  ;;  %1371 = vbcast.lane.b32.xlu1 %v8098_v36, 296  ;;  %v8298_v11 = vsub.f32 %v1833_v33, %v8246_v9 }
 0x315   : > { %v1246_v28 = vpop.permute.xlu1 %1245  ;;  %v1258_v38 = vpop.permute.xlu0 %1257 }
 0x316   : > { %12085 = vst [vmem:[#allocation202_spill] sm:$0xff] %v8298_v11  ;;  %v1832_v32 = vsub.f32 %v7191_v49, %v1246_v28  ;;  %v8302_v54 = vadd.f32 %v8266_v14, %v2266_v24  ;;  %v1835_v58 = vsub.f32 %v7242_v7, %v1258_v38 }
 0x317   : > { %1501 = vbcast.lane.b32.xlu0 %v8276_v34, 288 }
 0x318   : > { %12086 = vst [vmem:[#allocation203_spill] sm:$0xff] %v8302_v54  ;;  %v2268_v44 = vsub.f32 %v1832_v32, %v8246_v9  ;;  %1379 = vbcast.lane.b32.xlu1 %v8098_v36, 312  ;;  %v8309_v63 = vsub.f32 %v1835_v58, %v8246_v9 }
 0x319   : > { %v1254_v33 = vpop.permute.xlu1 %1253  ;;  %v1266_v42 = vpop.permute.xlu0 %1265 }
 0x31a   : > { %12087 = vst [vmem:[#allocation204_spill] sm:$0xff] %v8309_v63  ;;  %v1834_v53 = vsub.f32 %v7217_v59, %v1254_v33  ;;  %v8313_v28 = vadd.f32 %v8266_v14, %v2268_v44  ;;  %v1837_v24 = vsub.f32 %v7262_v17, %v1266_v42 }
 0x31b   : > { %1509 = vbcast.lane.b32.xlu0 %v8276_v34, 304 }
 0x31c   : > { %12088 = vst [vmem:[#allocation205_spill] sm:$0xff] %v8313_v28  ;;  %v2270_v38 = vsub.f32 %v1834_v53, %v8246_v9  ;;  %1387 = vbcast.lane.b32.xlu1 %v8098_v36, 328  ;;  %v8320_v32 = vsub.f32 %v1837_v24, %v8246_v9 }
 0x31d   : > { %v1262_v58 = vpop.permute.xlu1 %1261  ;;  %v1274_v49 = vpop.permute.xlu0 %1273 }
 0x31e   : > { %12089 = vst [vmem:[#allocation206_spill] sm:$0xff] %v8320_v32  ;;  %v1836_v54 = vsub.f32 %v7237_v5, %v1262_v58  ;;  %v8324_v33 = vadd.f32 %v8266_v14, %v2270_v38  ;;  %v1839_v44 = vsub.f32 %v7282_v27, %v1274_v49 }
 0x31f   : > { %1517 = vbcast.lane.b32.xlu0 %v8276_v34, 320 }
 0x320   : > { %12090 = vst [vmem:[#allocation207_spill] sm:$0xff] %v8324_v33  ;;  %v2272_v42 = vsub.f32 %v1836_v54, %v8246_v9  ;;  %1395 = vbcast.lane.b32.xlu1 %v8098_v36, 344  ;;  %v8331_v53 = vsub.f32 %v1839_v44, %v8246_v9 }
 0x321   : > { %v1270_v24 = vpop.permute.xlu1 %1269  ;;  %v8334_v59 = vpop.permute.xlu0 %1284 }
 0x322   : > { %12091 = vst [vmem:[#allocation208_spill] sm:$0xff] %v8331_v53  ;;  %v1838_v28 = vsub.f32 %v7257_v15, %v1270_v24  ;;  %12092 = vst [vmem:[#allocation209_spill] sm:$0xff] %v8334_v59  ;;  %v8337_v58 = vadd.f32 %v8266_v14, %v2272_v42 }
 0x323   : > { %1525 = vbcast.lane.b32.xlu0 %v8276_v34, 336 }
 0x324   : > { %12093 = vst [vmem:[#allocation210_spill] sm:$0xff] %v8337_v58  ;;  %v2274_v38 = vsub.f32 %v1838_v28, %v8246_v9  ;;  %1403 = vbcast.lane.b32.xlu1 %v8098_v36, 360 }
 0x325   : > { %v1278_v49 = vpop.permute.xlu1 %1277  ;;  %v8343_v33 = vpop.permute.xlu0 %1292 }
 0x326   : > { %v1840_v54 = vsub.f32 %v7277_v25, %v1278_v49  ;;  %12094 = vst [vmem:[#allocation211_spill] sm:$0xff] %v8343_v33  ;;  %v8346_v44 = vadd.f32 %v8266_v14, %v2274_v38  ;;  %v8360_v49 = vrot.slane %v7144_v31, %v7609_v10  ;;  %v8396_v25 = vrot.slane %v7144_v31, %v7713_v41 }
 0x327   : > { %1533 = vbcast.lane.b32.xlu0 %v8276_v34, 352 }
 0x328   : > { %12095 = vst [vmem:[#allocation212_spill] sm:$0xff] %v8346_v44  ;;  %v2276_v24 = vsub.f32 %v1840_v54, %v8246_v9  ;;  %1411 = vbcast.lane.b32.xlu1 %v8098_v36, 376 }
 0x329   : > { %v8351_v42 = vpop.permute.xlu0 %1300 }
 0x32a   : > { %12096 = vst [vmem:[#allocation213_spill] sm:$0xff] %v8351_v42  ;;  %v8354_v28 = vadd.f32 %v8266_v14, %v2276_v24 }
 0x32b   : > { %1541 = vbcast.lane.b32.xlu0 %v8276_v34, 368 }
 0x32c   : > { %12097 = vst [vmem:[#allocation214_spill] sm:$0xff] %v8354_v28  ;;  %1422 = vbcast.lane.b32.xlu1 %v8192_v0, 264 }
 0x32d   : > { %v8362_v38 = vpop.permute.xlu0 %1308 }
 0x32e   : > { %12098 = vst [vmem:[#allocation215_spill] sm:$0xff] %v8362_v38 }
 0x32f   : > { %1552 = vbcast.lane.b32.xlu0 %v8360_v49, 256 }
 0x330   : > { %1430 = vbcast.lane.b32.xlu1 %v8192_v0, 280 }
 0x331   : > { %v8366_v36 = vpop.permute.xlu0 %1316 }
 0x332   : > { %12099 = vst [vmem:[#allocation216_spill] sm:$0xff] %v8366_v36 }
 0x333   : > { %1560 = vbcast.lane.b32.xlu0 %v8360_v49, 272 }
 0x334   : > { %1438 = vbcast.lane.b32.xlu1 %v8192_v0, 296 }
 0x335   : > { %v8370_v9 = vpop.permute.xlu0 %1324 }
 0x336   : > { %12100 = vst [vmem:[#allocation217_spill] sm:$0xff] %v8370_v9 }
 0x337   : > { %1568 = vbcast.lane.b32.xlu0 %v8360_v49, 288 }
 0x338   : > { %1446 = vbcast.lane.b32.xlu1 %v8192_v0, 312 }
 0x339   : > { %v8374_v54 = vpop.permute.xlu0 %1332 }
 0x33a   : > { %12101 = vst [vmem:[#allocation218_spill] sm:$0xff] %v8374_v54 }
 0x33b   : > { %1576 = vbcast.lane.b32.xlu0 %v8360_v49, 304 }
 0x33c   : > { %1454 = vbcast.lane.b32.xlu1 %v8192_v0, 328 }
 0x33d   : > { %v8378_v24 = vpop.permute.xlu0 %1340 }
 0x33e   : > { %12102 = vst [vmem:[#allocation219_spill] sm:$0xff] %v8378_v24 }
 0x33f   : > { %1584 = vbcast.lane.b32.xlu0 %v8360_v49, 320 }
 0x340   : > { %1462 = vbcast.lane.b32.xlu1 %v8192_v0, 344 }
 0x341   : > { %v8382_v28 = vpop.permute.xlu0 %1351 }
 0x342   : > { %12103 = vst [vmem:[#allocation220_spill] sm:$0xff] %v8382_v28  ;;  %v8437_v28 = vld [vmem:[%s7349_s20] sm:$0xff] }
 0x343   : > { %1592 = vbcast.lane.b32.xlu0 %v8360_v49, 336  ;;  %v8441_v5 = vrot.slane %v8437_v28, %v7142_v30 }
 0x344   : > { %1470 = vbcast.lane.b32.xlu1 %v8192_v0, 360 }
 0x345   : > { %v8386_v44 = vpop.permute.xlu0 %1359 }
 0x346   : > { %12104 = vst [vmem:[#allocation221_spill] sm:$0xff] %v8386_v44 }
 0x347   : > { %1600 = vbcast.lane.b32.xlu0 %v8360_v49, 352 }
 0x348   : > { %1478 = vbcast.lane.b32.xlu1 %v8192_v0, 376 }
 0x349   : > { %v8390_v58 = vpop.permute.xlu0 %1367 }
 0x34a   : > { %12105 = vst [vmem:[#allocation222_spill] sm:$0xff] %v8390_v58 }
 0x34b   : > { %1608 = vbcast.lane.b32.xlu0 %v8360_v49, 368 }
 0x34c   : > { %1489 = vbcast.lane.b32.xlu1 %v8276_v34, 264 }
 0x34d   : > { %v8398_v15 = vpop.permute.xlu0 %1375 }
 0x34e   : > { %12106 = vst [vmem:[#allocation223_spill] sm:$0xff] %v8398_v15 }
 0x34f   : > { %1619 = vbcast.lane.b32.xlu0 %v8396_v25, 256 }
 0x350   : > { %1497 = vbcast.lane.b32.xlu1 %v8276_v34, 280 }
 0x351   : > { %v8402_v44 = vpop.permute.xlu0 %1383 }
 0x352   : > { %12107 = vst [vmem:[#allocation224_spill] sm:$0xff] %v8402_v44 }
 0x353   : > { %1627 = vbcast.lane.b32.xlu0 %v8396_v25, 272 }
 0x354   : > { %1505 = vbcast.lane.b32.xlu1 %v8276_v34, 296 }
 0x355   : > { %v8406_v0 = vpop.permute.xlu0 %1391 }
 0x356   : > { %12108 = vst [vmem:[#allocation225_spill] sm:$0xff] %v8406_v0 }
 0x357   : > { %1635 = vbcast.lane.b32.xlu0 %v8396_v25, 288 }
 0x358   : > { %1513 = vbcast.lane.b32.xlu1 %v8276_v34, 312 }
 0x359   : > { %v8410_v31 = vpop.permute.xlu0 %1399 }
 0x35a   : > { %12109 = vst [vmem:[#allocation226_spill] sm:$0xff] %v8410_v31 }
 0x35b   : > { %1643 = vbcast.lane.b32.xlu0 %v8396_v25, 304 }
 0x35c   : > { %1521 = vbcast.lane.b32.xlu1 %v8276_v34, 328 }
 0x35d   : > { %v8414_v15 = vpop.permute.xlu0 %1407 }
 0x35e   : > { %12110 = vst [vmem:[#allocation227_spill] sm:$0xff] %v8414_v15 }
 0x35f   : > { %1651 = vbcast.lane.b32.xlu0 %v8396_v25, 320 }
 0x360   : > { %1529 = vbcast.lane.b32.xlu1 %v8276_v34, 344 }
 0x361   : > { %v8418_v44 = vpop.permute.xlu0 %1418 }
 0x362   : > { %12111 = vst [vmem:[#allocation228_spill] sm:$0xff] %v8418_v44 }
 0x363   : > { %1659 = vbcast.lane.b32.xlu0 %v8396_v25, 336 }
 0x364   : > { %1537 = vbcast.lane.b32.xlu1 %v8276_v34, 360  ;;  %v8422_v0 = vpop.xlane.xlu1 %595 }
 0x365   : > { %v8424_v31 = vpop.permute.xlu0 %1426  ;;  %vm599_vm13 = vcmp.gt.f32.partialorder %v8422_v0, 0.0 }
 0x366   : > { %12112 = vst [vmem:[#allocation229_spill] sm:$0xff] %v8424_v31 }
 0x367   : > { %1667 = vbcast.lane.b32.xlu0 %v8396_v25, 352 }
 0x368   : > { %1545 = vbcast.lane.b32.xlu1 %v8276_v34, 376  ;;  %v8428_v58 = vpop.xlane.xlu1 %597 }
 0x369   : > { %12113 = vst [vmem:[#allocation230_spill] sm:$0xff] %v8428_v58  ;;  %v8430_v15 = vpop.permute.xlu0 %1434 }
 0x36a   : > { %12114 = vst [vmem:[#allocation231_spill] sm:$0xff] %v8430_v15 }
 0x36b   : > { %1675 = vbcast.lane.b32.xlu0 %v8396_v25, 368 }
 0x36c   : > { %1556 = vbcast.lane.b32.xlu1 %v8360_v49, 264  ;;  %v8434_v44 = vpop.permute.xlu1 %1288 }
 0x36d   : > { %12115 = vst [vmem:[#allocation232_spill] sm:$0xff] %v8434_v44  ;;  %v8443_v31 = vpop.permute.xlu0 %1442 }
 0x36e   : > { %12116 = vst [vmem:[#allocation233_spill] sm:$0xff] %v8443_v31 }
 0x36f   : > { %2716 = vbcast.lane.b32.xlu0 %v8441_v5, 256 }
 0x370   : > { %v8446_v34 = vpop.permute.xlu1 %1296  ;;  %1564 = vbcast.lane.b32.xlu1 %v8360_v49, 280 }
 0x371   : > { %12117 = vst [vmem:[#allocation234_spill] sm:$0xff] %v8446_v34  ;;  %v8449_v15 = vpop.permute.xlu0 %1450 }
 0x372   : > { %12118 = vst [vmem:[#allocation235_spill] sm:$0xff] %v8449_v15 }
 0x373   : > { %2724 = vbcast.lane.b32.xlu0 %v8441_v5, 272 }
 0x374   : > { %v8452_v24 = vpop.permute.xlu1 %1304  ;;  %1572 = vbcast.lane.b32.xlu1 %v8360_v49, 296 }
 0x375   : > { %12119 = vst [vmem:[#allocation236_spill] sm:$0xff] %v8452_v24  ;;  %v8455_v44 = vpop.permute.xlu0 %1458 }
 0x376   : > { %12120 = vst [vmem:[#allocation237_spill] sm:$0xff] %v8455_v44 }
 0x377   : > { %2732 = vbcast.lane.b32.xlu0 %v8441_v5, 288 }
 0x378   : > { %v8458_v54 = vpop.permute.xlu1 %1312  ;;  %1580 = vbcast.lane.b32.xlu1 %v8360_v49, 312 }
 0x379   : > { %12121 = vst [vmem:[#allocation238_spill] sm:$0xff] %v8458_v54  ;;  %v8461_v31 = vpop.permute.xlu0 %1466 }
 0x37a   : > { %12122 = vst [vmem:[#allocation239_spill] sm:$0xff] %v8461_v31 }
 0x37b   : > { %2740 = vbcast.lane.b32.xlu0 %v8441_v5, 304 }
 0x37c   : > { %v8464_v34 = vpop.permute.xlu1 %1320  ;;  %1588 = vbcast.lane.b32.xlu1 %v8360_v49, 328 }
 0x37d   : > { %12123 = vst [vmem:[#allocation240_spill] sm:$0xff] %v8464_v34  ;;  %v8467_v15 = vpop.permute.xlu0 %1474 }
 0x37e   : > { %12124 = vst [vmem:[#allocation241_spill] sm:$0xff] %v8467_v15 }
 0x37f   : > { %2748 = vbcast.lane.b32.xlu0 %v8441_v5, 320 }
 0x380   : > { %v8470_v24 = vpop.permute.xlu1 %1328  ;;  %1596 = vbcast.lane.b32.xlu1 %v8360_v49, 344 }
 0x381   : > { %12125 = vst [vmem:[#allocation242_spill] sm:$0xff] %v8470_v24  ;;  %v8473_v44 = vpop.permute.xlu0 %1485 }
 0x382   : > { %12126 = vst [vmem:[#allocation243_spill] sm:$0xff] %v8473_v44 }
 0x383   : > { %2756 = vbcast.lane.b32.xlu0 %v8441_v5, 336 }
 0x384   : > { %v8476_v54 = vpop.permute.xlu1 %1336  ;;  %1604 = vbcast.lane.b32.xlu1 %v8360_v49, 360 }
 0x385   : > { %12127 = vst [vmem:[#allocation244_spill] sm:$0xff] %v8476_v54  ;;  %v8479_v31 = vpop.permute.xlu0 %1493  ;;  %v8493_v54 = vrot.slane %v8437_v28, %v7317_v8 }
 0x386   : > { %12128 = vst [vmem:[#allocation245_spill] sm:$0xff] %v8479_v31 }
 0x387   : > { %2764 = vbcast.lane.b32.xlu0 %v8441_v5, 352 }
 0x388   : > { %v8482_v34 = vpop.permute.xlu1 %1344  ;;  %1612 = vbcast.lane.b32.xlu1 %v8360_v49, 376 }
 0x389   : > { %12129 = vst [vmem:[#allocation246_spill] sm:$0xff] %v8482_v34  ;;  %v8485_v15 = vpop.permute.xlu0 %1501 }
 0x38a   : > { %12130 = vst [vmem:[#allocation247_spill] sm:$0xff] %v8485_v15 }
 0x38b   : > { %2772 = vbcast.lane.b32.xlu0 %v8441_v5, 368 }
 0x38c   : > { %v8488_v24 = vpop.permute.xlu1 %1355  ;;  %1623 = vbcast.lane.b32.xlu1 %v8396_v25, 264 }
 0x38d   : > { %12131 = vst [vmem:[#allocation248_spill] sm:$0xff] %v8488_v24  ;;  %v8495_v44 = vpop.permute.xlu0 %1509 }
 0x38e   : > { %12132 = vst [vmem:[#allocation249_spill] sm:$0xff] %v8495_v44 }
 0x38f   : > { %2783 = vbcast.lane.b32.xlu0 %v8493_v54, 256 }
 0x390   : > { %v8498_v31 = vpop.permute.xlu1 %1363  ;;  %1631 = vbcast.lane.b32.xlu1 %v8396_v25, 280 }
 0x391   : > { %12133 = vst [vmem:[#allocation250_spill] sm:$0xff] %v8498_v31  ;;  %v8501_v49 = vpop.permute.xlu0 %1517 }
 0x392   : > { %12134 = vst [vmem:[#allocation251_spill] sm:$0xff] %v8501_v49 }
 0x393   : > { %2791 = vbcast.lane.b32.xlu0 %v8493_v54, 272 }
 0x394   : > { %v8504_v15 = vpop.permute.xlu1 %1371  ;;  %1639 = vbcast.lane.b32.xlu1 %v8396_v25, 296 }
 0x395   : > { %12135 = vst [vmem:[#allocation252_spill] sm:$0xff] %v8504_v15  ;;  %v8507_v24 = vpop.permute.xlu0 %1525 }
 0x396   : > { %12136 = vst [vmem:[#allocation253_spill] sm:$0xff] %v8507_v24 }
 0x397   : > { %2799 = vbcast.lane.b32.xlu0 %v8493_v54, 288 }
 0x398   : > { %v8510_v34 = vpop.permute.xlu1 %1379  ;;  %1647 = vbcast.lane.b32.xlu1 %v8396_v25, 312 }
 0x399   : > { %12137 = vst [vmem:[#allocation254_spill] sm:$0xff] %v8510_v34  ;;  %v8513_v44 = vpop.permute.xlu0 %1533 }
 0x39a   : > { %12138 = vst [vmem:[#allocation255_spill] sm:$0xff] %v8513_v44 }
 0x39b   : > { %2807 = vbcast.lane.b32.xlu0 %v8493_v54, 304 }
 0x39c   : > { %v8516_v31 = vpop.permute.xlu1 %1387  ;;  %1655 = vbcast.lane.b32.xlu1 %v8396_v25, 328 }
 0x39d   : > { %12139 = vst [vmem:[#allocation256_spill] sm:$0xff] %v8516_v31  ;;  %v8519_v49 = vpop.permute.xlu0 %1541 }
 0x39e   : > { %12140 = vst [vmem:[#allocation257_spill] sm:$0xff] %v8519_v49 }
 0x39f   : > { %2815 = vbcast.lane.b32.xlu0 %v8493_v54, 320 }
 0x3a0   : > { %v8522_v15 = vpop.permute.xlu1 %1395  ;;  %1663 = vbcast.lane.b32.xlu1 %v8396_v25, 344 }
 0x3a1   : > { %12141 = vst [vmem:[#allocation258_spill] sm:$0xff] %v8522_v15  ;;  %v8525_v24 = vpop.permute.xlu0 %1552 }
 0x3a2   : > { %12142 = vst [vmem:[#allocation259_spill] sm:$0xff] %v8525_v24 }
 0x3a3   : > { %2823 = vbcast.lane.b32.xlu0 %v8493_v54, 336 }
 0x3a4   : > { %v8528_v34 = vpop.permute.xlu1 %1403  ;;  %1671 = vbcast.lane.b32.xlu1 %v8396_v25, 360 }
 0x3a5   : > { %12143 = vst [vmem:[#allocation260_spill] sm:$0xff] %v8528_v34  ;;  %v8531_v44 = vpop.permute.xlu0 %1560  ;;  %v8545_v34 = vrot.slane %v8437_v28, %v7357_v13 }
 0x3a6   : > { %12144 = vst [vmem:[#allocation261_spill] sm:$0xff] %v8531_v44 }
 0x3a7   : > { %2831 = vbcast.lane.b32.xlu0 %v8493_v54, 352 }
 0x3a8   : > { %v8534_v31 = vpop.permute.xlu1 %1411  ;;  %1679 = vbcast.lane.b32.xlu1 %v8396_v25, 376 }
 0x3a9   : > { %12145 = vst [vmem:[#allocation262_spill] sm:$0xff] %v8534_v31  ;;  %v8537_v49 = vpop.permute.xlu0 %1568 }
 0x3aa   : > { %12146 = vst [vmem:[#allocation263_spill] sm:$0xff] %v8537_v49 }
 0x3ab   : > { %2839 = vbcast.lane.b32.xlu0 %v8493_v54, 368 }
 0x3ac   : > { %v8540_v15 = vpop.permute.xlu1 %1422  ;;  %2720 = vbcast.lane.b32.xlu1 %v8441_v5, 264 }
 0x3ad   : > { %12147 = vst [vmem:[#allocation264_spill] sm:$0xff] %v8540_v15  ;;  %v8547_v24 = vpop.permute.xlu0 %1576 }
 0x3ae   : > { %12148 = vst [vmem:[#allocation265_spill] sm:$0xff] %v8547_v24 }
 0x3af   : > { %2850 = vbcast.lane.b32.xlu0 %v8545_v34, 256 }
 0x3b0   : > { %v8550_v44 = vpop.permute.xlu1 %1430  ;;  %2728 = vbcast.lane.b32.xlu1 %v8441_v5, 280 }
 0x3b1   : > { %12149 = vst [vmem:[#allocation266_spill] sm:$0xff] %v8550_v44  ;;  %v8553_v25 = vpop.permute.xlu0 %1584 }
 0x3b2   : > { %12150 = vst [vmem:[#allocation267_spill] sm:$0xff] %v8553_v25 }
 0x3b3   : > { %2858 = vbcast.lane.b32.xlu0 %v8545_v34, 272 }
 0x3b4   : > { %v8556_v49 = vpop.permute.xlu1 %1438  ;;  %2736 = vbcast.lane.b32.xlu1 %v8441_v5, 296 }
 0x3b5   : > { %12151 = vst [vmem:[#allocation268_spill] sm:$0xff] %v8556_v49  ;;  %v8559_v15 = vpop.permute.xlu0 %1592 }
 0x3b6   : > { %12152 = vst [vmem:[#allocation269_spill] sm:$0xff] %v8559_v15 }
 0x3b7   : > { %2866 = vbcast.lane.b32.xlu0 %v8545_v34, 288 }
 0x3b8   : > { %v8562_v31 = vpop.permute.xlu1 %1446  ;;  %2744 = vbcast.lane.b32.xlu1 %v8441_v5, 312 }
 0x3b9   : > { %12153 = vst [vmem:[#allocation270_spill] sm:$0xff] %v8562_v31  ;;  %v8565_v24 = vpop.permute.xlu0 %1600 }
 0x3ba   : > { %12154 = vst [vmem:[#allocation271_spill] sm:$0xff] %v8565_v24 }
 0x3bb   : > { %2874 = vbcast.lane.b32.xlu0 %v8545_v34, 304 }
 0x3bc   : > { %v8568_v44 = vpop.permute.xlu1 %1454  ;;  %2752 = vbcast.lane.b32.xlu1 %v8441_v5, 328 }
 0x3bd   : > { %12155 = vst [vmem:[#allocation272_spill] sm:$0xff] %v8568_v44  ;;  %v8571_v25 = vpop.permute.xlu0 %1608 }
 0x3be   : > { %12156 = vst [vmem:[#allocation273_spill] sm:$0xff] %v8571_v25 }
 0x3bf   : > { %2882 = vbcast.lane.b32.xlu0 %v8545_v34, 320 }
 0x3c0   : > { %v8574_v49 = vpop.permute.xlu1 %1462  ;;  %2760 = vbcast.lane.b32.xlu1 %v8441_v5, 344 }
 0x3c1   : > { %12157 = vst [vmem:[#allocation274_spill] sm:$0xff] %v8574_v49  ;;  %v8577_v15 = vpop.permute.xlu0 %1619 }
 0x3c2   : > { %12158 = vst [vmem:[#allocation275_spill] sm:$0xff] %v8577_v15 }
 0x3c3   : > { %2890 = vbcast.lane.b32.xlu0 %v8545_v34, 336 }
 0x3c4   : > { %v8580_v31 = vpop.permute.xlu1 %1470  ;;  %2768 = vbcast.lane.b32.xlu1 %v8441_v5, 360 }
 0x3c5   : > { %12159 = vst [vmem:[#allocation276_spill] sm:$0xff] %v8580_v31  ;;  %v8583_v24 = vpop.permute.xlu0 %1627  ;;  %v8597_v31 = vrot.slane %v8437_v28, %v7364_v45 }
 0x3c6   : > { %12160 = vst [vmem:[#allocation277_spill] sm:$0xff] %v8583_v24 }
 0x3c7   : > { %2898 = vbcast.lane.b32.xlu0 %v8545_v34, 352 }
 0x3c8   : > { %v8586_v44 = vpop.permute.xlu1 %1478  ;;  %2776 = vbcast.lane.b32.xlu1 %v8441_v5, 376 }
 0x3c9   : > { %12161 = vst [vmem:[#allocation278_spill] sm:$0xff] %v8586_v44  ;;  %v8589_v25 = vpop.permute.xlu0 %1635 }
 0x3ca   : > { %12162 = vst [vmem:[#allocation279_spill] sm:$0xff] %v8589_v25 }
 0x3cb   : > { %2906 = vbcast.lane.b32.xlu0 %v8545_v34, 368 }
 0x3cc   : > { %v8592_v49 = vpop.permute.xlu1 %1489  ;;  %2787 = vbcast.lane.b32.xlu1 %v8493_v54, 264 }
 0x3cd   : > { %12163 = vst [vmem:[#allocation280_spill] sm:$0xff] %v8592_v49  ;;  %v8599_v15 = vpop.permute.xlu0 %1643 }
 0x3ce   : > { %12164 = vst [vmem:[#allocation281_spill] sm:$0xff] %v8599_v15 }
 0x3cf   : > { %2917 = vbcast.lane.b32.xlu0 %v8597_v31, 256 }
 0x3d0   : > { %v8602_v24 = vpop.permute.xlu1 %1497  ;;  %2795 = vbcast.lane.b32.xlu1 %v8493_v54, 280 }
 0x3d1   : > { %12165 = vst [vmem:[#allocation282_spill] sm:$0xff] %v8602_v24  ;;  %v8605_v5 = vpop.permute.xlu0 %1651 }
 0x3d2   : > { %12166 = vst [vmem:[#allocation283_spill] sm:$0xff] %v8605_v5 }
 0x3d3   : > { %2925 = vbcast.lane.b32.xlu0 %v8597_v31, 272 }
 0x3d4   : > { %v8608_v25 = vpop.permute.xlu1 %1505  ;;  %2803 = vbcast.lane.b32.xlu1 %v8493_v54, 296 }
 0x3d5   : > { %12167 = vst [vmem:[#allocation284_spill] sm:$0xff] %v8608_v25  ;;  %v8611_v49 = vpop.permute.xlu0 %1659 }
 0x3d6   : > { %12168 = vst [vmem:[#allocation285_spill] sm:$0xff] %v8611_v49 }
 0x3d7   : > { %2933 = vbcast.lane.b32.xlu0 %v8597_v31, 288 }
 0x3d8   : > { %v8614_v44 = vpop.permute.xlu1 %1513  ;;  %2811 = vbcast.lane.b32.xlu1 %v8493_v54, 312 }
 0x3d9   : > { %12169 = vst [vmem:[#allocation286_spill] sm:$0xff] %v8614_v44  ;;  %v8617_v15 = vpop.permute.xlu0 %1667 }
 0x3da   : > { %12170 = vst [vmem:[#allocation287_spill] sm:$0xff] %v8617_v15 }
 0x3db   : > { %2941 = vbcast.lane.b32.xlu0 %v8597_v31, 304 }
 0x3dc   : > { %v8620_v24 = vpop.permute.xlu1 %1521  ;;  %2819 = vbcast.lane.b32.xlu1 %v8493_v54, 328 }
 0x3dd   : > { %12171 = vst [vmem:[#allocation288_spill] sm:$0xff] %v8620_v24  ;;  %v8623_v5 = vpop.permute.xlu0 %1675 }
 0x3de   : > { %12172 = vst [vmem:[#allocation289_spill] sm:$0xff] %v8623_v5 }
 0x3df   : > { %2949 = vbcast.lane.b32.xlu0 %v8597_v31, 320 }
 0x3e0   : > { %v8626_v25 = vpop.permute.xlu1 %1529  ;;  %2827 = vbcast.lane.b32.xlu1 %v8493_v54, 344 }
 0x3e1   : > { %12173 = vst [vmem:[#allocation290_spill] sm:$0xff] %v8626_v25  ;;  %v8629_v49 = vpop.permute.xlu0 %2716 }
 0x3e3   : > { %2957 = vbcast.lane.b32.xlu0 %v8597_v31, 336 }
 0x3e4   : > { %v8632_v44 = vpop.permute.xlu1 %1537  ;;  %2835 = vbcast.lane.b32.xlu1 %v8493_v54, 360 }
 0x3e5   : > { %12174 = vst [vmem:[#allocation291_spill] sm:$0xff] %v8632_v44  ;;  %v8635_v15 = vpop.permute.xlu0 %2724  ;;  %v8649_v44 = vrot.slane %v8437_v28, %v7406_v23 }
 0x3e7   : > { %2965 = vbcast.lane.b32.xlu0 %v8597_v31, 352 }
 0x3e8   : > { %v8638_v24 = vpop.permute.xlu1 %1545  ;;  %2843 = vbcast.lane.b32.xlu1 %v8493_v54, 376 }
 0x3e9   : > { %12175 = vst [vmem:[#allocation292_spill] sm:$0xff] %v8638_v24  ;;  %v8641_v5 = vpop.permute.xlu0 %2732 }
 0x3eb   : > { %2973 = vbcast.lane.b32.xlu0 %v8597_v31, 368 }
 0x3ec   : > { %v8644_v25 = vpop.permute.xlu1 %1556  ;;  %2854 = vbcast.lane.b32.xlu1 %v8545_v34, 264 }
 0x3ed   : > { %12176 = vst [vmem:[#allocation293_spill] sm:$0xff] %v8644_v25  ;;  %v8651_v9 = vpop.permute.xlu0 %2740 }
 0x3ef   : > { %2984 = vbcast.lane.b32.xlu0 %v8649_v44, 256 }
 0x3f0   : > { %v8654_v36 = vpop.permute.xlu1 %1564  ;;  %2862 = vbcast.lane.b32.xlu1 %v8545_v34, 280 }
 0x3f1   : > { %12177 = vst [vmem:[#allocation294_spill] sm:$0xff] %v8654_v36  ;;  %v8657_v54 = vpop.permute.xlu0 %2748 }
 0x3f3   : > { %2992 = vbcast.lane.b32.xlu0 %v8649_v44, 272 }
 0x3f4   : > { %v8660_v24 = vpop.permute.xlu1 %1572  ;;  %2870 = vbcast.lane.b32.xlu1 %v8545_v34, 296 }
 0x3f5   : > { %12178 = vst [vmem:[#allocation295_spill] sm:$0xff] %v8660_v24  ;;  %v8663_v25 = vpop.permute.xlu0 %2756 }
 0x3f7   : > { %3000 = vbcast.lane.b32.xlu0 %v8649_v44, 288 }
 0x3f8   : > { %v8666_v38 = vpop.permute.xlu1 %1580  ;;  %2878 = vbcast.lane.b32.xlu1 %v8545_v34, 312 }
 0x3f9   : > { %12179 = vst [vmem:[#allocation296_spill] sm:$0xff] %v8666_v38  ;;  %v8669_v42 = vpop.permute.xlu0 %2764 }
 0x3fb   : > { %3008 = vbcast.lane.b32.xlu0 %v8649_v44, 304 }
 0x3fc   : > { %v8672_v36 = vpop.permute.xlu1 %1588  ;;  %2886 = vbcast.lane.b32.xlu1 %v8545_v34, 328 }
 0x3fd   : > { %12180 = vst [vmem:[#allocation297_spill] sm:$0xff] %v8672_v36  ;;  %v8675_v53 = vpop.permute.xlu0 %2772 }
 0x3ff   : > { %3016 = vbcast.lane.b32.xlu0 %v8649_v44, 320 }
 0x400   : > { %v8678_v24 = vpop.permute.xlu1 %1596  ;;  %2894 = vbcast.lane.b32.xlu1 %v8545_v34, 344 }
 0x401   : > { %12181 = vst [vmem:[#allocation298_spill] sm:$0xff] %v8678_v24  ;;  %v8681_v33 = vpop.permute.xlu0 %2783 }
 0x403   : > { %3024 = vbcast.lane.b32.xlu0 %v8649_v44, 336 }
 0x404   : > { %v8684_v38 = vpop.permute.xlu1 %1604  ;;  %2902 = vbcast.lane.b32.xlu1 %v8545_v34, 360 }
 0x405   : > { %12182 = vst [vmem:[#allocation299_spill] sm:$0xff] %v8684_v38  ;;  %v8687_v32 = vpop.permute.xlu0 %2791  ;;  %v8701_v38 = vrot.slane %v8437_v28, %v7505_v62 }
 0x407   : > { %3032 = vbcast.lane.b32.xlu0 %v8649_v44, 352 }
 0x408   : > { %v8690_v36 = vpop.permute.xlu1 %1612  ;;  %2910 = vbcast.lane.b32.xlu1 %v8545_v34, 376 }
 0x409   : > { %12183 = vst [vmem:[#allocation300_spill] sm:$0xff] %v8690_v36  ;;  %v8693_v59 = vpop.permute.xlu0 %2799 }
 0x40b   : > { %3040 = vbcast.lane.b32.xlu0 %v8649_v44, 368 }
 0x40c   : > { %v8696_v24 = vpop.permute.xlu1 %1623  ;;  %2921 = vbcast.lane.b32.xlu1 %v8597_v31, 264 }
 0x40d   : > { %12184 = vst [vmem:[#allocation301_spill] sm:$0xff] %v8696_v24  ;;  %v8703_v63 = vpop.permute.xlu0 %2807 }
 0x40f   : > { %3051 = vbcast.lane.b32.xlu0 %v8701_v38, 256 }
 0x410   : > { %v8706_v11 = vpop.permute.xlu1 %1631  ;;  %2929 = vbcast.lane.b32.xlu1 %v8597_v31, 280 }
 0x411   : > { %12185 = vst [vmem:[#allocation302_spill] sm:$0xff] %v8706_v11  ;;  %v8709_v34 = vpop.permute.xlu0 %2815 }
 0x413   : > { %3059 = vbcast.lane.b32.xlu0 %v8701_v38, 272 }
 0x414   : > { %v8712_v36 = vpop.permute.xlu1 %1639  ;;  %2937 = vbcast.lane.b32.xlu1 %v8597_v31, 296 }
 0x415   : > { %12186 = vst [vmem:[#allocation303_spill] sm:$0xff] %v8712_v36  ;;  %v8715_v24 = vpop.permute.xlu0 %2823 }
 0x417   : > { %3067 = vbcast.lane.b32.xlu0 %v8701_v38, 288 }
 0x418   : > { %v8718_v19 = vpop.permute.xlu1 %1647  ;;  %2945 = vbcast.lane.b32.xlu1 %v8597_v31, 312 }
 0x419   : > { %12187 = vst [vmem:[#allocation304_spill] sm:$0xff] %v8718_v19  ;;  %v8721_v14 = vpop.permute.xlu0 %2831 }
 0x41b   : > { %3075 = vbcast.lane.b32.xlu0 %v8701_v38, 304 }
 0x41c   : > { %v8724_v11 = vpop.permute.xlu1 %1655  ;;  %2953 = vbcast.lane.b32.xlu1 %v8597_v31, 328 }
 0x41d   : > { %12188 = vst [vmem:[#allocation305_spill] sm:$0xff] %v8724_v11  ;;  %v8727_v27 = vpop.permute.xlu0 %2839 }
 0x41f   : > { %3083 = vbcast.lane.b32.xlu0 %v8701_v38, 320 }
 0x420   : > { %v8730_v36 = vpop.permute.xlu1 %1663  ;;  %2961 = vbcast.lane.b32.xlu1 %v8597_v31, 344 }
 0x421   : > { %12189 = vst [vmem:[#allocation306_spill] sm:$0xff] %v8730_v36  ;;  %v8733_v17 = vpop.permute.xlu0 %2850 }
 0x423   : > { %3091 = vbcast.lane.b32.xlu0 %v8701_v38, 336 }
 0x424   : > { %v8736_v19 = vpop.permute.xlu1 %1671  ;;  %2969 = vbcast.lane.b32.xlu1 %v8597_v31, 360 }
 0x425   : > { %12190 = vst [vmem:[#allocation307_spill] sm:$0xff] %v8736_v19  ;;  %v8739_v7 = vpop.permute.xlu0 %2858  ;;  %v8753_v19 = vrot.slane %v8437_v28, %v7609_v10 }
 0x427   : > { %3099 = vbcast.lane.b32.xlu0 %v8701_v38, 352 }
 0x428   : > { %v8742_v11 = vpop.permute.xlu1 %1679  ;;  %2977 = vbcast.lane.b32.xlu1 %v8597_v31, 376 }
 0x429   : > { %12191 = vst [vmem:[#allocation308_spill] sm:$0xff] %v8742_v11  ;;  %v8745_v61 = vpop.permute.xlu0 %2866 }
 0x42b   : > { %3107 = vbcast.lane.b32.xlu0 %v8701_v38, 368 }
 0x42c   : > { %v8748_v36 = vpop.permute.xlu1 %2720  ;;  %2988 = vbcast.lane.b32.xlu1 %v8649_v44, 264 }
 0x42d   : > { %v8755_v52 = vpop.permute.xlu0 %2874 }
 0x42f   : > { %3118 = vbcast.lane.b32.xlu0 %v8753_v19, 256 }
 0x430   : > { %v8758_v39 = vpop.permute.xlu1 %2728  ;;  %2996 = vbcast.lane.b32.xlu1 %v8649_v44, 280 }
 0x431   : > { %v8761_v31 = vpop.permute.xlu0 %2882 }
 0x433   : > { %3126 = vbcast.lane.b32.xlu0 %v8753_v19, 272 }
 0x434   : > { %v8764_v11 = vpop.permute.xlu1 %2736  ;;  %3004 = vbcast.lane.b32.xlu1 %v8649_v44, 296 }
 0x435   : > { %v8767_v51 = vpop.permute.xlu0 %2890 }
 0x437   : > { %3134 = vbcast.lane.b32.xlu0 %v8753_v19, 288 }
 0x438   : > { %v8770_v35 = vpop.permute.xlu1 %2744  ;;  %3012 = vbcast.lane.b32.xlu1 %v8649_v44, 312 }
 0x439   : > { %v8773_v12 = vpop.permute.xlu0 %2898 }
 0x43b   : > { %3142 = vbcast.lane.b32.xlu0 %v8753_v19, 304 }
 0x43c   : > { %v8776_v2 = vpop.permute.xlu1 %2752  ;;  %3020 = vbcast.lane.b32.xlu1 %v8649_v44, 328 }
 0x43d   : > { %12192 = vst [vmem:[#allocation309_spill] sm:$0xff] %v8776_v2  ;;  %v8779_v56 = vpop.permute.xlu0 %2906 }
 0x43e   : > { %12193 = vst [vmem:[#allocation310_spill] sm:$0xff] %v8779_v56 }
 0x43f   : > { %3150 = vbcast.lane.b32.xlu0 %v8753_v19, 320 }
 0x440   : > { %v8782_v43 = vpop.permute.xlu1 %2760  ;;  %3028 = vbcast.lane.b32.xlu1 %v8649_v44, 344 }
 0x441   : > { %12194 = vst [vmem:[#allocation311_spill] sm:$0xff] %v8782_v43  ;;  %v8785_v29 = vpop.permute.xlu0 %2917 }
 0x442   : > { %12195 = vst [vmem:[#allocation312_spill] sm:$0xff] %v8785_v29 }
 0x443   : > { %3158 = vbcast.lane.b32.xlu0 %v8753_v19, 336 }
 0x444   : > { %v8788_v47 = vpop.permute.xlu1 %2768  ;;  %3036 = vbcast.lane.b32.xlu1 %v8649_v44, 360 }
 0x445   : > { %12196 = vst [vmem:[#allocation313_spill] sm:$0xff] %v8788_v47  ;;  %v8791_v58 = vpop.permute.xlu0 %2925  ;;  %v8805_v47 = vrot.slane %v8437_v28, %v7713_v41 }
 0x446   : > { %12197 = vst [vmem:[#allocation314_spill] sm:$0xff] %v8791_v58 }
 0x447   : > { %3166 = vbcast.lane.b32.xlu0 %v8753_v19, 352 }
 0x448   : > { %v8794_v1 = vpop.permute.xlu1 %2776  ;;  %3044 = vbcast.lane.b32.xlu1 %v8649_v44, 376 }
 0x449   : > { %12198 = vst [vmem:[#allocation315_spill] sm:$0xff] %v8794_v1  ;;  %v8797_v56 = vpop.permute.xlu0 %2933 }
 0x44a   : > { %12199 = vst [vmem:[#allocation316_spill] sm:$0xff] %v8797_v56 }
 0x44b   : > { %3174 = vbcast.lane.b32.xlu0 %v8753_v19, 368 }
 0x44c   : > { %v8800_v43 = vpop.permute.xlu1 %2787  ;;  %3055 = vbcast.lane.b32.xlu1 %v8701_v38, 264 }
 0x44d   : > { %12200 = vst [vmem:[#allocation317_spill] sm:$0xff] %v8800_v43  ;;  %v8807_v29 = vpop.permute.xlu0 %2941 }
 0x44e   : > { %12201 = vst [vmem:[#allocation318_spill] sm:$0xff] %v8807_v29 }
 0x44f   : > { %3185 = vbcast.lane.b32.xlu0 %v8805_v47, 256 }
 0x450   : > { %v8810_v58 = vpop.permute.xlu1 %2795  ;;  %3063 = vbcast.lane.b32.xlu1 %v8701_v38, 280 }
 0x451   : > { %12202 = vst [vmem:[#allocation319_spill] sm:$0xff] %v8810_v58  ;;  %v8813_v44 = vpop.permute.xlu0 %2949 }
 0x452   : > { %12203 = vst [vmem:[#allocation320_spill] sm:$0xff] %v8813_v44 }
 0x453   : > { %3193 = vbcast.lane.b32.xlu0 %v8805_v47, 272 }
 0x454   : > { %v8816_v56 = vpop.permute.xlu1 %2803  ;;  %3071 = vbcast.lane.b32.xlu1 %v8701_v38, 296 }
 0x455   : > { %12204 = vst [vmem:[#allocation321_spill] sm:$0xff] %v8816_v56  ;;  %v8819_v43 = vpop.permute.xlu0 %2957 }
 0x456   : > { %12205 = vst [vmem:[#allocation322_spill] sm:$0xff] %v8819_v43 }
 0x457   : > { %3201 = vbcast.lane.b32.xlu0 %v8805_v47, 288 }
 0x458   : > { %v8822_v28 = vpop.permute.xlu1 %2811  ;;  %3079 = vbcast.lane.b32.xlu1 %v8701_v38, 312 }
 0x459   : > { %12206 = vst [vmem:[#allocation323_spill] sm:$0xff] %v8822_v28  ;;  %v8825_v29 = vpop.permute.xlu0 %2965 }
 0x45a   : > { %12207 = vst [vmem:[#allocation324_spill] sm:$0xff] %v8825_v29 }
 0x45b   : > { %3209 = vbcast.lane.b32.xlu0 %v8805_v47, 304 }
 0x45c   : > { %v8828_v58 = vpop.permute.xlu1 %2819  ;;  %3087 = vbcast.lane.b32.xlu1 %v8701_v38, 328 }
 0x45d   : > { %12208 = vst [vmem:[#allocation325_spill] sm:$0xff] %v8828_v58  ;;  %v8831_v44 = vpop.permute.xlu0 %2973 }
 0x45e   : > { %12209 = vst [vmem:[#allocation326_spill] sm:$0xff] %v8831_v44 }
 0x45f   : > { %3217 = vbcast.lane.b32.xlu0 %v8805_v47, 320 }
 0x460   : > { %v8834_v43 = vpop.permute.xlu1 %2827  ;;  %3095 = vbcast.lane.b32.xlu1 %v8701_v38, 344 }
 0x461   : > { %12210 = vst [vmem:[#allocation327_spill] sm:$0xff] %v8834_v43  ;;  %v8837_v28 = vpop.permute.xlu0 %2984 }
 0x462   : > { %12211 = vst [vmem:[#allocation328_spill] sm:$0xff] %v8837_v28  ;;  %v8856_v28 = vld [vmem:[%s7349_s20 + $0x8] sm:$0xff] }
 0x463   : > { %3225 = vbcast.lane.b32.xlu0 %v8805_v47, 336 }
 0x464   : > { %v8840_v29 = vpop.permute.xlu1 %2835  ;;  %3103 = vbcast.lane.b32.xlu1 %v8701_v38, 360 }
 0x465   : > { %12212 = vst [vmem:[#allocation329_spill] sm:$0xff] %v8840_v29  ;;  %v8843_v58 = vpop.permute.xlu0 %2992  ;;  %v8860_v29 = vrot.slane %v8856_v28, %v7142_v30 }
 0x466   : > { %12213 = vst [vmem:[#allocation330_spill] sm:$0xff] %v8843_v58 }
 0x467   : > { %3233 = vbcast.lane.b32.xlu0 %v8805_v47, 352 }
 0x468   : > { %v8846_v44 = vpop.permute.xlu1 %2843  ;;  %3111 = vbcast.lane.b32.xlu1 %v8701_v38, 376 }
 0x469   : > { %12214 = vst [vmem:[#allocation331_spill] sm:$0xff] %v8846_v44  ;;  %v8849_v56 = vpop.permute.xlu0 %3000 }
 0x46a   : > { %12215 = vst [vmem:[#allocation332_spill] sm:$0xff] %v8849_v56 }
 0x46b   : > { %3241 = vbcast.lane.b32.xlu0 %v8805_v47, 368 }
 0x46c   : > { %v8852_v43 = vpop.permute.xlu1 %2854  ;;  %3122 = vbcast.lane.b32.xlu1 %v8753_v19, 264 }
 0x46d   : > { %12216 = vst [vmem:[#allocation333_spill] sm:$0xff] %v8852_v43  ;;  %v8862_v58 = vpop.permute.xlu0 %3008 }
 0x46e   : > { %12217 = vst [vmem:[#allocation334_spill] sm:$0xff] %v8862_v58 }
 0x46f   : > { %3252 = vbcast.lane.b32.xlu0 %v8860_v29, 256 }
 0x470   : > { %v8865_v44 = vpop.permute.xlu1 %2862  ;;  %3130 = vbcast.lane.b32.xlu1 %v8753_v19, 280 }
 0x471   : > { %12218 = vst [vmem:[#allocation335_spill] sm:$0xff] %v8865_v44  ;;  %v8868_v38 = vpop.permute.xlu0 %3016 }
 0x472   : > { %12219 = vst [vmem:[#allocation336_spill] sm:$0xff] %v8868_v38 }
 0x473   : > { %3260 = vbcast.lane.b32.xlu0 %v8860_v29, 272 }
 0x474   : > { %v8871_v43 = vpop.permute.xlu1 %2870  ;;  %3138 = vbcast.lane.b32.xlu1 %v8753_v19, 296 }
 0x475   : > { %12220 = vst [vmem:[#allocation337_spill] sm:$0xff] %v8871_v43  ;;  %v8874_v56 = vpop.permute.xlu0 %3024 }
 0x476   : > { %12221 = vst [vmem:[#allocation338_spill] sm:$0xff] %v8874_v56 }
 0x477   : > { %3268 = vbcast.lane.b32.xlu0 %v8860_v29, 288 }
 0x478   : > { %v8877_v1 = vpop.permute.xlu1 %2878  ;;  %3146 = vbcast.lane.b32.xlu1 %v8753_v19, 312 }
 0x479   : > { %12222 = vst [vmem:[#allocation339_spill] sm:$0xff] %v8877_v1  ;;  %v8880_v58 = vpop.permute.xlu0 %3032 }
 0x47a   : > { %12223 = vst [vmem:[#allocation340_spill] sm:$0xff] %v8880_v58 }
 0x47b   : > { %3276 = vbcast.lane.b32.xlu0 %v8860_v29, 304 }
 0x47c   : > { %v8883_v44 = vpop.permute.xlu1 %2886  ;;  %3154 = vbcast.lane.b32.xlu1 %v8753_v19, 328 }
 0x47d   : > { %12224 = vst [vmem:[#allocation341_spill] sm:$0xff] %v8883_v44  ;;  %v8886_v38 = vpop.permute.xlu0 %3040 }
 0x47e   : > { %12225 = vst [vmem:[#allocation342_spill] sm:$0xff] %v8886_v38 }
 0x47f   : > { %3284 = vbcast.lane.b32.xlu0 %v8860_v29, 320 }
 0x480   : > { %v8889_v43 = vpop.permute.xlu1 %2894  ;;  %3162 = vbcast.lane.b32.xlu1 %v8753_v19, 344 }
 0x481   : > { %12226 = vst [vmem:[#allocation343_spill] sm:$0xff] %v8889_v43  ;;  %v8892_v56 = vpop.permute.xlu0 %3051 }
 0x482   : > { %12227 = vst [vmem:[#allocation344_spill] sm:$0xff] %v8892_v56 }
 0x483   : > { %3292 = vbcast.lane.b32.xlu0 %v8860_v29, 336 }
 0x484   : > { %v8895_v1 = vpop.permute.xlu1 %2902  ;;  %3170 = vbcast.lane.b32.xlu1 %v8753_v19, 360 }
 0x485   : > { %12228 = vst [vmem:[#allocation345_spill] sm:$0xff] %v8895_v1  ;;  %v8898_v58 = vpop.permute.xlu0 %3059  ;;  %v8912_v1 = vrot.slane %v8856_v28, %v7317_v8 }
 0x486   : > { %12229 = vst [vmem:[#allocation346_spill] sm:$0xff] %v8898_v58 }
 0x487   : > { %3300 = vbcast.lane.b32.xlu0 %v8860_v29, 352 }
 0x488   : > { %v8901_v44 = vpop.permute.xlu1 %2910  ;;  %3178 = vbcast.lane.b32.xlu1 %v8753_v19, 376 }
 0x489   : > { %12230 = vst [vmem:[#allocation347_spill] sm:$0xff] %v8901_v44  ;;  %v8904_v38 = vpop.permute.xlu0 %3067 }
 0x48a   : > { %12231 = vst [vmem:[#allocation348_spill] sm:$0xff] %v8904_v38 }
 0x48b   : > { %3308 = vbcast.lane.b32.xlu0 %v8860_v29, 368 }
 0x48c   : > { %v8907_v43 = vpop.permute.xlu1 %2921  ;;  %3189 = vbcast.lane.b32.xlu1 %v8805_v47, 264 }
 0x48d   : > { %12232 = vst [vmem:[#allocation349_spill] sm:$0xff] %v8907_v43  ;;  %v8914_v56 = vpop.permute.xlu0 %3075 }
 0x48e   : > { %12233 = vst [vmem:[#allocation350_spill] sm:$0xff] %v8914_v56 }
 0x48f   : > { %3319 = vbcast.lane.b32.xlu0 %v8912_v1, 256 }
 0x490   : > { %v8917_v58 = vpop.permute.xlu1 %2929  ;;  %3197 = vbcast.lane.b32.xlu1 %v8805_v47, 280 }
 0x491   : > { %12234 = vst [vmem:[#allocation351_spill] sm:$0xff] %v8917_v58  ;;  %v8920_v19 = vpop.permute.xlu0 %3083 }
 0x492   : > { %12235 = vst [vmem:[#allocation352_spill] sm:$0xff] %v8920_v19 }
 0x493   : > { %3327 = vbcast.lane.b32.xlu0 %v8912_v1, 272 }
 0x494   : > { %v8923_v38 = vpop.permute.xlu1 %2937  ;;  %3205 = vbcast.lane.b32.xlu1 %v8805_v47, 296 }
 0x495   : > { %12236 = vst [vmem:[#allocation353_spill] sm:$0xff] %v8923_v38  ;;  %v8926_v43 = vpop.permute.xlu0 %3091 }
 0x496   : > { %12237 = vst [vmem:[#allocation354_spill] sm:$0xff] %v8926_v43 }
 0x497   : > { %3335 = vbcast.lane.b32.xlu0 %v8912_v1, 288 }
 0x498   : > { %v8929_v44 = vpop.permute.xlu1 %2945  ;;  %3213 = vbcast.lane.b32.xlu1 %v8805_v47, 312 }
 0x499   : > { %12238 = vst [vmem:[#allocation355_spill] sm:$0xff] %v8929_v44  ;;  %v8932_v56 = vpop.permute.xlu0 %3099 }
 0x49a   : > { %12239 = vst [vmem:[#allocation356_spill] sm:$0xff] %v8932_v56 }
 0x49b   : > { %3343 = vbcast.lane.b32.xlu0 %v8912_v1, 304 }
 0x49c   : > { %v8935_v58 = vpop.permute.xlu1 %2953  ;;  %3221 = vbcast.lane.b32.xlu1 %v8805_v47, 328 }
 0x49d   : > { %12240 = vst [vmem:[#allocation357_spill] sm:$0xff] %v8935_v58  ;;  %v8938_v19 = vpop.permute.xlu0 %3107 }
 0x49e   : > { %12241 = vst [vmem:[#allocation358_spill] sm:$0xff] %v8938_v19 }
 0x49f   : > { %3351 = vbcast.lane.b32.xlu0 %v8912_v1, 320 }
 0x4a0   : > { %v8941_v38 = vpop.permute.xlu1 %2961  ;;  %3229 = vbcast.lane.b32.xlu1 %v8805_v47, 344 }
 0x4a1   : > { %12242 = vst [vmem:[#allocation359_spill] sm:$0xff] %v8941_v38  ;;  %v8944_v43 = vpop.permute.xlu0 %3118 }
 0x4a2   : > { %12243 = vst [vmem:[#allocation360_spill] sm:$0xff] %v8944_v43 }
 0x4a3   : > { %3359 = vbcast.lane.b32.xlu0 %v8912_v1, 336 }
 0x4a4   : > { %v8947_v44 = vpop.permute.xlu1 %2969  ;;  %3237 = vbcast.lane.b32.xlu1 %v8805_v47, 360 }
 0x4a5   : > { %12244 = vst [vmem:[#allocation361_spill] sm:$0xff] %v8947_v44  ;;  %v8950_v56 = vpop.permute.xlu0 %3126  ;;  %v8964_v44 = vrot.slane %v8856_v28, %v7357_v13 }
 0x4a6   : > { %12245 = vst [vmem:[#allocation362_spill] sm:$0xff] %v8950_v56 }
 0x4a7   : > { %3367 = vbcast.lane.b32.xlu0 %v8912_v1, 352 }
 0x4a8   : > { %v8953_v58 = vpop.permute.xlu1 %2977  ;;  %3245 = vbcast.lane.b32.xlu1 %v8805_v47, 376 }
 0x4a9   : > { %12246 = vst [vmem:[#allocation363_spill] sm:$0xff] %v8953_v58  ;;  %v8956_v19 = vpop.permute.xlu0 %3134 }
 0x4aa   : > { %12247 = vst [vmem:[#allocation364_spill] sm:$0xff] %v8956_v19 }
 0x4ab   : > { %3375 = vbcast.lane.b32.xlu0 %v8912_v1, 368 }
 0x4ac   : > { %v8959_v38 = vpop.permute.xlu1 %2988  ;;  %3256 = vbcast.lane.b32.xlu1 %v8860_v29, 264 }
 0x4ad   : > { %12248 = vst [vmem:[#allocation365_spill] sm:$0xff] %v8959_v38  ;;  %v8966_v43 = vpop.permute.xlu0 %3142 }
 0x4ae   : > { %12249 = vst [vmem:[#allocation366_spill] sm:$0xff] %v8966_v43 }
 0x4af   : > { %3386 = vbcast.lane.b32.xlu0 %v8964_v44, 256 }
 0x4b0   : > { %v8969_v56 = vpop.permute.xlu1 %2996  ;;  %3264 = vbcast.lane.b32.xlu1 %v8860_v29, 280 }
 0x4b1   : > { %12250 = vst [vmem:[#allocation367_spill] sm:$0xff] %v8969_v56  ;;  %v8972_v47 = vpop.permute.xlu0 %3150 }
 0x4b2   : > { %12251 = vst [vmem:[#allocation368_spill] sm:$0xff] %v8972_v47 }
 0x4b3   : > { %3394 = vbcast.lane.b32.xlu0 %v8964_v44, 272 }
 0x4b4   : > { %v8975_v19 = vpop.permute.xlu1 %3004  ;;  %3272 = vbcast.lane.b32.xlu1 %v8860_v29, 296 }
 0x4b5   : > { %12252 = vst [vmem:[#allocation369_spill] sm:$0xff] %v8975_v19  ;;  %v8978_v38 = vpop.permute.xlu0 %3158 }
 0x4b6   : > { %12253 = vst [vmem:[#allocation370_spill] sm:$0xff] %v8978_v38 }
 0x4b7   : > { %3402 = vbcast.lane.b32.xlu0 %v8964_v44, 288 }
 0x4b8   : > { %v8981_v58 = vpop.permute.xlu1 %3012  ;;  %3280 = vbcast.lane.b32.xlu1 %v8860_v29, 312 }
 0x4b9   : > { %12254 = vst [vmem:[#allocation371_spill] sm:$0xff] %v8981_v58  ;;  %v8984_v43 = vpop.permute.xlu0 %3166 }
 0x4ba   : > { %12255 = vst [vmem:[#allocation372_spill] sm:$0xff] %v8984_v43 }
 0x4bb   : > { %3410 = vbcast.lane.b32.xlu0 %v8964_v44, 304 }
 0x4bc   : > { %v8987_v56 = vpop.permute.xlu1 %3020  ;;  %3288 = vbcast.lane.b32.xlu1 %v8860_v29, 328 }
 0x4bd   : > { %12256 = vst [vmem:[#allocation373_spill] sm:$0xff] %v8987_v56  ;;  %v8990_v47 = vpop.permute.xlu0 %3174 }
 0x4be   : > { %12257 = vst [vmem:[#allocation374_spill] sm:$0xff] %v8990_v47 }
 0x4bf   : > { %3418 = vbcast.lane.b32.xlu0 %v8964_v44, 320 }
 0x4c0   : > { %v8993_v19 = vpop.permute.xlu1 %3028  ;;  %3296 = vbcast.lane.b32.xlu1 %v8860_v29, 344 }
 0x4c1   : > { %12258 = vst [vmem:[#allocation375_spill] sm:$0xff] %v8993_v19  ;;  %v8996_v38 = vpop.permute.xlu0 %3185 }
 0x4c2   : > { %12259 = vst [vmem:[#allocation376_spill] sm:$0xff] %v8996_v38 }
 0x4c3   : > { %3426 = vbcast.lane.b32.xlu0 %v8964_v44, 336 }
 0x4c4   : > { %v8999_v58 = vpop.permute.xlu1 %3036  ;;  %3304 = vbcast.lane.b32.xlu1 %v8860_v29, 360 }
 0x4c5   : > { %12260 = vst [vmem:[#allocation377_spill] sm:$0xff] %v8999_v58  ;;  %v9002_v43 = vpop.permute.xlu0 %3193  ;;  %v9016_v58 = vrot.slane %v8856_v28, %v7364_v45 }
 0x4c6   : > { %12261 = vst [vmem:[#allocation378_spill] sm:$0xff] %v9002_v43 }
 0x4c7   : > { %3434 = vbcast.lane.b32.xlu0 %v8964_v44, 352 }
 0x4c8   : > { %v9005_v56 = vpop.permute.xlu1 %3044  ;;  %3312 = vbcast.lane.b32.xlu1 %v8860_v29, 376 }
 0x4c9   : > { %12262 = vst [vmem:[#allocation379_spill] sm:$0xff] %v9005_v56  ;;  %v9008_v47 = vpop.permute.xlu0 %3201 }
 0x4ca   : > { %12263 = vst [vmem:[#allocation380_spill] sm:$0xff] %v9008_v47 }
 0x4cb   : > { %3442 = vbcast.lane.b32.xlu0 %v8964_v44, 368 }
 0x4cc   : > { %v9011_v19 = vpop.permute.xlu1 %3055  ;;  %3323 = vbcast.lane.b32.xlu1 %v8912_v1, 264 }
 0x4cd   : > { %12264 = vst [vmem:[#allocation381_spill] sm:$0xff] %v9011_v19  ;;  %v9018_v38 = vpop.permute.xlu0 %3209 }
 0x4ce   : > { %12265 = vst [vmem:[#allocation382_spill] sm:$0xff] %v9018_v38 }
 0x4cf   : > { %3453 = vbcast.lane.b32.xlu0 %v9016_v58, 256 }
 0x4d0   : > { %v9021_v43 = vpop.permute.xlu1 %3063  ;;  %3331 = vbcast.lane.b32.xlu1 %v8912_v1, 280 }
 0x4d1   : > { %12266 = vst [vmem:[#allocation383_spill] sm:$0xff] %v9021_v43  ;;  %v9024_v29 = vpop.permute.xlu0 %3217 }
 0x4d2   : > { %12267 = vst [vmem:[#allocation384_spill] sm:$0xff] %v9024_v29 }
 0x4d3   : > { %3461 = vbcast.lane.b32.xlu0 %v9016_v58, 272 }
 0x4d4   : > { %v9027_v47 = vpop.permute.xlu1 %3071  ;;  %3339 = vbcast.lane.b32.xlu1 %v8912_v1, 296 }
 0x4d5   : > { %12268 = vst [vmem:[#allocation385_spill] sm:$0xff] %v9027_v47  ;;  %v9030_v19 = vpop.permute.xlu0 %3225 }
 0x4d6   : > { %12269 = vst [vmem:[#allocation386_spill] sm:$0xff] %v9030_v19 }
 0x4d7   : > { %3469 = vbcast.lane.b32.xlu0 %v9016_v58, 288 }
 0x4d8   : > { %v9033_v56 = vpop.permute.xlu1 %3079  ;;  %3347 = vbcast.lane.b32.xlu1 %v8912_v1, 312 }
 0x4d9   : > { %12270 = vst [vmem:[#allocation387_spill] sm:$0xff] %v9033_v56  ;;  %v9036_v38 = vpop.permute.xlu0 %3233 }
 0x4da   : > { %12271 = vst [vmem:[#allocation388_spill] sm:$0xff] %v9036_v38 }
 0x4db   : > { %3477 = vbcast.lane.b32.xlu0 %v9016_v58, 304 }
 0x4dc   : > { %v9039_v43 = vpop.permute.xlu1 %3087  ;;  %3355 = vbcast.lane.b32.xlu1 %v8912_v1, 328 }
 0x4dd   : > { %12272 = vst [vmem:[#allocation389_spill] sm:$0xff] %v9039_v43  ;;  %v9042_v29 = vpop.permute.xlu0 %3241 }
 0x4de   : > { %12273 = vst [vmem:[#allocation390_spill] sm:$0xff] %v9042_v29 }
 0x4df   : > { %3485 = vbcast.lane.b32.xlu0 %v9016_v58, 320 }
 0x4e0   : > { %v9045_v47 = vpop.permute.xlu1 %3095  ;;  %3363 = vbcast.lane.b32.xlu1 %v8912_v1, 344 }
 0x4e1   : > { %12274 = vst [vmem:[#allocation391_spill] sm:$0xff] %v9045_v47  ;;  %v9048_v19 = vpop.permute.xlu0 %3252 }
 0x4e2   : > { %12275 = vst [vmem:[#allocation392_spill] sm:$0xff] %v9048_v19 }
 0x4e3   : > { %3493 = vbcast.lane.b32.xlu0 %v9016_v58, 336 }
 0x4e4   : > { %v9051_v56 = vpop.permute.xlu1 %3103  ;;  %3371 = vbcast.lane.b32.xlu1 %v8912_v1, 360 }
 0x4e5   : > { %12276 = vst [vmem:[#allocation393_spill] sm:$0xff] %v9051_v56  ;;  %v9054_v38 = vpop.permute.xlu0 %3260  ;;  %v9068_v56 = vrot.slane %v8856_v28, %v7406_v23 }
 0x4e6   : > { %12277 = vst [vmem:[#allocation394_spill] sm:$0xff] %v9054_v38 }
 0x4e7   : > { %3501 = vbcast.lane.b32.xlu0 %v9016_v58, 352 }
 0x4e8   : > { %v9057_v43 = vpop.permute.xlu1 %3111  ;;  %3379 = vbcast.lane.b32.xlu1 %v8912_v1, 376 }
 0x4e9   : > { %12278 = vst [vmem:[#allocation395_spill] sm:$0xff] %v9057_v43  ;;  %v9060_v29 = vpop.permute.xlu0 %3268 }
 0x4ea   : > { %12279 = vst [vmem:[#allocation396_spill] sm:$0xff] %v9060_v29 }
 0x4eb   : > { %3509 = vbcast.lane.b32.xlu0 %v9016_v58, 368 }
 0x4ec   : > { %v9063_v47 = vpop.permute.xlu1 %3122  ;;  %3390 = vbcast.lane.b32.xlu1 %v8964_v44, 264 }
 0x4ed   : > { %12280 = vst [vmem:[#allocation397_spill] sm:$0xff] %v9063_v47  ;;  %v9070_v19 = vpop.permute.xlu0 %3276 }
 0x4ee   : > { %12281 = vst [vmem:[#allocation398_spill] sm:$0xff] %v9070_v19 }
 0x4ef   : > { %3520 = vbcast.lane.b32.xlu0 %v9068_v56, 256 }
 0x4f0   : > { %v9073_v38 = vpop.permute.xlu1 %3130  ;;  %3398 = vbcast.lane.b32.xlu1 %v8964_v44, 280 }
 0x4f1   : > { %12282 = vst [vmem:[#allocation399_spill] sm:$0xff] %v9073_v38  ;;  %v9076_v1 = vpop.permute.xlu0 %3284 }
 0x4f2   : > { %12283 = vst [vmem:[#allocation400_spill] sm:$0xff] %v9076_v1 }
 0x4f3   : > { %3528 = vbcast.lane.b32.xlu0 %v9068_v56, 272 }
 0x4f4   : > { %v9079_v29 = vpop.permute.xlu1 %3138  ;;  %3406 = vbcast.lane.b32.xlu1 %v8964_v44, 296 }
 0x4f5   : > { %12284 = vst [vmem:[#allocation401_spill] sm:$0xff] %v9079_v29  ;;  %v9082_v47 = vpop.permute.xlu0 %3292 }
 0x4f6   : > { %12285 = vst [vmem:[#allocation402_spill] sm:$0xff] %v9082_v47 }
 0x4f7   : > { %3536 = vbcast.lane.b32.xlu0 %v9068_v56, 288 }
 0x4f8   : > { %v9085_v43 = vpop.permute.xlu1 %3146  ;;  %3414 = vbcast.lane.b32.xlu1 %v8964_v44, 312 }
 0x4f9   : > { %12286 = vst [vmem:[#allocation403_spill] sm:$0xff] %v9085_v43  ;;  %v9088_v19 = vpop.permute.xlu0 %3300 }
 0x4fa   : > { %12287 = vst [vmem:[#allocation404_spill] sm:$0xff] %v9088_v19 }
 0x4fb   : > { %3544 = vbcast.lane.b32.xlu0 %v9068_v56, 304 }
 0x4fc   : > { %v9091_v38 = vpop.permute.xlu1 %3154  ;;  %3422 = vbcast.lane.b32.xlu1 %v8964_v44, 328 }
 0x4fd   : > { %12288 = vst [vmem:[#allocation405_spill] sm:$0xff] %v9091_v38  ;;  %v9094_v1 = vpop.permute.xlu0 %3308 }
 0x4fe   : > { %12289 = vst [vmem:[#allocation406_spill] sm:$0xff] %v9094_v1 }
 0x4ff   : > { %3552 = vbcast.lane.b32.xlu0 %v9068_v56, 320 }
 0x500   : > { %v9097_v29 = vpop.permute.xlu1 %3162  ;;  %3430 = vbcast.lane.b32.xlu1 %v8964_v44, 344 }
 0x501   : > { %12290 = vst [vmem:[#allocation407_spill] sm:$0xff] %v9097_v29  ;;  %v9100_v47 = vpop.permute.xlu0 %3319 }
 0x502   : > { %12291 = vst [vmem:[#allocation408_spill] sm:$0xff] %v9100_v47 }
 0x503   : > { %3560 = vbcast.lane.b32.xlu0 %v9068_v56, 336 }
 0x504   : > { %v9103_v43 = vpop.permute.xlu1 %3170  ;;  %3438 = vbcast.lane.b32.xlu1 %v8964_v44, 360 }
 0x505   : > { %12292 = vst [vmem:[#allocation409_spill] sm:$0xff] %v9103_v43  ;;  %v9106_v19 = vpop.permute.xlu0 %3327  ;;  %v9120_v43 = vrot.slane %v8856_v28, %v7505_v62 }
 0x506   : > { %12293 = vst [vmem:[#allocation410_spill] sm:$0xff] %v9106_v19 }
 0x507   : > { %3568 = vbcast.lane.b32.xlu0 %v9068_v56, 352 }
 0x508   : > { %v9109_v38 = vpop.permute.xlu1 %3178  ;;  %3446 = vbcast.lane.b32.xlu1 %v8964_v44, 376 }
 0x509   : > { %12294 = vst [vmem:[#allocation411_spill] sm:$0xff] %v9109_v38  ;;  %v9112_v1 = vpop.permute.xlu0 %3335 }
 0x50a   : > { %12295 = vst [vmem:[#allocation412_spill] sm:$0xff] %v9112_v1 }
 0x50b   : > { %3576 = vbcast.lane.b32.xlu0 %v9068_v56, 368 }
 0x50c   : > { %v9115_v29 = vpop.permute.xlu1 %3189  ;;  %3457 = vbcast.lane.b32.xlu1 %v9016_v58, 264 }
 0x50d   : > { %12296 = vst [vmem:[#allocation413_spill] sm:$0xff] %v9115_v29  ;;  %v9122_v47 = vpop.permute.xlu0 %3343 }
 0x50e   : > { %12297 = vst [vmem:[#allocation414_spill] sm:$0xff] %v9122_v47 }
 0x50f   : > { %3587 = vbcast.lane.b32.xlu0 %v9120_v43, 256 }
 0x510   : > { %v9125_v19 = vpop.permute.xlu1 %3197  ;;  %3465 = vbcast.lane.b32.xlu1 %v9016_v58, 280 }
 0x511   : > { %12298 = vst [vmem:[#allocation415_spill] sm:$0xff] %v9125_v19  ;;  %v9128_v44 = vpop.permute.xlu0 %3351 }
 0x512   : > { %12299 = vst [vmem:[#allocation416_spill] sm:$0xff] %v9128_v44 }
 0x513   : > { %3595 = vbcast.lane.b32.xlu0 %v9120_v43, 272 }
 0x514   : > { %v9131_v1 = vpop.permute.xlu1 %3205  ;;  %3473 = vbcast.lane.b32.xlu1 %v9016_v58, 296 }
 0x515   : > { %12300 = vst [vmem:[#allocation417_spill] sm:$0xff] %v9131_v1  ;;  %v9134_v29 = vpop.permute.xlu0 %3359 }
 0x516   : > { %12301 = vst [vmem:[#allocation418_spill] sm:$0xff] %v9134_v29 }
 0x517   : > { %3603 = vbcast.lane.b32.xlu0 %v9120_v43, 288 }
 0x518   : > { %v9137_v38 = vpop.permute.xlu1 %3213  ;;  %3481 = vbcast.lane.b32.xlu1 %v9016_v58, 312 }
 0x519   : > { %12302 = vst [vmem:[#allocation419_spill] sm:$0xff] %v9137_v38  ;;  %v9140_v47 = vpop.permute.xlu0 %3367 }
 0x51a   : > { %12303 = vst [vmem:[#allocation420_spill] sm:$0xff] %v9140_v47 }
 0x51b   : > { %3611 = vbcast.lane.b32.xlu0 %v9120_v43, 304 }
 0x51c   : > { %v9143_v19 = vpop.permute.xlu1 %3221  ;;  %3489 = vbcast.lane.b32.xlu1 %v9016_v58, 328 }
 0x51d   : > { %12304 = vst [vmem:[#allocation421_spill] sm:$0xff] %v9143_v19  ;;  %v9146_v44 = vpop.permute.xlu0 %3375 }
 0x51e   : > { %12305 = vst [vmem:[#allocation422_spill] sm:$0xff] %v9146_v44 }
 0x51f   : > { %3619 = vbcast.lane.b32.xlu0 %v9120_v43, 320 }
 0x520   : > { %v9149_v1 = vpop.permute.xlu1 %3229  ;;  %3497 = vbcast.lane.b32.xlu1 %v9016_v58, 344 }
 0x521   : > { %12306 = vst [vmem:[#allocation423_spill] sm:$0xff] %v9149_v1  ;;  %v9152_v29 = vpop.permute.xlu0 %3386 }
 0x522   : > { %12307 = vst [vmem:[#allocation424_spill] sm:$0xff] %v9152_v29 }
 0x523   : > { %3627 = vbcast.lane.b32.xlu0 %v9120_v43, 336 }
 0x524   : > { %v9155_v38 = vpop.permute.xlu1 %3237  ;;  %3505 = vbcast.lane.b32.xlu1 %v9016_v58, 360 }
 0x525   : > { %12308 = vst [vmem:[#allocation425_spill] sm:$0xff] %v9155_v38  ;;  %v9158_v47 = vpop.permute.xlu0 %3394  ;;  %v9172_v38 = vrot.slane %v8856_v28, %v7609_v10 }
 0x526   : > { %12309 = vst [vmem:[#allocation426_spill] sm:$0xff] %v9158_v47 }
 0x527   : > { %3635 = vbcast.lane.b32.xlu0 %v9120_v43, 352 }
 0x528   : > { %v9161_v19 = vpop.permute.xlu1 %3245  ;;  %3513 = vbcast.lane.b32.xlu1 %v9016_v58, 376 }
 0x529   : > { %12310 = vst [vmem:[#allocation427_spill] sm:$0xff] %v9161_v19  ;;  %v9164_v44 = vpop.permute.xlu0 %3402 }
 0x52a   : > { %12311 = vst [vmem:[#allocation428_spill] sm:$0xff] %v9164_v44 }
 0x52b   : > { %3643 = vbcast.lane.b32.xlu0 %v9120_v43, 368 }
 0x52c   : > { %v9167_v1 = vpop.permute.xlu1 %3256  ;;  %3524 = vbcast.lane.b32.xlu1 %v9068_v56, 264 }
 0x52d   : > { %12312 = vst [vmem:[#allocation429_spill] sm:$0xff] %v9167_v1  ;;  %v9174_v29 = vpop.permute.xlu0 %3410 }
 0x52e   : > { %12313 = vst [vmem:[#allocation430_spill] sm:$0xff] %v9174_v29 }
 0x52f   : > { %3654 = vbcast.lane.b32.xlu0 %v9172_v38, 256 }
 0x530   : > { %v9177_v47 = vpop.permute.xlu1 %3264  ;;  %3532 = vbcast.lane.b32.xlu1 %v9068_v56, 280 }
 0x531   : > { %12314 = vst [vmem:[#allocation431_spill] sm:$0xff] %v9177_v47  ;;  %v9180_v58 = vpop.permute.xlu0 %3418 }
 0x532   : > { %12315 = vst [vmem:[#allocation432_spill] sm:$0xff] %v9180_v58 }
 0x533   : > { %3662 = vbcast.lane.b32.xlu0 %v9172_v38, 272 }
 0x534   : > { %v9183_v44 = vpop.permute.xlu1 %3272  ;;  %3540 = vbcast.lane.b32.xlu1 %v9068_v56, 296 }
 0x535   : > { %12316 = vst [vmem:[#allocation433_spill] sm:$0xff] %v9183_v44  ;;  %v9186_v1 = vpop.permute.xlu0 %3426 }
 0x536   : > { %12317 = vst [vmem:[#allocation434_spill] sm:$0xff] %v9186_v1 }
 0x537   : > { %3670 = vbcast.lane.b32.xlu0 %v9172_v38, 288 }
 0x538   : > { %v9189_v19 = vpop.permute.xlu1 %3280  ;;  %3548 = vbcast.lane.b32.xlu1 %v9068_v56, 312 }
 0x539   : > { %12318 = vst [vmem:[#allocation435_spill] sm:$0xff] %v9189_v19  ;;  %v9192_v29 = vpop.permute.xlu0 %3434 }
 0x53a   : > { %12319 = vst [vmem:[#allocation436_spill] sm:$0xff] %v9192_v29 }
 0x53b   : > { %3678 = vbcast.lane.b32.xlu0 %v9172_v38, 304 }
 0x53c   : > { %v9195_v47 = vpop.permute.xlu1 %3288  ;;  %3556 = vbcast.lane.b32.xlu1 %v9068_v56, 328 }
 0x53d   : > { %12320 = vst [vmem:[#allocation437_spill] sm:$0xff] %v9195_v47  ;;  %v9198_v58 = vpop.permute.xlu0 %3442 }
 0x53e   : > { %12321 = vst [vmem:[#allocation438_spill] sm:$0xff] %v9198_v58 }
 0x53f   : > { %3686 = vbcast.lane.b32.xlu0 %v9172_v38, 320 }
 0x540   : > { %v9201_v44 = vpop.permute.xlu1 %3296  ;;  %3564 = vbcast.lane.b32.xlu1 %v9068_v56, 344 }
 0x541   : > { %12322 = vst [vmem:[#allocation439_spill] sm:$0xff] %v9201_v44  ;;  %v9204_v1 = vpop.permute.xlu0 %3453 }
 0x542   : > { %12323 = vst [vmem:[#allocation440_spill] sm:$0xff] %v9204_v1 }
 0x543   : > { %3694 = vbcast.lane.b32.xlu0 %v9172_v38, 336 }
 0x544   : > { %v9207_v19 = vpop.permute.xlu1 %3304  ;;  %3572 = vbcast.lane.b32.xlu1 %v9068_v56, 360 }
 0x545   : > { %12324 = vst [vmem:[#allocation441_spill] sm:$0xff] %v9207_v19  ;;  %v9210_v29 = vpop.permute.xlu0 %3461  ;;  %v9224_v19 = vrot.slane %v8856_v28, %v7713_v41 }
 0x546   : > { %12325 = vst [vmem:[#allocation442_spill] sm:$0xff] %v9210_v29 }
 0x547   : > { %3702 = vbcast.lane.b32.xlu0 %v9172_v38, 352 }
 0x548   : > { %v9213_v47 = vpop.permute.xlu1 %3312  ;;  %3580 = vbcast.lane.b32.xlu1 %v9068_v56, 376 }
 0x549   : > { %12326 = vst [vmem:[#allocation443_spill] sm:$0xff] %v9213_v47  ;;  %v9216_v58 = vpop.permute.xlu0 %3469  ;;  %v9267_v47 = vld [vmem:[%s7349_s20] sm:$0xff] }
 0x54a   : > { %12327 = vst [vmem:[#allocation444_spill] sm:$0xff] %v9216_v58  ;;  %12342 = vst [vmem:[#allocation459_spill] sm:$0xff] %v9267_v47 }
 0x54b   : > { %3710 = vbcast.lane.b32.xlu0 %v9172_v38, 368 }
 0x54c   : > { %v9219_v44 = vpop.permute.xlu1 %3323  ;;  %3591 = vbcast.lane.b32.xlu1 %v9120_v43, 264 }
 0x54d   : > { %12328 = vst [vmem:[#allocation445_spill] sm:$0xff] %v9219_v44  ;;  %v9226_v1 = vpop.permute.xlu0 %3477 }
 0x54e   : > { %12329 = vst [vmem:[#allocation446_spill] sm:$0xff] %v9226_v1 }
 0x54f   : > { %3721 = vbcast.lane.b32.xlu0 %v9224_v19, 256 }
 0x550   : > { %v9229_v29 = vpop.permute.xlu1 %3331  ;;  %3599 = vbcast.lane.b32.xlu1 %v9120_v43, 280 }
 0x551   : > { %12330 = vst [vmem:[#allocation447_spill] sm:$0xff] %v9229_v29  ;;  %v9232_v56 = vpop.permute.xlu0 %3485  ;;  %v601_v29 = vmul.f32 0.001, %v8422_v0 }
 0x552   : > { %12331 = vst [vmem:[#allocation448_spill] sm:$0xff] %v9232_v56 }
 0x553   : > { %3729 = vbcast.lane.b32.xlu0 %v9224_v19, 272 }
 0x554   : > { %v9235_v58 = vpop.permute.xlu1 %3339  ;;  %3607 = vbcast.lane.b32.xlu1 %v9120_v43, 296 }
 0x555   : > { %12332 = vst [vmem:[#allocation449_spill] sm:$0xff] %v9235_v58  ;;  %v9238_v44 = vpop.permute.xlu0 %3493 }
 0x556   : > { %12333 = vst [vmem:[#allocation450_spill] sm:$0xff] %v9238_v44 }
 0x557   : > { %3737 = vbcast.lane.b32.xlu0 %v9224_v19, 288 }
 0x558   : > { %v9241_v28 = vpop.permute.xlu1 %3347  ;;  %3615 = vbcast.lane.b32.xlu1 %v9120_v43, 312 }
 0x559   : > { %12334 = vst [vmem:[#allocation451_spill] sm:$0xff] %v9241_v28  ;;  %v9244_v1 = vpop.permute.xlu0 %3501 }
 0x55a   : > { %12335 = vst [vmem:[#allocation452_spill] sm:$0xff] %v9244_v1 }
 0x55b   : > { %3745 = vbcast.lane.b32.xlu0 %v9224_v19, 304 }
 0x55c   : > { %v9247_v56 = vpop.permute.xlu1 %3355  ;;  %3623 = vbcast.lane.b32.xlu1 %v9120_v43, 328 }
 0x55d   : > { %12336 = vst [vmem:[#allocation453_spill] sm:$0xff] %v9247_v56  ;;  %v9250_v58 = vpop.permute.xlu0 %3509 }
 0x55e   : > { %12337 = vst [vmem:[#allocation454_spill] sm:$0xff] %v9250_v58  ;;  %v603_v58 = vsel %vm599_vm13, %v601_v29, 0.001 }
 0x55f   : > { %3753 = vbcast.lane.b32.xlu0 %v9224_v19, 320 }
 0x560   : > { %v9253_v44 = vpop.permute.xlu1 %3363  ;;  %3631 = vbcast.lane.b32.xlu1 %v9120_v43, 344 }
 0x561   : > { %12338 = vst [vmem:[#allocation455_spill] sm:$0xff] %v9253_v44  ;;  %v9256_v28 = vpop.permute.xlu0 %3520  ;;  %v605_v44 = vsub.f32 1.0, %v9267_v47 }
 0x562   : > { %12339 = vst [vmem:[#allocation456_spill] sm:$0xff] %v9256_v28 }
 0x563   : > { %3761 = vbcast.lane.b32.xlu0 %v9224_v19, 336  ;;  %v9274_v0 = vadd.f32 %v605_v44, %v603_v58 }
 0x564   : > { %v9261_v1 = vpop.permute.xlu1 %3371  ;;  %3639 = vbcast.lane.b32.xlu1 %v9120_v43, 360 }
 0x565   : > { %12340 = vst [vmem:[#allocation457_spill] sm:$0xff] %v9261_v1  ;;  %v9264_v56 = vpop.permute.xlu0 %3528  ;;  %v9284_v29 = vrot.slane %v9274_v0, %v7142_v30 }
 0x566   : > { %12341 = vst [vmem:[#allocation458_spill] sm:$0xff] %v9264_v56 }
 0x567   : > { %3769 = vbcast.lane.b32.xlu0 %v9224_v19, 352 }
 0x568   : > { %v9271_v28 = vpop.permute.xlu1 %3379  ;;  %3647 = vbcast.lane.b32.xlu1 %v9120_v43, 376 }
 0x569   : > { %12343 = vst [vmem:[#allocation460_spill] sm:$0xff] %v9271_v28  ;;  %v9276_v41 = vpop.permute.xlu0 %3536 }
 0x56a   : > { %12344 = vst [vmem:[#allocation461_spill] sm:$0xff] %v9276_v41 }
 0x56b   : > { %3777 = vbcast.lane.b32.xlu0 %v9224_v19, 368 }
 0x56c   : > { %v9279_v1 = vpop.permute.xlu1 %3390  ;;  %3658 = vbcast.lane.b32.xlu1 %v9172_v38, 264 }
 0x56d   : > { %12345 = vst [vmem:[#allocation462_spill] sm:$0xff] %v9279_v1  ;;  %v9286_v56 = vpop.permute.xlu0 %3544 }
 0x56e   : > { %12346 = vst [vmem:[#allocation463_spill] sm:$0xff] %v9286_v56 }
 0x56f   : > { %4480 = vbcast.lane.b32.xlu0 %v9284_v29, 256 }
 0x570   : > { %v9289_v28 = vpop.permute.xlu1 %3398  ;;  %3666 = vbcast.lane.b32.xlu1 %v9172_v38, 280 }
 0x571   : > { %12347 = vst [vmem:[#allocation464_spill] sm:$0xff] %v9289_v28  ;;  %v9292_v43 = vpop.permute.xlu0 %3552 }
 0x572   : > { %12348 = vst [vmem:[#allocation465_spill] sm:$0xff] %v9292_v43 }
 0x573   : > { %4488 = vbcast.lane.b32.xlu0 %v9284_v29, 272 }
 0x574   : > { %v9295_v44 = vpop.permute.xlu1 %3406  ;;  %3674 = vbcast.lane.b32.xlu1 %v9172_v38, 296 }
 0x575   : > { %12349 = vst [vmem:[#allocation466_spill] sm:$0xff] %v9295_v44  ;;  %v9298_v58 = vpop.permute.xlu0 %3560 }
 0x576   : > { %12350 = vst [vmem:[#allocation467_spill] sm:$0xff] %v9298_v58 }
 0x577   : > { %4496 = vbcast.lane.b32.xlu0 %v9284_v29, 288 }
 0x578   : > { %v9301_v1 = vpop.permute.xlu1 %3414  ;;  %3682 = vbcast.lane.b32.xlu1 %v9172_v38, 312 }
 0x579   : > { %12351 = vst [vmem:[#allocation468_spill] sm:$0xff] %v9301_v1  ;;  %v9304_v56 = vpop.permute.xlu0 %3568 }
 0x57a   : > { %12352 = vst [vmem:[#allocation469_spill] sm:$0xff] %v9304_v56 }
 0x57b   : > { %4504 = vbcast.lane.b32.xlu0 %v9284_v29, 304 }
 0x57c   : > { %v9307_v28 = vpop.permute.xlu1 %3422  ;;  %3690 = vbcast.lane.b32.xlu1 %v9172_v38, 328 }
 0x57d   : > { %12353 = vst [vmem:[#allocation470_spill] sm:$0xff] %v9307_v28  ;;  %v9310_v43 = vpop.permute.xlu0 %3576 }
 0x57e   : > { %12354 = vst [vmem:[#allocation471_spill] sm:$0xff] %v9310_v43 }
 0x57f   : > { %4512 = vbcast.lane.b32.xlu0 %v9284_v29, 320 }
 0x580   : > { %v9313_v44 = vpop.permute.xlu1 %3430  ;;  %3698 = vbcast.lane.b32.xlu1 %v9172_v38, 344 }
 0x581   : > { %12355 = vst [vmem:[#allocation472_spill] sm:$0xff] %v9313_v44  ;;  %v9316_v58 = vpop.permute.xlu0 %3587 }
 0x582   : > { %12356 = vst [vmem:[#allocation473_spill] sm:$0xff] %v9316_v58 }
 0x583   : > { %4520 = vbcast.lane.b32.xlu0 %v9284_v29, 336 }
 0x584   : > { %v9319_v1 = vpop.permute.xlu1 %3438  ;;  %3706 = vbcast.lane.b32.xlu1 %v9172_v38, 360 }
 0x585   : > { %12357 = vst [vmem:[#allocation474_spill] sm:$0xff] %v9319_v1  ;;  %v9322_v56 = vpop.permute.xlu0 %3595  ;;  %v9336_v1 = vrot.slane %v9274_v0, %v7317_v8 }
 0x586   : > { %12358 = vst [vmem:[#allocation475_spill] sm:$0xff] %v9322_v56 }
 0x587   : > { %4528 = vbcast.lane.b32.xlu0 %v9284_v29, 352 }
 0x588   : > { %v9325_v28 = vpop.permute.xlu1 %3446  ;;  %3714 = vbcast.lane.b32.xlu1 %v9172_v38, 376 }
 0x589   : > { %12359 = vst [vmem:[#allocation476_spill] sm:$0xff] %v9325_v28  ;;  %v9328_v43 = vpop.permute.xlu0 %3603 }
 0x58a   : > { %12360 = vst [vmem:[#allocation477_spill] sm:$0xff] %v9328_v43 }
 0x58b   : > { %4536 = vbcast.lane.b32.xlu0 %v9284_v29, 368 }
 0x58c   : > { %v9331_v44 = vpop.permute.xlu1 %3457  ;;  %3725 = vbcast.lane.b32.xlu1 %v9224_v19, 264 }
 0x58d   : > { %12361 = vst [vmem:[#allocation478_spill] sm:$0xff] %v9331_v44  ;;  %v9338_v58 = vpop.permute.xlu0 %3611 }
 0x58e   : > { %12362 = vst [vmem:[#allocation479_spill] sm:$0xff] %v9338_v58 }
 0x58f   : > { %4547 = vbcast.lane.b32.xlu0 %v9336_v1, 256 }
 0x590   : > { %v9341_v56 = vpop.permute.xlu1 %3465  ;;  %3733 = vbcast.lane.b32.xlu1 %v9224_v19, 280 }
 0x591   : > { %12363 = vst [vmem:[#allocation480_spill] sm:$0xff] %v9341_v56  ;;  %v9344_v38 = vpop.permute.xlu0 %3619 }
 0x592   : > { %12364 = vst [vmem:[#allocation481_spill] sm:$0xff] %v9344_v38 }
 0x593   : > { %4555 = vbcast.lane.b32.xlu0 %v9336_v1, 272 }
 0x594   : > { %v9347_v43 = vpop.permute.xlu1 %3473  ;;  %3741 = vbcast.lane.b32.xlu1 %v9224_v19, 296 }
 0x595   : > { %12365 = vst [vmem:[#allocation482_spill] sm:$0xff] %v9347_v43  ;;  %v9350_v44 = vpop.permute.xlu0 %3627 }
 0x596   : > { %12366 = vst [vmem:[#allocation483_spill] sm:$0xff] %v9350_v44 }
 0x597   : > { %4563 = vbcast.lane.b32.xlu0 %v9336_v1, 288 }
 0x598   : > { %v9353_v28 = vpop.permute.xlu1 %3481  ;;  %3749 = vbcast.lane.b32.xlu1 %v9224_v19, 312 }
 0x599   : > { %12367 = vst [vmem:[#allocation484_spill] sm:$0xff] %v9353_v28  ;;  %v9356_v58 = vpop.permute.xlu0 %3635 }
 0x59a   : > { %12368 = vst [vmem:[#allocation485_spill] sm:$0xff] %v9356_v58 }
 0x59b   : > { %4571 = vbcast.lane.b32.xlu0 %v9336_v1, 304 }
 0x59c   : > { %v9359_v56 = vpop.permute.xlu1 %3489  ;;  %3757 = vbcast.lane.b32.xlu1 %v9224_v19, 328 }
 0x59d   : > { %12369 = vst [vmem:[#allocation486_spill] sm:$0xff] %v9359_v56  ;;  %v9362_v38 = vpop.permute.xlu0 %3643 }
 0x59e   : > { %12370 = vst [vmem:[#allocation487_spill] sm:$0xff] %v9362_v38 }
 0x59f   : > { %4579 = vbcast.lane.b32.xlu0 %v9336_v1, 320 }
 0x5a0   : > { %v9365_v43 = vpop.permute.xlu1 %3497  ;;  %3765 = vbcast.lane.b32.xlu1 %v9224_v19, 344 }
 0x5a1   : > { %12371 = vst [vmem:[#allocation488_spill] sm:$0xff] %v9365_v43  ;;  %v9368_v44 = vpop.permute.xlu0 %3654 }
 0x5a2   : > { %12372 = vst [vmem:[#allocation489_spill] sm:$0xff] %v9368_v44 }
 0x5a3   : > { %4587 = vbcast.lane.b32.xlu0 %v9336_v1, 336 }
 0x5a4   : > { %v9371_v28 = vpop.permute.xlu1 %3505  ;;  %3773 = vbcast.lane.b32.xlu1 %v9224_v19, 360 }
 0x5a5   : > { %12373 = vst [vmem:[#allocation490_spill] sm:$0xff] %v9371_v28  ;;  %v9374_v58 = vpop.permute.xlu0 %3662  ;;  %v9388_v28 = vrot.slane %v9274_v0, %v7357_v13 }
 0x5a6   : > { %12374 = vst [vmem:[#allocation491_spill] sm:$0xff] %v9374_v58 }
 0x5a7   : > { %4595 = vbcast.lane.b32.xlu0 %v9336_v1, 352 }
 0x5a8   : > { %v9377_v56 = vpop.permute.xlu1 %3513  ;;  %3781 = vbcast.lane.b32.xlu1 %v9224_v19, 376 }
 0x5a9   : > { %12375 = vst [vmem:[#allocation492_spill] sm:$0xff] %v9377_v56  ;;  %v9380_v38 = vpop.permute.xlu0 %3670 }
 0x5aa   : > { %12376 = vst [vmem:[#allocation493_spill] sm:$0xff] %v9380_v38 }
 0x5ab   : > { %4603 = vbcast.lane.b32.xlu0 %v9336_v1, 368 }
 0x5ac   : > { %v9383_v43 = vpop.permute.xlu1 %3524  ;;  %4484 = vbcast.lane.b32.xlu1 %v9284_v29, 264 }
 0x5ad   : > { %12377 = vst [vmem:[#allocation494_spill] sm:$0xff] %v9383_v43  ;;  %v9390_v44 = vpop.permute.xlu0 %3678 }
 0x5ae   : > { %12378 = vst [vmem:[#allocation495_spill] sm:$0xff] %v9390_v44 }
 0x5af   : > { %4614 = vbcast.lane.b32.xlu0 %v9388_v28, 256 }
 0x5b0   : > { %v9393_v58 = vpop.permute.xlu1 %3532  ;;  %4492 = vbcast.lane.b32.xlu1 %v9284_v29, 280 }
 0x5b1   : > { %12379 = vst [vmem:[#allocation496_spill] sm:$0xff] %v9393_v58  ;;  %v9396_v19 = vpop.permute.xlu0 %3686 }
 0x5b2   : > { %12380 = vst [vmem:[#allocation497_spill] sm:$0xff] %v9396_v19 }
 0x5b3   : > { %4622 = vbcast.lane.b32.xlu0 %v9388_v28, 272 }
 0x5b4   : > { %v9399_v38 = vpop.permute.xlu1 %3540  ;;  %4500 = vbcast.lane.b32.xlu1 %v9284_v29, 296 }
 0x5b5   : > { %12381 = vst [vmem:[#allocation498_spill] sm:$0xff] %v9399_v38  ;;  %v9402_v43 = vpop.permute.xlu0 %3694 }
 0x5b6   : > { %12382 = vst [vmem:[#allocation499_spill] sm:$0xff] %v9402_v43 }
 0x5b7   : > { %4630 = vbcast.lane.b32.xlu0 %v9388_v28, 288 }
 0x5b8   : > { %v9405_v56 = vpop.permute.xlu1 %3548  ;;  %4508 = vbcast.lane.b32.xlu1 %v9284_v29, 312 }
 0x5b9   : > { %12383 = vst [vmem:[#allocation500_spill] sm:$0xff] %v9405_v56  ;;  %v9408_v44 = vpop.permute.xlu0 %3702 }
 0x5ba   : > { %12384 = vst [vmem:[#allocation501_spill] sm:$0xff] %v9408_v44 }
 0x5bb   : > { %4638 = vbcast.lane.b32.xlu0 %v9388_v28, 304 }
 0x5bc   : > { %v9411_v58 = vpop.permute.xlu1 %3556  ;;  %4516 = vbcast.lane.b32.xlu1 %v9284_v29, 328 }
 0x5bd   : > { %12385 = vst [vmem:[#allocation502_spill] sm:$0xff] %v9411_v58  ;;  %v9414_v19 = vpop.permute.xlu0 %3710 }
 0x5be   : > { %12386 = vst [vmem:[#allocation503_spill] sm:$0xff] %v9414_v19 }
 0x5bf   : > { %4646 = vbcast.lane.b32.xlu0 %v9388_v28, 320 }
 0x5c0   : > { %v9417_v38 = vpop.permute.xlu1 %3564  ;;  %4524 = vbcast.lane.b32.xlu1 %v9284_v29, 344 }
 0x5c1   : > { %12387 = vst [vmem:[#allocation504_spill] sm:$0xff] %v9417_v38  ;;  %v9420_v43 = vpop.permute.xlu0 %3721 }
 0x5c2   : > { %12388 = vst [vmem:[#allocation505_spill] sm:$0xff] %v9420_v43 }
 0x5c3   : > { %4654 = vbcast.lane.b32.xlu0 %v9388_v28, 336 }
 0x5c4   : > { %v9423_v56 = vpop.permute.xlu1 %3572  ;;  %4532 = vbcast.lane.b32.xlu1 %v9284_v29, 360 }
 0x5c5   : > { %12389 = vst [vmem:[#allocation506_spill] sm:$0xff] %v9423_v56  ;;  %v9426_v44 = vpop.permute.xlu0 %3729  ;;  %v9440_v56 = vrot.slane %v9274_v0, %v7364_v45  ;;  %v2457_v45 = vadd.f32 %v7397_v3, %v7414_v37 }
 0x5c6   : > { %12390 = vst [vmem:[#allocation507_spill] sm:$0xff] %v9426_v44 }
 0x5c7   : > { %4662 = vbcast.lane.b32.xlu0 %v9388_v28, 352 }
 0x5c8   : > { %v9429_v58 = vpop.permute.xlu1 %3580  ;;  %4540 = vbcast.lane.b32.xlu1 %v9284_v29, 376 }
 0x5c9   : > { %12391 = vst [vmem:[#allocation508_spill] sm:$0xff] %v9429_v58  ;;  %v9432_v19 = vpop.permute.xlu0 %3737 }
 0x5ca   : > { %12392 = vst [vmem:[#allocation509_spill] sm:$0xff] %v9432_v19 }
 0x5cb   : > { %4670 = vbcast.lane.b32.xlu0 %v9388_v28, 368 }
 0x5cc   : > { %v9435_v38 = vpop.permute.xlu1 %3591  ;;  %4551 = vbcast.lane.b32.xlu1 %v9336_v1, 264 }
 0x5cd   : > { %12393 = vst [vmem:[#allocation510_spill] sm:$0xff] %v9435_v38  ;;  %v9442_v43 = vpop.permute.xlu0 %3745 }
 0x5ce   : > { %12394 = vst [vmem:[#allocation511_spill] sm:$0xff] %v9442_v43 }
 0x5cf   : > { %4681 = vbcast.lane.b32.xlu0 %v9440_v56, 256 }
 0x5d0   : > { %v9445_v44 = vpop.permute.xlu1 %3599  ;;  %4559 = vbcast.lane.b32.xlu1 %v9336_v1, 280 }
 0x5d1   : > { %12395 = vst [vmem:[#allocation512_spill] sm:$0xff] %v9445_v44  ;;  %v9448_v29 = vpop.permute.xlu0 %3753  ;;  %v9461_v44 = vrot.slane %v9267_v47, %v7371_v40 }
 0x5d2   : > { %12396 = vst [vmem:[#allocation513_spill] sm:$0xff] %v9448_v29 }
 0x5d3   : > { %4689 = vbcast.lane.b32.xlu0 %v9440_v56, 272 }
 0x5d4   : > { %v9451_v19 = vpop.permute.xlu1 %3607  ;;  %4567 = vbcast.lane.b32.xlu1 %v9336_v1, 296 }
 0x5d5   : > { %12397 = vst [vmem:[#allocation514_spill] sm:$0xff] %v9451_v19  ;;  %v9454_v38 = vpop.permute.xlu0 %3761 }
 0x5d6   : > { %12398 = vst [vmem:[#allocation515_spill] sm:$0xff] %v9454_v38  ;;  %v9471_v38 = vrot.slane %v9461_v44, %v7371_v40 }
 0x5d7   : > { %4697 = vbcast.lane.b32.xlu0 %v9440_v56, 288 }
 0x5d8   : > { %v9457_v58 = vpop.permute.xlu1 %3615  ;;  %4575 = vbcast.lane.b32.xlu1 %v9336_v1, 312 }
 0x5d9   : > { %12399 = vst [vmem:[#allocation516_spill] sm:$0xff] %v9457_v58  ;;  %v9464_v29 = vpop.permute.xlu0 %3769  ;;  %v2455_v58 = vadd.f32 %v7397_v3, %v7403_v18 }
 0x5da   : > { %12400 = vst [vmem:[#allocation517_spill] sm:$0xff] %v9464_v29 }
 0x5db   : > { %4705 = vbcast.lane.b32.xlu0 %v9440_v56, 304  ;;  %v3783_v41 = vmul.f32 %v8629_v49, %v2455_v58 }
 0x5dc   : > { %v9467_v19 = vpop.permute.xlu1 %3623  ;;  %4583 = vbcast.lane.b32.xlu1 %v9336_v1, 328 }
 0x5dd   : > { %12401 = vst [vmem:[#allocation518_spill] sm:$0xff] %v9467_v19  ;;  %v9476_v43 = vpop.permute.xlu0 %3777  ;;  %v9484_v19 = vrot.slane %v9471_v38, %v7142_v30 }
 0x5de   : > { %12402 = vst [vmem:[#allocation519_spill] sm:$0xff] %v9476_v43  ;;  %v3785_v43 = vmul.f32 %v8635_v15, %v2457_v45 }
 0x5df   : > { %4713 = vbcast.lane.b32.xlu0 %v9440_v56, 320  ;;  %v4219_v13 = vmul.f32 %v9484_v19, %v3783_v41 }
 0x5e0   : > { %v9480_v29 = vpop.permute.xlu1 %3631  ;;  %4591 = vbcast.lane.b32.xlu1 %v9336_v1, 344  ;;  %v4221_v47 = vmul.f32 %v9484_v19, %v3785_v43 }
 0x5e1   : > { %12403 = vst [vmem:[#allocation520_spill] sm:$0xff] %v9480_v29  ;;  %v4481_v18 = vpop.permute.xlu0 %4480  ;;  %v2459_v29 = vadd.f32 %v7397_v3, %v7417_v4 }
 0x5e2   : > { %v5547_v49 = vmul.f32 %v7182_v46, %v4481_v18  ;;  %v2463_v18 = vadd.f32 %v7397_v3, %v7438_v22  ;;  %v2465_v22 = vadd.f32 %v7397_v3, %v7449_v20 }
 0x5e3   : > { %4721 = vbcast.lane.b32.xlu0 %v9440_v56, 336  ;;  %v3787_v2 = vmul.f32 %v8641_v5, %v2459_v29 }
 0x5e4   : > { %v9494_v58 = vpop.permute.xlu1 %3639  ;;  %v5803_v8 = vadd.f32 %v5547_v49, %v4219_v13  ;;  %4599 = vbcast.lane.b32.xlu1 %v9336_v1, 360  ;;  %v2461_v13 = vadd.f32 %v7397_v3, %v7428_v57 }
 0x5e5   : > { %12404 = vst [vmem:[#allocation521_spill] sm:$0xff] %v9494_v58  ;;  %v4489_v37 = vpop.permute.xlu0 %4488  ;;  %v4223_v5 = vmul.f32 %v9484_v19, %v3787_v2  ;;  %v12646_v58 = vld [vmem:[#allocation395_spill] sm:$0xff] }
 0x5e6   : > { %6059 = vst [vmem:[%s9501_s4] sm:$0xff] %v5803_v8  ;;  %v5549_v15 = vmul.f32 %v7195_v50, %v4489_v37  ;;  %v3789_v43 = vmul.f32 %v8651_v9, %v2461_v13 }
 0x5e7   : > { %4729 = vbcast.lane.b32.xlu0 %v9440_v56, 352 }
 0x5e8   : > { %v9506_v45 = vpop.permute.xlu1 %3647  ;;  %v5805_v4 = vadd.f32 %v5549_v15, %v4221_v47  ;;  %4607 = vbcast.lane.b32.xlu1 %v9336_v1, 376  ;;  %v9523_v47 = vrot.slane %v9274_v0, %v7406_v23  ;;  %v4225_v9 = vmul.f32 %v9484_v19, %v3789_v43  ;;  %v3791_v1 = vmul.f32 %v8657_v54, %v2463_v18 }
 0x5e9   : > { %12405 = vst [vmem:[#allocation522_spill] sm:$0xff] %v9506_v45  ;;  %v4497_v41 = vpop.permute.xlu0 %4496  ;;  %v2467_v43 = vadd.f32 %v7397_v3, %v7462_v48  ;;  %v2469_v48 = vadd.f32 %v7397_v3, %v7476_v21  ;;  %v12411_v3 = vld [vmem:[#allocation59_spill] sm:$0xff]  ;;  %v12412_v21 = vld [vmem:[#allocation64_spill] sm:$0xff] }
 0x5ea   : > { %6061 = vst [vmem:[%s9501_s4 + $0x10] sm:$0xff] %v5805_v4  ;;  %v5551_v8 = vmul.f32 %v7220_v60, %v4497_v41  ;;  %v4227_v4 = vmul.f32 %v9484_v19, %v3791_v1  ;;  %v3793_v41 = vmul.f32 %v8663_v25, %v2465_v22 }
 0x5eb   : > { %4737 = vbcast.lane.b32.xlu0 %v9440_v56, 368  ;;  %v3797_v22 = vmul.f32 %v8675_v53, %v2469_v48 }
 0x5ec   : > { %v9516_v29 = vpop.permute.xlu1 %3658  ;;  %v5807_v57 = vadd.f32 %v5551_v8, %v4223_v5  ;;  %4618 = vbcast.lane.b32.xlu1 %v9388_v28, 264  ;;  %v4229_v18 = vmul.f32 %v9484_v19, %v3793_v41 }
 0x5ed   : > { %12406 = vst [vmem:[#allocation523_spill] sm:$0xff] %v9516_v29  ;;  %v4505_v2 = vpop.permute.xlu0 %4504  ;;  %v4233_v53 = vmul.f32 %v9484_v19, %v3797_v22 }
 0x5ee   : > { %6063 = vst [vmem:[%s9501_s4 + $0x20] sm:$0xff] %v5807_v57  ;;  %v5553_v49 = vmul.f32 %v7240_v6, %v4505_v2  ;;  %v3795_v57 = vmul.f32 %v8669_v42, %v2467_v43 }
 0x5ef   : > { %4748 = vbcast.lane.b32.xlu0 %v9523_v47, 256 }
 0x5f0   : > { %v9530_v37 = vpop.permute.xlu1 %3666  ;;  %v5809_v15 = vadd.f32 %v5553_v49, %v4225_v9  ;;  %4626 = vbcast.lane.b32.xlu1 %v9388_v28, 280  ;;  %v4056_v9 = vcombine.high %v9461_v44, %v9461_v44  ;;  %v4231_v42 = vmul.f32 %v9484_v19, %v3795_v57 }
 0x5f1   : > { %12407 = vst [vmem:[#allocation524_spill] sm:$0xff] %v9530_v37  ;;  %v4513_v13 = vpop.permute.xlu0 %4512 }
 0x5f2   : > { %6065 = vst [vmem:[%s9501_s4 + $0x30] sm:$0xff] %v5809_v15  ;;  %v5555_v54 = vmul.f32 %v7260_v16, %v4513_v13  ;;  %v9565_v44 = vrot.slane %v4056_v9, %v7371_v40 }
 0x5f3   : > { %4756 = vbcast.lane.b32.xlu0 %v9523_v47, 272 }
 0x5f4   : > { %v9540_v5 = vpop.permute.xlu1 %3674  ;;  %v5811_v20 = vadd.f32 %v5555_v54, %v4227_v4  ;;  %4634 = vbcast.lane.b32.xlu1 %v9388_v28, 296  ;;  %v2471_v4 = vadd.f32 %v12412_v21, %v12411_v3  ;;  %v9579_v57 = vrot.slane %v9565_v44, %v7142_v30 }
 0x5f5   : > { %12408 = vst [vmem:[#allocation525_spill] sm:$0xff] %v9540_v5  ;;  %v4521_v8 = vpop.permute.xlu0 %4520 }
 0x5f6   : > { %6067 = vst [vmem:[%s9501_s4 + $0x40] sm:$0xff] %v5811_v20  ;;  %v5557_v25 = vmul.f32 %v7280_v26, %v4521_v8  ;;  %v3799_v43 = vmul.f32 %v8681_v33, %v2471_v4  ;;  %v12413_v20 = vld [vmem:[#allocation39_spill] sm:$0xff] }
 0x5f7   : > { %4764 = vbcast.lane.b32.xlu0 %v9523_v47, 288 }
 0x5f8   : > { %v9550_v2 = vpop.permute.xlu1 %3682  ;;  %v5813_v1 = vadd.f32 %v5557_v25, %v4229_v18  ;;  %4642 = vbcast.lane.b32.xlu1 %v9388_v28, 312  ;;  %v12415_v25 = vld [vmem:[#allocation61_spill] sm:$0xff]  ;;  %v4235_v33 = vmul.f32 %v9579_v57, %v3799_v43 }
 0x5f9   : > { %12409 = vst [vmem:[#allocation526_spill] sm:$0xff] %v9550_v2  ;;  %v4529_v49 = vpop.permute.xlu0 %4528  ;;  %v2473_v9 = vadd.f32 %v12412_v21, %v12415_v25 }
 0x5fa   : > { %6069 = vst [vmem:[%s9501_s4 + $0x50] sm:$0xff] %v5813_v1  ;;  %v5559_v15 = vmul.f32 %v7298_v55, %v4529_v49 }
 0x5fb   : > { %4772 = vbcast.lane.b32.xlu0 %v9523_v47, 304  ;;  %v3801_v49 = vmul.f32 %v8687_v32, %v2473_v9 }
 0x5fc   : > { %v9562_v13 = vpop.permute.xlu1 %3690  ;;  %v5815_v41 = vadd.f32 %v5559_v15, %v4231_v42  ;;  %4650 = vbcast.lane.b32.xlu1 %v9388_v28, 328  ;;  %v12417_v15 = vld [vmem:[#allocation65_spill] sm:$0xff] }
 0x5fd   : > { %12410 = vst [vmem:[#allocation527_spill] sm:$0xff] %v9562_v13  ;;  %v4537_v54 = vpop.permute.xlu0 %4536  ;;  %v2475_v3 = vadd.f32 %v12412_v21, %v12417_v15 }
 0x5fe   : > { %6071 = vst [vmem:[%s9501_s4 + $0x60] sm:$0xff] %v5815_v41  ;;  %v5561_v8 = vmul.f32 %v12413_v20, %v4537_v54  ;;  %v4237_v54 = vmul.f32 %v9579_v57, %v3801_v49 }
 0x5ff   : > { %4780 = vbcast.lane.b32.xlu0 %v9523_v47, 320 }
 0x600   : > { %v9575_v18 = vpop.permute.xlu1 %3698  ;;  %v5817_v48 = vadd.f32 %v5561_v8, %v4233_v53  ;;  %4658 = vbcast.lane.b32.xlu1 %v9388_v28, 344  ;;  %v3803_v53 = vmul.f32 %v8693_v59, %v2475_v3  ;;  %v12419_v8 = vld [vmem:[#allocation67_spill] sm:$0xff] }
 0x601   : > { %12414 = vst [vmem:[#allocation59_spill] sm:$0xff] %v9575_v18  ;;  %v4548_v1 = vpop.permute.xlu0 %4547  ;;  %v2477_v25 = vadd.f32 %v12412_v21, %v12419_v8  ;;  %v12629_v18 = vld [vmem:[#allocation179_spill] sm:$0xff] }
 0x602   : > { %6073 = vst [vmem:[%s9501_s4 + $0x70] sm:$0xff] %v5817_v48  ;;  %v5563_v42 = vmul.f32 %v7182_v46, %v4548_v1  ;;  %v4239_v1 = vmul.f32 %v9579_v57, %v3803_v53 }
 0x603   : > { %4788 = vbcast.lane.b32.xlu0 %v9523_v47, 336 }
 0x604   : > { %v9589_v22 = vpop.permute.xlu1 %3706  ;;  %v5819_v4 = vadd.f32 %v5563_v42, %v4235_v33  ;;  %4666 = vbcast.lane.b32.xlu1 %v9388_v28, 360  ;;  %v3805_v33 = vmul.f32 %v8703_v63, %v2477_v25  ;;  %v12421_v42 = vld [vmem:[#allocation69_spill] sm:$0xff] }
 0x605   : > { %12416 = vst [vmem:[#allocation64_spill] sm:$0xff] %v9589_v22  ;;  %v4556_v41 = vpop.permute.xlu0 %4555  ;;  %v2479_v15 = vadd.f32 %v12412_v21, %v12421_v42 }
 0x606   : > { %6075 = vst [vmem:[%s9501_s4 + $0x80] sm:$0xff] %v5819_v4  ;;  %v5565_v32 = vmul.f32 %v7195_v50, %v4556_v41  ;;  %v4241_v63 = vmul.f32 %v9579_v57, %v3805_v33 }
 0x607   : > { %4796 = vbcast.lane.b32.xlu0 %v9523_v47, 352  ;;  %v3807_v41 = vmul.f32 %v8709_v34, %v2479_v15 }
 0x608   : > { %v9599_v43 = vpop.permute.xlu1 %3714  ;;  %v5821_v9 = vadd.f32 %v5565_v32, %v4237_v54  ;;  %4674 = vbcast.lane.b32.xlu1 %v9388_v28, 376  ;;  %v9616_v28 = vrot.slane %v9274_v0, %v7505_v62  ;;  %v12423_v32 = vld [vmem:[#allocation71_spill] sm:$0xff] }
 0x609   : > { %12418 = vst [vmem:[#allocation39_spill] sm:$0xff] %v9599_v43  ;;  %v4564_v48 = vpop.permute.xlu0 %4563  ;;  %v2481_v8 = vadd.f32 %v12412_v21, %v12423_v32 }
 0x60a   : > { %6077 = vst [vmem:[%s9501_s4 + $0x90] sm:$0xff] %v5821_v9  ;;  %v5567_v59 = vmul.f32 %v7220_v60, %v4564_v48  ;;  %v4243_v48 = vmul.f32 %v9579_v57, %v3807_v41 }
 0x60b   : > { %4804 = vbcast.lane.b32.xlu0 %v9523_v47, 368 }
 0x60c   : > { %v9609_v49 = vpop.permute.xlu1 %3725  ;;  %v5823_v3 = vadd.f32 %v5567_v59, %v4239_v1  ;;  %4685 = vbcast.lane.b32.xlu1 %v9440_v56, 264  ;;  %v3809_v1 = vmul.f32 %v8715_v24, %v2481_v8  ;;  %v12425_v59 = vld [vmem:[#allocation73_spill] sm:$0xff] }
 0x60d   : > { %12420 = vst [vmem:[#allocation61_spill] sm:$0xff] %v9609_v49  ;;  %v4572_v4 = vpop.permute.xlu0 %4571  ;;  %v2483_v42 = vadd.f32 %v12412_v21, %v12425_v59  ;;  %v12430_v59 = vld [vmem:[#allocation82_spill] sm:$0xff] }
 0x60e   : > { %6079 = vst [vmem:[%s9501_s4 + $0xa0] sm:$0xff] %v5823_v3  ;;  %v5569_v54 = vmul.f32 %v7240_v6, %v4572_v4  ;;  %v4245_v4 = vmul.f32 %v9579_v57, %v3809_v1  ;;  %v12623_v49 = vld [vmem:[#allocation142_spill] sm:$0xff] }
 0x60f   : > { %4815 = vbcast.lane.b32.xlu0 %v9616_v28, 256 }
 0x610   : > { %v9623_v53 = vpop.permute.xlu1 %3733  ;;  %v5825_v25 = vadd.f32 %v5569_v54, %v4241_v63  ;;  %4693 = vbcast.lane.b32.xlu1 %v9440_v56, 280  ;;  %v3811_v63 = vmul.f32 %v8721_v14, %v2483_v42  ;;  %v12427_v54 = vld [vmem:[#allocation75_spill] sm:$0xff] }
 0x611   : > { %12422 = vst [vmem:[#allocation65_spill] sm:$0xff] %v9623_v53  ;;  %v4580_v9 = vpop.permute.xlu0 %4579  ;;  %v2485_v32 = vadd.f32 %v12412_v21, %v12427_v54  ;;  %v12429_v21 = vld [vmem:[#allocation77_spill] sm:$0xff]  ;;  %v12432_v54 = vld [vmem:[#allocation79_spill] sm:$0xff] }
 0x612   : > { %6081 = vst [vmem:[%s9501_s4 + $0xb0] sm:$0xff] %v5825_v25  ;;  %v5571_v34 = vmul.f32 %v7260_v16, %v4580_v9  ;;  %v4247_v9 = vmul.f32 %v9579_v57, %v3811_v63  ;;  %v2487_v42 = vadd.f32 %v12430_v59, %v12429_v21 }
 0x613   : > { %4823 = vbcast.lane.b32.xlu0 %v9616_v28, 272 }
 0x614   : > { %v9633_v33 = vpop.permute.xlu1 %3741  ;;  %v5827_v15 = vadd.f32 %v5571_v34, %v4243_v48  ;;  %4701 = vbcast.lane.b32.xlu1 %v9440_v56, 296  ;;  %v3813_v48 = vmul.f32 %v8727_v27, %v2485_v32  ;;  %v4086_v34 = vcombine.high %v9471_v38, %v9471_v38  ;;  %v2489_v32 = vadd.f32 %v12430_v59, %v12432_v54 }
 0x615   : > { %12424 = vst [vmem:[#allocation67_spill] sm:$0xff] %v9633_v33  ;;  %v4588_v3 = vpop.permute.xlu0 %4587  ;;  %v12503_v33 = vld [vmem:[#allocation331_spill] sm:$0xff] }
 0x616   : > { %6083 = vst [vmem:[%s9501_s4 + $0xc0] sm:$0xff] %v5827_v15  ;;  %v5573_v24 = vmul.f32 %v7280_v26, %v4588_v3  ;;  %v4249_v27 = vmul.f32 %v9579_v57, %v3813_v48  ;;  %v9668_v38 = vrot.slane %v4086_v34, %v7142_v30  ;;  %v12434_v34 = vld [vmem:[#allocation83_spill] sm:$0xff] }
 0x617   : > { %4831 = vbcast.lane.b32.xlu0 %v9616_v28, 288  ;;  %v2491_v21 = vadd.f32 %v12430_v59, %v12434_v34  ;;  %v12438_v34 = vld [vmem:[#allocation87_spill] sm:$0xff] }
 0x618   : > { %v9643_v41 = vpop.permute.xlu1 %3749  ;;  %v5829_v8 = vadd.f32 %v5573_v24, %v4245_v4  ;;  %4709 = vbcast.lane.b32.xlu1 %v9440_v56, 312  ;;  %v3815_v4 = vmul.f32 %v8733_v17, %v2487_v42 }
 0x619   : > { %12426 = vst [vmem:[#allocation69_spill] sm:$0xff] %v9643_v41  ;;  %v4596_v25 = vpop.permute.xlu0 %4595 }
 0x61a   : > { %6085 = vst [vmem:[%s9501_s4 + $0xd0] sm:$0xff] %v5829_v8  ;;  %v5575_v14 = vmul.f32 %v7298_v55, %v4596_v25  ;;  %v4251_v17 = vmul.f32 %v9668_v38, %v3815_v4 }
 0x61b   : > { %4839 = vbcast.lane.b32.xlu0 %v9616_v28, 304 }
 0x61c   : > { %v9653_v1 = vpop.permute.xlu1 %3757  ;;  %v5831_v15 = vadd.f32 %v5575_v14, %v4247_v9  ;;  %4717 = vbcast.lane.b32.xlu1 %v9440_v56, 328  ;;  %v3817_v9 = vmul.f32 %v8739_v7, %v2489_v32  ;;  %v12437_v32 = vld [vmem:[#allocation85_spill] sm:$0xff] }
 0x61d   : > { %12428 = vst [vmem:[#allocation71_spill] sm:$0xff] %v9653_v1  ;;  %v4604_v3 = vpop.permute.xlu0 %4603 }
 0x61e   : > { %6087 = vst [vmem:[%s9501_s4 + $0xe0] sm:$0xff] %v5831_v15  ;;  %v5577_v63 = vmul.f32 %v12413_v20, %v4604_v3  ;;  %v4253_v3 = vmul.f32 %v9668_v38, %v3817_v9 }
 0x61f   : > { %4847 = vbcast.lane.b32.xlu0 %v9616_v28, 320 }
 0x620   : > { %v9665_v24 = vpop.permute.xlu1 %3765  ;;  %v5833_v8 = vadd.f32 %v5577_v63, %v4249_v27  ;;  %4725 = vbcast.lane.b32.xlu1 %v9440_v56, 344  ;;  %v3819_v27 = vmul.f32 %v8745_v61, %v2491_v21  ;;  %v12436_v63 = vld [vmem:[#allocation53_spill] sm:$0xff]  ;;  %v2495_v21 = vadd.f32 %v12430_v59, %v12438_v34  ;;  %v12442_v34 = vld [vmem:[#allocation55_spill] sm:$0xff] }
 0x621   : > { %12431 = vst [vmem:[#allocation73_spill] sm:$0xff] %v9665_v24  ;;  %v4615_v25 = vpop.permute.xlu0 %4614  ;;  %v3784_v54 = vmul.f32 %v8748_v36, %v12436_v63 }
 0x622   : > { %6089 = vst [vmem:[%s9501_s4 + $0xf0] sm:$0xff] %v5833_v8  ;;  %v5579_v48 = vmul.f32 %v7182_v46, %v4615_v25  ;;  %v2493_v8 = vadd.f32 %v12430_v59, %v12437_v32  ;;  %v4255_v9 = vmul.f32 %v9668_v38, %v3819_v27  ;;  %v12440_v27 = vld [vmem:[#allocation21_spill] sm:$0xff] }
 0x623   : > { %4855 = vbcast.lane.b32.xlu0 %v9616_v28, 336 }
 0x624   : > { %v9678_v14 = vpop.permute.xlu1 %3773  ;;  %v5835_v42 = vadd.f32 %v5579_v48, %v4251_v17  ;;  %4733 = vbcast.lane.b32.xlu1 %v9440_v56, 360  ;;  %v3821_v61 = vmul.f32 %v8755_v52, %v2493_v8  ;;  %v3823_v8 = vmul.f32 %v8761_v31, %v2495_v21  ;;  %v12443_v31 = vld [vmem:[#allocation24_spill] sm:$0xff] }
 0x625   : > { %12433 = vst [vmem:[#allocation75_spill] sm:$0xff] %v9678_v14  ;;  %v4623_v15 = vpop.permute.xlu0 %4622  ;;  %v12468_v14 = vld [vmem:[#allocation103_spill] sm:$0xff] }
 0x626   : > { %6091 = vst [vmem:[%s9501_s4 + $0x100] sm:$0xff] %v5835_v42  ;;  %v5581_v7 = vmul.f32 %v7195_v50, %v4623_v15  ;;  %v4220_v42 = vmul.f32 %v9484_v19, %v3784_v54  ;;  %v12439_v15 = vld [vmem:[#allocation54_spill] sm:$0xff]  ;;  %v4257_v32 = vmul.f32 %v9668_v38, %v3821_v61 }
 0x627   : > { %4863 = vbcast.lane.b32.xlu0 %v9616_v28, 352 }
 0x628   : > { %v9688_v4 = vpop.permute.xlu1 %3781  ;;  %v5837_v25 = vadd.f32 %v5581_v7, %v4253_v3  ;;  %4741 = vbcast.lane.b32.xlu1 %v9440_v56, 376  ;;  %v3786_v56 = vmul.f32 %v8758_v39, %v12439_v15  ;;  %v9709_v7 = vrot.slane %v9274_v0, %v7609_v10  ;;  %v4259_v15 = vmul.f32 %v9668_v38, %v3823_v8 }
 0x629   : > { %12435 = vst [vmem:[#allocation77_spill] sm:$0xff] %v9688_v4  ;;  %v4631_v17 = vpop.permute.xlu0 %4630  ;;  %v12463_v4 = vld [vmem:[#allocation101_spill] sm:$0xff] }
 0x62a   : > { %6093 = vst [vmem:[%s9501_s4 + $0x110] sm:$0xff] %v5837_v25  ;;  %v5583_v48 = vmul.f32 %v7220_v60, %v4631_v17  ;;  %v12441_v25 = vld [vmem:[#allocation89_spill] sm:$0xff] }
 0x62b   : > { %4871 = vbcast.lane.b32.xlu0 %v9616_v28, 368  ;;  %v2497_v17 = vadd.f32 %v12430_v59, %v12441_v25 }
 0x62c   : > { %v4485_v36 = vpop.permute.xlu1 %4484  ;;  %v5839_v3 = vadd.f32 %v5583_v48, %v4255_v9  ;;  %4752 = vbcast.lane.b32.xlu1 %v9523_v47, 264  ;;  %v4222_v48 = vmul.f32 %v9484_v19, %v3786_v56 }
 0x62d   : > { %v5548_v52 = vmul.f32 %v12440_v27, %v4485_v36  ;;  %v4639_v63 = vpop.permute.xlu0 %4638  ;;  %v3788_v36 = vmul.f32 %v8764_v11, %v12442_v34 }
 0x62e   : > { %6095 = vst [vmem:[%s9501_s4 + $0x120] sm:$0xff] %v5839_v3  ;;  %v5585_v39 = vmul.f32 %v7240_v6, %v4639_v63  ;;  %v3825_v3 = vmul.f32 %v8767_v51, %v2497_v17  ;;  %v12444_v63 = vld [vmem:[#allocation91_spill] sm:$0xff] }
 0x62f   : > { %v5804_v54 = vadd.f32 %v5548_v52, %v4220_v42  ;;  %4882 = vbcast.lane.b32.xlu0 %v9709_v7, 256  ;;  %v2499_v11 = vadd.f32 %v12430_v59, %v12444_v63  ;;  %v12446_v51 = vld [vmem:[#allocation27_spill] sm:$0xff] }
 0x630   : > { %v4493_v9 = vpop.permute.xlu1 %4492  ;;  %v5841_v61 = vadd.f32 %v5585_v39, %v4257_v32  ;;  %4760 = vbcast.lane.b32.xlu1 %v9523_v47, 280  ;;  %v12445_v39 = vld [vmem:[#allocation56_spill] sm:$0xff] }
 0x631   : > { %6060 = vst [vmem:[%s9501_s4 + $0x8] sm:$0xff] %v5804_v54  ;;  %v5550_v21 = vmul.f32 %v12443_v31, %v4493_v9  ;;  %v4647_v42 = vpop.permute.xlu0 %4646  ;;  %v4224_v54 = vmul.f32 %v9484_v19, %v3788_v36  ;;  %v3790_v25 = vmul.f32 %v8770_v35, %v12445_v39  ;;  %v3827_v34 = vmul.f32 %v8773_v12, %v2499_v11  ;;  %v12450_v12 = vld [vmem:[#allocation30_spill] sm:$0xff] }
 0x632   : > { %6097 = vst [vmem:[%s9501_s4 + $0x130] sm:$0xff] %v5841_v61  ;;  %v5587_v56 = vmul.f32 %v7260_v16, %v4647_v42  ;;  %v12451_v39 = vld [vmem:[#allocation310_spill] sm:$0xff] }
 0x633   : > { %v5806_v52 = vadd.f32 %v5550_v21, %v4222_v48  ;;  %4890 = vbcast.lane.b32.xlu0 %v9709_v7, 272  ;;  %v4261_v48 = vmul.f32 %v9668_v38, %v3825_v3  ;;  %v12447_v21 = vld [vmem:[#allocation93_spill] sm:$0xff] }
 0x634   : > { %v4501_v32 = vpop.permute.xlu1 %4500  ;;  %v5843_v8 = vadd.f32 %v5587_v56, %v4259_v15  ;;  %4768 = vbcast.lane.b32.xlu1 %v9523_v47, 296  ;;  %v2501_v35 = vadd.f32 %v12430_v59, %v12447_v21  ;;  %v4226_v15 = vmul.f32 %v9484_v19, %v3790_v25  ;;  %v12449_v56 = vld [vmem:[#allocation309_spill] sm:$0xff] }
 0x635   : > { %6062 = vst [vmem:[%s9501_s4 + $0x18] sm:$0xff] %v5806_v52  ;;  %v5552_v17 = vmul.f32 %v12446_v51, %v4501_v32  ;;  %v4655_v9 = vpop.permute.xlu0 %4654  ;;  %v12448_v52 = vld [vmem:[#allocation57_spill] sm:$0xff] }
 0x636   : > { %6099 = vst [vmem:[%s9501_s4 + $0x140] sm:$0xff] %v5843_v8  ;;  %v5589_v36 = vmul.f32 %v7280_v26, %v4655_v9  ;;  %v3792_v63 = vmul.f32 %v12449_v56, %v12448_v52  ;;  %v3829_v59 = vmul.f32 %v12451_v39, %v2501_v35  ;;  %v12452_v9 = vld [vmem:[#allocation95_spill] sm:$0xff] }
 0x637   : > { %v5808_v61 = vadd.f32 %v5552_v17, %v4224_v54  ;;  %4898 = vbcast.lane.b32.xlu0 %v9709_v7, 288  ;;  %v4263_v54 = vmul.f32 %v9668_v38, %v3827_v34  ;;  %v4088_v17 = vcombine.high %v9565_v44, %v9565_v44  ;;  %v12455_v34 = vld [vmem:[#allocation311_spill] sm:$0xff] }
 0x638   : > { %v4509_v42 = vpop.permute.xlu1 %4508  ;;  %v5845_v3 = vadd.f32 %v5589_v36, %v4261_v48  ;;  %4776 = vbcast.lane.b32.xlu1 %v9523_v47, 312  ;;  %v4228_v21 = vmul.f32 %v9484_v19, %v3792_v63  ;;  %v4265_v44 = vmul.f32 %v9668_v38, %v3829_v59  ;;  %v12460_v59 = vld [vmem:[#allocation313_spill] sm:$0xff] }
 0x639   : > { %6064 = vst [vmem:[%s9501_s4 + $0x28] sm:$0xff] %v5808_v61  ;;  %v5554_v11 = vmul.f32 %v12450_v12, %v4509_v42  ;;  %v4663_v32 = vpop.permute.xlu0 %4662  ;;  %v12453_v61 = vld [vmem:[#allocation100_spill] sm:$0xff]  ;;  %v12454_v42 = vld [vmem:[#allocation58_spill] sm:$0xff] }
 0x63a   : > { %6101 = vst [vmem:[%s9501_s4 + $0x150] sm:$0xff] %v5845_v3  ;;  %v5591_v25 = vmul.f32 %v7298_v55, %v4663_v32  ;;  %v2503_v48 = vadd.f32 %v12453_v61, %v12452_v9  ;;  %v3794_v52 = vmul.f32 %v12455_v34, %v12454_v42  ;;  %v9770_v9 = vrot.slane %v4088_v17, %v7142_v30  ;;  %v12459_v42 = vld [vmem:[#allocation60_spill] sm:$0xff] }
 0x63b   : > { %v5810_v8 = vadd.f32 %v5554_v11, %v4226_v15  ;;  %4906 = vbcast.lane.b32.xlu0 %v9709_v7, 304  ;;  %v12456_v15 = vld [vmem:[#allocation33_spill] sm:$0xff]  ;;  %v12457_v11 = vld [vmem:[#allocation312_spill] sm:$0xff]  ;;  %v3796_v34 = vmul.f32 %v12460_v59, %v12459_v42  ;;  %v2507_v42 = vadd.f32 %v12453_v61, %v12463_v4 }
 0x63c   : > { %v4517_v36 = vpop.permute.xlu1 %4516  ;;  %v5847_v35 = vadd.f32 %v5591_v25, %v4263_v54  ;;  %4784 = vbcast.lane.b32.xlu1 %v9523_v47, 328  ;;  %v3831_v32 = vmul.f32 %v12457_v11, %v2503_v48 }
 0x63d   : > { %6066 = vst [vmem:[%s9501_s4 + $0x38] sm:$0xff] %v5810_v8  ;;  %v5556_v56 = vmul.f32 %v12456_v15, %v4517_v36  ;;  %v4671_v3 = vpop.permute.xlu0 %4670  ;;  %v12458_v8 = vld [vmem:[#allocation97_spill] sm:$0xff]  ;;  %v4230_v36 = vmul.f32 %v9484_v19, %v3794_v52 }
 0x63e   : > { %6103 = vst [vmem:[%s9501_s4 + $0x160] sm:$0xff] %v5847_v35  ;;  %v5593_v63 = vmul.f32 %v12413_v20, %v4671_v3  ;;  %v2505_v54 = vadd.f32 %v12453_v61, %v12458_v8  ;;  %v12462_v3 = vld [vmem:[#allocation314_spill] sm:$0xff] }
 0x63f   : > { %v5812_v39 = vadd.f32 %v5556_v56, %v4228_v21  ;;  %4914 = vbcast.lane.b32.xlu0 %v9709_v7, 320  ;;  %v12461_v21 = vld [vmem:[#allocation36_spill] sm:$0xff]  ;;  %v4267_v56 = vmul.f32 %v9770_v9, %v3831_v32 }
 0x640   : > { %v4525_v25 = vpop.permute.xlu1 %4524  ;;  %v5849_v48 = vadd.f32 %v5593_v63, %v4265_v44  ;;  %4792 = vbcast.lane.b32.xlu1 %v9523_v47, 344  ;;  %v3833_v11 = vmul.f32 %v12462_v3, %v2505_v54  ;;  %v12464_v63 = vld [vmem:[#allocation63_spill] sm:$0xff]  ;;  %v12466_v54 = vld [vmem:[#allocation38_spill] sm:$0xff] }
 0x641   : > { %6068 = vst [vmem:[%s9501_s4 + $0x48] sm:$0xff] %v5812_v39  ;;  %v5558_v35 = vmul.f32 %v12461_v21, %v4525_v25  ;;  %v4682_v17 = vpop.permute.xlu0 %4681  ;;  %v4232_v39 = vmul.f32 %v9484_v19, %v3796_v34  ;;  %v12465_v25 = vld [vmem:[#allocation315_spill] sm:$0xff] }
 0x642   : > { %6105 = vst [vmem:[%s9501_s4 + $0x170] sm:$0xff] %v5849_v48  ;;  %v5595_v52 = vmul.f32 %v7182_v46, %v4682_v17  ;;  %v3798_v59 = vmul.f32 %v12465_v25, %v12464_v63  ;;  %v12467_v17 = vld [vmem:[#allocation316_spill] sm:$0xff]  ;;  %v2509_v63 = vadd.f32 %v12453_v61, %v12468_v14 }
 0x643   : > { %v5814_v8 = vadd.f32 %v5558_v35, %v4230_v36  ;;  %4922 = vbcast.lane.b32.xlu0 %v9709_v7, 336  ;;  %v4269_v35 = vmul.f32 %v9770_v9, %v3833_v11  ;;  %v3835_v4 = vmul.f32 %v12467_v17, %v2507_v42  ;;  %v12471_v42 = vld [vmem:[#allocation41_spill] sm:$0xff] }
 0x644   : > { %v4533_v44 = vpop.permute.xlu1 %4532  ;;  %v5851_v32 = vadd.f32 %v5595_v52, %v4267_v56  ;;  %4800 = vbcast.lane.b32.xlu1 %v9523_v47, 360  ;;  %v12469_v52 = vld [vmem:[#allocation66_spill] sm:$0xff] }
 0x645   : > { %6070 = vst [vmem:[%s9501_s4 + $0x58] sm:$0xff] %v5814_v8  ;;  %v5560_v36 = vmul.f32 %v12466_v54, %v4533_v44  ;;  %v4690_v48 = vpop.permute.xlu0 %4689  ;;  %v4234_v8 = vmul.f32 %v9484_v19, %v3798_v59  ;;  %v12470_v44 = vld [vmem:[#allocation317_spill] sm:$0xff] }
 0x646   : > { %6107 = vst [vmem:[%s9501_s4 + $0x180] sm:$0xff] %v5851_v32  ;;  %v5597_v34 = vmul.f32 %v7195_v50, %v4690_v48  ;;  %v3800_v25 = vmul.f32 %v12470_v44, %v12469_v52  ;;  %v12472_v48 = vld [vmem:[#allocation318_spill] sm:$0xff]  ;;  %v12473_v59 = vld [vmem:[#allocation105_spill] sm:$0xff] }
 0x647   : > { %v5816_v3 = vadd.f32 %v5560_v36, %v4232_v39  ;;  %4930 = vbcast.lane.b32.xlu0 %v9709_v7, 352  ;;  %v4271_v36 = vmul.f32 %v9770_v9, %v3835_v4  ;;  %v3837_v14 = vmul.f32 %v12472_v48, %v2509_v63  ;;  %v2511_v52 = vadd.f32 %v12453_v61, %v12473_v59  ;;  %v12478_v59 = vld [vmem:[#allocation107_spill] sm:$0xff] }
 0x648   : > { %v4541_v56 = vpop.permute.xlu1 %4540  ;;  %v5853_v11 = vadd.f32 %v5597_v34, %v4269_v35  ;;  %4808 = vbcast.lane.b32.xlu1 %v9523_v47, 376  ;;  %v4236_v47 = vmul.f32 %v9579_v57, %v3800_v25  ;;  %v12475_v34 = vld [vmem:[#allocation319_spill] sm:$0xff] }
 0x649   : > { %6072 = vst [vmem:[%s9501_s4 + $0x68] sm:$0xff] %v5816_v3  ;;  %v5562_v39 = vmul.f32 %v12471_v42, %v4541_v56  ;;  %v4698_v32 = vpop.permute.xlu0 %4697  ;;  %v12474_v3 = vld [vmem:[#allocation68_spill] sm:$0xff] }
 0x64a   : > { %6109 = vst [vmem:[%s9501_s4 + $0x190] sm:$0xff] %v5853_v11  ;;  %v5599_v19 = vmul.f32 %v7220_v60, %v4698_v32  ;;  %v3802_v56 = vmul.f32 %v12475_v34, %v12474_v3  ;;  %v12477_v32 = vld [vmem:[#allocation320_spill] sm:$0xff]  ;;  %v12480_v3 = vld [vmem:[#allocation321_spill] sm:$0xff] }
 0x64b   : > { %v5818_v17 = vadd.f32 %v5562_v39, %v4234_v8  ;;  %4938 = vbcast.lane.b32.xlu0 %v9709_v7, 368  ;;  %v12476_v8 = vld [vmem:[#allocation98_spill] sm:$0xff]  ;;  %v4273_v39 = vmul.f32 %v9770_v9, %v3837_v14  ;;  %v3839_v48 = vmul.f32 %v12477_v32, %v2511_v52 }
 0x64c   : > { %v4552_v35 = vpop.permute.xlu1 %4551  ;;  %v5855_v4 = vadd.f32 %v5599_v19, %v4271_v36  ;;  %4819 = vbcast.lane.b32.xlu1 %v9616_v28, 264  ;;  %v9822_v44 = vrot.slane %v9274_v0, %v12476_v8  ;;  %v2513_v36 = vadd.f32 %v12453_v61, %v12478_v59  ;;  %v12479_v0 = vld [vmem:[#allocation70_spill] sm:$0xff]  ;;  %v12482_v59 = vld [vmem:[#allocation459_spill] sm:$0xff]  ;;  %v12651_v8 = vld [vmem:[#allocation397_spill] sm:$0xff] }
 0x64d   : > { %6074 = vst [vmem:[%s9501_s4 + $0x78] sm:$0xff] %v5818_v17  ;;  %v5564_v63 = vmul.f32 %v12440_v27, %v4552_v35  ;;  %v4706_v11 = vpop.permute.xlu0 %4705  ;;  %v4238_v35 = vmul.f32 %v9579_v57, %v3802_v56  ;;  %v3804_v34 = vmul.f32 %v12480_v3, %v12479_v0  ;;  %v4041_v0 = vcombine.high %v12482_v59, %v12482_v59  ;;  %v12484_v3 = vld [vmem:[#allocation72_spill] sm:$0xff] }
 0x64e   : > { %6111 = vst [vmem:[%s9501_s4 + $0x1a0] sm:$0xff] %v5855_v4  ;;  %v5601_v17 = vmul.f32 %v7240_v6, %v4706_v11  ;;  %v4275_v4 = vmul.f32 %v9770_v9, %v3839_v48  ;;  %v12485_v48 = vld [vmem:[#allocation323_spill] sm:$0xff] }
 0x64f   : > { %v5820_v25 = vadd.f32 %v5564_v63, %v4236_v47  ;;  %4949 = vbcast.lane.b32.xlu0 %v9822_v44, 256  ;;  %v12481_v63 = vld [vmem:[#allocation322_spill] sm:$0xff]  ;;  %v3806_v24 = vmul.f32 %v12485_v48, %v12484_v3 }
 0x650   : > { %v4560_v19 = vpop.permute.xlu1 %4559  ;;  %v5857_v14 = vadd.f32 %v5601_v17, %v4273_v39  ;;  %4827 = vbcast.lane.b32.xlu1 %v9616_v28, 280  ;;  %v3841_v11 = vmul.f32 %v12481_v63, %v2513_v36  ;;  %v12488_v3 = vld [vmem:[#allocation74_spill] sm:$0xff] }
 0x651   : > { %6076 = vst [vmem:[%s9501_s4 + $0x88] sm:$0xff] %v5820_v25  ;;  %v5566_v52 = vmul.f32 %v12443_v31, %v4560_v19  ;;  %v4714_v47 = vpop.permute.xlu0 %4713  ;;  %v12483_v25 = vld [vmem:[#allocation109_spill] sm:$0xff]  ;;  %v4240_v19 = vmul.f32 %v9579_v57, %v3804_v34 }
 0x652   : > { %6113 = vst [vmem:[%s9501_s4 + $0x1b0] sm:$0xff] %v5857_v14  ;;  %v5603_v56 = vmul.f32 %v7260_v16, %v4714_v47  ;;  %v2515_v39 = vadd.f32 %v12453_v61, %v12483_v25  ;;  %v12486_v47 = vld [vmem:[#allocation324_spill] sm:$0xff]  ;;  %v9857_v25 = vrot.slane %v4041_v0, %v7371_v40 }
 0x653   : > { %v5822_v32 = vadd.f32 %v5566_v52, %v4238_v35  ;;  %4957 = vbcast.lane.b32.xlu0 %v9822_v44, 272  ;;  %v4277_v52 = vmul.f32 %v9770_v9, %v3841_v11  ;;  %v12489_v11 = vld [vmem:[#allocation325_spill] sm:$0xff] }
 0x654   : > { %v4568_v17 = vpop.permute.xlu1 %4567  ;;  %v5859_v36 = vadd.f32 %v5603_v56, %v4275_v4  ;;  %4835 = vbcast.lane.b32.xlu1 %v9616_v28, 296  ;;  %v3843_v63 = vmul.f32 %v12486_v47, %v2515_v39  ;;  %v3808_v48 = vmul.f32 %v12489_v11, %v12488_v3  ;;  %v9874_v47 = vrot.slane %v9857_v25, %v7371_v40  ;;  %v12494_v3 = vld [vmem:[#allocation327_spill] sm:$0xff] }
 0x655   : > { %6078 = vst [vmem:[%s9501_s4 + $0x98] sm:$0xff] %v5822_v32  ;;  %v5568_v35 = vmul.f32 %v12446_v51, %v4568_v17  ;;  %v4722_v14 = vpop.permute.xlu0 %4721  ;;  %v12487_v32 = vld [vmem:[#allocation111_spill] sm:$0xff]  ;;  %v4242_v17 = vmul.f32 %v9579_v57, %v3806_v24 }
 0x656   : > { %6115 = vst [vmem:[%s9501_s4 + $0x1c0] sm:$0xff] %v5859_v36  ;;  %v5605_v34 = vmul.f32 %v7280_v26, %v4722_v14  ;;  %v2517_v4 = vadd.f32 %v12453_v61, %v12487_v32  ;;  %v4279_v36 = vmul.f32 %v9770_v9, %v3843_v63  ;;  %v12493_v63 = vld [vmem:[#allocation76_spill] sm:$0xff] }
 0x657   : > { %v5824_v59 = vadd.f32 %v5568_v35, %v4240_v19  ;;  %4965 = vbcast.lane.b32.xlu0 %v9822_v44, 288  ;;  %v12490_v35 = vld [vmem:[#allocation326_spill] sm:$0xff] }
 0x658   : > { %v4576_v56 = vpop.permute.xlu1 %4575  ;;  %v5861_v39 = vadd.f32 %v5605_v34, %v4277_v52  ;;  %4843 = vbcast.lane.b32.xlu1 %v9616_v28, 312  ;;  %v3845_v61 = vmul.f32 %v12490_v35, %v2517_v4  ;;  %v12492_v52 = vld [vmem:[#allocation117_spill] sm:$0xff]  ;;  %v3810_v4 = vmul.f32 %v12494_v3, %v12493_v63 }
 0x659   : > { %6080 = vst [vmem:[%s9501_s4 + $0xa8] sm:$0xff] %v5824_v59  ;;  %v5570_v19 = vmul.f32 %v12450_v12, %v4576_v56  ;;  %v4730_v0 = vpop.permute.xlu0 %4729  ;;  %v12491_v59 = vld [vmem:[#allocation113_spill] sm:$0xff]  ;;  %v4244_v56 = vmul.f32 %v9579_v57, %v3808_v48  ;;  %v9891_v48 = vrot.slane %v9874_v47, %v7142_v30 }
 0x65a   : > { %6117 = vst [vmem:[%s9501_s4 + $0x1d0] sm:$0xff] %v5861_v39  ;;  %v5607_v24 = vmul.f32 %v7298_v55, %v4730_v0  ;;  %v2519_v34 = vadd.f32 %v12492_v52, %v12491_v59  ;;  %v12495_v0 = vld [vmem:[#allocation328_spill] sm:$0xff]  ;;  %v12498_v63 = vld [vmem:[#allocation329_spill] sm:$0xff] }
 0x65b   : > { %v5826_v14 = vadd.f32 %v5570_v19, %v4242_v17  ;;  %4973 = vbcast.lane.b32.xlu0 %v9822_v44, 304  ;;  %v4281_v19 = vmul.f32 %v9770_v9, %v3845_v61  ;;  %v12497_v61 = vld [vmem:[#allocation78_spill] sm:$0xff] }
 0x65c   : > { %v4584_v32 = vpop.permute.xlu1 %4583  ;;  %v5863_v17 = vadd.f32 %v5607_v24, %v4279_v36  ;;  %4851 = vbcast.lane.b32.xlu1 %v9616_v28, 328  ;;  %v3847_v35 = vmul.f32 %v12495_v0, %v2519_v34  ;;  %v3812_v34 = vmul.f32 %v12498_v63, %v12497_v61  ;;  %v12502_v63 = vld [vmem:[#allocation81_spill] sm:$0xff] }
 0x65d   : > { %6082 = vst [vmem:[%s9501_s4 + $0xb8] sm:$0xff] %v5826_v14  ;;  %v5572_v11 = vmul.f32 %v12456_v15, %v4584_v32  ;;  %v4738_v39 = vpop.permute.xlu0 %4737  ;;  %v12496_v14 = vld [vmem:[#allocation115_spill] sm:$0xff]  ;;  %v4246_v32 = vmul.f32 %v9579_v57, %v3810_v4  ;;  %v3814_v53 = vmul.f32 %v12503_v33, %v12502_v63 }
 0x65e   : > { %6119 = vst [vmem:[%s9501_s4 + $0x1e0] sm:$0xff] %v5863_v17  ;;  %v5609_v1 = vmul.f32 %v12413_v20, %v4738_v39  ;;  %v2521_v36 = vadd.f32 %v12492_v52, %v12496_v14  ;;  %v12499_v17 = vld [vmem:[#allocation230_spill] sm:$0xff]  ;;  %v4283_v0 = vmul.f32 %v9891_v48, %v3847_v35  ;;  %v4248_v61 = vmul.f32 %v9579_v57, %v3812_v34  ;;  %v9924_v33 = vld [vmem:[%s7349_s20 + $0x8] sm:$0xff] }
 0x65f   : > { %v5828_v59 = vadd.f32 %v5572_v11, %v4244_v56  ;;  %4981 = vbcast.lane.b32.xlu0 %v9822_v44, 320  ;;  %vm600_vm14 = vcmp.gt.f32.partialorder %v12499_v17, 0.0  ;;  %v602_v11 = vmul.f32 0.001, %v12499_v17  ;;  %v12500_v14 = vld [vmem:[#allocation330_spill] sm:$0xff] }
 0x660   : > { %v4592_v24 = vpop.permute.xlu1 %4591  ;;  %v5865_v56 = vadd.f32 %v5609_v1, %v4281_v19  ;;  %4859 = vbcast.lane.b32.xlu1 %v9616_v28, 344  ;;  %v3849_v41 = vmul.f32 %v12500_v14, %v2521_v36  ;;  %v12501_v1 = vld [vmem:[#allocation118_spill] sm:$0xff] }
 0x661   : > { %6084 = vst [vmem:[%s9501_s4 + $0xc8] sm:$0xff] %v5828_v59  ;;  %v5574_v3 = vmul.f32 %v12461_v21, %v4592_v24  ;;  %v4749_v39 = vpop.permute.xlu0 %4748  ;;  %v2523_v19 = vadd.f32 %v12492_v52, %v12501_v1 }
 0x662   : > { %6121 = vst [vmem:[%s9501_s4 + $0x1f0] sm:$0xff] %v5865_v56  ;;  %v5611_v59 = vmul.f32 %v7182_v46, %v4749_v39  ;;  %v12504_v39 = vld [vmem:[#allocation332_spill] sm:$0xff] }
 0x663   : > { %v5830_v4 = vadd.f32 %v5574_v3, %v4246_v32  ;;  %4989 = vbcast.lane.b32.xlu0 %v9822_v44, 336  ;;  %v604_v32 = vsel %vm600_vm14, %v602_v11, 0.001  ;;  %v4285_v3 = vmul.f32 %v9891_v48, %v3849_v41  ;;  %v3851_v14 = vmul.f32 %v12504_v39, %v2523_v19  ;;  %v12506_v41 = vld [vmem:[#allocation84_spill] sm:$0xff]  ;;  %v12508_v39 = vld [vmem:[#allocation334_spill] sm:$0xff] }
 0x664   : > { %v4600_v24 = vpop.permute.xlu1 %4599  ;;  %v5867_v35 = vadd.f32 %v5611_v59, %v4283_v0  ;;  %4867 = vbcast.lane.b32.xlu1 %v9616_v28, 360  ;;  %v606_v0 = vsub.f32 1.0, %v9924_v33  ;;  %v4250_v11 = vmul.f32 %v9579_v57, %v3814_v53 }
 0x665   : > { %6086 = vst [vmem:[%s9501_s4 + $0xd8] sm:$0xff] %v5830_v4  ;;  %v5576_v36 = vmul.f32 %v12466_v54, %v4600_v24  ;;  %v4757_v56 = vpop.permute.xlu0 %4756  ;;  %v12505_v4 = vld [vmem:[#allocation120_spill] sm:$0xff]  ;;  %v12507_v24 = vld [vmem:[#allocation333_spill] sm:$0xff] }
 0x666   : > { %6123 = vst [vmem:[%s9501_s4 + $0x200] sm:$0xff] %v5867_v35  ;;  %v5613_v1 = vmul.f32 %v7195_v50, %v4757_v56  ;;  %v2525_v59 = vadd.f32 %v12492_v52, %v12505_v4  ;;  %v3816_v19 = vmul.f32 %v12507_v24, %v12506_v41  ;;  %v9936_v35 = vadd.f32 %v606_v0, %v604_v32  ;;  %v12509_v41 = vld [vmem:[#allocation122_spill] sm:$0xff] }
 0x667   : > { %v5832_v34 = vadd.f32 %v5576_v36, %v4248_v61  ;;  %4997 = vbcast.lane.b32.xlu0 %v9822_v44, 352  ;;  %v4287_v56 = vmul.f32 %v9891_v48, %v3851_v14  ;;  %v12510_v32 = vld [vmem:[#allocation86_spill] sm:$0xff] }
 0x668   : > { %v4608_v17 = vpop.permute.xlu1 %4607  ;;  %v5869_v61 = vadd.f32 %v5613_v1, %v4285_v3  ;;  %4875 = vbcast.lane.b32.xlu1 %v9616_v28, 376  ;;  %v3853_v4 = vmul.f32 %v12508_v39, %v2525_v59  ;;  %v4252_v3 = vmul.f32 %v9668_v38, %v3816_v19  ;;  %v12511_v1 = vld [vmem:[#allocation335_spill] sm:$0xff]  ;;  %v12513_v39 = vld [vmem:[#allocation124_spill] sm:$0xff] }
 0x669   : > { %6088 = vst [vmem:[%s9501_s4 + $0xe8] sm:$0xff] %v5832_v34  ;;  %v5578_v63 = vmul.f32 %v12471_v42, %v4608_v17  ;;  %v4765_v36 = vpop.permute.xlu0 %4764  ;;  %v2527_v34 = vadd.f32 %v12492_v52, %v12509_v41  ;;  %v3818_v0 = vmul.f32 %v12511_v1, %v12510_v32  ;;  %v9953_v17 = vrot.slane %v9936_v35, %v7142_v30  ;;  %v12514_v41 = vld [vmem:[#allocation88_spill] sm:$0xff] }
 0x66a   : > { %6125 = vst [vmem:[%s9501_s4 + $0x210] sm:$0xff] %v5869_v61  ;;  %v5615_v53 = vmul.f32 %v7220_v60, %v4765_v36  ;;  %v4289_v24 = vmul.f32 %v9891_v48, %v3853_v4  ;;  %v12512_v61 = vld [vmem:[#allocation336_spill] sm:$0xff] }
 0x66b   : > { %v5834_v57 = vadd.f32 %v5578_v63, %v4250_v11  ;;  %5005 = vbcast.lane.b32.xlu0 %v9822_v44, 368  ;;  %v3855_v63 = vmul.f32 %v12512_v61, %v2527_v34  ;;  %v12517_v61 = vld [vmem:[#allocation126_spill] sm:$0xff] }
 0x66c   : > { %v4619_v28 = vpop.permute.xlu1 %4618  ;;  %v5871_v14 = vadd.f32 %v5615_v53, %v4287_v56  ;;  %4886 = vbcast.lane.b32.xlu1 %v9709_v7, 264  ;;  %v2529_v56 = vadd.f32 %v12492_v52, %v12513_v39  ;;  %v4254_v53 = vmul.f32 %v9668_v38, %v3818_v0  ;;  %v2531_v39 = vadd.f32 %v12492_v52, %v12517_v61 }
 0x66d   : > { %6090 = vst [vmem:[%s9501_s4 + $0xf8] sm:$0xff] %v5834_v57  ;;  %v5580_v59 = vmul.f32 %v12440_v27, %v4619_v28  ;;  %v4773_v11 = vpop.permute.xlu0 %4772  ;;  %v12515_v28 = vld [vmem:[#allocation337_spill] sm:$0xff]  ;;  %v4291_v1 = vmul.f32 %v9891_v48, %v3855_v63 }
 0x66e   : > { %6127 = vst [vmem:[%s9501_s4 + $0x220] sm:$0xff] %v5871_v14  ;;  %v5617_v36 = vmul.f32 %v7240_v6, %v4773_v11  ;;  %v3820_v32 = vmul.f32 %v12515_v28, %v12514_v41  ;;  %v12516_v14 = vld [vmem:[#allocation338_spill] sm:$0xff] }
 0x66f   : > { %v5836_v19 = vadd.f32 %v5580_v59, %v4252_v3  ;;  %5016 = vbcast.lane.b32.xlu0 %v9953_v17, 256  ;;  %v3857_v59 = vmul.f32 %v12516_v14, %v2529_v56  ;;  %v4057_v14 = vcombine.high %v9857_v25, %v9857_v25 }
 0x670   : > { %v4627_v57 = vpop.permute.xlu1 %4626  ;;  %v5873_v4 = vadd.f32 %v5617_v36, %v4289_v24  ;;  %4894 = vbcast.lane.b32.xlu1 %v9709_v7, 280  ;;  %v12518_v36 = vld [vmem:[#allocation90_spill] sm:$0xff] }
 0x671   : > { %6092 = vst [vmem:[%s9501_s4 + $0x108] sm:$0xff] %v5836_v19  ;;  %v5582_v34 = vmul.f32 %v12443_v31, %v4627_v57  ;;  %v4781_v3 = vpop.permute.xlu0 %4780  ;;  %v4256_v19 = vmul.f32 %v9668_v38, %v3820_v32  ;;  %v12519_v57 = vld [vmem:[#allocation339_spill] sm:$0xff]  ;;  %v4293_v28 = vmul.f32 %v9891_v48, %v3857_v59  ;;  %v12523_v59 = vld [vmem:[#allocation341_spill] sm:$0xff] }
 0x672   : > { %6129 = vst [vmem:[%s9501_s4 + $0x230] sm:$0xff] %v5873_v4  ;;  %v5619_v0 = vmul.f32 %v7260_v16, %v4781_v3  ;;  %v3822_v41 = vmul.f32 %v12519_v57, %v12518_v36  ;;  %v12520_v4 = vld [vmem:[#allocation340_spill] sm:$0xff] }
 0x673   : > { %v5838_v11 = vadd.f32 %v5582_v34, %v4254_v53  ;;  %5024 = vbcast.lane.b32.xlu0 %v9953_v17, 272  ;;  %v3859_v34 = vmul.f32 %v12520_v4, %v2531_v39  ;;  %v12525_v4 = vld [vmem:[#allocation130_spill] sm:$0xff] }
 0x674   : > { %v4635_v24 = vpop.permute.xlu1 %4634  ;;  %v5875_v63 = vadd.f32 %v5619_v0, %v4291_v1  ;;  %4902 = vbcast.lane.b32.xlu1 %v9709_v7, 296  ;;  %v4258_v61 = vmul.f32 %v9668_v38, %v3822_v41 }
 0x675   : > { %6094 = vst [vmem:[%s9501_s4 + $0x118] sm:$0xff] %v5838_v11  ;;  %v5584_v56 = vmul.f32 %v12446_v51, %v4635_v24  ;;  %v4789_v53 = vpop.permute.xlu0 %4788  ;;  %v12521_v11 = vld [vmem:[#allocation128_spill] sm:$0xff]  ;;  %v4295_v25 = vmul.f32 %v9891_v48, %v3859_v34  ;;  %v12528_v34 = vld [vmem:[#allocation343_spill] sm:$0xff] }
 0x676   : > { %6131 = vst [vmem:[%s9501_s4 + $0x240] sm:$0xff] %v5875_v63  ;;  %v5621_v32 = vmul.f32 %v7280_v26, %v4789_v53  ;;  %v2533_v1 = vadd.f32 %v12492_v52, %v12521_v11  ;;  %v12522_v24 = vld [vmem:[#allocation92_spill] sm:$0xff]  ;;  %v12524_v63 = vld [vmem:[#allocation342_spill] sm:$0xff]  ;;  %v10001_v53 = vrot.slane %v4057_v14, %v7371_v40 }
 0x677   : > { %v5840_v3 = vadd.f32 %v5584_v56, %v4256_v19  ;;  %5032 = vbcast.lane.b32.xlu0 %v9953_v17, 288  ;;  %v3824_v36 = vmul.f32 %v12523_v59, %v12522_v24 }
 0x678   : > { %v4643_v0 = vpop.permute.xlu1 %4642  ;;  %v5877_v39 = vadd.f32 %v5621_v32, %v4293_v28  ;;  %4910 = vbcast.lane.b32.xlu1 %v9709_v7, 312  ;;  %v3861_v52 = vmul.f32 %v12524_v63, %v2533_v1  ;;  %v10018_v63 = vrot.slane %v10001_v53, %v7142_v30 }
 0x679   : > { %6096 = vst [vmem:[%s9501_s4 + $0x128] sm:$0xff] %v5840_v3  ;;  %v5586_v19 = vmul.f32 %v12450_v12, %v4643_v0  ;;  %v4797_v57 = vpop.permute.xlu0 %4796  ;;  %v12526_v3 = vld [vmem:[#allocation134_spill] sm:$0xff]  ;;  %v4260_v11 = vmul.f32 %v9668_v38, %v3824_v36 }
 0x67a   : > { %6133 = vst [vmem:[%s9501_s4 + $0x250] sm:$0xff] %v5877_v39  ;;  %v5623_v41 = vmul.f32 %v7298_v55, %v4797_v57  ;;  %v2535_v28 = vadd.f32 %v12526_v3, %v12525_v4  ;;  %v12527_v0 = vld [vmem:[#allocation94_spill] sm:$0xff]  ;;  %v4297_v59 = vmul.f32 %v9891_v48, %v3861_v52  ;;  %v12529_v39 = vld [vmem:[#allocation344_spill] sm:$0xff] }
 0x67b   : > { %v5842_v56 = vadd.f32 %v5586_v19, %v4258_v61  ;;  %5040 = vbcast.lane.b32.xlu0 %v9953_v17, 304  ;;  %v3826_v24 = vmul.f32 %v12528_v34, %v12527_v0  ;;  %v12531_v52 = vld [vmem:[#allocation96_spill] sm:$0xff] }
 0x67c   : > { %v4651_v32 = vpop.permute.xlu1 %4650  ;;  %v5879_v1 = vadd.f32 %v5623_v41, %v4295_v25  ;;  %4918 = vbcast.lane.b32.xlu1 %v9709_v7, 328  ;;  %v3863_v19 = vmul.f32 %v12529_v39, %v2535_v28 }
 0x67d   : > { %6098 = vst [vmem:[%s9501_s4 + $0x138] sm:$0xff] %v5842_v56  ;;  %v5588_v61 = vmul.f32 %v12456_v15, %v4651_v32  ;;  %v4805_v14 = vpop.permute.xlu0 %4804  ;;  %v12530_v56 = vld [vmem:[#allocation132_spill] sm:$0xff]  ;;  %v4262_v4 = vmul.f32 %v9668_v38, %v3826_v24  ;;  %v12532_v32 = vld [vmem:[#allocation345_spill] sm:$0xff] }
 0x67e   : > { %6135 = vst [vmem:[%s9501_s4 + $0x260] sm:$0xff] %v5879_v1  ;;  %v5625_v36 = vmul.f32 %v12413_v20, %v4805_v14  ;;  %v2537_v25 = vadd.f32 %v12526_v3, %v12530_v56  ;;  %v3828_v28 = vmul.f32 %v12532_v32, %v12531_v52  ;;  %v4299_v1 = vmul.f32 %v10018_v63, %v3863_v19  ;;  %v12534_v56 = vld [vmem:[#allocation135_spill] sm:$0xff] }
 0x67f   : > { %v5844_v57 = vadd.f32 %v5588_v61, %v4260_v11  ;;  %5048 = vbcast.lane.b32.xlu0 %v9953_v17, 320  ;;  %v12533_v61 = vld [vmem:[#allocation346_spill] sm:$0xff]  ;;  %v2539_v52 = vadd.f32 %v12526_v3, %v12534_v56  ;;  %v12538_v56 = vld [vmem:[#allocation137_spill] sm:$0xff] }
 0x680   : > { %v4659_v41 = vpop.permute.xlu1 %4658  ;;  %v5881_v11 = vadd.f32 %v5625_v36, %v4297_v59  ;;  %4926 = vbcast.lane.b32.xlu1 %v9709_v7, 344  ;;  %v3865_v14 = vmul.f32 %v12533_v61, %v2537_v25  ;;  %v12535_v36 = vld [vmem:[#allocation99_spill] sm:$0xff] }
 0x681   : > { %6100 = vst [vmem:[%s9501_s4 + $0x148] sm:$0xff] %v5844_v57  ;;  %v5590_v0 = vmul.f32 %v12461_v21, %v4659_v41  ;;  %v4816_v34 = vpop.permute.xlu0 %4815  ;;  %v4264_v57 = vmul.f32 %v9668_v38, %v3828_v28  ;;  %v12536_v41 = vld [vmem:[#allocation347_spill] sm:$0xff] }
 0x682   : > { %6137 = vst [vmem:[%s9501_s4 + $0x270] sm:$0xff] %v5881_v11  ;;  %v5627_v24 = vmul.f32 %v7182_v46, %v4816_v34  ;;  %v3830_v32 = vmul.f32 %v12536_v41, %v12535_v36  ;;  %v4301_v11 = vmul.f32 %v10018_v63, %v3865_v14  ;;  %v2541_v36 = vadd.f32 %v12526_v3, %v12538_v56 }
 0x683   : > { %v5846_v39 = vadd.f32 %v5590_v0, %v4262_v4  ;;  %5056 = vbcast.lane.b32.xlu0 %v9953_v17, 336  ;;  %v12537_v0 = vld [vmem:[#allocation348_spill] sm:$0xff] }
 0x684   : > { %v4667_v59 = vpop.permute.xlu1 %4666  ;;  %v5883_v19 = vadd.f32 %v5627_v24, %v4299_v1  ;;  %4934 = vbcast.lane.b32.xlu1 %v9709_v7, 360  ;;  %v3867_v34 = vmul.f32 %v12537_v0, %v2539_v52  ;;  %v12539_v24 = vld [vmem:[#allocation102_spill] sm:$0xff] }
 0x685   : > { %6102 = vst [vmem:[%s9501_s4 + $0x158] sm:$0xff] %v5846_v39  ;;  %v5592_v25 = vmul.f32 %v12466_v54, %v4667_v59  ;;  %v4824_v4 = vpop.permute.xlu0 %4823  ;;  %v4266_v39 = vmul.f32 %v9668_v38, %v3830_v32  ;;  %v12540_v59 = vld [vmem:[#allocation349_spill] sm:$0xff]  ;;  %v12542_v32 = vld [vmem:[#allocation139_spill] sm:$0xff] }
 0x686   : > { %6139 = vst [vmem:[%s9501_s4 + $0x280] sm:$0xff] %v5883_v19  ;;  %v5629_v28 = vmul.f32 %v7195_v50, %v4824_v4  ;;  %v3832_v41 = vmul.f32 %v12540_v59, %v12539_v24  ;;  %v4303_v19 = vmul.f32 %v10018_v63, %v3867_v34  ;;  %v2543_v56 = vadd.f32 %v12526_v3, %v12542_v32 }
 0x687   : > { %v5848_v61 = vadd.f32 %v5592_v25, %v4264_v57  ;;  %5064 = vbcast.lane.b32.xlu0 %v9953_v17, 352  ;;  %v12541_v25 = vld [vmem:[#allocation350_spill] sm:$0xff] }
 0x688   : > { %v4675_v1 = vpop.permute.xlu1 %4674  ;;  %v5885_v14 = vadd.f32 %v5629_v28, %v4301_v11  ;;  %4942 = vbcast.lane.b32.xlu1 %v9709_v7, 376  ;;  %v3869_v4 = vmul.f32 %v12541_v25, %v2541_v36  ;;  %v4268_v7 = vmul.f32 %v9770_v9, %v3832_v41  ;;  %v12544_v28 = vld [vmem:[#allocation351_spill] sm:$0xff] }
 0x689   : > { %6104 = vst [vmem:[%s9501_s4 + $0x168] sm:$0xff] %v5848_v61  ;;  %v5594_v52 = vmul.f32 %v12471_v42, %v4675_v1  ;;  %v4832_v57 = vpop.permute.xlu0 %4831  ;;  %v12543_v61 = vld [vmem:[#allocation104_spill] sm:$0xff] }
 0x68a   : > { %6141 = vst [vmem:[%s9501_s4 + $0x290] sm:$0xff] %v5885_v14  ;;  %v5631_v38 = vmul.f32 %v7220_v60, %v4832_v57  ;;  %v3834_v1 = vmul.f32 %v12544_v28, %v12543_v61  ;;  %v4305_v14 = vmul.f32 %v10018_v63, %v3869_v4  ;;  %v12549_v61 = vld [vmem:[#allocation353_spill] sm:$0xff] }
 0x68b   : > { %v5850_v0 = vadd.f32 %v5594_v52, %v4266_v39  ;;  %5072 = vbcast.lane.b32.xlu0 %v9953_v17, 368  ;;  %v12545_v39 = vld [vmem:[#allocation40_spill] sm:$0xff] }
 0x68c   : > { %v4686_v11 = vpop.permute.xlu1 %4685  ;;  %v5887_v34 = vadd.f32 %v5631_v38, %v4303_v19  ;;  %4953 = vbcast.lane.b32.xlu1 %v9822_v44, 264  ;;  %v10070_v24 = vrot.slane %v9936_v35, %v12545_v39  ;;  %v12546_v52 = vld [vmem:[#allocation352_spill] sm:$0xff]  ;;  %v4270_v32 = vmul.f32 %v9770_v9, %v3834_v1 }
 0x68d   : > { %6106 = vst [vmem:[%s9501_s4 + $0x178] sm:$0xff] %v5850_v0  ;;  %v5596_v36 = vmul.f32 %v12440_v27, %v4686_v11  ;;  %v4840_v59 = vpop.permute.xlu0 %4839  ;;  %v3871_v57 = vmul.f32 %v12546_v52, %v2543_v56  ;;  %v12547_v0 = vld [vmem:[#allocation141_spill] sm:$0xff]  ;;  %v12548_v11 = vld [vmem:[#allocation106_spill] sm:$0xff]  ;;  %v12551_v52 = vld [vmem:[#allocation143_spill] sm:$0xff] }
 0x68e   : > { %6143 = vst [vmem:[%s9501_s4 + $0x2a0] sm:$0xff] %v5887_v34  ;;  %v5633_v25 = vmul.f32 %v7240_v6, %v4840_v59  ;;  %v2545_v19 = vadd.f32 %v12526_v3, %v12547_v0  ;;  %v3836_v28 = vmul.f32 %v12549_v61, %v12548_v11  ;;  %v2547_v0 = vadd.f32 %v12526_v3, %v12551_v52 }
 0x68f   : > { %v5852_v41 = vadd.f32 %v5596_v36, %v4268_v7  ;;  %5083 = vbcast.lane.b32.xlu0 %v10070_v24, 256  ;;  %v4307_v34 = vmul.f32 %v10018_v63, %v3871_v57  ;;  %v12550_v36 = vld [vmem:[#allocation354_spill] sm:$0xff] }
 0x690   : > { %v4694_v38 = vpop.permute.xlu1 %4693  ;;  %v5889_v4 = vadd.f32 %v5633_v25, %v4305_v14  ;;  %4961 = vbcast.lane.b32.xlu1 %v9822_v44, 280  ;;  %v3873_v39 = vmul.f32 %v12550_v36, %v2545_v19  ;;  %v12552_v25 = vld [vmem:[#allocation108_spill] sm:$0xff]  ;;  %v12555_v36 = vld [vmem:[#allocation145_spill] sm:$0xff] }
 0x691   : > { %6108 = vst [vmem:[%s9501_s4 + $0x188] sm:$0xff] %v5852_v41  ;;  %v5598_v56 = vmul.f32 %v12443_v31, %v4694_v38  ;;  %v4848_v7 = vpop.permute.xlu0 %4847  ;;  %v4272_v41 = vmul.f32 %v9770_v9, %v3836_v28  ;;  %v12553_v38 = vld [vmem:[#allocation355_spill] sm:$0xff]  ;;  %v2549_v52 = vadd.f32 %v12526_v3, %v12555_v36 }
 0x692   : > { %6145 = vst [vmem:[%s9501_s4 + $0x2b0] sm:$0xff] %v5889_v4  ;;  %v5635_v1 = vmul.f32 %v7260_v16, %v4848_v7  ;;  %v3838_v11 = vmul.f32 %v12553_v38, %v12552_v25  ;;  %v4309_v61 = vmul.f32 %v10018_v63, %v3873_v39  ;;  %v12554_v4 = vld [vmem:[#allocation356_spill] sm:$0xff] }
 0x693   : > { %v5854_v59 = vadd.f32 %v5598_v56, %v4270_v32  ;;  %5091 = vbcast.lane.b32.xlu0 %v10070_v24, 272  ;;  %v3875_v56 = vmul.f32 %v12554_v4, %v2547_v0  ;;  %v12559_v4 = vld [vmem:[#allocation147_spill] sm:$0xff] }
 0x694   : > { %v4702_v14 = vpop.permute.xlu1 %4701  ;;  %v5891_v57 = vadd.f32 %v5635_v1, %v4307_v34  ;;  %4969 = vbcast.lane.b32.xlu1 %v9822_v44, 296  ;;  %v12556_v1 = vld [vmem:[#allocation110_spill] sm:$0xff] }
 0x695   : > { %6110 = vst [vmem:[%s9501_s4 + $0x198] sm:$0xff] %v5854_v59  ;;  %v5600_v19 = vmul.f32 %v12446_v51, %v4702_v14  ;;  %v4856_v32 = vpop.permute.xlu0 %4855  ;;  %v4274_v59 = vmul.f32 %v9770_v9, %v3838_v11  ;;  %v12557_v14 = vld [vmem:[#allocation357_spill] sm:$0xff]  ;;  %v4311_v38 = vmul.f32 %v10018_v63, %v3875_v56  ;;  %v12562_v56 = vld [vmem:[#allocation359_spill] sm:$0xff] }
 0x696   : > { %6147 = vst [vmem:[%s9501_s4 + $0x2c0] sm:$0xff] %v5891_v57  ;;  %v5637_v28 = vmul.f32 %v7280_v26, %v4856_v32  ;;  %v3840_v25 = vmul.f32 %v12557_v14, %v12556_v1  ;;  %v12558_v57 = vld [vmem:[#allocation358_spill] sm:$0xff]  ;;  %v4087_v32 = vcombine.high %v9874_v47, %v9874_v47 }
 0x697   : > { %v5856_v7 = vadd.f32 %v5600_v19, %v4272_v41  ;;  %5099 = vbcast.lane.b32.xlu0 %v10070_v24, 288  ;;  %v3877_v3 = vmul.f32 %v12558_v57, %v2549_v52 }
 0x698   : > { %v4710_v34 = vpop.permute.xlu1 %4709  ;;  %v5893_v39 = vadd.f32 %v5637_v28, %v4309_v61  ;;  %4977 = vbcast.lane.b32.xlu1 %v9822_v44, 312  ;;  %v4276_v36 = vmul.f32 %v9770_v9, %v3840_v25  ;;  %v10131_v57 = vrot.slane %v4087_v32, %v7142_v30 }
 0x699   : > { %6112 = vst [vmem:[%s9501_s4 + $0x1a8] sm:$0xff] %v5856_v7  ;;  %v5602_v0 = vmul.f32 %v12450_v12, %v4710_v34  ;;  %v4864_v41 = vpop.permute.xlu0 %4863  ;;  %v12560_v7 = vld [vmem:[#allocation151_spill] sm:$0xff]  ;;  %v12561_v34 = vld [vmem:[#allocation112_spill] sm:$0xff]  ;;  %v4313_v47 = vmul.f32 %v10018_v63, %v3877_v3  ;;  %v12566_v3 = vld [vmem:[#allocation361_spill] sm:$0xff] }
 0x69a   : > { %6149 = vst [vmem:[%s9501_s4 + $0x2d0] sm:$0xff] %v5893_v39  ;;  %v5639_v11 = vmul.f32 %v7298_v55, %v4864_v41  ;;  %v2551_v61 = vadd.f32 %v12560_v7, %v12559_v4  ;;  %v3842_v1 = vmul.f32 %v12562_v56, %v12561_v34  ;;  %v12563_v39 = vld [vmem:[#allocation360_spill] sm:$0xff] }
 0x69b   : > { %v5858_v19 = vadd.f32 %v5602_v0, %v4274_v59  ;;  %5107 = vbcast.lane.b32.xlu0 %v10070_v24, 304 }
 0x69c   : > { %v4718_v28 = vpop.permute.xlu1 %4717  ;;  %v5895_v52 = vadd.f32 %v5639_v11, %v4311_v38  ;;  %4985 = vbcast.lane.b32.xlu1 %v9822_v44, 328  ;;  %v3879_v0 = vmul.f32 %v12563_v39, %v2551_v61  ;;  %v4278_v4 = vmul.f32 %v9770_v9, %v3842_v1  ;;  %v12568_v39 = vld [vmem:[#allocation152_spill] sm:$0xff] }
 0x69d   : > { %6114 = vst [vmem:[%s9501_s4 + $0x1b8] sm:$0xff] %v5858_v19  ;;  %v5604_v59 = vmul.f32 %v12456_v15, %v4718_v28  ;;  %v4872_v14 = vpop.permute.xlu0 %4871  ;;  %v12564_v19 = vld [vmem:[#allocation149_spill] sm:$0xff]  ;;  %v12565_v28 = vld [vmem:[#allocation114_spill] sm:$0xff] }
 0x69e   : > { %6151 = vst [vmem:[%s9501_s4 + $0x2e0] sm:$0xff] %v5895_v52  ;;  %v5641_v25 = vmul.f32 %v12413_v20, %v4872_v14  ;;  %v2553_v38 = vadd.f32 %v12560_v7, %v12564_v19  ;;  %v3844_v34 = vmul.f32 %v12566_v3, %v12565_v28  ;;  %v4315_v56 = vmul.f32 %v10131_v57, %v3879_v0  ;;  %v12567_v52 = vld [vmem:[#allocation362_spill] sm:$0xff] }
 0x69f   : > { %v5860_v41 = vadd.f32 %v5604_v59, %v4276_v36  ;;  %5115 = vbcast.lane.b32.xlu0 %v10070_v24, 320  ;;  %v2555_v19 = vadd.f32 %v12560_v7, %v12568_v39 }
 0x6a0   : > { %v4726_v11 = vpop.permute.xlu1 %4725  ;;  %v5897_v61 = vadd.f32 %v5641_v25, %v4313_v47  ;;  %4993 = vbcast.lane.b32.xlu1 %v9822_v44, 344  ;;  %v3881_v59 = vmul.f32 %v12567_v52, %v2553_v38  ;;  %v12569_v25 = vld [vmem:[#allocation116_spill] sm:$0xff]  ;;  %v12572_v52 = vld [vmem:[#allocation154_spill] sm:$0xff] }
 0x6a1   : > { %6116 = vst [vmem:[%s9501_s4 + $0x1c8] sm:$0xff] %v5860_v41  ;;  %v5606_v36 = vmul.f32 %v12461_v21, %v4726_v11  ;;  %v4883_v32 = vpop.permute.xlu0 %4882  ;;  %v4280_v41 = vmul.f32 %v9770_v9, %v3844_v34  ;;  %v12570_v11 = vld [vmem:[#allocation363_spill] sm:$0xff]  ;;  %v2557_v39 = vadd.f32 %v12560_v7, %v12572_v52 }
 0x6a2   : > { %6153 = vst [vmem:[%s9501_s4 + $0x2f0] sm:$0xff] %v5897_v61  ;;  %v5643_v1 = vmul.f32 %v7182_v46, %v4883_v32  ;;  %v3846_v28 = vmul.f32 %v12570_v11, %v12569_v25  ;;  %v4317_v3 = vmul.f32 %v10131_v57, %v3881_v59  ;;  %v12571_v61 = vld [vmem:[#allocation364_spill] sm:$0xff] }
 0x6a3   : > { %v5862_v14 = vadd.f32 %v5606_v36, %v4278_v4  ;;  %5123 = vbcast.lane.b32.xlu0 %v10070_v24, 336  ;;  %v3883_v36 = vmul.f32 %v12571_v61, %v2555_v19 }
 0x6a4   : > { %v4734_v47 = vpop.permute.xlu1 %4733  ;;  %v5899_v0 = vadd.f32 %v5643_v1, %v4315_v56  ;;  %5001 = vbcast.lane.b32.xlu1 %v9822_v44, 360  ;;  %v12573_v1 = vld [vmem:[#allocation119_spill] sm:$0xff] }
 0x6a5   : > { %6118 = vst [vmem:[%s9501_s4 + $0x1d8] sm:$0xff] %v5862_v14  ;;  %v5608_v38 = vmul.f32 %v12466_v54, %v4734_v47  ;;  %v4891_v4 = vpop.permute.xlu0 %4890  ;;  %v4282_v14 = vmul.f32 %v9770_v9, %v3846_v28  ;;  %v12574_v47 = vld [vmem:[#allocation365_spill] sm:$0xff]  ;;  %v4319_v11 = vmul.f32 %v10131_v57, %v3883_v36  ;;  %v12576_v28 = vld [vmem:[#allocation156_spill] sm:$0xff] }
 0x6a6   : > { %6155 = vst [vmem:[%s9501_s4 + $0x300] sm:$0xff] %v5899_v0  ;;  %v5645_v34 = vmul.f32 %v7195_v50, %v4891_v4  ;;  %v3848_v25 = vmul.f32 %v12574_v47, %v12573_v1  ;;  %v12575_v0 = vld [vmem:[#allocation366_spill] sm:$0xff]  ;;  %v2559_v61 = vadd.f32 %v12560_v7, %v12576_v28  ;;  %v12582_v28 = vld [vmem:[#allocation123_spill] sm:$0xff] }
 0x6a7   : > { %v5864_v32 = vadd.f32 %v5608_v38, %v4280_v41  ;;  %5131 = vbcast.lane.b32.xlu0 %v10070_v24, 352  ;;  %v3885_v38 = vmul.f32 %v12575_v0, %v2557_v39  ;;  %v12581_v0 = vld [vmem:[#allocation158_spill] sm:$0xff] }
 0x6a8   : > { %v4742_v56 = vpop.permute.xlu1 %4741  ;;  %v5901_v59 = vadd.f32 %v5645_v34, %v4317_v3  ;;  %5009 = vbcast.lane.b32.xlu1 %v9822_v44, 376  ;;  %v4284_v44 = vmul.f32 %v9891_v48, %v3848_v25  ;;  %v12578_v34 = vld [vmem:[#allocation367_spill] sm:$0xff] }
 0x6a9   : > { %6120 = vst [vmem:[%s9501_s4 + $0x1e8] sm:$0xff] %v5864_v32  ;;  %v5610_v19 = vmul.f32 %v12471_v42, %v4742_v56  ;;  %v4899_v41 = vpop.permute.xlu0 %4898  ;;  %v12577_v32 = vld [vmem:[#allocation121_spill] sm:$0xff]  ;;  %v12579_v56 = vld [vmem:[#allocation43_spill] sm:$0xff]  ;;  %v4321_v47 = vmul.f32 %v10131_v57, %v3885_v38 }
 0x6aa   : > { %6157 = vst [vmem:[%s9501_s4 + $0x310] sm:$0xff] %v5901_v59  ;;  %v5647_v9 = vmul.f32 %v7220_v60, %v4899_v41  ;;  %v3850_v52 = vmul.f32 %v12578_v34, %v12577_v32  ;;  %v12580_v59 = vld [vmem:[#allocation368_spill] sm:$0xff] }
 0x6ab   : > { %v5866_v4 = vadd.f32 %v5610_v19, %v4282_v14  ;;  %5139 = vbcast.lane.b32.xlu0 %v10070_v24, 368  ;;  %v10183_v14 = vrot.slane %v9936_v35, %v12579_v56  ;;  %v3887_v19 = vmul.f32 %v12580_v59, %v2559_v61  ;;  %v12585_v59 = vld [vmem:[#allocation160_spill] sm:$0xff] }
 0x6ac   : > { %v4753_v3 = vpop.permute.xlu1 %4752  ;;  %v5903_v36 = vadd.f32 %v5647_v9, %v4319_v11  ;;  %5020 = vbcast.lane.b32.xlu1 %v9953_v17, 264  ;;  %v2561_v11 = vadd.f32 %v12560_v7, %v12581_v0  ;;  %v4286_v9 = vmul.f32 %v9891_v48, %v3850_v52  ;;  %v2563_v0 = vadd.f32 %v12560_v7, %v12585_v59 }
 0x6ad   : > { %6122 = vst [vmem:[%s9501_s4 + $0x1f8] sm:$0xff] %v5866_v4  ;;  %v5612_v39 = vmul.f32 %v12440_v27, %v4753_v3  ;;  %v4907_v1 = vpop.permute.xlu0 %4906  ;;  %v12583_v3 = vld [vmem:[#allocation369_spill] sm:$0xff]  ;;  %v4323_v34 = vmul.f32 %v10131_v57, %v3887_v19 }
 0x6ae   : > { %6159 = vst [vmem:[%s9501_s4 + $0x320] sm:$0xff] %v5903_v36  ;;  %v5649_v41 = vmul.f32 %v7240_v6, %v4907_v1  ;;  %v3852_v32 = vmul.f32 %v12583_v3, %v12582_v28  ;;  %v12584_v36 = vld [vmem:[#allocation370_spill] sm:$0xff] }
 0x6af   : > { %v5868_v25 = vadd.f32 %v5612_v39, %v4284_v44  ;;  %5150 = vbcast.lane.b32.xlu0 %v10183_v14, 256  ;;  %v3889_v39 = vmul.f32 %v12584_v36, %v2561_v11  ;;  %v12589_v36 = vld [vmem:[#allocation162_spill] sm:$0xff] }
 0x6b0   : > { %v4761_v4 = vpop.permute.xlu1 %4760  ;;  %v5905_v38 = vadd.f32 %v5649_v41, %v4321_v47  ;;  %5028 = vbcast.lane.b32.xlu1 %v9953_v17, 280  ;;  %v12586_v41 = vld [vmem:[#allocation125_spill] sm:$0xff]  ;;  %v2565_v59 = vadd.f32 %v12560_v7, %v12589_v36 }
 0x6b1   : > { %6124 = vst [vmem:[%s9501_s4 + $0x208] sm:$0xff] %v5868_v25  ;;  %v5614_v61 = vmul.f32 %v12443_v31, %v4761_v4  ;;  %v4915_v44 = vpop.permute.xlu0 %4914  ;;  %v4288_v25 = vmul.f32 %v9891_v48, %v3852_v32  ;;  %v12587_v4 = vld [vmem:[#allocation371_spill] sm:$0xff]  ;;  %v4325_v3 = vmul.f32 %v10131_v57, %v3889_v39 }
 0x6b2   : > { %6161 = vst [vmem:[%s9501_s4 + $0x330] sm:$0xff] %v5905_v38  ;;  %v5651_v52 = vmul.f32 %v7260_v16, %v4915_v44  ;;  %v3854_v28 = vmul.f32 %v12587_v4, %v12586_v41  ;;  %v12588_v38 = vld [vmem:[#allocation372_spill] sm:$0xff] }
 0x6b3   : > { %v5870_v1 = vadd.f32 %v5614_v61, %v4286_v9  ;;  %5158 = vbcast.lane.b32.xlu0 %v10183_v14, 272  ;;  %v3891_v61 = vmul.f32 %v12588_v38, %v2563_v0  ;;  %v12593_v38 = vld [vmem:[#allocation164_spill] sm:$0xff] }
 0x6b4   : > { %v4769_v47 = vpop.permute.xlu1 %4768  ;;  %v5907_v19 = vadd.f32 %v5651_v52, %v4323_v34  ;;  %5036 = vbcast.lane.b32.xlu1 %v9953_v17, 296  ;;  %v12590_v52 = vld [vmem:[#allocation127_spill] sm:$0xff] }
 0x6b5   : > { %6126 = vst [vmem:[%s9501_s4 + $0x218] sm:$0xff] %v5870_v1  ;;  %v5616_v11 = vmul.f32 %v12446_v51, %v4769_v47  ;;  %v4923_v9 = vpop.permute.xlu0 %4922  ;;  %v4290_v1 = vmul.f32 %v9891_v48, %v3854_v28  ;;  %v12591_v47 = vld [vmem:[#allocation373_spill] sm:$0xff]  ;;  %v4327_v4 = vmul.f32 %v10131_v57, %v3891_v61  ;;  %v12596_v61 = vld [vmem:[#allocation375_spill] sm:$0xff] }
 0x6b6   : > { %6163 = vst [vmem:[%s9501_s4 + $0x340] sm:$0xff] %v5907_v19  ;;  %v5653_v32 = vmul.f32 %v7280_v26, %v4923_v9  ;;  %v3856_v41 = vmul.f32 %v12591_v47, %v12590_v52  ;;  %v12592_v19 = vld [vmem:[#allocation374_spill] sm:$0xff]  ;;  %v4089_v9 = vcombine.high %v10001_v53, %v10001_v53 }
 0x6b7   : > { %v5872_v44 = vadd.f32 %v5616_v11, %v4288_v25  ;;  %5166 = vbcast.lane.b32.xlu0 %v10183_v14, 288  ;;  %v3893_v7 = vmul.f32 %v12592_v19, %v2565_v59 }
 0x6b8   : > { %v4777_v34 = vpop.permute.xlu1 %4776  ;;  %v5909_v39 = vadd.f32 %v5653_v32, %v4325_v3  ;;  %5044 = vbcast.lane.b32.xlu1 %v9953_v17, 312  ;;  %v4292_v36 = vmul.f32 %v9891_v48, %v3856_v41  ;;  %v10244_v19 = vrot.slane %v4089_v9, %v7142_v30 }
 0x6b9   : > { %6128 = vst [vmem:[%s9501_s4 + $0x228] sm:$0xff] %v5872_v44  ;;  %v5618_v0 = vmul.f32 %v12450_v12, %v4777_v34  ;;  %v4931_v25 = vpop.permute.xlu0 %4930  ;;  %v12594_v44 = vld [vmem:[#allocation168_spill] sm:$0xff]  ;;  %v12595_v34 = vld [vmem:[#allocation129_spill] sm:$0xff]  ;;  %v4329_v53 = vmul.f32 %v10131_v57, %v3893_v7 }
 0x6ba   : > { %6165 = vst [vmem:[%s9501_s4 + $0x350] sm:$0xff] %v5909_v39  ;;  %v5655_v28 = vmul.f32 %v7298_v55, %v4931_v25  ;;  %v2567_v3 = vadd.f32 %v12594_v44, %v12593_v38  ;;  %v3858_v52 = vmul.f32 %v12596_v61, %v12595_v34  ;;  %v12597_v39 = vld [vmem:[#allocation376_spill] sm:$0xff]  ;;  %v12600_v7 = vld [vmem:[#allocation377_spill] sm:$0xff]  ;;  %v2581_v13 = vadd.f32 %v12594_v44, %v12629_v18 }
 0x6bb   : > { %v5874_v11 = vadd.f32 %v5618_v0, %v4290_v1  ;;  %5174 = vbcast.lane.b32.xlu0 %v10183_v14, 304 }
 0x6bc   : > { %v4785_v32 = vpop.permute.xlu1 %4784  ;;  %v5911_v59 = vadd.f32 %v5655_v28, %v4327_v4  ;;  %5052 = vbcast.lane.b32.xlu1 %v9953_v17, 328  ;;  %v3895_v0 = vmul.f32 %v12597_v39, %v2567_v3  ;;  %v4294_v38 = vmul.f32 %v9891_v48, %v3858_v52  ;;  %v12602_v39 = vld [vmem:[#allocation169_spill] sm:$0xff] }
 0x6bd   : > { %6130 = vst [vmem:[%s9501_s4 + $0x238] sm:$0xff] %v5874_v11  ;;  %v5620_v1 = vmul.f32 %v12456_v15, %v4785_v32  ;;  %v4939_v47 = vpop.permute.xlu0 %4938  ;;  %v12598_v11 = vld [vmem:[#allocation166_spill] sm:$0xff]  ;;  %v12599_v32 = vld [vmem:[#allocation131_spill] sm:$0xff] }
 0x6be   : > { %6167 = vst [vmem:[%s9501_s4 + $0x360] sm:$0xff] %v5911_v59  ;;  %v5657_v41 = vmul.f32 %v12413_v20, %v4939_v47  ;;  %v2569_v4 = vadd.f32 %v12594_v44, %v12598_v11  ;;  %v3860_v34 = vmul.f32 %v12600_v7, %v12599_v32  ;;  %v4331_v61 = vmul.f32 %v10244_v19, %v3895_v0  ;;  %v12601_v59 = vld [vmem:[#allocation378_spill] sm:$0xff] }
 0x6bf   : > { %v5876_v25 = vadd.f32 %v5620_v1, %v4292_v36  ;;  %5182 = vbcast.lane.b32.xlu0 %v10183_v14, 320  ;;  %v2571_v11 = vadd.f32 %v12594_v44, %v12602_v39 }
 0x6c0   : > { %v4793_v28 = vpop.permute.xlu1 %4792  ;;  %v5913_v3 = vadd.f32 %v5657_v41, %v4329_v53  ;;  %5060 = vbcast.lane.b32.xlu1 %v9953_v17, 344  ;;  %v3897_v1 = vmul.f32 %v12601_v59, %v2569_v4  ;;  %v12603_v41 = vld [vmem:[#allocation133_spill] sm:$0xff]  ;;  %v12606_v59 = vld [vmem:[#allocation171_spill] sm:$0xff] }
 0x6c1   : > { %6132 = vst [vmem:[%s9501_s4 + $0x248] sm:$0xff] %v5876_v25  ;;  %v5622_v36 = vmul.f32 %v12461_v21, %v4793_v28  ;;  %v4950_v9 = vpop.permute.xlu0 %4949  ;;  %v4296_v25 = vmul.f32 %v9891_v48, %v3860_v34  ;;  %v12604_v28 = vld [vmem:[#allocation379_spill] sm:$0xff]  ;;  %v2573_v39 = vadd.f32 %v12594_v44, %v12606_v59 }
 0x6c2   : > { %6169 = vst [vmem:[%s9501_s4 + $0x370] sm:$0xff] %v5913_v3  ;;  %v5659_v52 = vmul.f32 %v7182_v46, %v4950_v9  ;;  %v3862_v32 = vmul.f32 %v12604_v28, %v12603_v41  ;;  %v4333_v7 = vmul.f32 %v10244_v19, %v3897_v1  ;;  %v12605_v3 = vld [vmem:[#allocation380_spill] sm:$0xff] }
 0x6c3   : > { %v5878_v47 = vadd.f32 %v5622_v36, %v4294_v38  ;;  %5190 = vbcast.lane.b32.xlu0 %v10183_v14, 336  ;;  %v3899_v36 = vmul.f32 %v12605_v3, %v2571_v11 }
 0x6c4   : > { %v4801_v53 = vpop.permute.xlu1 %4800  ;;  %v5915_v0 = vadd.f32 %v5659_v52, %v4331_v61  ;;  %5068 = vbcast.lane.b32.xlu1 %v9953_v17, 360  ;;  %v12607_v52 = vld [vmem:[#allocation136_spill] sm:$0xff] }
 0x6c5   : > { %6134 = vst [vmem:[%s9501_s4 + $0x258] sm:$0xff] %v5878_v47  ;;  %v5624_v4 = vmul.f32 %v12466_v54, %v4801_v53  ;;  %v4958_v38 = vpop.permute.xlu0 %4957  ;;  %v4298_v47 = vmul.f32 %v9891_v48, %v3862_v32  ;;  %v12608_v53 = vld [vmem:[#allocation381_spill] sm:$0xff]  ;;  %v4335_v28 = vmul.f32 %v10244_v19, %v3899_v36 }
 0x6c6   : > { %6171 = vst [vmem:[%s9501_s4 + $0x380] sm:$0xff] %v5915_v0  ;;  %v5661_v34 = vmul.f32 %v7195_v50, %v4958_v38  ;;  %v3864_v41 = vmul.f32 %v12608_v53, %v12607_v52  ;;  %v12609_v0 = vld [vmem:[#allocation382_spill] sm:$0xff]  ;;  %v12610_v32 = vld [vmem:[#allocation173_spill] sm:$0xff] }
 0x6c7   : > { %v5880_v9 = vadd.f32 %v5624_v4, %v4296_v25  ;;  %5198 = vbcast.lane.b32.xlu0 %v10183_v14, 352  ;;  %v3901_v4 = vmul.f32 %v12609_v0, %v2573_v39  ;;  %v2575_v3 = vadd.f32 %v12594_v44, %v12610_v32  ;;  %v12615_v0 = vld [vmem:[#allocation175_spill] sm:$0xff]  ;;  %v12616_v32 = vld [vmem:[#allocation140_spill] sm:$0xff] }
 0x6c8   : > { %v4809_v61 = vpop.permute.xlu1 %4808  ;;  %v5917_v1 = vadd.f32 %v5661_v34, %v4333_v7  ;;  %5076 = vbcast.lane.b32.xlu1 %v9953_v17, 376  ;;  %v4300_v17 = vmul.f32 %v10018_v63, %v3864_v41  ;;  %v12612_v34 = vld [vmem:[#allocation383_spill] sm:$0xff] }
 0x6c9   : > { %6136 = vst [vmem:[%s9501_s4 + $0x268] sm:$0xff] %v5880_v9  ;;  %v5626_v11 = vmul.f32 %v12471_v42, %v4809_v61  ;;  %v4966_v25 = vpop.permute.xlu0 %4965  ;;  %v12611_v9 = vld [vmem:[#allocation138_spill] sm:$0xff]  ;;  %v12613_v61 = vld [vmem:[#allocation44_spill] sm:$0xff]  ;;  %v4337_v53 = vmul.f32 %v10244_v19, %v3901_v4 }
 0x6ca   : > { %6173 = vst [vmem:[%s9501_s4 + $0x390] sm:$0xff] %v5917_v1  ;;  %v5663_v48 = vmul.f32 %v7220_v60, %v4966_v25  ;;  %v3866_v59 = vmul.f32 %v12612_v34, %v12611_v9  ;;  %v12614_v1 = vld [vmem:[#allocation384_spill] sm:$0xff] }
 0x6cb   : > { %v5882_v38 = vadd.f32 %v5626_v11, %v4298_v47  ;;  %5206 = vbcast.lane.b32.xlu0 %v10183_v14, 368  ;;  %v10296_v47 = vrot.slane %v9936_v35, %v12613_v61  ;;  %v3903_v11 = vmul.f32 %v12614_v1, %v2575_v3 }
 0x6cc   : > { %v4820_v7 = vpop.permute.xlu1 %4819  ;;  %v5919_v36 = vadd.f32 %v5663_v48, %v4335_v28  ;;  %5087 = vbcast.lane.b32.xlu1 %v10070_v24, 264  ;;  %v2577_v28 = vadd.f32 %v12594_v44, %v12615_v0  ;;  %v4302_v48 = vmul.f32 %v10018_v63, %v3866_v59 }
 0x6cd   : > { %6138 = vst [vmem:[%s9501_s4 + $0x278] sm:$0xff] %v5882_v38  ;;  %v5628_v39 = vmul.f32 %v12440_v27, %v4820_v7  ;;  %v4974_v52 = vpop.permute.xlu0 %4973  ;;  %v12617_v7 = vld [vmem:[#allocation385_spill] sm:$0xff] }
 0x6ce   : > { %6175 = vst [vmem:[%s9501_s4 + $0x3a0] sm:$0xff] %v5919_v36  ;;  %v5665_v25 = vmul.f32 %v7240_v6, %v4974_v52  ;;  %v3868_v9 = vmul.f32 %v12617_v7, %v12616_v32  ;;  %v12619_v52 = vld [vmem:[#allocation386_spill] sm:$0xff]  ;;  %v12622_v32 = vld [vmem:[#allocation177_spill] sm:$0xff] }
 0x6cf   : > { %v5884_v41 = vadd.f32 %v5628_v39, %v4300_v17  ;;  %5217 = vbcast.lane.b32.xlu0 %v10296_v47, 256  ;;  %v12618_v17 = vld [vmem:[#allocation186_spill] sm:$0xff]  ;;  %v4339_v39 = vmul.f32 %v10244_v19, %v3903_v11  ;;  %v3905_v1 = vmul.f32 %v12619_v52, %v2577_v28  ;;  %v12624_v11 = vld [vmem:[#allocation387_spill] sm:$0xff] }
 0x6d0   : > { %v4828_v38 = vpop.permute.xlu1 %4827  ;;  %v5921_v4 = vadd.f32 %v5665_v25, %v4337_v53  ;;  %5095 = vbcast.lane.b32.xlu1 %v10070_v24, 280  ;;  %v10313_v34 = vrot.slane %v12618_v17, %v7371_v40  ;;  %v12621_v53 = vld [vmem:[#allocation16_spill] sm:$0xff]  ;;  %v4304_v17 = vmul.f32 %v10018_v63, %v3868_v9  ;;  %v3870_v43 = vmul.f32 %v12624_v11, %v12623_v49  ;;  %v12628_v11 = vld [vmem:[#allocation18_spill] sm:$0xff] }
 0x6d1   : > { %6140 = vst [vmem:[%s9501_s4 + $0x288] sm:$0xff] %v5884_v41  ;;  %v5630_v3 = vmul.f32 %v12443_v31, %v4828_v38  ;;  %v4982_v36 = vpop.permute.xlu0 %4981  ;;  %v12620_v41 = vld [vmem:[#allocation47_spill] sm:$0xff]  ;;  %v2579_v38 = vadd.f32 %v12594_v44, %v12622_v32  ;;  %v4341_v9 = vmul.f32 %v10244_v19, %v3905_v1 }
 0x6d2   : > { %6177 = vst [vmem:[%s9501_s4 + $0x3b0] sm:$0xff] %v5921_v4  ;;  %v5667_v0 = vmul.f32 %v7260_v16, %v4982_v36  ;;  %v1809_v25 = vsub.f32 %v12621_v53, %v12620_v41  ;;  %v10332_v4 = vrot.slane %v10313_v34, %v7142_v30  ;;  %v12626_v41 = vld [vmem:[#allocation388_spill] sm:$0xff] }
 0x6d3   : > { %v5886_v59 = vadd.f32 %v5630_v3, %v4302_v48  ;;  %5225 = vbcast.lane.b32.xlu0 %v10296_v47, 272  ;;  %v12625_v3 = vld [vmem:[#allocation42_spill] sm:$0xff]  ;;  %v3907_v49 = vmul.f32 %v12626_v41, %v2579_v38  ;;  %v4306_v38 = vmul.f32 %v10018_v63, %v3870_v43 }
 0x6d4   : > { %v4836_v7 = vpop.permute.xlu1 %4835  ;;  %v5923_v28 = vadd.f32 %v5667_v0, %v4339_v39  ;;  %5103 = vbcast.lane.b32.xlu1 %v10070_v24, 296  ;;  %v10336_v36 = vrot.slane %v12625_v3, %v7142_v30  ;;  %v10344_v0 = vrot.slane %v9924_v33, %v7371_v40  ;;  %v2245_v32 = vsub.f32 %v1809_v25, %v10332_v4 }
 0x6d5   : > { %6142 = vst [vmem:[%s9501_s4 + $0x298] sm:$0xff] %v5886_v59  ;;  %v5632_v48 = vmul.f32 %v12446_v51, %v4836_v7  ;;  %v4990_v52 = vpop.permute.xlu0 %4989  ;;  %v12627_v7 = vld [vmem:[#allocation49_spill] sm:$0xff]  ;;  %v4343_v41 = vmul.f32 %v10244_v19, %v3907_v49 }
 0x6d6   : > { %6179 = vst [vmem:[%s9501_s4 + $0x3c0] sm:$0xff] %v5923_v28  ;;  %v5669_v59 = vmul.f32 %v7280_v26, %v4990_v52  ;;  %v1811_v22 = vsub.f32 %v12628_v11, %v12627_v7  ;;  %v12631_v28 = vld [vmem:[#allocation389_spill] sm:$0xff]  ;;  %v12632_v7 = vld [vmem:[#allocation390_spill] sm:$0xff]  ;;  %v10364_v43 = vrot.slane %v10344_v0, %v7371_v40 }
 0x6d7   : > { %v5888_v39 = vadd.f32 %v5632_v48, %v4304_v17  ;;  %5233 = vbcast.lane.b32.xlu0 %v10296_v47, 288  ;;  %v12630_v17 = vld [vmem:[#allocation144_spill] sm:$0xff]  ;;  %v3909_v18 = vmul.f32 %v12632_v7, %v2581_v13 }
 0x6d8   : > { %v4844_v1 = vpop.permute.xlu1 %4843  ;;  %v3872_v48 = vmul.f32 %v12631_v28, %v12630_v17  ;;  %v5925_v52 = vadd.f32 %v5669_v59, %v4341_v9  ;;  %5111 = vbcast.lane.b32.xlu1 %v10070_v24, 312  ;;  %v2247_v9 = vsub.f32 %v1811_v22, %v10332_v4  ;;  %v12634_v59 = vld [vmem:[#allocation20_spill] sm:$0xff]  ;;  %v12636_v28 = vld [vmem:[#allocation391_spill] sm:$0xff] }
 0x6d9   : > { %6144 = vst [vmem:[%s9501_s4 + $0x2a8] sm:$0xff] %v5888_v39  ;;  %v5634_v33 = vmul.f32 %v12450_v12, %v4844_v1  ;;  %v4998_v25 = vpop.permute.xlu0 %4997  ;;  %v12633_v39 = vld [vmem:[#allocation51_spill] sm:$0xff]  ;;  %v2583_v1 = vadd.f32 %v10336_v36, %v2245_v32  ;;  %v4345_v7 = vmul.f32 %v10244_v19, %v3909_v18 }
 0x6da   : > { %6181 = vst [vmem:[%s9501_s4 + $0x3d0] sm:$0xff] %v5925_v52  ;;  %v5671_v2 = vmul.f32 %v7298_v55, %v4998_v25  ;;  %v1813_v17 = vsub.f32 %v12634_v59, %v12633_v39  ;;  %v4308_v13 = vmul.f32 %v10018_v63, %v3872_v48  ;;  %v12637_v39 = vld [vmem:[#allocation392_spill] sm:$0xff]  ;;  %v10383_v48 = vrot.slane %v10364_v43, %v7142_v30 }
 0x6db   : > { %v5890_v44 = vadd.f32 %v5634_v33, %v4306_v38  ;;  %5241 = vbcast.lane.b32.xlu0 %v10296_v47, 304  ;;  %v12635_v38 = vld [vmem:[#allocation146_spill] sm:$0xff]  ;;  %v3911_v32 = vmul.f32 %v12637_v39, %v2583_v1 }
 0x6dc   : > { %v4852_v49 = vpop.permute.xlu1 %4851  ;;  %v3874_v52 = vmul.f32 %v12636_v28, %v12635_v38  ;;  %v5927_v33 = vadd.f32 %v5671_v2, %v4343_v41  ;;  %5119 = vbcast.lane.b32.xlu1 %v10070_v24, 328  ;;  %v2249_v2 = vsub.f32 %v1813_v17, %v10332_v4  ;;  %v12638_v41 = vld [vmem:[#allocation180_spill] sm:$0xff]  ;;  %v12641_v28 = vld [vmem:[#allocation393_spill] sm:$0xff] }
 0x6dd   : > { %6146 = vst [vmem:[%s9501_s4 + $0x2b8] sm:$0xff] %v5890_v44  ;;  %v5636_v22 = vmul.f32 %v12456_v15, %v4852_v49  ;;  %v5006_v25 = vpop.permute.xlu0 %5005  ;;  %v12639_v44 = vld [vmem:[#allocation23_spill] sm:$0xff]  ;;  %v2585_v49 = vadd.f32 %v10336_v36, %v2247_v9  ;;  %v4347_v39 = vmul.f32 %v10383_v48, %v3911_v32  ;;  %v12645_v32 = vld [vmem:[#allocation150_spill] sm:$0xff] }
 0x6de   : > { %6183 = vst [vmem:[%s9501_s4 + $0x3e0] sm:$0xff] %v5927_v33  ;;  %v5673_v37 = vmul.f32 %v12413_v20, %v5006_v25  ;;  %v1815_v38 = vsub.f32 %v12639_v44, %v12638_v41  ;;  %v4310_v1 = vmul.f32 %v10018_v63, %v3874_v52  ;;  %v12642_v41 = vld [vmem:[#allocation394_spill] sm:$0xff] }
 0x6df   : > { %v5892_v5 = vadd.f32 %v5636_v22, %v4308_v13  ;;  %5249 = vbcast.lane.b32.xlu0 %v10296_v47, 320  ;;  %v12640_v13 = vld [vmem:[#allocation148_spill] sm:$0xff]  ;;  %v3913_v9 = vmul.f32 %v12642_v41, %v2585_v49  ;;  %v3878_v49 = vmul.f32 %v12646_v58, %v12645_v32  ;;  %v12648_v58 = vld [vmem:[#allocation185_spill] sm:$0xff] }
 0x6e0   : > { %v4860_v18 = vpop.permute.xlu1 %4859  ;;  %v3876_v33 = vmul.f32 %v12641_v28, %v12640_v13  ;;  %v5929_v22 = vadd.f32 %v5673_v37, %v4345_v7  ;;  %5127 = vbcast.lane.b32.xlu1 %v10070_v24, 344  ;;  %v2251_v45 = vsub.f32 %v1815_v38, %v10332_v4  ;;  %v12643_v13 = vld [vmem:[#allocation183_spill] sm:$0xff]  ;;  %v2587_v7 = vadd.f32 %v10336_v36, %v2249_v2 }
 0x6e1   : > { %6148 = vst [vmem:[%s9501_s4 + $0x2c8] sm:$0xff] %v5892_v5  ;;  %v5638_v17 = vmul.f32 %v12461_v21, %v4860_v18  ;;  %v5017_v25 = vpop.permute.xlu0 %5016  ;;  %v12644_v5 = vld [vmem:[#allocation26_spill] sm:$0xff]  ;;  %v4314_v32 = vmul.f32 %v10018_v63, %v3878_v49  ;;  %v12654_v49 = vld [vmem:[#allocation32_spill] sm:$0xff] }
 0x6e2   : > { %6185 = vst [vmem:[%s9501_s4 + $0x3f0] sm:$0xff] %v5929_v22  ;;  %v5675_v52 = vmul.f32 %v7182_v46, %v5017_v25  ;;  %v1817_v37 = vsub.f32 %v12644_v5, %v12643_v13  ;;  %v4312_v28 = vmul.f32 %v10018_v63, %v3876_v33  ;;  %v12647_v25 = vld [vmem:[#allocation396_spill] sm:$0xff] }
 0x6e3   : > { %v5894_v29 = vadd.f32 %v5638_v17, %v4310_v1  ;;  %5257 = vbcast.lane.b32.xlu0 %v10296_v47, 336  ;;  %v4349_v17 = vmul.f32 %v10383_v48, %v3913_v9  ;;  %v3915_v2 = vmul.f32 %v12647_v25, %v2587_v7  ;;  %v12650_v9 = vld [vmem:[#allocation153_spill] sm:$0xff] }
 0x6e4   : > { %v4868_v18 = vpop.permute.xlu1 %4867  ;;  %v5931_v1 = vadd.f32 %v5675_v52, %v4347_v39  ;;  %5135 = vbcast.lane.b32.xlu1 %v10070_v24, 360  ;;  %v2253_v13 = vsub.f32 %v1817_v37, %v10332_v4  ;;  %v2589_v52 = vadd.f32 %v10336_v36, %v2251_v45  ;;  %v3880_v7 = vmul.f32 %v12651_v8, %v12650_v9  ;;  %v12653_v8 = vld [vmem:[#allocation188_spill] sm:$0xff] }
 0x6e5   : > { %6150 = vst [vmem:[%s9501_s4 + $0x2d8] sm:$0xff] %v5894_v29  ;;  %v5640_v38 = vmul.f32 %v12466_v54, %v4868_v18  ;;  %v5025_v22 = vpop.permute.xlu0 %5024  ;;  %v12649_v29 = vld [vmem:[#allocation29_spill] sm:$0xff]  ;;  %v10443_v9 = vrot.slane %v9936_v35, %v7406_v23 }
 0x6e6   : > { %6187 = vst [vmem:[%s9501_s4 + $0x400] sm:$0xff] %v5931_v1  ;;  %v5677_v33 = vmul.f32 %v7195_v50, %v5025_v22  ;;  %v1819_v39 = vsub.f32 %v12649_v29, %v12648_v58  ;;  %v12652_v22 = vld [vmem:[#allocation398_spill] sm:$0xff]  ;;  %v12661_v23 = vld [vmem:[#allocation401_spill] sm:$0xff] }
 0x6e7   : > { %v5896_v41 = vadd.f32 %v5640_v38, %v4312_v28  ;;  %5265 = vbcast.lane.b32.xlu0 %v10296_v47, 352  ;;  %v4351_v38 = vmul.f32 %v10383_v48, %v3915_v2  ;;  %v3917_v45 = vmul.f32 %v12652_v22, %v2589_v52  ;;  %v12655_v2 = vld [vmem:[#allocation155_spill] sm:$0xff] }
 0x6e8   : > { %v4876_v18 = vpop.permute.xlu1 %4875  ;;  %v5933_v28 = vadd.f32 %v5677_v33, %v4349_v17  ;;  %5143 = vbcast.lane.b32.xlu1 %v10070_v24, 376  ;;  %v2255_v63 = vsub.f32 %v1819_v39, %v10332_v4  ;;  %v1821_v17 = vsub.f32 %v12654_v49, %v12653_v8  ;;  %v4316_v33 = vmul.f32 %v10131_v57, %v3880_v7 }
 0x6e9   : > { %6152 = vst [vmem:[%s9501_s4 + $0x2e8] sm:$0xff] %v5896_v41  ;;  %v5642_v37 = vmul.f32 %v12471_v42, %v4876_v18  ;;  %v5033_v1 = vpop.permute.xlu0 %5032  ;;  %v2591_v41 = vadd.f32 %v10336_v36, %v2253_v13  ;;  %v12656_v18 = vld [vmem:[#allocation399_spill] sm:$0xff] }
 0x6ea   : > { %6189 = vst [vmem:[%s9501_s4 + $0x410] sm:$0xff] %v5933_v28  ;;  %v5679_v58 = vmul.f32 %v7220_v60, %v5033_v1  ;;  %v3882_v52 = vmul.f32 %v12656_v18, %v12655_v2  ;;  %v4353_v28 = vmul.f32 %v10383_v48, %v3917_v45  ;;  %v12660_v45 = vld [vmem:[#allocation157_spill] sm:$0xff] }
 0x6eb   : > { %v5898_v25 = vadd.f32 %v5642_v37, %v4314_v32  ;;  %5273 = vbcast.lane.b32.xlu0 %v10296_v47, 368  ;;  %v12657_v37 = vld [vmem:[#allocation400_spill] sm:$0xff] }
 0x6ec   : > { %v4887_v24 = vpop.permute.xlu1 %4886  ;;  %v5935_v32 = vadd.f32 %v5679_v58, %v4351_v38  ;;  %5154 = vbcast.lane.b32.xlu1 %v10183_v14, 264  ;;  %v3919_v1 = vmul.f32 %v12657_v37, %v2591_v41  ;;  %v2257_v38 = vsub.f32 %v1821_v17, %v10332_v4  ;;  %v12659_v58 = vld [vmem:[#allocation35_spill] sm:$0xff]  ;;  %v4318_v18 = vmul.f32 %v10131_v57, %v3882_v52 }
 0x6ed   : > { %6154 = vst [vmem:[%s9501_s4 + $0x2f8] sm:$0xff] %v5898_v25  ;;  %v5644_v39 = vmul.f32 %v12440_v27, %v4887_v24  ;;  %v5041_v13 = vpop.permute.xlu0 %5040  ;;  %v12658_v25 = vld [vmem:[#allocation191_spill] sm:$0xff]  ;;  %v2593_v24 = vadd.f32 %v10336_v36, %v2255_v63  ;;  %v3884_v41 = vmul.f32 %v12661_v23, %v12660_v45 }
 0x6ee   : > { %6191 = vst [vmem:[%s9501_s4 + $0x420] sm:$0xff] %v5935_v32  ;;  %v5681_v22 = vmul.f32 %v7240_v6, %v5041_v13  ;;  %v1823_v8 = vsub.f32 %v12659_v58, %v12658_v25  ;;  %v12662_v13 = vld [vmem:[#allocation402_spill] sm:$0xff]  ;;  %v2595_v23 = vadd.f32 %v10336_v36, %v2257_v38 }
 0x6ef   : > { %v5900_v7 = vadd.f32 %v5644_v39, %v4316_v33  ;;  %5284 = vbcast.lane.b32.xlu0 %v10443_v9, 256  ;;  %v4355_v39 = vmul.f32 %v10383_v48, %v3919_v1  ;;  %v3921_v63 = vmul.f32 %v12662_v13, %v2593_v24 }
 0x6f0   : > { %v4895_v2 = vpop.permute.xlu1 %4894  ;;  %v5937_v33 = vadd.f32 %v5681_v22, %v4353_v28  ;;  %5162 = vbcast.lane.b32.xlu1 %v10183_v14, 280  ;;  %v2259_v25 = vsub.f32 %v1823_v8, %v10332_v4  ;;  %v12663_v22 = vld [vmem:[#allocation159_spill] sm:$0xff] }
 0x6f1   : > { %6156 = vst [vmem:[%s9501_s4 + $0x308] sm:$0xff] %v5900_v7  ;;  %v5646_v17 = vmul.f32 %v12443_v31, %v4895_v2  ;;  %v5049_v32 = vpop.permute.xlu0 %5048  ;;  %v4320_v7 = vmul.f32 %v10131_v57, %v3884_v41  ;;  %v12664_v2 = vld [vmem:[#allocation403_spill] sm:$0xff]  ;;  %v4357_v8 = vmul.f32 %v10383_v48, %v3921_v63 }
 0x6f2   : > { %6193 = vst [vmem:[%s9501_s4 + $0x430] sm:$0xff] %v5937_v33  ;;  %v5683_v52 = vmul.f32 %v7260_v16, %v5049_v32  ;;  %v3886_v45 = vmul.f32 %v12664_v2, %v12663_v22  ;;  %v12665_v33 = vld [vmem:[#allocation404_spill] sm:$0xff]  ;;  %v4105_v32 = vcombine.high %v10344_v0, %v10344_v0  ;;  %v2597_v13 = vadd.f32 %v10336_v36, %v2259_v25  ;;  %v12668_v2 = vld [vmem:[#allocation406_spill] sm:$0xff] }
 0x6f3   : > { %v5902_v37 = vadd.f32 %v5646_v17, %v4318_v18  ;;  %5292 = vbcast.lane.b32.xlu0 %v10443_v9, 272  ;;  %v3923_v38 = vmul.f32 %v12665_v33, %v2595_v23  ;;  %v12670_v33 = vld [vmem:[#allocation197_spill] sm:$0xff] }
 0x6f4   : > { %v4903_v28 = vpop.permute.xlu1 %4902  ;;  %v5939_v1 = vadd.f32 %v5683_v52, %v4355_v39  ;;  %5170 = vbcast.lane.b32.xlu1 %v10183_v14, 296  ;;  %v12666_v52 = vld [vmem:[#allocation161_spill] sm:$0xff]  ;;  %v3925_v25 = vmul.f32 %v12668_v2, %v2597_v13 }
 0x6f5   : > { %6158 = vst [vmem:[%s9501_s4 + $0x318] sm:$0xff] %v5902_v37  ;;  %v5648_v24 = vmul.f32 %v12446_v51, %v4903_v28  ;;  %v5057_v18 = vpop.permute.xlu0 %5056  ;;  %v4322_v37 = vmul.f32 %v10131_v57, %v3886_v45  ;;  %v12667_v28 = vld [vmem:[#allocation405_spill] sm:$0xff]  ;;  %v4359_v0 = vmul.f32 %v10383_v48, %v3923_v38  ;;  %v12672_v38 = vld [vmem:[#allocation407_spill] sm:$0xff] }
 0x6f6   : > { %6195 = vst [vmem:[%s9501_s4 + $0x440] sm:$0xff] %v5939_v1  ;;  %v5685_v41 = vmul.f32 %v7280_v26, %v5057_v18  ;;  %v3888_v63 = vmul.f32 %v12667_v28, %v12666_v52  ;;  %v12669_v18 = vld [vmem:[#allocation194_spill] sm:$0xff]  ;;  %v4361_v28 = vmul.f32 %v10383_v48, %v3925_v25  ;;  %v12676_v25 = vld [vmem:[#allocation165_spill] sm:$0xff] }
 0x6f7   : > { %v5904_v17 = vadd.f32 %v5648_v24, %v4320_v7  ;;  %5300 = vbcast.lane.b32.xlu0 %v10443_v9, 288  ;;  %v10492_v24 = vrot.slane %v4105_v32, %v7371_v40 }
 0x6f8   : > { %v4911_v39 = vpop.permute.xlu1 %4910  ;;  %v5941_v23 = vadd.f32 %v5685_v41, %v4357_v8  ;;  %5178 = vbcast.lane.b32.xlu1 %v10183_v14, 312  ;;  %v2599_v8 = vadd.f32 %v12670_v33, %v12669_v18  ;;  %v4324_v41 = vmul.f32 %v10131_v57, %v3888_v63 }
 0x6f9   : > { %6160 = vst [vmem:[%s9501_s4 + $0x328] sm:$0xff] %v5904_v17  ;;  %v5650_v7 = vmul.f32 %v12450_v12, %v4911_v39  ;;  %v5065_v22 = vpop.permute.xlu0 %5064  ;;  %v12671_v39 = vld [vmem:[#allocation163_spill] sm:$0xff]  ;;  %v10509_v2 = vrot.slane %v10492_v24, %v7142_v30 }
 0x6fa   : > { %6197 = vst [vmem:[%s9501_s4 + $0x450] sm:$0xff] %v5941_v23  ;;  %v5687_v45 = vmul.f32 %v7298_v55, %v5065_v22  ;;  %v3890_v52 = vmul.f32 %v12672_v38, %v12671_v39  ;;  %v12673_v23 = vld [vmem:[#allocation408_spill] sm:$0xff] }
 0x6fb   : > { %v5906_v1 = vadd.f32 %v5650_v7, %v4322_v37  ;;  %5308 = vbcast.lane.b32.xlu0 %v10443_v9, 304  ;;  %v3927_v7 = vmul.f32 %v12673_v23, %v2599_v8  ;;  %12674 = vst [vmem:[#allocation82_spill] sm:$0xff] %v10509_v2 }
 0x6fc   : > { %v4919_v17 = vpop.permute.xlu1 %4918  ;;  %v5943_v13 = vadd.f32 %v5687_v45, %v4359_v0  ;;  %5186 = vbcast.lane.b32.xlu1 %v10183_v14, 328  ;;  %v4326_v18 = vmul.f32 %v10131_v57, %v3890_v52 }
 0x6fd   : > { %6162 = vst [vmem:[%s9501_s4 + $0x338] sm:$0xff] %v5906_v1  ;;  %v5652_v37 = vmul.f32 %v12456_v15, %v4919_v17  ;;  %v5073_v32 = vpop.permute.xlu0 %5072  ;;  %v12675_v1 = vld [vmem:[#allocation196_spill] sm:$0xff]  ;;  %v12677_v17 = vld [vmem:[#allocation409_spill] sm:$0xff] }
 0x6fe   : > { %6199 = vst [vmem:[%s9501_s4 + $0x460] sm:$0xff] %v5943_v13  ;;  %v5689_v63 = vmul.f32 %v12413_v20, %v5073_v32  ;;  %v2601_v0 = vadd.f32 %v12670_v33, %v12675_v1  ;;  %v3892_v8 = vmul.f32 %v12677_v17, %v12676_v25  ;;  %v4363_v13 = vmul.f32 %v10509_v2, %v3927_v7  ;;  %v12679_v1 = vld [vmem:[#allocation198_spill] sm:$0xff] }
 0x6ff   : > { %v5908_v22 = vadd.f32 %v5652_v37, %v4324_v41  ;;  %5316 = vbcast.lane.b32.xlu0 %v10443_v9, 320  ;;  %v12678_v37 = vld [vmem:[#allocation410_spill] sm:$0xff]  ;;  %v2603_v25 = vadd.f32 %v12670_v33, %v12679_v1  ;;  %v12683_v1 = vld [vmem:[#allocation200_spill] sm:$0xff] }
 0x700   : > { %v4927_v45 = vpop.permute.xlu1 %4926  ;;  %v5945_v41 = vadd.f32 %v5689_v63, %v4361_v28  ;;  %5194 = vbcast.lane.b32.xlu1 %v10183_v14, 344  ;;  %v3929_v32 = vmul.f32 %v12678_v37, %v2601_v0  ;;  %v12680_v63 = vld [vmem:[#allocation167_spill] sm:$0xff] }
 0x701   : > { %6164 = vst [vmem:[%s9501_s4 + $0x348] sm:$0xff] %v5908_v22  ;;  %v5654_v39 = vmul.f32 %v12461_v21, %v4927_v45  ;;  %v5084_v38 = vpop.permute.xlu0 %5083  ;;  %v4328_v22 = vmul.f32 %v10131_v57, %v3892_v8  ;;  %v12681_v45 = vld [vmem:[#allocation411_spill] sm:$0xff] }
 0x702   : > { %6201 = vst [vmem:[%s9501_s4 + $0x470] sm:$0xff] %v5945_v41  ;;  %v5691_v52 = vmul.f32 %v7182_v46, %v5084_v38  ;;  %v3894_v17 = vmul.f32 %v12681_v45, %v12680_v63  ;;  %v4365_v41 = vmul.f32 %v10509_v2, %v3929_v32  ;;  %v2605_v63 = vadd.f32 %v12670_v33, %v12683_v1 }
 0x703   : > { %v5910_v23 = vadd.f32 %v5654_v39, %v4326_v18  ;;  %5324 = vbcast.lane.b32.xlu0 %v10443_v9, 336  ;;  %v12682_v39 = vld [vmem:[#allocation412_spill] sm:$0xff] }
 0x704   : > { %v4935_v28 = vpop.permute.xlu1 %4934  ;;  %v5947_v7 = vadd.f32 %v5691_v52, %v4363_v13  ;;  %5202 = vbcast.lane.b32.xlu1 %v10183_v14, 360  ;;  %v3931_v38 = vmul.f32 %v12682_v39, %v2603_v25  ;;  %v12684_v52 = vld [vmem:[#allocation170_spill] sm:$0xff] }
 0x705   : > { %6166 = vst [vmem:[%s9501_s4 + $0x358] sm:$0xff] %v5910_v23  ;;  %v5656_v0 = vmul.f32 %v12466_v54, %v4935_v28  ;;  %v5092_v18 = vpop.permute.xlu0 %5091  ;;  %v4330_v23 = vmul.f32 %v10131_v57, %v3894_v17  ;;  %v12685_v28 = vld [vmem:[#allocation413_spill] sm:$0xff]  ;;  %v12687_v17 = vld [vmem:[#allocation202_spill] sm:$0xff] }
 0x706   : > { %6203 = vst [vmem:[%s9501_s4 + $0x480] sm:$0xff] %v5947_v7  ;;  %v5693_v8 = vmul.f32 %v7195_v50, %v5092_v18  ;;  %v3896_v45 = vmul.f32 %v12685_v28, %v12684_v52  ;;  %v4367_v7 = vmul.f32 %v10509_v2, %v3931_v38  ;;  %v2607_v1 = vadd.f32 %v12670_v33, %v12687_v17  ;;  %v12692_v17 = vld [vmem:[#allocation174_spill] sm:$0xff] }
 0x707   : > { %v5912_v37 = vadd.f32 %v5656_v0, %v4328_v22  ;;  %5332 = vbcast.lane.b32.xlu0 %v10443_v9, 352  ;;  %v12686_v0 = vld [vmem:[#allocation414_spill] sm:$0xff] }
 0x708   : > { %v4943_v13 = vpop.permute.xlu1 %4942  ;;  %v5949_v32 = vadd.f32 %v5693_v8, %v4365_v41  ;;  %5210 = vbcast.lane.b32.xlu1 %v10183_v14, 376  ;;  %v3933_v18 = vmul.f32 %v12686_v0, %v2605_v63  ;;  %v4332_v14 = vmul.f32 %v10244_v19, %v3896_v45  ;;  %v12689_v8 = vld [vmem:[#allocation415_spill] sm:$0xff]  ;;  %v12691_v0 = vld [vmem:[#allocation204_spill] sm:$0xff] }
 0x709   : > { %6168 = vst [vmem:[%s9501_s4 + $0x368] sm:$0xff] %v5912_v37  ;;  %v5658_v25 = vmul.f32 %v12471_v42, %v4943_v13  ;;  %v5100_v22 = vpop.permute.xlu0 %5099  ;;  %v12688_v37 = vld [vmem:[#allocation172_spill] sm:$0xff] }
 0x70a   : > { %6205 = vst [vmem:[%s9501_s4 + $0x490] sm:$0xff] %v5949_v32  ;;  %v5695_v57 = vmul.f32 %v7220_v60, %v5100_v22  ;;  %v3898_v13 = vmul.f32 %v12689_v8, %v12688_v37  ;;  %v4369_v28 = vmul.f32 %v10509_v2, %v3933_v18  ;;  %v12690_v32 = vld [vmem:[#allocation416_spill] sm:$0xff] }
 0x70b   : > { %v5914_v39 = vadd.f32 %v5658_v25, %v4330_v23  ;;  %5340 = vbcast.lane.b32.xlu0 %v10443_v9, 368  ;;  %v10561_v23 = vrot.slane %v9936_v35, %v7505_v62  ;;  %v3935_v25 = vmul.f32 %v12690_v32, %v2607_v1 }
 0x70c   : > { %v4954_v41 = vpop.permute.xlu1 %4953  ;;  %v5951_v38 = vadd.f32 %v5695_v57, %v4367_v7  ;;  %5221 = vbcast.lane.b32.xlu1 %v10296_v47, 264  ;;  %v2609_v7 = vadd.f32 %v12670_v33, %v12691_v0  ;;  %v4334_v57 = vmul.f32 %v10244_v19, %v3898_v13 }
 0x70d   : > { %6170 = vst [vmem:[%s9501_s4 + $0x378] sm:$0xff] %v5914_v39  ;;  %v5660_v63 = vmul.f32 %v12440_v27, %v4954_v41  ;;  %v5108_v52 = vpop.permute.xlu0 %5107  ;;  %v12693_v41 = vld [vmem:[#allocation417_spill] sm:$0xff] }
 0x70e   : > { %6207 = vst [vmem:[%s9501_s4 + $0x4a0] sm:$0xff] %v5951_v38  ;;  %v5697_v22 = vmul.f32 %v7240_v6, %v5108_v52  ;;  %v3900_v37 = vmul.f32 %v12693_v41, %v12692_v17  ;;  %v4371_v38 = vmul.f32 %v10509_v2, %v3935_v25  ;;  %v12697_v17 = vld [vmem:[#allocation176_spill] sm:$0xff]  ;;  %v12698_v25 = vld [vmem:[#allocation419_spill] sm:$0xff] }
 0x70f   : > { %v5916_v45 = vadd.f32 %v5660_v63, %v4332_v14  ;;  %5351 = vbcast.lane.b32.xlu0 %v10561_v23, 256  ;;  %v2033_v14 = vcombine.high %v10313_v34, %v10313_v34  ;;  %v12694_v63 = vld [vmem:[#allocation418_spill] sm:$0xff]  ;;  %v3902_v41 = vmul.f32 %v12698_v25, %v12697_v17  ;;  %v12701_v17 = vld [vmem:[#allocation208_spill] sm:$0xff] }
 0x710   : > { %v4962_v39 = vpop.permute.xlu1 %4961  ;;  %v5953_v18 = vadd.f32 %v5697_v22, %v4369_v28  ;;  %5229 = vbcast.lane.b32.xlu1 %v10296_v47, 280  ;;  %v3937_v52 = vmul.f32 %v12694_v63, %v2609_v7  ;;  %v12696_v22 = vld [vmem:[#allocation206_spill] sm:$0xff]  ;;  %v4336_v34 = vmul.f32 %v10244_v19, %v3900_v37  ;;  %v12699_v63 = vld [vmem:[#allocation420_spill] sm:$0xff] }
 0x711   : > { %6172 = vst [vmem:[%s9501_s4 + $0x388] sm:$0xff] %v5916_v45  ;;  %v5662_v1 = vmul.f32 %v12443_v31, %v4962_v39  ;;  %v5116_v8 = vpop.permute.xlu0 %5115  ;;  %v12695_v45 = vld [vmem:[#allocation209_spill] sm:$0xff]  ;;  %v2611_v0 = vadd.f32 %v12670_v33, %v12696_v22  ;;  %v12702_v25 = vld [vmem:[#allocation178_spill] sm:$0xff] }
 0x712   : > { %6209 = vst [vmem:[%s9501_s4 + $0x4b0] sm:$0xff] %v5953_v18  ;;  %v5699_v32 = vmul.f32 %v7260_v16, %v5116_v8  ;;  %v1841_v28 = vsub.f32 %v12621_v53, %v12695_v45  ;;  %v10594_v18 = vrot.slane %v2033_v14, %v7142_v30  ;;  %v4373_v8 = vmul.f32 %v10509_v2, %v3937_v52 }
 0x713   : > { %v5918_v13 = vadd.f32 %v5662_v1, %v4334_v57  ;;  %5359 = vbcast.lane.b32.xlu0 %v10561_v23, 272  ;;  %v3939_v45 = vmul.f32 %v12699_v63, %v2611_v0  ;;  %v4338_v52 = vmul.f32 %v10244_v19, %v3902_v41  ;;  %v12703_v0 = vld [vmem:[#allocation421_spill] sm:$0xff]  ;;  %v12704_v63 = vld [vmem:[#allocation422_spill] sm:$0xff] }
 0x714   : > { %v4970_v39 = vpop.permute.xlu1 %4969  ;;  %v5955_v7 = vadd.f32 %v5699_v32, %v4371_v38  ;;  %5237 = vbcast.lane.b32.xlu1 %v10296_v47, 296  ;;  %v2277_v38 = vsub.f32 %v1841_v28, %v10594_v18 }
 0x715   : > { %6174 = vst [vmem:[%s9501_s4 + $0x398] sm:$0xff] %v5918_v13  ;;  %v5664_v57 = vmul.f32 %v12446_v51, %v4970_v39  ;;  %v5124_v1 = vpop.permute.xlu0 %5123  ;;  %v12700_v13 = vld [vmem:[#allocation211_spill] sm:$0xff]  ;;  %v2613_v39 = vadd.f32 %v12670_v33, %v12701_v17 }
 0x716   : > { %6211 = vst [vmem:[%s9501_s4 + $0x4c0] sm:$0xff] %v5955_v7  ;;  %v5701_v22 = vmul.f32 %v7280_v26, %v5124_v1  ;;  %v1843_v32 = vsub.f32 %v12628_v11, %v12700_v13  ;;  %v3904_v7 = vmul.f32 %v12703_v0, %v12702_v25  ;;  %v4375_v1 = vmul.f32 %v10509_v2, %v3939_v45  ;;  %v12706_v25 = vld [vmem:[#allocation181_spill] sm:$0xff] }
 0x717   : > { %v5920_v37 = vadd.f32 %v5664_v57, %v4336_v34  ;;  %5367 = vbcast.lane.b32.xlu0 %v10561_v23, 288  ;;  %v10614_v57 = vrot.slane %v12625_v3, %v12579_v56  ;;  %v3941_v13 = vmul.f32 %v12704_v63, %v2613_v39 }
 0x718   : > { %v4978_v14 = vpop.permute.xlu1 %4977  ;;  %v5957_v34 = vadd.f32 %v5701_v22, %v4373_v8  ;;  %5245 = vbcast.lane.b32.xlu1 %v10296_v47, 312  ;;  %v4135_v8 = vcombine.high %v10364_v43, %v10364_v43  ;;  %v12705_v22 = vld [vmem:[#allocation213_spill] sm:$0xff]  ;;  %v4340_v39 = vmul.f32 %v10244_v19, %v3904_v7 }
 0x719   : > { %6176 = vst [vmem:[%s9501_s4 + $0x3a8] sm:$0xff] %v5920_v37  ;;  %v5666_v28 = vmul.f32 %v12450_v12, %v4978_v14  ;;  %v5132_v33 = vpop.permute.xlu0 %5131  ;;  %v2279_v37 = vsub.f32 %v1843_v32, %v10594_v18  ;;  %v1845_v14 = vsub.f32 %v12634_v59, %v12705_v22  ;;  %v2615_v56 = vadd.f32 %v10614_v57, %v2277_v38  ;;  %v12708_v32 = vld [vmem:[#allocation45_spill] sm:$0xff]  ;;  %v12710_v22 = vld [vmem:[#allocation424_spill] sm:$0xff] }
 0x71a   : > { %6213 = vst [vmem:[%s9501_s4 + $0x4d0] sm:$0xff] %v5957_v34  ;;  %v5703_v17 = vmul.f32 %v7298_v55, %v5132_v33  ;;  %v4377_v38 = vmul.f32 %v10509_v2, %v3941_v13 }
 0x71b   : > { %v5922_v41 = vadd.f32 %v5666_v28, %v4338_v52  ;;  %5375 = vbcast.lane.b32.xlu0 %v10561_v23, 304  ;;  %v12707_v52 = vld [vmem:[#allocation423_spill] sm:$0xff]  ;;  %v3943_v62 = vmul.f32 %v12710_v22, %v2615_v56 }
 0x71c   : > { %v4986_v45 = vpop.permute.xlu1 %4985  ;;  %v3906_v0 = vmul.f32 %v12707_v52, %v12706_v25  ;;  %v5959_v34 = vadd.f32 %v5703_v17, %v4375_v1  ;;  %5253 = vbcast.lane.b32.xlu1 %v10296_v47, 328  ;;  %v12709_v28 = vld [vmem:[#allocation15_spill] sm:$0xff]  ;;  %v2281_v1 = vsub.f32 %v1845_v14, %v10594_v18  ;;  %v2617_v25 = vadd.f32 %v10614_v57, %v2279_v37  ;;  %v12712_v52 = vld [vmem:[#allocation184_spill] sm:$0xff] }
 0x71d   : > { %6178 = vst [vmem:[%s9501_s4 + $0x3b8] sm:$0xff] %v5922_v41  ;;  %v5668_v43 = vmul.f32 %v12456_v15, %v4986_v45  ;;  %v1810_v33 = vsub.f32 %v12709_v28, %v12708_v32  ;;  %v5140_v63 = vpop.permute.xlu0 %5139  ;;  %v10640_v41 = vrot.slane %v4135_v8, %v7142_v30  ;;  %v12711_v17 = vld [vmem:[#allocation215_spill] sm:$0xff]  ;;  %v12714_v32 = vld [vmem:[#allocation48_spill] sm:$0xff]  ;;  %v12716_v28 = vld [vmem:[#allocation426_spill] sm:$0xff] }
 0x71e   : > { %6215 = vst [vmem:[%s9501_s4 + $0x4e0] sm:$0xff] %v5959_v34  ;;  %v5705_v40 = vmul.f32 %v12413_v20, %v5140_v63  ;;  %v1847_v45 = vsub.f32 %v12639_v44, %v12711_v17  ;;  %v4342_v56 = vmul.f32 %v10244_v19, %v3906_v0  ;;  %v12715_v63 = vld [vmem:[#allocation17_spill] sm:$0xff]  ;;  %v3945_v0 = vmul.f32 %v12716_v28, %v2617_v25 }
 0x71f   : > { %v5924_v7 = vadd.f32 %v5668_v43, %v4340_v39  ;;  %5383 = vbcast.lane.b32.xlu0 %v10561_v23, 320  ;;  %v12713_v39 = vld [vmem:[#allocation425_spill] sm:$0xff]  ;;  %v2246_v14 = vsub.f32 %v1810_v33, %v10332_v4  ;;  %v1812_v37 = vsub.f32 %v12715_v63, %v12714_v32  ;;  %v4379_v17 = vmul.f32 %v10640_v41, %v3943_v62  ;;  %v12719_v32 = vld [vmem:[#allocation427_spill] sm:$0xff]  ;;  %v12722_v63 = vld [vmem:[#allocation428_spill] sm:$0xff] }
 0x720   : > { %v4994_v13 = vpop.permute.xlu1 %4993  ;;  %v3908_v34 = vmul.f32 %v12713_v39, %v12712_v52  ;;  %v5961_v43 = vadd.f32 %v5705_v40, %v4377_v38  ;;  %5261 = vbcast.lane.b32.xlu1 %v10296_v47, 344  ;;  %v2283_v40 = vsub.f32 %v1847_v45, %v10594_v18  ;;  %v12717_v38 = vld [vmem:[#allocation216_spill] sm:$0xff]  ;;  %v2619_v33 = vadd.f32 %v10614_v57, %v2281_v1  ;;  %v12718_v62 = vld [vmem:[#allocation189_spill] sm:$0xff] }
 0x721   : > { %6180 = vst [vmem:[%s9501_s4 + $0x3c8] sm:$0xff] %v5924_v7  ;;  %v5670_v8 = vmul.f32 %v12461_v21, %v4994_v13  ;;  %v5151_v22 = vpop.permute.xlu0 %5150  ;;  %v1849_v13 = vsub.f32 %v12644_v5, %v12717_v38  ;;  %v3910_v28 = vmul.f32 %v12719_v32, %v12718_v62 }
 0x722   : > { %6217 = vst [vmem:[%s9501_s4 + $0x4f0] sm:$0xff] %v5961_v43  ;;  %v5707_v7 = vmul.f32 %v7182_v46, %v5151_v22  ;;  %v4344_v39 = vmul.f32 %v10244_v19, %v3908_v34  ;;  %v12720_v43 = vld [vmem:[#allocation50_spill] sm:$0xff]  ;;  %v2584_v22 = vadd.f32 %v10336_v36, %v2246_v14  ;;  %v4381_v34 = vmul.f32 %v10640_v41, %v3945_v0  ;;  %v12724_v0 = vld [vmem:[#allocation429_spill] sm:$0xff] }
 0x723   : > { %v5926_v2 = vadd.f32 %v5670_v8, %v4342_v56  ;;  %5391 = vbcast.lane.b32.xlu0 %v10561_v23, 336  ;;  %v2248_v56 = vsub.f32 %v1812_v37, %v10332_v4  ;;  %v12721_v8 = vld [vmem:[#allocation19_spill] sm:$0xff]  ;;  %v3947_v5 = vmul.f32 %v12722_v63, %v2619_v33  ;;  %v2621_v62 = vadd.f32 %v10614_v57, %v2283_v40 }
 0x724   : > { %v5002_v52 = vpop.permute.xlu1 %5001  ;;  %v5963_v25 = vadd.f32 %v5707_v7, %v4379_v17  ;;  %5269 = vbcast.lane.b32.xlu1 %v10296_v47, 360  ;;  %v1814_v1 = vsub.f32 %v12721_v8, %v12720_v43  ;;  %v2285_v7 = vsub.f32 %v1849_v13, %v10594_v18  ;;  %v4346_v32 = vmul.f32 %v10244_v19, %v3910_v28  ;;  %v12727_v19 = vld [vmem:[#allocation430_spill] sm:$0xff] }
 0x725   : > { %6182 = vst [vmem:[%s9501_s4 + $0x3d8] sm:$0xff] %v5926_v2  ;;  %v5672_v45 = vmul.f32 %v12466_v54, %v5002_v52  ;;  %v5159_v38 = vpop.permute.xlu0 %5158  ;;  %v12723_v52 = vld [vmem:[#allocation217_spill] sm:$0xff]  ;;  %v3912_v43 = vmul.f32 %v12724_v0, %v2584_v22  ;;  %v2586_v40 = vadd.f32 %v10336_v36, %v2248_v56  ;;  %v3949_v28 = vmul.f32 %v12727_v19, %v2621_v62 }
 0x726   : > { %6219 = vst [vmem:[%s9501_s4 + $0x500] sm:$0xff] %v5963_v25  ;;  %v5709_v17 = vmul.f32 %v7195_v50, %v5159_v38  ;;  %v1851_v37 = vsub.f32 %v12649_v29, %v12723_v52  ;;  %v2250_v13 = vsub.f32 %v1814_v1, %v10332_v4  ;;  %v12726_v25 = vld [vmem:[#allocation22_spill] sm:$0xff]  ;;  %v4383_v52 = vmul.f32 %v10640_v41, %v3947_v5  ;;  %v12729_v5 = vld [vmem:[#allocation431_spill] sm:$0xff] }
 0x727   : > { %v5928_v2 = vadd.f32 %v5672_v45, %v4344_v39  ;;  %5399 = vbcast.lane.b32.xlu0 %v10561_v23, 352  ;;  %v12725_v39 = vld [vmem:[#allocation182_spill] sm:$0xff]  ;;  %v3914_v0 = vmul.f32 %v12729_v5, %v2586_v40  ;;  %v4385_v40 = vmul.f32 %v10640_v41, %v3949_v28  ;;  %v12734_v28 = vld [vmem:[#allocation433_spill] sm:$0xff] }
 0x728   : > { %v5010_v14 = vpop.permute.xlu1 %5009  ;;  %v5965_v63 = vadd.f32 %v5709_v17, %v4381_v34  ;;  %5277 = vbcast.lane.b32.xlu1 %v10296_v47, 376  ;;  %v1816_v45 = vsub.f32 %v12726_v25, %v12725_v39  ;;  %v2287_v47 = vsub.f32 %v1851_v37, %v10594_v18  ;;  %v2623_v17 = vadd.f32 %v10614_v57, %v2285_v7 }
 0x729   : > { %6184 = vst [vmem:[%s9501_s4 + $0x3e8] sm:$0xff] %v5928_v2  ;;  %v5674_v33 = vmul.f32 %v12471_v42, %v5010_v14  ;;  %v5167_v38 = vpop.permute.xlu0 %5166  ;;  %v12728_v2 = vld [vmem:[#allocation218_spill] sm:$0xff]  ;;  %v4348_v14 = vmul.f32 %v10383_v48, %v3912_v43  ;;  %v10712_v7 = vrot.slane %v9936_v35, %v7609_v10  ;;  %v2588_v43 = vadd.f32 %v10336_v36, %v2250_v13 }
 0x72a   : > { %6221 = vst [vmem:[%s9501_s4 + $0x510] sm:$0xff] %v5965_v63  ;;  %v5711_v34 = vmul.f32 %v7220_v60, %v5167_v38  ;;  %v1853_v1 = vsub.f32 %v12654_v49, %v12728_v2  ;;  %v2252_v37 = vsub.f32 %v1816_v45, %v10332_v4  ;;  %v12730_v63 = vld [vmem:[#allocation187_spill] sm:$0xff]  ;;  %v2625_v5 = vadd.f32 %v10614_v57, %v2287_v47  ;;  %v12736_v47 = vld [vmem:[#allocation190_spill] sm:$0xff] }
 0x72b   : > { %v5930_v22 = vadd.f32 %v5674_v33, %v4346_v32  ;;  %5407 = vbcast.lane.b32.xlu0 %v10561_v23, 368  ;;  %v12731_v33 = vld [vmem:[#allocation25_spill] sm:$0xff]  ;;  %v12733_v2 = vld [vmem:[#allocation219_spill] sm:$0xff]  ;;  %v3916_v10 = vmul.f32 %v12734_v28, %v2588_v43 }
 0x72c   : > { %v5021_v56 = vpop.permute.xlu1 %5020  ;;  %v5967_v62 = vadd.f32 %v5711_v34, %v4383_v52  ;;  %5288 = vbcast.lane.b32.xlu1 %v10443_v9, 264  ;;  %v1818_v39 = vsub.f32 %v12731_v33, %v12730_v63  ;;  %v12732_v52 = vld [vmem:[#allocation432_spill] sm:$0xff]  ;;  %v2289_v45 = vsub.f32 %v1853_v1, %v10594_v18  ;;  %v4350_v63 = vmul.f32 %v10383_v48, %v3914_v0 }
 0x72d   : > { %6186 = vst [vmem:[%s9501_s4 + $0x3f8] sm:$0xff] %v5930_v22  ;;  %v5676_v32 = vmul.f32 %v12440_v27, %v5021_v56  ;;  %v5175_v38 = vpop.permute.xlu0 %5174  ;;  %v3951_v19 = vmul.f32 %v12732_v52, %v2623_v17  ;;  %v1855_v56 = vsub.f32 %v12659_v58, %v12733_v2  ;;  %v12735_v1 = vld [vmem:[#allocation192_spill] sm:$0xff]  ;;  %v2590_v2 = vadd.f32 %v10336_v36, %v2252_v37 }
 0x72e   : > { %6223 = vst [vmem:[%s9501_s4 + $0x520] sm:$0xff] %v5967_v62  ;;  %v5713_v34 = vmul.f32 %v7240_v6, %v5175_v38  ;;  %v2035_v62 = vcombine.high %v12735_v1, %v12735_v1  ;;  %v12737_v38 = vld [vmem:[#allocation28_spill] sm:$0xff]  ;;  %v2627_v33 = vadd.f32 %v10614_v57, %v2289_v45  ;;  %v12742_v45 = vld [vmem:[#allocation193_spill] sm:$0xff] }
 0x72f   : > { %v5932_v22 = vadd.f32 %v5676_v32, %v4348_v14  ;;  %5418 = vbcast.lane.b32.xlu0 %v10712_v7, 256  ;;  %v2254_v32 = vsub.f32 %v1818_v39, %v10332_v4  ;;  %v1820_v52 = vsub.f32 %v12737_v38, %v12736_v47  ;;  %v4387_v43 = vmul.f32 %v10640_v41, %v3951_v19  ;;  %v12739_v1 = vld [vmem:[#allocation220_spill] sm:$0xff]  ;;  %v12740_v19 = vld [vmem:[#allocation435_spill] sm:$0xff] }
 0x730   : > { %v5029_v13 = vpop.permute.xlu1 %5028  ;;  %v5969_v17 = vadd.f32 %v5713_v34, %v4385_v40  ;;  %5296 = vbcast.lane.b32.xlu1 %v10443_v9, 280  ;;  %v2291_v28 = vsub.f32 %v1855_v56, %v10594_v18  ;;  %v1857_v39 = vsub.f32 %v12621_v53, %v12739_v1  ;;  %v4352_v47 = vmul.f32 %v10383_v48, %v3916_v10 }
 0x731   : > { %6188 = vst [vmem:[%s9501_s4 + $0x408] sm:$0xff] %v5932_v22  ;;  %v5678_v14 = vmul.f32 %v12443_v31, %v5029_v13  ;;  %v5183_v0 = vpop.permute.xlu0 %5182  ;;  %v12738_v22 = vld [vmem:[#allocation434_spill] sm:$0xff]  ;;  %v3918_v38 = vmul.f32 %v12740_v19, %v2590_v2  ;;  %v10750_v56 = vrot.slane %v2035_v62, %v7142_v30 }
 0x732   : > { %v3953_v40 = vmul.f32 %v12738_v22, %v2625_v5  ;;  %6225 = vst [vmem:[%s9501_s4 + $0x530] sm:$0xff] %v5969_v17  ;;  %v5715_v13 = vmul.f32 %v7260_v16, %v5183_v0  ;;  %v2256_v17 = vsub.f32 %v1820_v52, %v10332_v4  ;;  %v2592_v22 = vadd.f32 %v10336_v36, %v2254_v32 }
 0x733   : > { %v5934_v34 = vadd.f32 %v5678_v14, %v4350_v63  ;;  %5426 = vbcast.lane.b32.xlu0 %v10712_v7, 272  ;;  %12741 = vst [vmem:[#allocation79_spill] sm:$0xff] %v10750_v56  ;;  %v12743_v14 = vld [vmem:[#allocation31_spill] sm:$0xff]  ;;  %v2293_v62 = vsub.f32 %v1857_v39, %v10750_v56  ;;  %v2629_v19 = vadd.f32 %v10614_v57, %v2291_v28 }
 0x734   : > { %v5037_v37 = vpop.permute.xlu1 %5036  ;;  %v5971_v5 = vadd.f32 %v5715_v13, %v4387_v43  ;;  %5304 = vbcast.lane.b32.xlu1 %v10443_v9, 296  ;;  %v1822_v0 = vsub.f32 %v12743_v14, %v12742_v45  ;;  %v4389_v2 = vmul.f32 %v10640_v41, %v3953_v40  ;;  %v4354_v45 = vmul.f32 %v10383_v48, %v3918_v38  ;;  %v12746_v40 = vld [vmem:[#allocation437_spill] sm:$0xff] }
 0x735   : > { %6190 = vst [vmem:[%s9501_s4 + $0x418] sm:$0xff] %v5934_v34  ;;  %v5680_v63 = vmul.f32 %v12446_v51, %v5037_v37  ;;  %v5191_v10 = vpop.permute.xlu0 %5190  ;;  %v12744_v34 = vld [vmem:[#allocation436_spill] sm:$0xff]  ;;  %v12745_v37 = vld [vmem:[#allocation221_spill] sm:$0xff]  ;;  %v3920_v14 = vmul.f32 %v12746_v40, %v2592_v22  ;;  %v10772_v39 = vrot.slane %v12625_v3, %v12613_v61  ;;  %v2594_v38 = vadd.f32 %v10336_v36, %v2256_v17 }
 0x736   : > { %v3955_v43 = vmul.f32 %v12744_v34, %v2627_v33  ;;  %6227 = vst [vmem:[%s9501_s4 + $0x540] sm:$0xff] %v5971_v5  ;;  %v5717_v1 = vmul.f32 %v7280_v26, %v5191_v10  ;;  %v1859_v52 = vsub.f32 %v12628_v11, %v12745_v37  ;;  %v2258_v28 = vsub.f32 %v1822_v0, %v10332_v4  ;;  %v12748_v5 = vld [vmem:[#allocation195_spill] sm:$0xff] }
 0x737   : > { %v5936_v13 = vadd.f32 %v5680_v63, %v4352_v47  ;;  %5434 = vbcast.lane.b32.xlu0 %v10712_v7, 288  ;;  %12747 = vst [vmem:[#allocation83_spill] sm:$0xff] %v10772_v39  ;;  %v12749_v63 = vld [vmem:[#allocation34_spill] sm:$0xff]  ;;  %v4137_v61 = vcombine.high %v10492_v24, %v10492_v24  ;;  %v2631_v17 = vadd.f32 %v10772_v39, %v2293_v62 }
 0x738   : > { %v5045_v32 = vpop.permute.xlu1 %5044  ;;  %v5973_v33 = vadd.f32 %v5717_v1, %v4389_v2  ;;  %5312 = vbcast.lane.b32.xlu1 %v10443_v9, 312  ;;  %v1824_v10 = vsub.f32 %v12749_v63, %v12748_v5  ;;  %v4391_v22 = vmul.f32 %v10640_v41, %v3955_v43  ;;  %v12750_v2 = vld [vmem:[#allocation438_spill] sm:$0xff]  ;;  %v2295_v0 = vsub.f32 %v1859_v52, %v10750_v56 }
 0x739   : > { %6192 = vst [vmem:[%s9501_s4 + $0x428] sm:$0xff] %v5936_v13  ;;  %v5682_v47 = vmul.f32 %v12450_v12, %v5045_v32  ;;  %v5199_v34 = vpop.permute.xlu0 %5198  ;;  %v3957_v13 = vmul.f32 %v12750_v2, %v2629_v19  ;;  %v12751_v32 = vld [vmem:[#allocation222_spill] sm:$0xff]  ;;  %v4356_v19 = vmul.f32 %v10383_v48, %v3920_v14  ;;  %v2596_v5 = vadd.f32 %v10336_v36, %v2258_v28  ;;  %v12753_v2 = vld [vmem:[#allocation440_spill] sm:$0xff] }
 0x73a   : > { %6229 = vst [vmem:[%s9501_s4 + $0x550] sm:$0xff] %v5973_v33  ;;  %v5719_v37 = vmul.f32 %v7298_v55, %v5199_v34  ;;  %v1861_v40 = vsub.f32 %v12634_v59, %v12751_v32  ;;  %v12752_v33 = vld [vmem:[#allocation439_spill] sm:$0xff]  ;;  %v2260_v52 = vsub.f32 %v1824_v10, %v10332_v4  ;;  %v3959_v32 = vmul.f32 %v12753_v2, %v2631_v17  ;;  %v12756_v17 = vld [vmem:[#allocation441_spill] sm:$0xff]  ;;  %v12759_v2 = vld [vmem:[#allocation26_spill] sm:$0xff] }
 0x73b   : > { %v5938_v1 = vadd.f32 %v5682_v47, %v4354_v45  ;;  %5442 = vbcast.lane.b32.xlu0 %v10712_v7, 304  ;;  %v3922_v45 = vmul.f32 %v12752_v33, %v2594_v38  ;;  %v4393_v62 = vmul.f32 %v10640_v41, %v3957_v13  ;;  %v2633_v28 = vadd.f32 %v10772_v39, %v2295_v0  ;;  %v12757_v0 = vld [vmem:[#allocation442_spill] sm:$0xff] }
 0x73c   : > { %v5053_v43 = vpop.permute.xlu1 %5052  ;;  %v5975_v47 = vadd.f32 %v5719_v37, %v4391_v22  ;;  %5320 = vbcast.lane.b32.xlu1 %v10443_v9, 328  ;;  %v10801_v22 = vrot.slane %v4137_v61, %v7142_v30  ;;  %v12755_v37 = vld [vmem:[#allocation223_spill] sm:$0xff] }
 0x73d   : > { %6194 = vst [vmem:[%s9501_s4 + $0x438] sm:$0xff] %v5938_v1  ;;  %v5684_v24 = vmul.f32 %v12456_v15, %v5053_v43  ;;  %v5207_v34 = vpop.permute.xlu0 %5206  ;;  %v2297_v1 = vsub.f32 %v1861_v40, %v10750_v56  ;;  %v1863_v4 = vsub.f32 %v12639_v44, %v12755_v37  ;;  %v4358_v13 = vmul.f32 %v10383_v48, %v3922_v45 }
 0x73e   : > { %6231 = vst [vmem:[%s9501_s4 + $0x560] sm:$0xff] %v5975_v47  ;;  %v5721_v38 = vmul.f32 %v12413_v20, %v5207_v34  ;;  %12754 = vst [vmem:[#allocation53_spill] sm:$0xff] %v10801_v22  ;;  %v3924_v43 = vmul.f32 %v12756_v17, %v2596_v5  ;;  %v2598_v40 = vadd.f32 %v10336_v36, %v2260_v52  ;;  %v12761_v17 = vld [vmem:[#allocation444_spill] sm:$0xff] }
 0x73f   : > { %v5940_v14 = vadd.f32 %v5684_v24, %v4356_v19  ;;  %5450 = vbcast.lane.b32.xlu0 %v10712_v7, 320  ;;  %v4395_v47 = vmul.f32 %v10801_v22, %v3959_v32  ;;  %v3961_v24 = vmul.f32 %v12757_v0, %v2633_v28  ;;  %v2299_v5 = vsub.f32 %v1863_v4, %v10750_v56  ;;  %v12760_v32 = vld [vmem:[#allocation443_spill] sm:$0xff] }
 0x740   : > { %v5061_v10 = vpop.permute.xlu1 %5060  ;;  %v5977_v19 = vadd.f32 %v5721_v38, %v4393_v62  ;;  %5328 = vbcast.lane.b32.xlu1 %v10443_v9, 344  ;;  %v12758_v62 = vld [vmem:[#allocation224_spill] sm:$0xff]  ;;  %v2635_v38 = vadd.f32 %v10772_v39, %v2297_v1  ;;  %v4360_v52 = vmul.f32 %v10383_v48, %v3924_v43  ;;  %v3926_v37 = vmul.f32 %v12760_v32, %v2598_v40  ;;  %v12762_v40 = vld [vmem:[#allocation225_spill] sm:$0xff] }
 0x741   : > { %6196 = vst [vmem:[%s9501_s4 + $0x448] sm:$0xff] %v5940_v14  ;;  %v5686_v61 = vmul.f32 %v12461_v21, %v5061_v10  ;;  %v5218_v33 = vpop.permute.xlu0 %5217  ;;  %v1865_v14 = vsub.f32 %v12759_v2, %v12758_v62 }
 0x742   : > { %6233 = vst [vmem:[%s9501_s4 + $0x570] sm:$0xff] %v5977_v19  ;;  %v5723_v45 = vmul.f32 %v7182_v46, %v5218_v33  ;;  %v3963_v19 = vmul.f32 %v12761_v17, %v2635_v38  ;;  %v1867_v33 = vsub.f32 %v12649_v29, %v12762_v40 }
 0x743   : > { %v5942_v34 = vadd.f32 %v5686_v61, %v4358_v13  ;;  %5458 = vbcast.lane.b32.xlu0 %v10712_v7, 336  ;;  %v4397_v13 = vmul.f32 %v10801_v22, %v3961_v24  ;;  %v2301_v43 = vsub.f32 %v1865_v14, %v10750_v56  ;;  %v12763_v24 = vld [vmem:[#allocation199_spill] sm:$0xff] }
 0x744   : > { %v5069_v36 = vpop.permute.xlu1 %5068  ;;  %v5979_v28 = vadd.f32 %v5723_v45, %v4395_v47  ;;  %5336 = vbcast.lane.b32.xlu1 %v10443_v9, 360  ;;  %v2637_v47 = vadd.f32 %v10772_v39, %v2299_v5  ;;  %v12764_v45 = vld [vmem:[#allocation445_spill] sm:$0xff]  ;;  %v4399_v5 = vmul.f32 %v10801_v22, %v3963_v19 }
 0x745   : > { %6198 = vst [vmem:[%s9501_s4 + $0x458] sm:$0xff] %v5942_v34  ;;  %v5688_v10 = vmul.f32 %v12466_v54, %v5069_v36  ;;  %v5226_v4 = vpop.permute.xlu0 %5225  ;;  %v4362_v34 = vmul.f32 %v10383_v48, %v3926_v37  ;;  %v3928_v62 = vmul.f32 %v12764_v45, %v12763_v24  ;;  %v12765_v36 = vld [vmem:[#allocation14_spill] sm:$0xff]  ;;  %v2639_v17 = vadd.f32 %v10772_v39, %v2301_v43  ;;  %v12769_v19 = vld [vmem:[#allocation201_spill] sm:$0xff] }
 0x746   : > { %6235 = vst [vmem:[%s9501_s4 + $0x580] sm:$0xff] %v5979_v28  ;;  %v5725_v61 = vmul.f32 %v7195_v50, %v5226_v4  ;;  %v12766_v28 = vld [vmem:[#allocation446_spill] sm:$0xff]  ;;  %v2303_v4 = vsub.f32 %v1867_v33, %v10750_v56 }
 0x747   : > { %v5944_v1 = vadd.f32 %v5688_v10, %v4360_v52  ;;  %5466 = vbcast.lane.b32.xlu0 %v10712_v7, 352  ;;  %v1988_v52 = vcombine.high %v12765_v36, %v12765_v36  ;;  %v3965_v10 = vmul.f32 %v12766_v28, %v2637_v47  ;;  %v12771_v24 = vld [vmem:[#allocation46_spill] sm:$0xff]  ;;  %v12773_v36 = vld [vmem:[#allocation448_spill] sm:$0xff] }
 0x748   : > { %v5077_v0 = vpop.permute.xlu1 %5076  ;;  %v5981_v38 = vadd.f32 %v5725_v61, %v4397_v13  ;;  %5344 = vbcast.lane.b32.xlu1 %v10443_v9, 376  ;;  %v12767_v13 = vld [vmem:[#allocation226_spill] sm:$0xff] }
 0x749   : > { %6200 = vst [vmem:[%s9501_s4 + $0x468] sm:$0xff] %v5944_v1  ;;  %v5690_v14 = vmul.f32 %v12471_v42, %v5077_v0  ;;  %v5234_v32 = vpop.permute.xlu0 %5233  ;;  %v1869_v9 = vsub.f32 %v12654_v49, %v12767_v13  ;;  %v12768_v61 = vld [vmem:[#allocation82_spill] sm:$0xff]  ;;  %v12770_v0 = vld [vmem:[#allocation447_spill] sm:$0xff]  ;;  %v10861_v45 = vrot.slane %v1988_v52, %v12771_v24  ;;  %v2641_v13 = vadd.f32 %v10772_v39, %v2303_v4 }
 0x74a   : > { %6237 = vst [vmem:[%s9501_s4 + $0x590] sm:$0xff] %v5981_v38  ;;  %v5727_v37 = vmul.f32 %v7220_v60, %v5234_v32  ;;  %v4364_v40 = vmul.f32 %v12768_v61, %v3928_v62  ;;  %v3930_v47 = vmul.f32 %v12770_v0, %v12769_v19  ;;  %v12772_v38 = vld [vmem:[#allocation98_spill] sm:$0xff]  ;;  %v4401_v62 = vmul.f32 %v10801_v22, %v3965_v10 }
 0x74b   : > { %v5946_v48 = vadd.f32 %v5690_v14, %v4362_v34  ;;  %5474 = vbcast.lane.b32.xlu0 %v10712_v7, 368  ;;  %v10865_v43 = vrot.slane %v9936_v35, %v12772_v38  ;;  %v3967_v32 = vmul.f32 %v12773_v36, %v2639_v17  ;;  %v12776_v17 = vld [vmem:[#allocation449_spill] sm:$0xff]  ;;  %v10884_v0 = vrot.slane %v10861_v45, %v12771_v24  ;;  %v12789_v38 = vld [vmem:[#allocation454_spill] sm:$0xff] }
 0x74c   : > { %v5088_v1 = vpop.permute.xlu1 %5087  ;;  %v5983_v34 = vadd.f32 %v5727_v37, %v4399_v5  ;;  %5355 = vbcast.lane.b32.xlu1 %v10561_v23, 264  ;;  %v12774_v37 = vld [vmem:[#allocation227_spill] sm:$0xff]  ;;  %v4366_v10 = vmul.f32 %v12768_v61, %v3930_v47 }
 0x74d   : > { %6202 = vst [vmem:[%s9501_s4 + $0x478] sm:$0xff] %v5946_v48  ;;  %v5692_v33 = vmul.f32 %v12440_v27, %v5088_v1  ;;  %v5242_v14 = vpop.permute.xlu0 %5241  ;;  %v2305_v48 = vsub.f32 %v1869_v9, %v10750_v56  ;;  %v1871_v52 = vsub.f32 %v12659_v58, %v12774_v37  ;;  %v12775_v1 = vld [vmem:[#allocation203_spill] sm:$0xff]  ;;  %12777 = vst [vmem:[#allocation85_spill] sm:$0xff] %v10884_v0  ;;  %v12779_v37 = vld [vmem:[#allocation228_spill] sm:$0xff] }
 0x74e   : > { %6239 = vst [vmem:[%s9501_s4 + $0x5a0] sm:$0xff] %v5983_v34  ;;  %v5729_v5 = vmul.f32 %v7240_v6, %v5242_v14  ;;  %v3932_v19 = vmul.f32 %v12776_v17, %v12775_v1  ;;  %v4403_v34 = vmul.f32 %v10801_v22, %v3967_v32 }
 0x74f   : > { %v5948_v28 = vadd.f32 %v5692_v33, %v4364_v40  ;;  %5485 = vbcast.lane.b32.xlu0 %v10865_v43, 256  ;;  %v12778_v33 = vld [vmem:[#allocation450_spill] sm:$0xff]  ;;  %v2643_v1 = vadd.f32 %v10772_v39, %v2305_v48 }
 0x750   : > { %v5096_v35 = vpop.permute.xlu1 %5095  ;;  %v5985_v40 = vadd.f32 %v5729_v5, %v4401_v62  ;;  %5363 = vbcast.lane.b32.xlu1 %v10561_v23, 280  ;;  %v3969_v14 = vmul.f32 %v12778_v33, %v2641_v13  ;;  %v2307_v5 = vsub.f32 %v1871_v52, %v10750_v56  ;;  %v4368_v32 = vmul.f32 %v12768_v61, %v3932_v19  ;;  %v12780_v13 = vld [vmem:[#allocation205_spill] sm:$0xff]  ;;  %v12796_v56 = vld [vmem:[#allocation456_spill] sm:$0xff] }
 0x751   : > { %6204 = vst [vmem:[%s9501_s4 + $0x488] sm:$0xff] %v5948_v28  ;;  %v5694_v9 = vmul.f32 %v12443_v31, %v5096_v35  ;;  %v5250_v4 = vpop.permute.xlu0 %5249  ;;  %v6791_v28 = vld [vmem:[%s7349_s20 + $0x8] sm:$0xff]  ;;  %v1873_v35 = vsub.f32 %v12621_v53, %v12779_v37  ;;  %v10904_v52 = vrot.slane %v10884_v0, %v7142_v30 }
 0x752   : > { %6241 = vst [vmem:[%s9501_s4 + $0x5b0] sm:$0xff] %v5985_v40  ;;  %v5731_v36 = vmul.f32 %v7260_v16, %v5250_v4  ;;  %v4090_v62 = vcombine.high %v6791_v28, %v6791_v28  ;;  %v12781_v40 = vld [vmem:[#allocation451_spill] sm:$0xff]  ;;  %v4405_v33 = vmul.f32 %v10801_v22, %v3969_v14  ;;  %v12783_v28 = vld [vmem:[#allocation452_spill] sm:$0xff] }
 0x753   : > { %v5950_v47 = vadd.f32 %v5694_v9, %v4366_v10  ;;  %5493 = vbcast.lane.b32.xlu0 %v10865_v43, 272  ;;  %v3934_v10 = vmul.f32 %v12781_v40, %v12780_v13  ;;  %12782 = vst [vmem:[#allocation87_spill] sm:$0xff] %v10904_v52  ;;  %v3971_v37 = vmul.f32 %v12783_v28, %v2643_v1 }
 0x754   : > { %v5104_v17 = vpop.permute.xlu1 %5103  ;;  %v5987_v9 = vadd.f32 %v5731_v36, %v4403_v34  ;;  %5371 = vbcast.lane.b32.xlu1 %v10561_v23, 296  ;;  %v10911_v34 = vrot.slane %v4090_v62, %v12771_v24  ;;  %v12784_v36 = vld [vmem:[#allocation229_spill] sm:$0xff]  ;;  %v2645_v40 = vadd.f32 %v10772_v39, %v2307_v5 }
 0x755   : > { %6206 = vst [vmem:[%s9501_s4 + $0x498] sm:$0xff] %v5950_v47  ;;  %v5696_v4 = vmul.f32 %v12446_v51, %v5104_v17  ;;  %v5258_v48 = vpop.permute.xlu0 %5257  ;;  %v2309_v47 = vsub.f32 %v1873_v35, %v10904_v52  ;;  %v1875_v17 = vsub.f32 %v12628_v11, %v12784_v36  ;;  %v4370_v1 = vmul.f32 %v12768_v61, %v3934_v10  ;;  %v12787_v35 = vld [vmem:[#allocation52_spill] sm:$0xff] }
 0x756   : > { %6243 = vst [vmem:[%s9501_s4 + $0x5c0] sm:$0xff] %v5987_v9  ;;  %v5733_v13 = vmul.f32 %v7280_v26, %v5258_v48  ;;  %v12785_v9 = vld [vmem:[#allocation207_spill] sm:$0xff]  ;;  %v10926_v28 = vrot.slane %v12625_v3, %v12787_v35  ;;  %v4407_v36 = vmul.f32 %v10801_v22, %v3971_v37  ;;  %v3973_v0 = vmul.f32 %v12789_v38, %v2645_v40  ;;  %v12792_v40 = vld [vmem:[#allocation210_spill] sm:$0xff] }
 0x757   : > { %v5952_v19 = vadd.f32 %v5696_v4, %v4368_v32  ;;  %5501 = vbcast.lane.b32.xlu0 %v10865_v43, 288  ;;  %v12786_v32 = vld [vmem:[#allocation453_spill] sm:$0xff] }
 0x758   : > { %v5112_v14 = vpop.permute.xlu1 %5111  ;;  %v3936_v4 = vmul.f32 %v12786_v32, %v12785_v9  ;;  %v5989_v48 = vadd.f32 %v5733_v13, %v4405_v33  ;;  %5379 = vbcast.lane.b32.xlu1 %v10561_v23, 312  ;;  %12788 = vst [vmem:[#allocation54_spill] sm:$0xff] %v10926_v28  ;;  %v10934_v33 = vrot.slane %v10911_v34, %v12771_v24  ;;  %v12791_v13 = vld [vmem:[#allocation231_spill] sm:$0xff] }
 0x759   : > { %6208 = vst [vmem:[%s9501_s4 + $0x4a8] sm:$0xff] %v5952_v19  ;;  %v5698_v62 = vmul.f32 %v12450_v12, %v5112_v14  ;;  %v5266_v5 = vpop.permute.xlu0 %5265  ;;  %v2311_v19 = vsub.f32 %v1875_v17, %v10904_v52  ;;  %v1877_v14 = vsub.f32 %v12634_v59, %v12791_v13  ;;  %v2647_v32 = vadd.f32 %v10926_v28, %v2309_v47  ;;  %v12794_v17 = vld [vmem:[#allocation232_spill] sm:$0xff] }
 0x75a   : > { %6245 = vst [vmem:[%s9501_s4 + $0x5d0] sm:$0xff] %v5989_v48  ;;  %v5735_v9 = vmul.f32 %v7298_v55, %v5266_v5  ;;  %12790 = vst [vmem:[#allocation21_spill] sm:$0xff] %v10934_v33  ;;  %v4372_v38 = vmul.f32 %v12768_v61, %v3936_v4  ;;  %v12795_v5 = vld [vmem:[#allocation15_spill] sm:$0xff]  ;;  %v4409_v47 = vmul.f32 %v10801_v22, %v3973_v0  ;;  %v12803_v22 = vld [vmem:[#allocation458_spill] sm:$0xff] }
 0x75b   : > { %v5954_v10 = vadd.f32 %v5698_v62, %v4370_v1  ;;  %5509 = vbcast.lane.b32.xlu0 %v10865_v43, 304  ;;  %v12793_v1 = vld [vmem:[#allocation455_spill] sm:$0xff]  ;;  %v1842_v13 = vsub.f32 %v12795_v5, %v12794_v17  ;;  %v3975_v59 = vmul.f32 %v12796_v56, %v2647_v32  ;;  %v12799_v32 = vld [vmem:[#allocation212_spill] sm:$0xff]  ;;  %v12802_v17 = vld [vmem:[#allocation17_spill] sm:$0xff] }
 0x75c   : > { %v5120_v37 = vpop.permute.xlu1 %5119  ;;  %v3938_v48 = vmul.f32 %v12793_v1, %v12792_v40  ;;  %v5991_v62 = vadd.f32 %v5735_v9, %v4407_v36  ;;  %5387 = vbcast.lane.b32.xlu1 %v10561_v23, 328  ;;  %v10955_v36 = vrot.slane %v10934_v33, %v7142_v30  ;;  %v12798_v9 = vld [vmem:[#allocation233_spill] sm:$0xff]  ;;  %v2649_v40 = vadd.f32 %v10926_v28, %v2311_v19 }
 0x75d   : > { %6210 = vst [vmem:[%s9501_s4 + $0x4b8] sm:$0xff] %v5954_v10  ;;  %v5700_v35 = vmul.f32 %v12456_v15, %v5120_v37  ;;  %v5274_v39 = vpop.permute.xlu0 %5273  ;;  %v2313_v10 = vsub.f32 %v1877_v14, %v10904_v52  ;;  %v1879_v37 = vsub.f32 %v12639_v44, %v12798_v9 }
 0x75e   : > { %6247 = vst [vmem:[%s9501_s4 + $0x5e0] sm:$0xff] %v5991_v62  ;;  %v5737_v55 = vmul.f32 %v12413_v20, %v5274_v39  ;;  %12797 = vst [vmem:[#allocation89_spill] sm:$0xff] %v10955_v36  ;;  %v4374_v56 = vmul.f32 %v12768_v61, %v3938_v48  ;;  %v2278_v62 = vsub.f32 %v1842_v13, %v10594_v18 }
 0x75f   : > { %v5956_v4 = vadd.f32 %v5700_v35, %v4372_v38  ;;  %5517 = vbcast.lane.b32.xlu0 %v10865_v43, 320  ;;  %v12800_v38 = vld [vmem:[#allocation457_spill] sm:$0xff]  ;;  %v12801_v35 = vld [vmem:[#allocation234_spill] sm:$0xff]  ;;  %v4411_v33 = vmul.f32 %v10955_v36, %v3975_v59  ;;  %v3977_v48 = vmul.f32 %v12803_v22, %v2649_v40  ;;  %v2651_v13 = vadd.f32 %v10926_v28, %v2313_v10 }
 0x760   : > { %v5128_v0 = vpop.permute.xlu1 %5127  ;;  %v3940_v39 = vmul.f32 %v12800_v38, %v12799_v32  ;;  %v5993_v1 = vadd.f32 %v5737_v55, %v4409_v47  ;;  %5395 = vbcast.lane.b32.xlu1 %v10561_v23, 344  ;;  %v1844_v19 = vsub.f32 %v12802_v17, %v12801_v35  ;;  %v2315_v55 = vsub.f32 %v1879_v37, %v10904_v52  ;;  %v12804_v47 = vld [vmem:[#allocation235_spill] sm:$0xff]  ;;  %v12805_v59 = vld [vmem:[#allocation214_spill] sm:$0xff]  ;;  %v12806_v35 = vld [vmem:[#allocation460_spill] sm:$0xff] }
 0x761   : > { %6212 = vst [vmem:[%s9501_s4 + $0x4c8] sm:$0xff] %v5956_v4  ;;  %v5702_v14 = vmul.f32 %v12461_v21, %v5128_v0  ;;  %v5285_v9 = vpop.permute.xlu0 %5284  ;;  %v1881_v0 = vsub.f32 %v12759_v2, %v12804_v47  ;;  %v3942_v22 = vmul.f32 %v12806_v35, %v12805_v59  ;;  %v12808_v47 = vld [vmem:[#allocation461_spill] sm:$0xff] }
 0x762   : > { %6249 = vst [vmem:[%s9501_s4 + $0x5f0] sm:$0xff] %v5993_v1  ;;  %v5739_v4 = vmul.f32 %v7182_v46, %v5285_v9  ;;  %v4376_v38 = vmul.f32 %v12768_v61, %v3940_v39  ;;  %v12807_v1 = vld [vmem:[#allocation236_spill] sm:$0xff]  ;;  %v4413_v39 = vmul.f32 %v10955_v36, %v3977_v48  ;;  %v3979_v2 = vmul.f32 %v12808_v47, %v2651_v13  ;;  %v12810_v48 = vld [vmem:[#allocation462_spill] sm:$0xff] }
 0x763   : > { %v5958_v44 = vadd.f32 %v5702_v14, %v4374_v56  ;;  %5525 = vbcast.lane.b32.xlu0 %v10865_v43, 336  ;;  %v2280_v56 = vsub.f32 %v1844_v19, %v10594_v18  ;;  %v1846_v10 = vsub.f32 %v12721_v8, %v12807_v1  ;;  %v2616_v14 = vadd.f32 %v10614_v57, %v2278_v62 }
 0x764   : > { %v5136_v32 = vpop.permute.xlu1 %5135  ;;  %v5995_v40 = vadd.f32 %v5739_v4, %v4411_v33  ;;  %5403 = vbcast.lane.b32.xlu1 %v10561_v23, 360  ;;  %v2317_v4 = vsub.f32 %v1881_v0, %v10904_v52  ;;  %v2653_v59 = vadd.f32 %v10926_v28, %v2315_v55  ;;  %v4378_v35 = vmul.f32 %v12768_v61, %v3942_v22  ;;  %v12812_v61 = vld [vmem:[#allocation463_spill] sm:$0xff] }
 0x765   : > { %6214 = vst [vmem:[%s9501_s4 + $0x4d8] sm:$0xff] %v5958_v44  ;;  %v5704_v37 = vmul.f32 %v12466_v54, %v5136_v32  ;;  %v5293_v9 = vpop.permute.xlu0 %5292  ;;  %v12809_v32 = vld [vmem:[#allocation237_spill] sm:$0xff]  ;;  %v3944_v1 = vmul.f32 %v12810_v48, %v2616_v14  ;;  %v2282_v0 = vsub.f32 %v1846_v10, %v10594_v18  ;;  %v2618_v55 = vadd.f32 %v10614_v57, %v2280_v56  ;;  %v12815_v48 = vld [vmem:[#allocation240_spill] sm:$0xff] }
 0x766   : > { %6251 = vst [vmem:[%s9501_s4 + $0x600] sm:$0xff] %v5995_v40  ;;  %v5741_v33 = vmul.f32 %v7195_v50, %v5293_v9  ;;  %v1883_v19 = vsub.f32 %v12649_v29, %v12809_v32  ;;  %v12811_v40 = vld [vmem:[#allocation238_spill] sm:$0xff]  ;;  %v4415_v47 = vmul.f32 %v10955_v36, %v3979_v2  ;;  %v3981_v22 = vmul.f32 %v12812_v61, %v2653_v59  ;;  %v12814_v2 = vld [vmem:[#allocation464_spill] sm:$0xff] }
 0x767   : > { %v5960_v44 = vadd.f32 %v5704_v37, %v4376_v38  ;;  %5533 = vbcast.lane.b32.xlu0 %v10865_v43, 352  ;;  %v1848_v37 = vsub.f32 %v12726_v25, %v12811_v40  ;;  %v4380_v32 = vmul.f32 %v10640_v41, %v3944_v1  ;;  %v2620_v40 = vadd.f32 %v10614_v57, %v2282_v0 }
 0x768   : > { %v5144_v62 = vpop.permute.xlu1 %5143  ;;  %v5997_v13 = vadd.f32 %v5741_v33, %v4413_v39  ;;  %5411 = vbcast.lane.b32.xlu1 %v10561_v23, 376  ;;  %v2319_v23 = vsub.f32 %v1883_v19, %v10904_v52  ;;  %v2655_v33 = vadd.f32 %v10926_v28, %v2317_v4  ;;  %v2004_v19 = vcombine.high %v10861_v45, %v10861_v45  ;;  %v12818_v45 = vld [vmem:[#allocation241_spill] sm:$0xff] }
 0x769   : > { %6216 = vst [vmem:[%s9501_s4 + $0x4e8] sm:$0xff] %v5960_v44  ;;  %v5706_v38 = vmul.f32 %v12471_v42, %v5144_v62  ;;  %v5301_v9 = vpop.permute.xlu0 %5300  ;;  %v12813_v44 = vld [vmem:[#allocation239_spill] sm:$0xff]  ;;  %v3946_v62 = vmul.f32 %v12814_v2, %v2618_v55  ;;  %v2284_v4 = vsub.f32 %v1848_v37, %v10594_v18  ;;  %v4417_v55 = vmul.f32 %v10955_v36, %v3981_v22  ;;  %v12819_v2 = vld [vmem:[#allocation466_spill] sm:$0xff] }
 0x76a   : > { %6253 = vst [vmem:[%s9501_s4 + $0x610] sm:$0xff] %v5997_v13  ;;  %v5743_v39 = vmul.f32 %v7220_v60, %v5301_v9  ;;  %v1885_v10 = vsub.f32 %v12654_v49, %v12813_v44  ;;  %v12816_v13 = vld [vmem:[#allocation25_spill] sm:$0xff]  ;;  %v1887_v44 = vsub.f32 %v12659_v58, %v12818_v45  ;;  %v2657_v37 = vadd.f32 %v10926_v28, %v2319_v23  ;;  %v12824_v45 = vld [vmem:[#allocation243_spill] sm:$0xff] }
 0x76b   : > { %v5962_v14 = vadd.f32 %v5706_v38, %v4378_v35  ;;  %5541 = vbcast.lane.b32.xlu0 %v10865_v43, 368  ;;  %v1850_v38 = vsub.f32 %v12816_v13, %v12815_v48  ;;  %v12817_v9 = vld [vmem:[#allocation465_spill] sm:$0xff]  ;;  %v4382_v0 = vmul.f32 %v10640_v41, %v3946_v62  ;;  %v3948_v48 = vmul.f32 %v12819_v2, %v2620_v40 }
 0x76c   : > { %v5155_v56 = vpop.permute.xlu1 %5154  ;;  %v5999_v59 = vadd.f32 %v5743_v39, %v4415_v47  ;;  %5422 = vbcast.lane.b32.xlu1 %v10712_v7, 264  ;;  %v3983_v47 = vmul.f32 %v12817_v9, %v2655_v33  ;;  %v2321_v39 = vsub.f32 %v1885_v10, %v10904_v52  ;;  %v12823_v9 = vld [vmem:[#allocation467_spill] sm:$0xff] }
 0x76d   : > { %6218 = vst [vmem:[%s9501_s4 + $0x4f8] sm:$0xff] %v5962_v14  ;;  %v5708_v35 = vmul.f32 %v12440_v27, %v5155_v56  ;;  %v5309_v1 = vpop.permute.xlu0 %5308  ;;  %v2286_v10 = vsub.f32 %v1850_v38, %v10594_v18 }
 0x76e   : > { %6255 = vst [vmem:[%s9501_s4 + $0x620] sm:$0xff] %v5999_v59  ;;  %v5745_v14 = vmul.f32 %v7240_v6, %v5309_v1  ;;  %v12821_v59 = vld [vmem:[#allocation242_spill] sm:$0xff]  ;;  %v2622_v1 = vadd.f32 %v10614_v57, %v2284_v4  ;;  %v4419_v40 = vmul.f32 %v10955_v36, %v3983_v47  ;;  %v2659_v38 = vadd.f32 %v10926_v28, %v2321_v39 }
 0x76f   : > { %v5964_v61 = vadd.f32 %v5708_v35, %v4380_v32  ;;  %v11042_v32 = vrot.slane %v2004_v19, %v12771_v24  ;;  %v12822_v35 = vld [vmem:[#allocation28_spill] sm:$0xff]  ;;  %v2323_v19 = vsub.f32 %v1887_v44, %v10904_v52  ;;  %v4384_v4 = vmul.f32 %v10640_v41, %v3948_v48 }
 0x770   : > { %v5163_v56 = vpop.permute.xlu1 %5162  ;;  %v6001_v22 = vadd.f32 %v5745_v14, %v4417_v55  ;;  %5430 = vbcast.lane.b32.xlu1 %v10712_v7, 280  ;;  %v1852_v23 = vsub.f32 %v12822_v35, %v12821_v59  ;;  %v3985_v55 = vmul.f32 %v12823_v9, %v2657_v37  ;;  %v12825_v59 = vld [vmem:[#allocation468_spill] sm:$0xff]  ;;  %v2624_v48 = vadd.f32 %v10614_v57, %v2286_v10 }
 0x771   : > { %6220 = vst [vmem:[%s9501_s4 + $0x508] sm:$0xff] %v5964_v61  ;;  %v5710_v33 = vmul.f32 %v12443_v31, %v5163_v56  ;;  %12820 = vst [vmem:[#allocation55_spill] sm:$0xff] %v11042_v32  ;;  %v5317_v62 = vpop.permute.xlu0 %5316  ;;  %v1889_v56 = vsub.f32 %v12621_v53, %v12824_v45  ;;  %v3950_v35 = vmul.f32 %v12825_v59, %v2622_v1 }
 0x772   : > { %6257 = vst [vmem:[%s9501_s4 + $0x630] sm:$0xff] %v6001_v22  ;;  %v5747_v14 = vmul.f32 %v7260_v16, %v5317_v62  ;;  %v11063_v44 = vrot.slane %v11042_v32, %v7142_v30  ;;  %v12827_v22 = vld [vmem:[#allocation244_spill] sm:$0xff]  ;;  %v4421_v1 = vmul.f32 %v10955_v36, %v3985_v55  ;;  %v4106_v45 = vcombine.high %v10911_v34, %v10911_v34  ;;  %v12831_v32 = vld [vmem:[#allocation470_spill] sm:$0xff] }
 0x773   : > { %v5966_v61 = vadd.f32 %v5710_v33, %v4382_v0  ;;  %v2288_v0 = vsub.f32 %v1852_v23, %v10594_v18  ;;  %v12828_v33 = vld [vmem:[#allocation31_spill] sm:$0xff]  ;;  %v2661_v10 = vadd.f32 %v10926_v28, %v2323_v19  ;;  %v4386_v55 = vmul.f32 %v10640_v41, %v3950_v35  ;;  %v12832_v34 = vld [vmem:[#allocation62_spill] sm:$0xff]  ;;  %v12839_v28 = vld [vmem:[#allocation20_spill] sm:$0xff] }
 0x774   : > { %v5171_v2 = vpop.permute.xlu1 %5170  ;;  %v6003_v47 = vadd.f32 %v5747_v14, %v4419_v40  ;;  %5438 = vbcast.lane.b32.xlu1 %v10712_v7, 296  ;;  %12826 = vst [vmem:[#allocation24_spill] sm:$0xff] %v11063_v44  ;;  %v1854_v39 = vsub.f32 %v12828_v33, %v12827_v22  ;;  %v12829_v40 = vld [vmem:[#allocation469_spill] sm:$0xff]  ;;  %v2325_v23 = vsub.f32 %v1889_v56, %v11063_v44 }
 0x775   : > { %6222 = vst [vmem:[%s9501_s4 + $0x518] sm:$0xff] %v5966_v61  ;;  %v5712_v37 = vmul.f32 %v12446_v51, %v5171_v2  ;;  %v5325_v62 = vpop.permute.xlu0 %5324  ;;  %v3987_v9 = vmul.f32 %v12829_v40, %v2659_v38  ;;  %v12830_v2 = vld [vmem:[#allocation245_spill] sm:$0xff]  ;;  %v3952_v38 = vmul.f32 %v12831_v32, %v2624_v48  ;;  %v11086_v56 = vrot.slane %v12625_v3, %v12832_v34  ;;  %v12835_v48 = vld [vmem:[#allocation471_spill] sm:$0xff] }
 0x776   : > { %6259 = vst [vmem:[%s9501_s4 + $0x640] sm:$0xff] %v6003_v47  ;;  %v5749_v14 = vmul.f32 %v7280_v26, %v5325_v62  ;;  %v1891_v59 = vsub.f32 %v12628_v11, %v12830_v2  ;;  %v12834_v62 = vld [vmem:[#allocation246_spill] sm:$0xff]  ;;  %v2626_v35 = vadd.f32 %v10614_v57, %v2288_v0  ;;  %v12838_v34 = vld [vmem:[#allocation247_spill] sm:$0xff] }
 0x777   : > { %v5968_v61 = vadd.f32 %v5712_v37, %v4384_v4  ;;  %12833 = vst [vmem:[#allocation91_spill] sm:$0xff] %v11086_v56  ;;  %v2290_v37 = vsub.f32 %v1854_v39, %v10594_v18  ;;  %v1856_v19 = vsub.f32 %v12749_v63, %v12834_v62  ;;  %v4423_v32 = vmul.f32 %v10955_v36, %v3987_v9  ;;  %v12840_v63 = vld [vmem:[#allocation472_spill] sm:$0xff] }
 0x778   : > { %v5179_v22 = vpop.permute.xlu1 %5178  ;;  %v6005_v4 = vadd.f32 %v5749_v14, %v4421_v1  ;;  %5446 = vbcast.lane.b32.xlu1 %v10712_v7, 312  ;;  %v3989_v1 = vmul.f32 %v12835_v48, %v2661_v10  ;;  %v12836_v14 = vld [vmem:[#allocation37_spill] sm:$0xff]  ;;  %v2327_v39 = vsub.f32 %v1891_v59, %v11063_v44  ;;  %v1893_v62 = vsub.f32 %v12839_v28, %v12838_v34  ;;  %v12841_v59 = vld [vmem:[#allocation248_spill] sm:$0xff]  ;;  %v12846_v34 = vld [vmem:[#allocation474_spill] sm:$0xff] }
 0x779   : > { %6224 = vst [vmem:[%s9501_s4 + $0x528] sm:$0xff] %v5968_v61  ;;  %v5714_v47 = vmul.f32 %v12450_v12, %v5179_v22  ;;  %v5333_v40 = vpop.permute.xlu0 %5332  ;;  %v11097_v22 = vrot.slane %v4106_v45, %v12771_v24  ;;  %v2663_v0 = vadd.f32 %v11086_v56, %v2325_v23  ;;  %v4388_v9 = vmul.f32 %v10640_v41, %v3952_v38  ;;  %v12842_v38 = vld [vmem:[#allocation473_spill] sm:$0xff] }
 0x77a   : > { %6261 = vst [vmem:[%s9501_s4 + $0x650] sm:$0xff] %v6005_v4  ;;  %v5751_v2 = vmul.f32 %v12836_v14, %v5333_v40  ;;  %v3954_v10 = vmul.f32 %v12840_v63, %v2626_v35  ;;  %v2292_v45 = vsub.f32 %v1856_v19, %v10594_v18  ;;  %v1858_v4 = vsub.f32 %v12795_v5, %v12841_v59  ;;  %v12844_v19 = vld [vmem:[#allocation249_spill] sm:$0xff]  ;;  %v12848_v59 = vld [vmem:[#allocation250_spill] sm:$0xff] }
 0x77b   : > { %v5970_v61 = vadd.f32 %v5714_v47, %v4386_v55  ;;  %12837 = vst [vmem:[#allocation56_spill] sm:$0xff] %v11097_v22  ;;  %v2628_v47 = vadd.f32 %v10614_v57, %v2290_v37  ;;  %v4425_v40 = vmul.f32 %v10955_v36, %v3989_v1  ;;  %v3991_v48 = vmul.f32 %v12842_v38, %v2663_v0 }
 0x77c   : > { %v5187_v52 = vpop.permute.xlu1 %5186  ;;  %v6007_v55 = vadd.f32 %v5751_v2, %v4423_v32  ;;  %5454 = vbcast.lane.b32.xlu1 %v10712_v7, 328  ;;  %v2329_v18 = vsub.f32 %v1893_v62, %v11063_v44  ;;  %v12845_v32 = vld [vmem:[#allocation23_spill] sm:$0xff]  ;;  %v2665_v37 = vadd.f32 %v11086_v56, %v2327_v39  ;;  %v4390_v1 = vmul.f32 %v10640_v41, %v3954_v10 }
 0x77d   : > { %6226 = vst [vmem:[%s9501_s4 + $0x538] sm:$0xff] %v5970_v61  ;;  %v5716_v24 = vmul.f32 %v12456_v15, %v5187_v52  ;;  %v5341_v23 = vpop.permute.xlu0 %5340  ;;  %v11118_v52 = vrot.slane %v11097_v22, %v7142_v30  ;;  %v1895_v61 = vsub.f32 %v12845_v32, %v12844_v19  ;;  %v3956_v0 = vmul.f32 %v12846_v34, %v2628_v47  ;;  %v12849_v10 = vld [vmem:[#allocation475_spill] sm:$0xff] }
 0x77e   : > { %6263 = vst [vmem:[%s9501_s4 + $0x660] sm:$0xff] %v6007_v55  ;;  %v5753_v35 = vmul.f32 %v12413_v20, %v5341_v23  ;;  %v1860_v23 = vsub.f32 %v12802_v17, %v12848_v59  ;;  %v2630_v38 = vadd.f32 %v10614_v57, %v2292_v45  ;;  %v3993_v22 = vmul.f32 %v12849_v10, %v2665_v37  ;;  %v12852_v45 = vld [vmem:[#allocation476_spill] sm:$0xff] }
 0x77f   : > { %v5972_v63 = vadd.f32 %v5716_v24, %v4388_v9  ;;  %12843 = vst [vmem:[#allocation27_spill] sm:$0xff] %v11118_v52  ;;  %v12847_v24 = vld [vmem:[#allocation79_spill] sm:$0xff]  ;;  %v4427_v19 = vmul.f32 %v11118_v52, %v3991_v48  ;;  %v2667_v34 = vadd.f32 %v11086_v56, %v2329_v18  ;;  %v4392_v57 = vmul.f32 %v10640_v41, %v3956_v0  ;;  %v12855_v0 = vld [vmem:[#allocation477_spill] sm:$0xff] }
 0x780   : > { %v5195_v2 = vpop.permute.xlu1 %5194  ;;  %v6009_v9 = vadd.f32 %v5753_v35, %v4425_v40  ;;  %5462 = vbcast.lane.b32.xlu1 %v10712_v7, 344  ;;  %v2294_v62 = vsub.f32 %v1858_v4, %v12847_v24  ;;  %v12850_v35 = vld [vmem:[#allocation251_spill] sm:$0xff]  ;;  %v3958_v36 = vmul.f32 %v12852_v45, %v2630_v38  ;;  %v4429_v10 = vmul.f32 %v11118_v52, %v3993_v22 }
 0x781   : > { %6228 = vst [vmem:[%s9501_s4 + $0x548] sm:$0xff] %v5972_v63  ;;  %v5718_v55 = vmul.f32 %v12461_v21, %v5195_v2  ;;  %v5352_v39 = vpop.permute.xlu0 %5351  ;;  %v2331_v63 = vsub.f32 %v1895_v61, %v11063_v44  ;;  %v12851_v2 = vld [vmem:[#allocation26_spill] sm:$0xff]  ;;  %v2296_v61 = vsub.f32 %v1860_v23, %v12847_v24 }
 0x782   : > { %6265 = vst [vmem:[%s9501_s4 + $0x670] sm:$0xff] %v6009_v9  ;;  %v5755_v40 = vmul.f32 %v7182_v46, %v5352_v39  ;;  %v1897_v4 = vsub.f32 %v12851_v2, %v12850_v35  ;;  %v3995_v35 = vmul.f32 %v12855_v0, %v2667_v34  ;;  %v12860_v0 = vld [vmem:[#allocation255_spill] sm:$0xff] }
 0x783   : > { %v5974_v47 = vadd.f32 %v5718_v55, %v4390_v1  ;;  %v12853_v1 = vld [vmem:[#allocation252_spill] sm:$0xff]  ;;  %v12854_v55 = vld [vmem:[#allocation83_spill] sm:$0xff] }
 0x784   : > { %v5203_v59 = vpop.permute.xlu1 %5202  ;;  %v6011_v48 = vadd.f32 %v5755_v40, %v4427_v19  ;;  %5470 = vbcast.lane.b32.xlu1 %v10712_v7, 360  ;;  %v1862_v9 = vsub.f32 %v12721_v8, %v12853_v1  ;;  %v2632_v39 = vadd.f32 %v12854_v55, %v2294_v62  ;;  %v12856_v40 = vld [vmem:[#allocation253_spill] sm:$0xff]  ;;  %v4394_v62 = vmul.f32 %v10640_v41, %v3958_v36  ;;  %v12857_v1 = vld [vmem:[#allocation478_spill] sm:$0xff]  ;;  %v12859_v41 = vld [vmem:[#allocation479_spill] sm:$0xff] }
 0x785   : > { %6230 = vst [vmem:[%s9501_s4 + $0x558] sm:$0xff] %v5974_v47  ;;  %v5720_v37 = vmul.f32 %v12466_v54, %v5203_v59  ;;  %v5360_v18 = vpop.permute.xlu0 %5359  ;;  %v2333_v47 = vsub.f32 %v1897_v4, %v11063_v44  ;;  %v1899_v23 = vsub.f32 %v12649_v29, %v12856_v40  ;;  %v2669_v59 = vadd.f32 %v11086_v56, %v2331_v63  ;;  %v12861_v40 = vld [vmem:[#allocation53_spill] sm:$0xff] }
 0x786   : > { %6267 = vst [vmem:[%s9501_s4 + $0x680] sm:$0xff] %v6011_v48  ;;  %v5757_v19 = vmul.f32 %v7195_v50, %v5360_v18  ;;  %v3960_v8 = vmul.f32 %v12857_v1, %v2632_v39  ;;  %v2298_v4 = vsub.f32 %v1862_v9, %v12847_v24  ;;  %v4431_v18 = vmul.f32 %v11118_v52, %v3995_v35 }
 0x787   : > { %v5976_v38 = vadd.f32 %v5720_v37, %v4392_v57  ;;  %v12858_v57 = vld [vmem:[#allocation254_spill] sm:$0xff]  ;;  %v2634_v37 = vadd.f32 %v12854_v55, %v2296_v61  ;;  %v3997_v36 = vmul.f32 %v12859_v41, %v2669_v59  ;;  %v1901_v9 = vsub.f32 %v12654_v49, %v12860_v0 }
 0x788   : > { %v5211_v45 = vpop.permute.xlu1 %5210  ;;  %v6013_v22 = vadd.f32 %v5757_v19, %v4429_v10  ;;  %5478 = vbcast.lane.b32.xlu1 %v10712_v7, 376  ;;  %v1864_v48 = vsub.f32 %v12726_v25, %v12858_v57  ;;  %v2335_v7 = vsub.f32 %v1899_v23, %v11063_v44  ;;  %v4396_v61 = vmul.f32 %v12861_v40, %v3960_v8  ;;  %v12864_v8 = vld [vmem:[#allocation481_spill] sm:$0xff] }
 0x789   : > { %6232 = vst [vmem:[%s9501_s4 + $0x568] sm:$0xff] %v5976_v38  ;;  %v5722_v34 = vmul.f32 %v12471_v42, %v5211_v45  ;;  %v5368_v63 = vpop.permute.xlu0 %5367  ;;  %v2671_v38 = vadd.f32 %v11086_v56, %v2333_v47  ;;  %v12862_v45 = vld [vmem:[#allocation480_spill] sm:$0xff]  ;;  %v4433_v57 = vmul.f32 %v11118_v52, %v3997_v36  ;;  %v2337_v41 = vsub.f32 %v1901_v9, %v11063_v44 }
 0x78a   : > { %6269 = vst [vmem:[%s9501_s4 + $0x690] sm:$0xff] %v6013_v22  ;;  %v5759_v10 = vmul.f32 %v7220_v60, %v5368_v63  ;;  %v3962_v1 = vmul.f32 %v12862_v45, %v2634_v37  ;;  %v2300_v23 = vsub.f32 %v1864_v48, %v12847_v24  ;;  %v2673_v48 = vadd.f32 %v11086_v56, %v2335_v7 }
 0x78b   : > { %v5978_v39 = vadd.f32 %v5722_v34, %v4394_v62  ;;  %v12863_v62 = vld [vmem:[#allocation256_spill] sm:$0xff]  ;;  %v2636_v34 = vadd.f32 %v12854_v55, %v2298_v4  ;;  %v3999_v63 = vmul.f32 %v12864_v8, %v2671_v38  ;;  %v12870_v8 = vld [vmem:[#allocation483_spill] sm:$0xff] }
 0x78c   : > { %v5222_v19 = vpop.permute.xlu1 %5221  ;;  %v6015_v35 = vadd.f32 %v5759_v10, %v4431_v18  ;;  %5489 = vbcast.lane.b32.xlu1 %v10865_v43, 264  ;;  %v1866_v22 = vsub.f32 %v12816_v13, %v12863_v62  ;;  %v4398_v4 = vmul.f32 %v12861_v40, %v3962_v1  ;;  %v12869_v62 = vld [vmem:[#allocation28_spill] sm:$0xff] }
 0x78d   : > { %6234 = vst [vmem:[%s9501_s4 + $0x578] sm:$0xff] %v5978_v39  ;;  %v5724_v59 = vmul.f32 %v12440_v27, %v5222_v19  ;;  %v5376_v47 = vpop.permute.xlu0 %5375  ;;  %v12865_v39 = vld [vmem:[#allocation257_spill] sm:$0xff]  ;;  %v12866_v19 = vld [vmem:[#allocation482_spill] sm:$0xff] }
 0x78e   : > { %6271 = vst [vmem:[%s9501_s4 + $0x6a0] sm:$0xff] %v6015_v35  ;;  %v5761_v18 = vmul.f32 %v7240_v6, %v5376_v47  ;;  %v1903_v10 = vsub.f32 %v12659_v58, %v12865_v39  ;;  %v3964_v45 = vmul.f32 %v12866_v19, %v2636_v34  ;;  %v2302_v35 = vsub.f32 %v1866_v22, %v12847_v24 }
 0x78f   : > { %v5980_v37 = vadd.f32 %v5724_v59, %v4396_v61  ;;  %v12867_v61 = vld [vmem:[#allocation85_spill] sm:$0xff]  ;;  %v12868_v59 = vld [vmem:[#allocation258_spill] sm:$0xff]  ;;  %v2638_v47 = vadd.f32 %v12854_v55, %v2300_v23  ;;  %v4435_v34 = vmul.f32 %v11118_v52, %v3999_v63  ;;  %v2675_v22 = vadd.f32 %v11086_v56, %v2337_v41 }
 0x790   : > { %v5230_v0 = vpop.permute.xlu1 %5229  ;;  %v6017_v36 = vadd.f32 %v5761_v18, %v4433_v57  ;;  %5497 = vbcast.lane.b32.xlu1 %v10865_v43, 280  ;;  %v2034_v9 = vcombine.high %v12867_v61, %v12867_v61  ;;  %v1868_v7 = vsub.f32 %v12869_v62, %v12868_v59  ;;  %v4001_v57 = vmul.f32 %v12870_v8, %v2673_v48  ;;  %v12872_v59 = vld [vmem:[#allocation484_spill] sm:$0xff] }
 0x791   : > { %6236 = vst [vmem:[%s9501_s4 + $0x588] sm:$0xff] %v5980_v37  ;;  %v5726_v38 = vmul.f32 %v12443_v31, %v5230_v0  ;;  %v5384_v1 = vpop.permute.xlu0 %5383  ;;  %v2339_v39 = vsub.f32 %v1903_v10, %v11063_v44  ;;  %v12871_v0 = vld [vmem:[#allocation259_spill] sm:$0xff]  ;;  %v4400_v23 = vmul.f32 %v12861_v40, %v3964_v45  ;;  %v3966_v62 = vmul.f32 %v12872_v59, %v2638_v47  ;;  %v12876_v59 = vld [vmem:[#allocation486_spill] sm:$0xff]  ;;  %v12883_v44 = vld [vmem:[#allocation488_spill] sm:$0xff] }
 0x792   : > { %6273 = vst [vmem:[%s9501_s4 + $0x6b0] sm:$0xff] %v6017_v36  ;;  %v5763_v18 = vmul.f32 %v7260_v16, %v5384_v1  ;;  %v1905_v19 = vsub.f32 %v12621_v53, %v12871_v0  ;;  %v2304_v10 = vsub.f32 %v1868_v7, %v12847_v24  ;;  %v12873_v36 = vld [vmem:[#allocation260_spill] sm:$0xff]  ;;  %v4437_v47 = vmul.f32 %v11118_v52, %v4001_v57  ;;  %v12874_v1 = vld [vmem:[#allocation485_spill] sm:$0xff] }
 0x793   : > { %v5982_v37 = vadd.f32 %v5726_v38, %v4398_v4  ;;  %v11217_v4 = vrot.slane %v2034_v9, %v7142_v30  ;;  %v1870_v41 = vsub.f32 %v12828_v33, %v12873_v36  ;;  %v2640_v38 = vadd.f32 %v12854_v55, %v2302_v35 }
 0x794   : > { %v5238_v61 = vpop.permute.xlu1 %5237  ;;  %v6019_v63 = vadd.f32 %v5763_v18, %v4435_v34  ;;  %5505 = vbcast.lane.b32.xlu1 %v10865_v43, 296  ;;  %v4003_v34 = vmul.f32 %v12874_v1, %v2675_v22  ;;  %v12875_v18 = vld [vmem:[#allocation261_spill] sm:$0xff]  ;;  %v2677_v7 = vadd.f32 %v11086_v56, %v2339_v39  ;;  %v4402_v35 = vmul.f32 %v12861_v40, %v3966_v62 }
 0x795   : > { %6238 = vst [vmem:[%s9501_s4 + $0x598] sm:$0xff] %v5982_v37  ;;  %v5728_v48 = vmul.f32 %v12446_v51, %v5238_v61  ;;  %v5392_v45 = vpop.permute.xlu0 %5391  ;;  %v2341_v9 = vsub.f32 %v1905_v19, %v11217_v4  ;;  %v1907_v0 = vsub.f32 %v12628_v11, %v12875_v18  ;;  %v3968_v36 = vmul.f32 %v12876_v59, %v2640_v38 }
 0x796   : > { %6275 = vst [vmem:[%s9501_s4 + $0x6c0] sm:$0xff] %v6019_v63  ;;  %v5765_v37 = vmul.f32 %v7280_v26, %v5392_v45  ;;  %v2306_v63 = vsub.f32 %v1870_v41, %v12847_v24  ;;  %v12879_v45 = vld [vmem:[#allocation34_spill] sm:$0xff]  ;;  %v2642_v62 = vadd.f32 %v12854_v55, %v2304_v10  ;;  %v4439_v38 = vmul.f32 %v11118_v52, %v4003_v34 }
 0x797   : > { %v5984_v8 = vadd.f32 %v5728_v48, %v4400_v23  ;;  %v12877_v23 = vld [vmem:[#allocation80_spill] sm:$0xff]  ;;  %v12878_v48 = vld [vmem:[#allocation262_spill] sm:$0xff]  ;;  %v2343_v41 = vsub.f32 %v1907_v0, %v11217_v4  ;;  %v4404_v34 = vmul.f32 %v12861_v40, %v3968_v36  ;;  %v12885_v36 = vld [vmem:[#allocation489_spill] sm:$0xff] }
 0x798   : > { %v5246_v61 = vpop.permute.xlu1 %5245  ;;  %v6021_v57 = vadd.f32 %v5765_v37, %v4437_v47  ;;  %5513 = vbcast.lane.b32.xlu1 %v10865_v43, 312  ;;  %v11238_v19 = vrot.slane %v12625_v3, %v12877_v23  ;;  %v1872_v39 = vsub.f32 %v12879_v45, %v12878_v48  ;;  %v12880_v47 = vld [vmem:[#allocation487_spill] sm:$0xff]  ;;  %v12884_v0 = vld [vmem:[#allocation264_spill] sm:$0xff] }
 0x799   : > { %6240 = vst [vmem:[%s9501_s4 + $0x5a8] sm:$0xff] %v5984_v8  ;;  %v5730_v22 = vmul.f32 %v12450_v12, %v5246_v61  ;;  %v5400_v1 = vpop.permute.xlu0 %5399  ;;  %v4005_v8 = vmul.f32 %v12880_v47, %v2677_v7  ;;  %v12881_v61 = vld [vmem:[#allocation21_spill] sm:$0xff]  ;;  %v12882_v23 = vld [vmem:[#allocation263_spill] sm:$0xff]  ;;  %v3970_v7 = vmul.f32 %v12883_v44, %v2642_v62  ;;  %v2644_v47 = vadd.f32 %v12854_v55, %v2306_v63 }
 0x79a   : > { %6277 = vst [vmem:[%s9501_s4 + $0x6d0] sm:$0xff] %v6021_v57  ;;  %v5767_v18 = vmul.f32 %v12836_v14, %v5400_v1  ;;  %v4136_v59 = vcombine.high %v12881_v61, %v12881_v61  ;;  %v1909_v48 = vsub.f32 %v12839_v28, %v12882_v23  ;;  %v2679_v10 = vadd.f32 %v11238_v19, %v2341_v9 }
 0x79b   : > { %v5986_v37 = vadd.f32 %v5730_v22, %v4402_v35  ;;  %v2308_v22 = vsub.f32 %v1872_v39, %v12847_v24  ;;  %v1874_v1 = vsub.f32 %v12795_v5, %v12884_v0  ;;  %v4441_v61 = vmul.f32 %v11118_v52, %v4005_v8  ;;  %v12886_v24 = vld [vmem:[#allocation265_spill] sm:$0xff] }
 0x79c   : > { %v5254_v56 = vpop.permute.xlu1 %5253  ;;  %v6023_v35 = vadd.f32 %v5767_v18, %v4439_v38  ;;  %5521 = vbcast.lane.b32.xlu1 %v10865_v43, 328  ;;  %v4007_v23 = vmul.f32 %v12885_v36, %v2679_v10  ;;  %v11268_v38 = vrot.slane %v4136_v59, %v7142_v30  ;;  %v1911_v39 = vsub.f32 %v12845_v32, %v12886_v24  ;;  %v12887_v18 = vld [vmem:[#allocation490_spill] sm:$0xff] }
 0x79d   : > { %6242 = vst [vmem:[%s9501_s4 + $0x5b8] sm:$0xff] %v5986_v37  ;;  %v5732_v57 = vmul.f32 %v12456_v15, %v5254_v56  ;;  %v5408_v9 = vpop.permute.xlu0 %5407  ;;  %v2345_v56 = vsub.f32 %v1909_v48, %v11217_v4  ;;  %v2681_v63 = vadd.f32 %v11238_v19, %v2343_v41  ;;  %v4406_v8 = vmul.f32 %v12861_v40, %v3970_v7  ;;  %v12890_v7 = vld [vmem:[#allocation491_spill] sm:$0xff] }
 0x79e   : > { %6279 = vst [vmem:[%s9501_s4 + $0x6e0] sm:$0xff] %v6023_v35  ;;  %v5769_v62 = vmul.f32 %v12413_v20, %v5408_v9  ;;  %v3972_v10 = vmul.f32 %v12887_v18, %v2644_v47  ;;  %v12888_v35 = vld [vmem:[#allocation87_spill] sm:$0xff]  ;;  %v2646_v9 = vadd.f32 %v12854_v55, %v2308_v22  ;;  %v4443_v36 = vmul.f32 %v11268_v38, %v4007_v23  ;;  %v12892_v22 = vld [vmem:[#allocation492_spill] sm:$0xff] }
 0x79f   : > { %v5988_v44 = vadd.f32 %v5732_v57, %v4404_v34  ;;  %v2310_v48 = vsub.f32 %v1874_v1, %v12888_v35  ;;  %v12889_v57 = vld [vmem:[#allocation266_spill] sm:$0xff]  ;;  %v4009_v24 = vmul.f32 %v12890_v7, %v2681_v63 }
 0x7a0   : > { %v5262_v37 = vpop.permute.xlu1 %5261  ;;  %v6025_v34 = vadd.f32 %v5769_v62, %v4441_v61  ;;  %5529 = vbcast.lane.b32.xlu1 %v10865_v43, 344  ;;  %v1876_v0 = vsub.f32 %v12802_v17, %v12889_v57  ;;  %v12891_v62 = vld [vmem:[#allocation267_spill] sm:$0xff]  ;;  %v4408_v55 = vmul.f32 %v12861_v40, %v3972_v10  ;;  %v3974_v57 = vmul.f32 %v12892_v22, %v2646_v9  ;;  %v12896_v10 = vld [vmem:[#allocation493_spill] sm:$0xff] }
 0x7a1   : > { %6244 = vst [vmem:[%s9501_s4 + $0x5c8] sm:$0xff] %v5988_v44  ;;  %v5734_v59 = vmul.f32 %v12461_v21, %v5262_v37  ;;  %v5419_v41 = vpop.permute.xlu0 %5418  ;;  %v2347_v44 = vsub.f32 %v1911_v39, %v11217_v4  ;;  %v1913_v1 = vsub.f32 %v12851_v2, %v12891_v62  ;;  %v2683_v37 = vadd.f32 %v11238_v19, %v2345_v56 }
 0x7a2   : > { %6281 = vst [vmem:[%s9501_s4 + $0x6f0] sm:$0xff] %v6025_v34  ;;  %v5771_v61 = vmul.f32 %v7182_v46, %v5419_v41  ;;  %v2312_v39 = vsub.f32 %v1876_v0, %v12888_v35  ;;  %v12894_v34 = vld [vmem:[#allocation19_spill] sm:$0xff]  ;;  %v12895_v41 = vld [vmem:[#allocation54_spill] sm:$0xff]  ;;  %v4445_v62 = vmul.f32 %v11268_v38, %v4009_v24 }
 0x7a3   : > { %v5990_v47 = vadd.f32 %v5734_v59, %v4406_v8  ;;  %v12893_v8 = vld [vmem:[#allocation268_spill] sm:$0xff]  ;;  %v2648_v7 = vadd.f32 %v12895_v41, %v2310_v48  ;;  %v4011_v52 = vmul.f32 %v12896_v10, %v2683_v37  ;;  %v4410_v48 = vmul.f32 %v12861_v40, %v3974_v57  ;;  %v12900_v40 = vld [vmem:[#allocation495_spill] sm:$0xff] }
 0x7a4   : > { %v5270_v18 = vpop.permute.xlu1 %5269  ;;  %v6027_v23 = vadd.f32 %v5771_v61, %v4443_v36  ;;  %5537 = vbcast.lane.b32.xlu1 %v10865_v43, 360  ;;  %v1878_v59 = vsub.f32 %v12894_v34, %v12893_v8  ;;  %v12897_v61 = vld [vmem:[#allocation269_spill] sm:$0xff]  ;;  %v12898_v8 = vld [vmem:[#allocation494_spill] sm:$0xff]  ;;  %v12901_v10 = vld [vmem:[#allocation271_spill] sm:$0xff] }
 0x7a5   : > { %6246 = vst [vmem:[%s9501_s4 + $0x5d8] sm:$0xff] %v5990_v47  ;;  %v5736_v63 = vmul.f32 %v12466_v54, %v5270_v18  ;;  %v5427_v56 = vpop.permute.xlu0 %5426  ;;  %v2349_v47 = vsub.f32 %v1913_v1, %v11217_v4  ;;  %v1915_v0 = vsub.f32 %v12649_v29, %v12897_v61  ;;  %v2685_v18 = vadd.f32 %v11238_v19, %v2347_v44  ;;  %v12902_v61 = vld [vmem:[#allocation89_spill] sm:$0xff] }
 0x7a6   : > { %6283 = vst [vmem:[%s9501_s4 + $0x700] sm:$0xff] %v6027_v23  ;;  %v5773_v36 = vmul.f32 %v7195_v50, %v5427_v56  ;;  %v3976_v34 = vmul.f32 %v12898_v8, %v2648_v7  ;;  %v2314_v1 = vsub.f32 %v1878_v59, %v12888_v35  ;;  %v4447_v56 = vmul.f32 %v11268_v38, %v4011_v52 }
 0x7a7   : > { %v5992_v9 = vadd.f32 %v5736_v63, %v4408_v55  ;;  %v12899_v55 = vld [vmem:[#allocation270_spill] sm:$0xff]  ;;  %v2650_v63 = vadd.f32 %v12895_v41, %v2312_v39  ;;  %v4013_v57 = vmul.f32 %v12900_v40, %v2685_v18  ;;  %v1917_v59 = vsub.f32 %v12654_v49, %v12901_v10 }
 0x7a8   : > { %v5278_v22 = vpop.permute.xlu1 %5277  ;;  %v6029_v24 = vadd.f32 %v5773_v36, %v4445_v62  ;;  %5545 = vbcast.lane.b32.xlu1 %v10865_v43, 376  ;;  %v1880_v23 = vsub.f32 %v12726_v25, %v12899_v55  ;;  %v2351_v43 = vsub.f32 %v1915_v0, %v11217_v4  ;;  %v4412_v39 = vmul.f32 %v12902_v61, %v3976_v34  ;;  %v12905_v34 = vld [vmem:[#allocation497_spill] sm:$0xff] }
 0x7a9   : > { %6248 = vst [vmem:[%s9501_s4 + $0x5e8] sm:$0xff] %v5992_v9  ;;  %v5738_v37 = vmul.f32 %v12471_v42, %v5278_v22  ;;  %v5435_v44 = vpop.permute.xlu0 %5434  ;;  %v2687_v9 = vadd.f32 %v11238_v19, %v2349_v47  ;;  %v12903_v22 = vld [vmem:[#allocation496_spill] sm:$0xff]  ;;  %v4449_v47 = vmul.f32 %v11268_v38, %v4013_v57  ;;  %v2353_v40 = vsub.f32 %v1917_v59, %v11217_v4 }
 0x7aa   : > { %6285 = vst [vmem:[%s9501_s4 + $0x710] sm:$0xff] %v6029_v24  ;;  %v5775_v62 = vmul.f32 %v7220_v60, %v5435_v44  ;;  %v3978_v8 = vmul.f32 %v12903_v22, %v2650_v63  ;;  %v12904_v24 = vld [vmem:[#allocation272_spill] sm:$0xff] }
 0x7ab   : > { %v5994_v7 = vadd.f32 %v5738_v37, %v4410_v48  ;;  %v2316_v48 = vsub.f32 %v1880_v23, %v12888_v35  ;;  %v1882_v0 = vsub.f32 %v12816_v13, %v12904_v24  ;;  %v2652_v37 = vadd.f32 %v12895_v41, %v2314_v1 }
 0x7ac   : > { %v5289_v36 = vpop.permute.xlu1 %5288  ;;  %v6031_v52 = vadd.f32 %v5775_v62, %v4447_v56  ;;  %v4015_v44 = vmul.f32 %v12905_v34, %v2687_v9  ;;  %v2689_v62 = vadd.f32 %v11238_v19, %v2351_v43  ;;  %v4414_v1 = vmul.f32 %v12902_v61, %v3978_v8  ;;  %v12909_v43 = vld [vmem:[#allocation274_spill] sm:$0xff] }
 0x7ad   : > { %6250 = vst [vmem:[%s9501_s4 + $0x5f8] sm:$0xff] %v5994_v7  ;;  %v5740_v18 = vmul.f32 %v12440_v27, %v5289_v36  ;;  %v5443_v55 = vpop.permute.xlu0 %5442  ;;  %v12906_v7 = vld [vmem:[#allocation273_spill] sm:$0xff]  ;;  %v12907_v36 = vld [vmem:[#allocation498_spill] sm:$0xff]  ;;  %v2654_v8 = vadd.f32 %v12895_v41, %v2316_v48 }
 0x7ae   : > { %6287 = vst [vmem:[%s9501_s4 + $0x720] sm:$0xff] %v6031_v52  ;;  %v5777_v56 = vmul.f32 %v7240_v6, %v5443_v55  ;;  %v1919_v23 = vsub.f32 %v12659_v58, %v12906_v7  ;;  %v3980_v22 = vmul.f32 %v12907_v36, %v2652_v37  ;;  %v2318_v52 = vsub.f32 %v1882_v0, %v12888_v35 }
 0x7af   : > { %v5996_v63 = vadd.f32 %v5740_v18, %v4412_v39  ;;  %v12908_v39 = vld [vmem:[#allocation55_spill] sm:$0xff]  ;;  %v12910_v18 = vld [vmem:[#allocation28_spill] sm:$0xff]  ;;  %v4451_v37 = vmul.f32 %v11268_v38, %v4015_v44 }
 0x7b0   : > { %v5297_v10 = vpop.permute.xlu1 %5296  ;;  %v6033_v57 = vadd.f32 %v5777_v56, %v4449_v47  ;;  %v2036_v59 = vcombine.high %v12908_v39, %v12908_v39  ;;  %v1884_v24 = vsub.f32 %v12910_v18, %v12909_v43  ;;  %v12911_v47 = vld [vmem:[#allocation499_spill] sm:$0xff] }
 0x7b1   : > { %6252 = vst [vmem:[%s9501_s4 + $0x608] sm:$0xff] %v5996_v63  ;;  %v5742_v9 = vmul.f32 %v12443_v31, %v5297_v10  ;;  %v5451_v55 = vpop.permute.xlu0 %5450  ;;  %v4017_v0 = vmul.f32 %v12911_v47, %v2689_v62 }
 0x7b2   : > { %6289 = vst [vmem:[%s9501_s4 + $0x730] sm:$0xff] %v6033_v57  ;;  %v5779_v63 = vmul.f32 %v7260_v16, %v5451_v55 }
 0x7b3   : > { %v5998_v34 = vadd.f32 %v5742_v9, %v4414_v1 }
 0x7b4   : > { %6863 = shalt.err (!%p6860_p7)
}
 0x7b5   : > { %s6864_s26 = scalar_lea.hbm %s11356_s27, 256  ;;  %s6868_s18 = scalar_lea.hbm %s11765_s3, 2048 }
 0x7b6   : > { %p6865_p9 = scmp.ne.s32.totalorder %s11356_s27, %s6864_s26  ;;  %p6869_p5 = scmp.lt.u32.totalorder %s11356_s27, %s11765_s3 }
 0x7b7   : > { %p6870_p2 = scmp.lt.u32.totalorder %s6868_s18, %s6864_s26  ;;  %p6872_p4 = scmp.lt.u32.totalorder %s6864_s26, %s11356_s27 }
 0x7b8   : > { %p6866_p1 = pnand %p6865_p9, %p7070_p12 }
 0x7b9   : > { %p6871_p10 = por %p6870_p2, %p6869_p5 }
 0x7ba   : > { %p6867_p0 = pneg %p6866_p1 }
 0x7bb   : > { %p6873_p6 = por %p6872_p4, %p6871_p10 }
 0x7bd   : > { %p6874_p8 = pnand %p6873_p6, %p6867_p0 }
 0x7bf   : > { %6877 = shalt.err (!%p6874_p8)
}
 0x7c0   : > { %s6961_s25 = smov 128   ;;  %s6962_s10 = smov 8   ;;  %v2355_v48 = vsub.f32 %v1919_v23, %v11217_v4  ;;  %v12912_v44 = vld [vmem:[#allocation275_spill] sm:$0xff]  ;;  %v2691_v7 = vadd.f32 %v11238_v19, %v2353_v40  ;;  %v5305_v62 = vpop.permute.xlu1 %5304  ;;  %v4416_v10 = vmul.f32 %v12902_v61, %v3980_v22  ;;  %v12913_v1 = vld [vmem:[#allocation500_spill] sm:$0xff]  ;;  %6254 = vst [vmem:[%s9501_s4 + $0x618] sm:$0xff] %v5998_v34  ;;  %v6035_v57 = vadd.f32 %v5779_v63, %v4451_v37  ;;  %v5459_v55 = vpop.permute.xlu0 %5458  ;;  %v12915_v47 = vld [vmem:[#allocation501_spill] sm:$0xff] }
 0x7c1   : > { %6726 = dma.vmem_to_hbm [thread:$0]  (%p7070_p12), %s11358_s5, 256, %s11356_s27, %s6323_s28, %s6961_s25, %s6961_s25, %s6962_s10   ;;  %v1921_v56 = vsub.f32 %v12621_v53, %v12912_v44  ;;  %v3982_v36 = vmul.f32 %v12913_v1, %v2654_v8  ;;  %v5744_v9 = vmul.f32 %v12446_v51, %v5305_v62  ;;  %v11400_v39 = vrot.slane %v2036_v59, %v7142_v30  ;;  %v12914_v43 = vld [vmem:[#allocation276_spill] sm:$0xff]  ;;  %v12916_v63 = vld [vmem:[#allocation277_spill] sm:$0xff]  ;;  %v12917_v1 = vld [vmem:[#allocation502_spill] sm:$0xff] }
 0x7c2   : > { %v2320_v23 = vsub.f32 %v1884_v24, %v12888_v35  ;;  %v1886_v53 = vsub.f32 %v12828_v33, %v12914_v43  ;;  %v2656_v40 = vadd.f32 %v12895_v41, %v2318_v52  ;;  %v4453_v22 = vmul.f32 %v11268_v38, %v4017_v0  ;;  %6291 = vst [vmem:[%s9501_s4 + $0x740] sm:$0xff] %v6035_v57  ;;  %s6512_s5 = sshll.u32 %s7005_s16, 15  ;;  %s6337_s11 = sshll.u32 %s9501_s4, 4  ;;  %s11715_s11 = int_to_ptr.vmem [resolvable:$true] %s6337_s11 }
 0x7c3   : > { %v4019_v8 = vmul.f32 %v12915_v47, %v2691_v7  ;;  %v6000_v37 = vadd.f32 %v5744_v9, %v4416_v10  ;;  %v5781_v34 = vmul.f32 %v7280_v26, %v5459_v55  ;;  %v2357_v59 = vsub.f32 %v1921_v56, %v11400_v39  ;;  %v12918_v10 = vld [vmem:[#allocation98_spill] sm:$0xff]  ;;  %s11713_s23 = scalar_lea.hbm %s11764_s2, %s6512_s5  ;;  %s6318_s29 = scalar_lea.sflag [#allocation4], %s7125_s6 }
 0x7c4   : > { %v1923_v24 = vsub.f32 %v12628_v11, %v12916_v63  ;;  %v2693_v44 = vadd.f32 %v11238_v19, %v2355_v48  ;;  %v5313_v62 = vpop.permute.xlu1 %5312  ;;  %v4418_v52 = vmul.f32 %v12902_v61, %v3982_v36  ;;  %v3984_v43 = vmul.f32 %v12917_v1, %v2656_v40  ;;  %v12919_v9 = vld [vmem:[#allocation278_spill] sm:$0xff]  ;;  %v5467_v55 = vpop.permute.xlu0 %5466  ;;  %v12920_v40 = vld [vmem:[#allocation503_spill] sm:$0xff]  ;;  %s6878_s16 = scalar_lea.vmem %s11715_s11, 32768  ;;  %s6963_s30 = smov [#allocation7]  }
 0x7c5   : > { %6256 = vst [vmem:[%s9501_s4 + $0x628] sm:$0xff] %v6000_v37  ;;  %v6037_v0 = vadd.f32 %v5781_v34, %v4453_v22  ;;  %v5746_v7 = vmul.f32 %v12450_v12, %v5313_v62  ;;  %v11420_v57 = vrot.slane %v12625_v3, %v12918_v10  ;;  %v2322_v56 = vsub.f32 %v1886_v53, %v12888_v35  ;;  %v12921_v34 = vld [vmem:[#allocation56_spill] sm:$0xff]  ;;  %v12922_v63 = vld [vmem:[#allocation279_spill] sm:$0xff]  ;;  %p6879_p11 = scmp.ne.s32.totalorder %s11715_s11, %s6878_s16  ;;  %s6882_s22 = sshll.u32 %s6963_s30, 4  ;;  %s6883_s22 = int_to_ptr.vmem [resolvable:$false] %s6882_s22 }
 0x7c6   : > { %v1888_v11 = vsub.f32 %v12879_v45, %v12919_v9  ;;  %v2658_v48 = vadd.f32 %v12895_v41, %v2320_v23  ;;  %v4455_v36 = vmul.f32 %v11268_v38, %v4019_v8  ;;  %v4021_v47 = vmul.f32 %v12920_v40, %v2693_v44  ;;  %v12923_v10 = vld [vmem:[#allocation504_spill] sm:$0xff]  ;;  %v12925_v40 = vld [vmem:[#allocation505_spill] sm:$0xff]  ;;  %s6884_s26 = scalar_lea.vmem %s6883_s22, 65536  ;;  %p6885_p7 = scmp.lt.s32.totalorder %s11715_s11, %s6883_s22 }
 0x7c7   : > { %6293 = vst [vmem:[%s9501_s4 + $0x750] sm:$0xff] %v6037_v0  ;;  %v6002_v22 = vadd.f32 %v5746_v7, %v4418_v52  ;;  %v5783_v37 = vmul.f32 %v12836_v14, %v5467_v55  ;;  %v4138_v3 = vcombine.high %v12921_v34, %v12921_v34  ;;  %v2359_v53 = vsub.f32 %v1923_v24, %v11400_v39  ;;  %v12924_v9 = vld [vmem:[#allocation280_spill] sm:$0xff]  ;;  %p6880_p13 = pnand %p6879_p11, %p7070_p12  ;;  %p6886_p9 = scmp.lt.s32.totalorder %s6884_s26, %s6878_s16 }
 0x7c8   : > { %v1925_v62 = vsub.f32 %v12839_v28, %v12922_v63  ;;  %v2695_v23 = vadd.f32 %v11420_v57, %v2357_v59  ;;  %v5321_v1 = vpop.permute.xlu1 %5320  ;;  %v4420_v8 = vmul.f32 %v12902_v61, %v3984_v43  ;;  %v3986_v44 = vmul.f32 %v12923_v10, %v2658_v48  ;;  %v5475_v28 = vpop.permute.xlu0 %5474  ;;  %v12927_v63 = vld [vmem:[#allocation506_spill] sm:$0xff]  ;;  %v12928_v10 = vld [vmem:[#allocation24_spill] sm:$0xff] }
 0x7c9   : > { %6258 = vst [vmem:[%s9501_s4 + $0x638] sm:$0xff] %v6002_v22  ;;  %v6039_v52 = vadd.f32 %v5783_v37, %v4455_v36  ;;  %v5748_v0 = vmul.f32 %v12456_v15, %v5321_v1  ;;  %v2324_v7 = vsub.f32 %v1888_v11, %v12888_v35  ;;  %v1890_v24 = vsub.f32 %v12795_v5, %v12924_v9  ;;  %v12926_v11 = vld [vmem:[#allocation281_spill] sm:$0xff]  ;;  %p6881_p3 = pneg %p6880_p13  ;;  %p6887_p1 = por %p6886_p9, %p6885_p7 }
 0x7ca   : > { %v2660_v55 = vadd.f32 %v12895_v41, %v2322_v56  ;;  %v4457_v59 = vmul.f32 %v11268_v38, %v4021_v47  ;;  %v4023_v34 = vmul.f32 %v12925_v40, %v2695_v23  ;;  %v5785_v48 = vmul.f32 %v12413_v20, %v5475_v28 }
 0x7cb   : > { %6295 = vst [vmem:[%s9501_s4 + $0x760] sm:$0xff] %v6039_v52  ;;  %v6004_v43 = vadd.f32 %v5748_v0, %v4420_v8  ;;  %v11449_v36 = vrot.slane %v4138_v3, %v7142_v30  ;;  %v2361_v35 = vsub.f32 %v1925_v62, %v11400_v39  ;;  %v1927_v22 = vsub.f32 %v12845_v32, %v12926_v11  ;;  %v12929_v3 = vld [vmem:[#allocation282_spill] sm:$0xff]  ;;  %v12930_v0 = vld [vmem:[#allocation507_spill] sm:$0xff]  ;;  %p6888_p0 = pnand %p6887_p1, %p6881_p3 }
 0x7cc   : > { %v2697_v56 = vadd.f32 %v11420_v57, %v2359_v53  ;;  %v5329_v37 = vpop.permute.xlu1 %5328  ;;  %v4422_v47 = vmul.f32 %v12902_v61, %v3986_v44  ;;  %v3988_v23 = vmul.f32 %v12927_v63, %v2660_v55  ;;  %v6041_v1 = vadd.f32 %v5785_v48, %v4457_v59  ;;  %v5486_v32 = vpop.permute.xlu0 %5485  ;;  %v12931_v59 = vld [vmem:[#allocation283_spill] sm:$0xff] }
 0x7cd   : > { %6260 = vst [vmem:[%s9501_s4 + $0x648] sm:$0xff] %v6004_v43  ;;  %v5750_v8 = vmul.f32 %v12461_v21, %v5329_v37  ;;  %v2326_v30 = vsub.f32 %v1890_v24, %v12928_v10  ;;  %v1892_v62 = vsub.f32 %v12802_v17, %v12929_v3  ;;  %v2662_v52 = vadd.f32 %v12895_v41, %v2324_v7  ;;  %v12932_v7 = vld [vmem:[#allocation508_spill] sm:$0xff]  ;;  %v12934_v37 = vld [vmem:[#allocation19_spill] sm:$0xff] }
 0x7ce   : > { %v4459_v53 = vmul.f32 %v11449_v36, %v4023_v34  ;;  %v4025_v9 = vmul.f32 %v12930_v0, %v2697_v56  ;;  %6297 = vst [vmem:[%s9501_s4 + $0x770] sm:$0xff] %v6041_v1  ;;  %v5787_v55 = vmul.f32 %v7182_v46, %v5486_v32  ;;  %v2363_v28 = vsub.f32 %v1927_v22, %v11400_v39  ;;  %v12933_v56 = vld [vmem:[#allocation284_spill] sm:$0xff]  ;;  %v12936_v1 = vld [vmem:[#allocation509_spill] sm:$0xff] }
 0x7cf   : > { %v6006_v44 = vadd.f32 %v5750_v8, %v4422_v47  ;;  %v1929_v24 = vsub.f32 %v12851_v2, %v12931_v59  ;;  %v2699_v40 = vadd.f32 %v11420_v57, %v2361_v35  ;;  %v4424_v41 = vmul.f32 %v12902_v61, %v3988_v23  ;;  %v12935_v47 = vld [vmem:[#allocation91_spill] sm:$0xff]  ;;  %v12937_v32 = vld [vmem:[#allocation285_spill] sm:$0xff] }
 0x7d0   : > { %v5337_v43 = vpop.permute.xlu1 %5336  ;;  %v3990_v48 = vmul.f32 %v12932_v7, %v2662_v52  ;;  %v6043_v34 = vadd.f32 %v5787_v55, %v4459_v53  ;;  %v2328_v46 = vsub.f32 %v1892_v62, %v12928_v10  ;;  %v1894_v22 = vsub.f32 %v12934_v37, %v12933_v56  ;;  %v5494_v2 = vpop.permute.xlu0 %5493 }
 0x7d1   : > { %6262 = vst [vmem:[%s9501_s4 + $0x658] sm:$0xff] %v6006_v44  ;;  %v5752_v11 = vmul.f32 %v12466_v54, %v5337_v43  ;;  %v2664_v63 = vadd.f32 %v12935_v47, %v2326_v30  ;;  %v4461_v35 = vmul.f32 %v11449_v36, %v4025_v9  ;;  %v4027_v8 = vmul.f32 %v12936_v1, %v2699_v40  ;;  %v12938_v44 = vld [vmem:[#allocation510_spill] sm:$0xff] }
 0x7d2   : > { %6299 = vst [vmem:[%s9501_s4 + $0x780] sm:$0xff] %v6043_v34  ;;  %v5789_v3 = vmul.f32 %v7195_v50, %v5494_v2  ;;  %v2365_v52 = vsub.f32 %v1929_v24, %v11400_v39  ;;  %v1931_v62 = vsub.f32 %v12649_v29, %v12937_v32  ;;  %v2701_v53 = vadd.f32 %v11420_v57, %v2363_v28  ;;  %v12939_v40 = vld [vmem:[#allocation286_spill] sm:$0xff]  ;;  %v12942_v2 = vld [vmem:[#allocation27_spill] sm:$0xff] }
 0x7d3   : > { %v6008_v23 = vadd.f32 %v5752_v11, %v4424_v41  ;;  %v4426_v30 = vmul.f32 %v12902_v61, %v3990_v48  ;;  %v3992_v55 = vmul.f32 %v12938_v44, %v2664_v63  ;;  %v2330_v50 = vsub.f32 %v1894_v22, %v12928_v10  ;;  %v12940_v41 = vld [vmem:[#allocation511_spill] sm:$0xff] }
 0x7d4   : > { %v5345_v0 = vpop.permute.xlu1 %5344  ;;  %v6045_v9 = vadd.f32 %v5789_v3, %v4461_v35  ;;  %v1896_v24 = vsub.f32 %v12726_v25, %v12939_v40  ;;  %v2666_v43 = vadd.f32 %v12935_v47, %v2328_v46  ;;  %v5502_v29 = vpop.permute.xlu0 %5501  ;;  %v4463_v28 = vmul.f32 %v11449_v36, %v4027_v8  ;;  %v12941_v11 = vld [vmem:[#allocation287_spill] sm:$0xff]  ;;  %v12943_v35 = vld [vmem:[#allocation512_spill] sm:$0xff] }
 0x7d5   : > { %6264 = vst [vmem:[%s9501_s4 + $0x668] sm:$0xff] %v6008_v23  ;;  %v5754_v59 = vmul.f32 %v12471_v42, %v5345_v0  ;;  %v4029_v7 = vmul.f32 %v12940_v41, %v2701_v53  ;;  %v5791_v48 = vmul.f32 %v7220_v60, %v5502_v29  ;;  %v2367_v34 = vsub.f32 %v1931_v62, %v11400_v39  ;;  %v12944_v3 = vld [vmem:[#allocation288_spill] sm:$0xff]  ;;  %v12945_v53 = vld [vmem:[#allocation513_spill] sm:$0xff] }
 0x7d6   : > { %6301 = vst [vmem:[%s9501_s4 + $0x790] sm:$0xff] %v6045_v9  ;;  %v1933_v56 = vsub.f32 %v12654_v49, %v12941_v11  ;;  %v2703_v22 = vadd.f32 %v11420_v57, %v2365_v52  ;;  %v4428_v46 = vmul.f32 %v12942_v2, %v3992_v55  ;;  %v3994_v1 = vmul.f32 %v12943_v35, %v2666_v43  ;;  %v12946_v9 = vld [vmem:[#allocation289_spill] sm:$0xff]  ;;  %v12947_v43 = vld [vmem:[#allocation514_spill] sm:$0xff]  ;;  %v12949_v11 = vld [vmem:[#allocation515_spill] sm:$0xff] }
 0x7d7   : > { %v6010_v61 = vadd.f32 %v5754_v59, %v4426_v30  ;;  %v6047_v8 = vadd.f32 %v5791_v48, %v4463_v28  ;;  %v2332_v60 = vsub.f32 %v1896_v24, %v12928_v10  ;;  %v1898_v32 = vsub.f32 %v12816_v13, %v12944_v3 }
 0x7d8   : > { %v5356_v63 = vpop.permute.xlu1 %5355  ;;  %v2668_v62 = vadd.f32 %v12935_v47, %v2330_v50  ;;  %v5510_v49 = vpop.permute.xlu0 %5509  ;;  %v4465_v52 = vmul.f32 %v11449_v36, %v4029_v7  ;;  %v4031_v0 = vmul.f32 %v12945_v53, %v2703_v22  ;;  %v2369_v55 = vsub.f32 %v1933_v56, %v11400_v39  ;;  %v12948_v7 = vld [vmem:[#allocation290_spill] sm:$0xff] }
 0x7d9   : > { %6266 = vst [vmem:[%s9501_s4 + $0x678] sm:$0xff] %v6010_v61  ;;  %v5756_v23 = vmul.f32 %v12440_v27, %v5356_v63  ;;  %6303 = vst [vmem:[%s9501_s4 + $0x7a0] sm:$0xff] %v6047_v8  ;;  %v5793_v44 = vmul.f32 %v7240_v6, %v5510_v49  ;;  %v1935_v59 = vsub.f32 %v12659_v58, %v12946_v9  ;;  %v12951_v49 = vld [vmem:[#allocation291_spill] sm:$0xff] }
 0x7da   : > { %v2705_v40 = vadd.f32 %v11420_v57, %v2367_v34  ;;  %v4430_v50 = vmul.f32 %v12942_v2, %v3994_v1  ;;  %v3996_v29 = vmul.f32 %v12947_v43, %v2668_v62  ;;  %v2334_v6 = vsub.f32 %v1898_v32, %v12928_v10 }
 0x7db   : > { %v6012_v30 = vadd.f32 %v5756_v23, %v4428_v46  ;;  %v6049_v28 = vadd.f32 %v5793_v44, %v4465_v52  ;;  %v1900_v61 = vsub.f32 %v12910_v18, %v12948_v7  ;;  %v2670_v48 = vadd.f32 %v12935_v47, %v2332_v60  ;;  %v12950_v23 = vld [vmem:[#allocation516_spill] sm:$0xff] }
 0x7dc   : > { %v5364_v24 = vpop.permute.xlu1 %5363  ;;  %v5518_v58 = vpop.permute.xlu0 %5517  ;;  %v4467_v34 = vmul.f32 %v11449_v36, %v4031_v0  ;;  %v4033_v56 = vmul.f32 %v12949_v11, %v2705_v40  ;;  %v2371_v46 = vsub.f32 %v1935_v59, %v11400_v39  ;;  %v2707_v35 = vadd.f32 %v11420_v57, %v2369_v55 }
 0x7dd   : > { %6268 = vst [vmem:[%s9501_s4 + $0x688] sm:$0xff] %v6012_v30  ;;  %v5758_v41 = vmul.f32 %v12443_v31, %v5364_v24  ;;  %6305 = vst [vmem:[%s9501_s4 + $0x7b0] sm:$0xff] %v6049_v28  ;;  %v5795_v63 = vmul.f32 %v7260_v16, %v5518_v58  ;;  %v4432_v8 = vmul.f32 %v12942_v2, %v3996_v29  ;;  %v12952_v30 = vld [vmem:[#allocation517_spill] sm:$0xff]  ;;  %v12955_v58 = vld [vmem:[#allocation519_spill] sm:$0xff] }
 0x7de   : > { %v3998_v3 = vmul.f32 %v12950_v23, %v2670_v48  ;;  %v2336_v62 = vsub.f32 %v1900_v61, %v12928_v10  ;;  %v1902_v52 = vsub.f32 %v12828_v33, %v12951_v49  ;;  %v2672_v16 = vadd.f32 %v12935_v47, %v2334_v6  ;;  %v12954_v6 = vld [vmem:[#allocation292_spill] sm:$0xff] }
 0x7df   : > { %v6014_v22 = vadd.f32 %v5758_v41, %v4430_v50  ;;  %v6051_v60 = vadd.f32 %v5795_v63, %v4467_v34  ;;  %v4469_v0 = vmul.f32 %v11449_v36, %v4033_v56  ;;  %v4035_v44 = vmul.f32 %v12952_v30, %v2707_v35  ;;  %v12953_v50 = vld [vmem:[#allocation518_spill] sm:$0xff] }
 0x7e0   : > { %v5372_v1 = vpop.permute.xlu1 %5371  ;;  %v5526_v53 = vpop.permute.xlu0 %5525  ;;  %v2709_v59 = vadd.f32 %v11420_v57, %v2371_v46  ;;  %v4434_v24 = vmul.f32 %v12942_v2, %v3998_v3  ;;  %v4000_v43 = vmul.f32 %v12953_v50, %v2672_v16  ;;  %v2338_v41 = vsub.f32 %v1902_v52, %v12928_v10  ;;  %v12956_v46 = vld [vmem:[#allocation520_spill] sm:$0xff] }
 0x7e1   : > { %6270 = vst [vmem:[%s9501_s4 + $0x698] sm:$0xff] %v6014_v22  ;;  %v5760_v32 = vmul.f32 %v12446_v51, %v5372_v1  ;;  %6307 = vst [vmem:[%s9501_s4 + $0x7c0] sm:$0xff] %v6051_v60  ;;  %v5797_v9 = vmul.f32 %v7280_v26, %v5526_v53  ;;  %v1904_v7 = vsub.f32 %v12879_v45, %v12954_v6  ;;  %v12961_v6 = vld [vmem:[#allocation295_spill] sm:$0xff] }
 0x7e2   : > { %v2674_v61 = vadd.f32 %v12935_v47, %v2336_v62  ;;  %v4471_v48 = vmul.f32 %v11449_v36, %v4035_v44  ;;  %v4037_v34 = vmul.f32 %v12955_v58, %v2709_v59  ;;  %v4436_v63 = vmul.f32 %v12942_v2, %v4000_v43  ;;  %v12960_v43 = vld [vmem:[#allocation522_spill] sm:$0xff]  ;;  %v12962_v58 = vld [vmem:[#allocation523_spill] sm:$0xff] }
 0x7e3   : > { %v6016_v55 = vadd.f32 %v5760_v32, %v4432_v8  ;;  %v6053_v29 = vadd.f32 %v5797_v9, %v4469_v0  ;;  %v2340_v23 = vsub.f32 %v1904_v7, %v12928_v10  ;;  %v2676_v3 = vadd.f32 %v12935_v47, %v2338_v41  ;;  %v12957_v32 = vld [vmem:[#allocation293_spill] sm:$0xff]  ;;  %v12959_v9 = vld [vmem:[#allocation294_spill] sm:$0xff] }
 0x7e4   : > { %v5380_v40 = vpop.permute.xlu1 %5379  ;;  %v5534_v26 = vpop.permute.xlu0 %5533  ;;  %v4002_v35 = vmul.f32 %v12956_v46, %v2674_v61  ;;  %v1906_v62 = vsub.f32 %v12795_v5, %v12957_v32  ;;  %v12958_v0 = vld [vmem:[#allocation521_spill] sm:$0xff]  ;;  %v1908_v59 = vsub.f32 %v12802_v17, %v12959_v9  ;;  %v1910_v7 = vsub.f32 %v12934_v37, %v12961_v6 }
 0x7e5   : > { %6272 = vst [vmem:[%s9501_s4 + $0x6a8] sm:$0xff] %v6016_v55  ;;  %v5762_v28 = vmul.f32 %v12450_v12, %v5380_v40  ;;  %6309 = vst [vmem:[%s9501_s4 + $0x7d0] sm:$0xff] %v6053_v29  ;;  %v5799_v56 = vmul.f32 %v12836_v14, %v5534_v26  ;;  %v4473_v14 = vmul.f32 %v11449_v36, %v4037_v34  ;;  %v12965_v32 = vld [vmem:[#allocation297_spill] sm:$0xff] }
 0x7e6   : > { %v4438_v53 = vmul.f32 %v12942_v2, %v4002_v35  ;;  %v4004_v30 = vmul.f32 %v12958_v0, %v2676_v3  ;;  %v2342_v55 = vsub.f32 %v1906_v62, %v11217_v4  ;;  %v2678_v40 = vadd.f32 %v12935_v47, %v2340_v23  ;;  %v12964_v23 = vld [vmem:[#allocation524_spill] sm:$0xff] }
 0x7e7   : > { %v6018_v11 = vadd.f32 %v5762_v28, %v4434_v24  ;;  %v6055_v1 = vadd.f32 %v5799_v56, %v4471_v48  ;;  %v2344_v41 = vsub.f32 %v1908_v59, %v11217_v4  ;;  %v2346_v56 = vsub.f32 %v1910_v7, %v11217_v4 }
 0x7e8   : > { %v5388_v22 = vpop.permute.xlu1 %5387  ;;  %v5542_v60 = vpop.permute.xlu0 %5541  ;;  %v4440_v50 = vmul.f32 %v12942_v2, %v4004_v30  ;;  %v4006_v29 = vmul.f32 %v12960_v43, %v2678_v40  ;;  %v2680_v61 = vadd.f32 %v11238_v19, %v2342_v55  ;;  %v1914_v62 = vsub.f32 %v12816_v13, %v12965_v32 }
 0x7e9   : > { %6274 = vst [vmem:[%s9501_s4 + $0x6b8] sm:$0xff] %v6018_v11  ;;  %v5764_v8 = vmul.f32 %v12456_v15, %v5388_v22  ;;  %6311 = vst [vmem:[%s9501_s4 + $0x7e0] sm:$0xff] %v6055_v1  ;;  %v5801_v52 = vmul.f32 %v12413_v20, %v5542_v60  ;;  %v12963_v22 = vld [vmem:[#allocation296_spill] sm:$0xff]  ;;  %v2682_v46 = vadd.f32 %v11238_v19, %v2344_v41 }
 0x7ea   : > { %v4442_v48 = vmul.f32 %v12942_v2, %v4006_v29  ;;  %v4008_v34 = vmul.f32 %v12962_v58, %v2680_v61 }
 0x7eb   : > { %v6020_v49 = vadd.f32 %v5764_v8, %v4436_v63  ;;  %v6057_v10 = vadd.f32 %v5801_v52, %v4473_v14  ;;  %v1912_v63 = vsub.f32 %v12726_v25, %v12963_v22  ;;  %v4010_v3 = vmul.f32 %v12964_v23, %v2682_v46 }
 0x7ec   : > { %v5396_v16 = vpop.permute.xlu1 %5395  ;;  %v4444_v8 = vmul.f32 %v11268_v38, %v4008_v34  ;;  %v2684_v14 = vadd.f32 %v11238_v19, %v2346_v56 }
 0x7ed   : > { %6276 = vst [vmem:[%s9501_s4 + $0x6c8] sm:$0xff] %v6020_v49  ;;  %v5766_v44 = vmul.f32 %v12461_v21, %v5396_v16  ;;  %6313 = vst [vmem:[%s9501_s4 + $0x7f0] sm:$0xff] %v6057_v10  ;;  %v2348_v60 = vsub.f32 %v1912_v63, %v11217_v4  ;;  %v4446_v16 = vmul.f32 %v11268_v38, %v4010_v3 }
 0x7ee   : > { %v2350_v10 = vsub.f32 %v1914_v62, %v11217_v4 }
 0x7ef   : > { %v6022_v24 = vadd.f32 %v5766_v44, %v4438_v53  ;;  %v12966_v53 = vld [vmem:[#allocation525_spill] sm:$0xff]  ;;  %v12967_v44 = vld [vmem:[#allocation298_spill] sm:$0xff]  ;;  %v2686_v9 = vadd.f32 %v11238_v19, %v2348_v60 }
 0x7f0   : > { %v5404_v20 = vpop.permute.xlu1 %5403  ;;  %v4012_v0 = vmul.f32 %v12966_v53, %v2684_v14  ;;  %v1916_v55 = vsub.f32 %v12910_v18, %v12967_v44  ;;  %v2688_v6 = vadd.f32 %v11238_v19, %v2350_v10 }
 0x7f1   : > { %6278 = vst [vmem:[%s9501_s4 + $0x6d8] sm:$0xff] %v6022_v24  ;;  %v5768_v28 = vmul.f32 %v12466_v54, %v5404_v20  ;;  %v12968_v20 = vld [vmem:[#allocation526_spill] sm:$0xff] }
 0x7f2   : > { %v4448_v24 = vmul.f32 %v11268_v38, %v4012_v0  ;;  %v2352_v29 = vsub.f32 %v1916_v55, %v11217_v4 }
 0x7f3   : > { %v6024_v26 = vadd.f32 %v5768_v28, %v4440_v50  ;;  %v4014_v50 = vmul.f32 %v12968_v20, %v2686_v9  ;;  %v12969_v28 = vld [vmem:[#allocation299_spill] sm:$0xff] }
 0x7f4   : > { %v5412_v47 = vpop.permute.xlu1 %5411  ;;  %v1918_v41 = vsub.f32 %v12828_v33, %v12969_v28  ;;  %v2690_v22 = vadd.f32 %v11238_v19, %v2352_v29  ;;  %v12976_v9 = vld [vmem:[#allocation39_spill] sm:$0xff]  ;;  %v12978_v28 = vld [vmem:[#allocation61_spill] sm:$0xff] }
 0x7f5   : > { %6280 = vst [vmem:[%s9501_s4 + $0x6e8] sm:$0xff] %v6024_v26  ;;  %v5770_v11 = vmul.f32 %v12471_v42, %v5412_v47  ;;  %v4450_v26 = vmul.f32 %v11268_v38, %v4014_v50  ;;  %v12970_v47 = vld [vmem:[#allocation527_spill] sm:$0xff] }
 0x7f6   : > { %v2354_v34 = vsub.f32 %v1918_v41, %v11217_v4  ;;  %v12977_v20 = vld [vmem:[#allocation303_spill] sm:$0xff] }
 0x7f7   : > { %v6026_v35 = vadd.f32 %v5770_v11, %v4442_v48  ;;  %v4016_v48 = vmul.f32 %v12970_v47, %v2688_v6  ;;  %v12971_v11 = vld [vmem:[#allocation300_spill] sm:$0xff]  ;;  %v1926_v50 = vsub.f32 %v12934_v37, %v12977_v20 }
 0x7f8   : > { %v5423_v1 = vpop.permute.xlu1 %5422  ;;  %v1920_v56 = vsub.f32 %v12879_v45, %v12971_v11  ;;  %v2692_v32 = vadd.f32 %v11238_v19, %v2354_v34  ;;  %v12980_v34 = vld [vmem:[#allocation65_spill] sm:$0xff] }
 0x7f9   : > { %6282 = vst [vmem:[%s9501_s4 + $0x6f8] sm:$0xff] %v6026_v35  ;;  %v5772_v2 = vmul.f32 %v12440_v27, %v5423_v1  ;;  %v4452_v35 = vmul.f32 %v11268_v38, %v4016_v48  ;;  %v12972_v1 = vld [vmem:[#allocation59_spill] sm:$0xff] }
 0x7fa   : > { %v2356_v3 = vsub.f32 %v1920_v56, %v11217_v4 }
 0x7fb   : > { %v6028_v49 = vadd.f32 %v5772_v2, %v4444_v8  ;;  %v4018_v8 = vmul.f32 %v12972_v1, %v2690_v22  ;;  %v12973_v2 = vld [vmem:[#allocation301_spill] sm:$0xff] }
 0x7fc   : > { %v5431_v52 = vpop.permute.xlu1 %5430  ;;  %v1922_v60 = vsub.f32 %v12795_v5, %v12973_v2  ;;  %v2694_v10 = vadd.f32 %v11238_v19, %v2356_v3  ;;  %v12981_v22 = vld [vmem:[#allocation305_spill] sm:$0xff] }
 0x7fd   : > { %6284 = vst [vmem:[%s9501_s4 + $0x708] sm:$0xff] %v6028_v49  ;;  %v5774_v30 = vmul.f32 %v12443_v31, %v5431_v52  ;;  %v4454_v49 = vmul.f32 %v11268_v38, %v4018_v8  ;;  %v12974_v52 = vld [vmem:[#allocation64_spill] sm:$0xff]  ;;  %v12982_v8 = vld [vmem:[#allocation67_spill] sm:$0xff] }
 0x7fe   : > { %v2358_v0 = vsub.f32 %v1922_v60, %v11400_v39 }
 0x7ff   : > { %v6030_v59 = vadd.f32 %v5774_v30, %v4446_v16  ;;  %v4020_v16 = vmul.f32 %v12974_v52, %v2692_v32  ;;  %v12975_v30 = vld [vmem:[#allocation302_spill] sm:$0xff] }
 0x800   : > { %v5439_v40 = vpop.permute.xlu1 %5438  ;;  %v1924_v4 = vsub.f32 %v12802_v17, %v12975_v30 }
 0x801   : > { %6286 = vst [vmem:[%s9501_s4 + $0x718] sm:$0xff] %v6030_v59  ;;  %v5776_v43 = vmul.f32 %v12446_v51, %v5439_v40  ;;  %v4456_v55 = vmul.f32 %v11268_v38, %v4020_v16  ;;  %v4022_v59 = vmul.f32 %v12976_v9, %v2694_v10  ;;  %v12987_v9 = vld [vmem:[#allocation308_spill] sm:$0xff] }
 0x803   : > { %v6032_v7 = vadd.f32 %v5776_v43, %v4448_v24  ;;  %v2360_v24 = vsub.f32 %v1924_v4, %v11400_v39  ;;  %v2696_v43 = vadd.f32 %v11420_v57, %v2358_v0  ;;  %v4458_v19 = vmul.f32 %v11268_v38, %v4022_v59 }
 0x804   : > { %v5447_v61 = vpop.permute.xlu1 %5446  ;;  %v1936_v59 = vsub.f32 %v12879_v45, %v12987_v9 }
 0x805   : > { %6288 = vst [vmem:[%s9501_s4 + $0x728] sm:$0xff] %v6032_v7  ;;  %v5778_v58 = vmul.f32 %v12450_v12, %v5447_v61  ;;  %v4024_v41 = vmul.f32 %v12978_v28, %v2696_v43  ;;  %v2362_v7 = vsub.f32 %v1926_v50, %v11400_v39  ;;  %v12979_v61 = vld [vmem:[#allocation304_spill] sm:$0xff]  ;;  %v2698_v47 = vadd.f32 %v11420_v57, %v2360_v24  ;;  %v12988_v50 = vld [vmem:[#allocation73_spill] sm:$0xff] }
 0x807   : > { %v6034_v63 = vadd.f32 %v5778_v58, %v4450_v26  ;;  %v1928_v26 = vsub.f32 %v12726_v25, %v12979_v61  ;;  %v4460_v58 = vmul.f32 %v11449_v36, %v4024_v41  ;;  %v4026_v11 = vmul.f32 %v12980_v34, %v2698_v47  ;;  %v12989_v41 = vld [vmem:[#allocation75_spill] sm:$0xff]  ;;  %v12990_v47 = vld [vmem:[#allocation77_spill] sm:$0xff] }
 0x808   : > { %v5455_v46 = vpop.permute.xlu1 %5454 }
 0x809   : > { %6290 = vst [vmem:[%s9501_s4 + $0x738] sm:$0xff] %v6034_v63  ;;  %v5780_v23 = vmul.f32 %v12456_v15, %v5455_v46  ;;  %v2364_v56 = vsub.f32 %v1928_v26, %v11400_v39  ;;  %v1930_v63 = vsub.f32 %v12816_v13, %v12981_v22  ;;  %v2700_v46 = vadd.f32 %v11420_v57, %v2362_v7 }
 0x80a   : > { %v4462_v1 = vmul.f32 %v11449_v36, %v4026_v11 }
 0x80b   : > { %v6036_v62 = vadd.f32 %v5780_v23, %v4452_v35  ;;  %v4028_v23 = vmul.f32 %v12982_v8, %v2700_v46  ;;  %v2366_v2 = vsub.f32 %v1930_v63, %v11400_v39  ;;  %v2702_v32 = vadd.f32 %v11420_v57, %v2364_v56 }
 0x80c   : > { %v5463_v14 = vpop.permute.xlu1 %5462 }
 0x80d   : > { %6292 = vst [vmem:[%s9501_s4 + $0x748] sm:$0xff] %v6036_v62  ;;  %v5782_v53 = vmul.f32 %v12461_v21, %v5463_v14  ;;  %v4464_v14 = vmul.f32 %v11449_v36, %v4028_v23  ;;  %v2704_v30 = vadd.f32 %v11420_v57, %v2366_v2 }
 0x80f   : > { %v6038_v5 = vadd.f32 %v5782_v53, %v4454_v49  ;;  %v12984_v49 = vld [vmem:[#allocation69_spill] sm:$0xff] }
 0x810   : > { %v5471_v44 = vpop.permute.xlu1 %5470  ;;  %v4030_v52 = vmul.f32 %v12984_v49, %v2702_v32 }
 0x811   : > { %6294 = vst [vmem:[%s9501_s4 + $0x758] sm:$0xff] %v6038_v5  ;;  %v5784_v40 = vmul.f32 %v12466_v54, %v5471_v44  ;;  %v12986_v5 = vld [vmem:[#allocation71_spill] sm:$0xff] }
 0x812   : > { %v4466_v10 = vmul.f32 %v11449_v36, %v4030_v52  ;;  %v4032_v44 = vmul.f32 %v12986_v5, %v2704_v30 }
 0x813   : > { %v6040_v17 = vadd.f32 %v5784_v40, %v4456_v55 }
 0x814   : > { %v5479_v29 = vpop.permute.xlu1 %5478  ;;  %v4468_v20 = vmul.f32 %v11449_v36, %v4032_v44 }
 0x815   : > { %6296 = vst [vmem:[%s9501_s4 + $0x768] sm:$0xff] %v6040_v17  ;;  %v5786_v6 = vmul.f32 %v12471_v42, %v5479_v29 }
 0x817   : > { %v6042_v37 = vadd.f32 %v5786_v6, %v4458_v19 }
 0x818   : > { %v5490_v48 = vpop.permute.xlu1 %5489 }
 0x819   : > { %6298 = vst [vmem:[%s9501_s4 + $0x778] sm:$0xff] %v6042_v37  ;;  %v5788_v38 = vmul.f32 %v12440_v27, %v5490_v48  ;;  %v12983_v27 = vld [vmem:[#allocation306_spill] sm:$0xff] }
 0x81a   : > { %v1932_v60 = vsub.f32 %v12910_v18, %v12983_v27 }
 0x81b   : > { %v6044_v25 = vadd.f32 %v5788_v38, %v4460_v58 }
 0x81c   : > { %v5498_v35 = vpop.permute.xlu1 %5497  ;;  %v2368_v53 = vsub.f32 %v1932_v60, %v11400_v39 }
 0x81d   : > { %6300 = vst [vmem:[%s9501_s4 + $0x788] sm:$0xff] %v6044_v25  ;;  %v5790_v3 = vmul.f32 %v12443_v31, %v5498_v35  ;;  %v12985_v31 = vld [vmem:[#allocation307_spill] sm:$0xff] }
 0x81e   : > { %v1934_v0 = vsub.f32 %v12828_v33, %v12985_v31  ;;  %v2706_v40 = vadd.f32 %v11420_v57, %v2368_v53 }
 0x81f   : > { %v6046_v13 = vadd.f32 %v5790_v3, %v4462_v1 }
 0x820   : > { %v5506_v62 = vpop.permute.xlu1 %5505  ;;  %v4034_v43 = vmul.f32 %v12988_v50, %v2706_v40 }
 0x821   : > { %6302 = vst [vmem:[%s9501_s4 + $0x798] sm:$0xff] %v6046_v13  ;;  %v5792_v16 = vmul.f32 %v12446_v51, %v5506_v62  ;;  %v2370_v51 = vsub.f32 %v1934_v0, %v11400_v39 }
 0x822   : > { %v4470_v28 = vmul.f32 %v11449_v36, %v4034_v43 }
 0x823   : > { %v6048_v18 = vadd.f32 %v5792_v16, %v4464_v14  ;;  %v2708_v29 = vadd.f32 %v11420_v57, %v2370_v51 }
 0x824   : > { %v5514_v4 = vpop.permute.xlu1 %5513 }
 0x825   : > { %6304 = vst [vmem:[%s9501_s4 + $0x7a8] sm:$0xff] %v6048_v18  ;;  %v5794_v55 = vmul.f32 %v12450_v12, %v5514_v4  ;;  %v2372_v12 = vsub.f32 %v1936_v59, %v11400_v39  ;;  %v4036_v6 = vmul.f32 %v12989_v41, %v2708_v29 }
 0x827   : > { %v6050_v33 = vadd.f32 %v5794_v55, %v4466_v10  ;;  %v2710_v61 = vadd.f32 %v11420_v57, %v2372_v12  ;;  %v4472_v39 = vmul.f32 %v11449_v36, %v4036_v6 }
 0x828   : > { %v5522_v24 = vpop.permute.xlu1 %5521 }
 0x829   : > { %6306 = vst [vmem:[%s9501_s4 + $0x7b8] sm:$0xff] %v6050_v33  ;;  %v5796_v17 = vmul.f32 %v12456_v15, %v5522_v24  ;;  %v4038_v37 = vmul.f32 %v12990_v47, %v2710_v61 }
 0x82b   : > { %v6052_v19 = vadd.f32 %v5796_v17, %v4468_v20 }
 0x82c   : > { %v5530_v45 = vpop.permute.xlu1 %5529 }
 0x82d   : > { %6308 = vst [vmem:[%s9501_s4 + $0x7c8] sm:$0xff] %v6052_v19  ;;  %v5798_v7 = vmul.f32 %v12461_v21, %v5530_v45  ;;  %v4474_v21 = vmul.f32 %v11449_v36, %v4038_v37 }
 0x82f   : > { %v6054_v26 = vadd.f32 %v5798_v7, %v4470_v28 }
 0x830   : > { %v5538_v15 = vpop.permute.xlu1 %5537 }
 0x831   : > { %6310 = vst [vmem:[%s9501_s4 + $0x7d8] sm:$0xff] %v6054_v26  ;;  %v5800_v48 = vmul.f32 %v12466_v54, %v5538_v15 }
 0x833   : > { %v6056_v58 = vadd.f32 %v5800_v48, %v4472_v39 }
 0x834   : > { %v5546_v34 = vpop.permute.xlu1 %5545 }
 0x835   : > { %6312 = vst [vmem:[%s9501_s4 + $0x7e8] sm:$0xff] %v6056_v58  ;;  %v5802_v57 = vmul.f32 %v12471_v42, %v5546_v34 }
 0x837   : > { %v6058_v11 = vadd.f32 %v5802_v57, %v4474_v21 }
 0x839   : > { %6314 = vst [vmem:[%s9501_s4 + $0x7f8] sm:$0xff] %v6058_v11 }
 0x83a   : > { %6891 = shalt.err (!%p6888_p0)
}
 0x83b   : > { %s6892_s4 = scalar_lea.hbm %s11713_s23, 32768  ;;  %s6896_s18 = scalar_lea.hbm %s11764_s2, 262144 }
 0x83c   : > { %p6893_p5 = scmp.ne.s32.totalorder %s11713_s23, %s6892_s4  ;;  %p6897_p4 = scmp.lt.u32.totalorder %s11713_s23, %s11764_s2 }
 0x83d   : > { %p6898_p6 = scmp.lt.u32.totalorder %s6896_s18, %s6892_s4  ;;  %p6900_p11 = scmp.lt.u32.totalorder %s6892_s4, %s11713_s23 }
 0x83e   : > { %p6894_p2 = pnand %p6893_p5, %p7070_p12 }
 0x83f   : > { %p6899_p8 = por %p6898_p6, %p6897_p4 }
 0x840   : > { %p6895_p10 = pneg %p6894_p2 }
 0x841   : > { %p6901_p13 = por %p6900_p11, %p6899_p8 }
 0x843   : > { %p6902_p3 = pnand %p6901_p13, %p6895_p10 }
 0x845   : > { %6905 = shalt.err (!%p6902_p3)
}
 0x846   : > { %6725 = dma.vmem_to_hbm [thread:$0]  (%p7070_p12), %s11715_s11, 32768, %s11713_s23, %s6318_s29, %s6961_s25, %s6961_s25, %s6962_s10  }
 0x847 PF: > { %p6747_p7 = scmp.ge.s32.totalorder %s6952_s15, 2  ;;  %s6368_s5 = sand.u32 1, %s6940_s12  }
 0x848   : > { %p12991_p9 = scmp.ne.s32.totalorder %s11887_s19, 0  ;;  %s6369_s27 = scalar_lea.sflag [#allocation4], %s6368_s5 }
 0x84a   : > { %p6738_p1 = pnand %p6747_p7, %p12991_p9 }
 0x84c   : > { %6931 = dma.done.wait (!%p6738_p1), %s6369_s27, 32768  }
 0x84d   : > { %6933 = vsyncadd (!%p6738_p1), %s6369_s27, 4294934528  ;;  %s6378_s21 = scalar_lea.sflag [#allocation9], %s6368_s5 }
 0x84e   : > { %6935 = dma.done.wait (!%p6738_p1), %s6378_s21, 256  }
 0x84f   : > { %6937 = vsyncadd (!%p6738_p1), %s6378_s21, 4294967040  ;;  %p21_p12 = scmp.ge.s32.totalorder %s7037_s24, 10   ;;  %s12992_s12 = smov %s6944_s13 }
 0x850   : > { %s12993_s13 = smov %s6948_s14  ;;  %s12994_s14 = smov %s7066_s17 }
 0x851   : > { %s12995_s15 = smov %s7037_s24  ;;  %23 = sbr.rel (!%p21_p12) target bundleno = 8 (0x8), region = 95 }
 0x858   :  { %6383 = vsyncpa [#allocation3], 1 }
 0x859   :  { %6385 = vsyncpa [#allocation3 + $0x1], 1 }
 0x85a   :  { %6386 = vsyncpa [#allocation6], 1 }
 0x85b   :  { %6388 = vsyncpa [#allocation6 + $0x1], 1 }
 0x85c   :  { %6389 = vsyncpa [#allocation4], 1 }
 0x85d   :  { %6391 = vsyncpa [#allocation4 + $0x1], 1 }
 0x85e   :  { %6392 = vsyncpa [#allocation9], 1 }
 0x85f   :  { %6394 = vsyncpa [#allocation9 + $0x1], 1 }

</bundles_post_ra>
